<compile_context>
chip_gen: v7x
topology: tpu7x:2x2x1
jax: 0.10.0
libtpu: 0.0.40
codegen_flags: <defaults>
</compile_context>

<pallas_src>
import numpy as np
import jax
import jax.numpy as jnp
from jax import lax
from jax.experimental import pallas as pl
from jax.experimental.pallas import tpu as pltpu

BN_EPS = 1e-3  # matches nn.BatchNorm2d(eps=0.001)


def _inception_aux_kernel(x_ref, w0_ref, b0_ref, w1_ref, b1_ref,
                          wfc_ref, bfc_ref, out_ref):
    # x_ref : (TN, 17, 17, Cin) bf16 (NHWC batch tile)
    # w0_ref: (Cin, 128)  bf16   -- 1x1 conv weight, BN0 scale and 1/25 folded in
    # b0_ref: (1, 128)    f32    -- folded BN0 bias
    # w1_ref: (3200, 768) bf16   -- 5x5 conv weight, (kh*5+kw)*128+c rows, BN1 folded
    # b1_ref: (1, 768)    f32
    # wfc_ref:(768, NCpad) bf16, bfc_ref:(1, NCpad) f32
    TN = x_ref.shape[0]
    P = 5  # pooled spatial side == conv1 kernel size (17x17 aux input)

    # ---- avg_pool2d(k=5, s=3), separable. Row sums via contiguous slab loads.
    ph = []
    for i in range(P):
        slab = x_ref[:, pl.ds(3 * i, 5), :, :].astype(jnp.float32)   # (TN,5,17,Cin)
        ph.append(jnp.sum(slab, axis=1))                             # (TN,17,Cin)

    # Column-window sums -> pooled pieces in conv-tap order t = i*5 + j.
    pooled = []
    for i in range(P):
        for j in range(P):
            win = ph[i][:, 3 * j:3 * j + 5, :]                       # (TN,5,Cin)
            pooled.append(jnp.sum(win, axis=1))                      # (TN,Cin)
    # (25*TN, Cin); the 1/25 average and BN0 scale are folded into w0.
    pooled_all = jnp.concatenate(pooled, axis=0).astype(jnp.bfloat16)

    # ---- conv0 (1x1) + BN + ReLU: ONE matmul over all 25 taps ---------------
    h0 = jnp.dot(pooled_all, w0_ref[...], preferred_element_type=jnp.float32)
    h0 = jnp.maximum(h0 + b0_ref[...], 0.0)                          # (25*TN,128)

    # ---- conv1 (5x5 valid on the 5x5 map) + BN + ReLU: ONE big-K matmul -----
    parts = [h0[t * TN:(t + 1) * TN, :] for t in range(P * P)]       # tap-aligned
    h1_lhs = jnp.concatenate(parts, axis=1).astype(jnp.bfloat16)     # (TN, 3200)
    h1 = jnp.dot(h1_lhs, w1_ref[...], preferred_element_type=jnp.float32)
    h1 = jnp.maximum(h1 + b1_ref[...], 0.0)                          # (TN, 768)

    # ---- adaptive_avg_pool2d((1,1)) is identity on a 1x1 map; flatten + fc --
    out = jnp.dot(h1.astype(jnp.bfloat16), wfc_ref[...],
                  preferred_element_type=jnp.float32) + bfc_ref[...]
    out_ref[...] = out.astype(out_ref.dtype)                         # (TN, NCpad)


def _pick_batch_tile(n, batch_tile):
    # Block's second-to-last dims must be 8-aligned or span the full array.
    for tn in range(min(batch_tile, n), 0, -1):
        if n % tn == 0 and (tn % 8 == 0 or tn == n):
            return tn
    return n


def inception_aux_forward(x_nchw, p, *, batch_tile=8):
    """x_nchw: (N, Cin, H, W) float32; p: torch-layout params (see make_params)."""
    N, Cin, H, W = x_nchw.shape
    P = (H - 5) // 3 + 1
    assert P == 5 and (W - 5) // 3 + 1 == 5, \
        "InceptionAux expects a 17x17 aux input (5x5 after avg_pool2d(5, 3))"
    num_classes = p["wfc"].shape[0]
    nc_pad = ((num_classes + 127) // 128) * 128   # lane-dense fc output

    # Fold eval-mode BatchNorm into scale/bias; fold scales (and 1/25) into weights.
    s0 = p["g0"] / jnp.sqrt(p["v0"] + BN_EPS)
    b0 = (p["be0"] - p["m0"] * s0).reshape(1, 128).astype(jnp.float32)
    s1 = p["g1"] / jnp.sqrt(p["v1"] + BN_EPS)
    b1 = (p["be1"] - p["m1"] * s1).reshape(1, 768).astype(jnp.float32)

    # conv0: OIHW (128,Cin,1,1) -> (Cin,128); fold BN0 scale and the 1/25 average.
    w0 = (jnp.transpose(p["w0"][:, :, 0, 0], (1, 0))
          * (s0[None, :] / 25.0)).astype(jnp.bfloat16)
    # conv1: OIHW (768,128,5,5) -> (kh,kw,I,O) -> (3200,768); fold BN1 scale.
    w1 = (jnp.transpose(p["w1"], (2, 3, 1, 0)).reshape(25 * 128, 768)
          * s1[None, :]).astype(jnp.bfloat16)
    # fc: (nc,768) -> (768, nc_pad), zero-padded lanes; bias padded to match.
    wfc = jnp.zeros((768, nc_pad), jnp.float32)
    wfc = wfc.at[:, :num_classes].set(jnp.transpose(p["wfc"], (1, 0))).astype(jnp.bfloat16)
    bfc = jnp.zeros((1, nc_pad), jnp.float32).at[0, :num_classes].set(p["bfc"])

    # NCHW -> NHWC, bf16 (halves HBM traffic for the dominant input bytes).
    x_nhwc = jnp.transpose(x_nchw, (0, 2, 3, 1)).astype(jnp.bfloat16)

    tn = _pick_batch_tile(N, batch_tile)
    grid = (N // tn,)
    const2 = lambda b: (0, 0)   # weights/biases: constant block -> stay resident

    out = pl.pallas_call(
        _inception_aux_kernel,
        out_shape=jax.ShapeDtypeStruct((N, nc_pad), jnp.float32),
        grid=grid,
        in_specs=[
            pl.BlockSpec((tn, H, W, Cin), lambda b: (b, 0, 0, 0)),
            pl.BlockSpec((Cin, 128), const2),
            pl.BlockSpec((1, 128), const2),
            pl.BlockSpec((25 * 128, 768), const2),
            pl.BlockSpec((1, 768), const2),
            pl.BlockSpec((768, nc_pad), const2),
            pl.BlockSpec((1, nc_pad), const2),
        ],
        out_specs=pl.BlockSpec((tn, nc_pad), lambda b: (b, 0)),
        compiler_params=pltpu.CompilerParams(
            dimension_semantics=("parallel",)),  # default scoped VMEM is ample
    )(x_nhwc, w0, b0, w1, b1, wfc, bfc)
    return out[:, :num_classes]


def make_params(key, in_channels, num_classes):
    """Deterministic synthetic params in PyTorch layouts (OIHW conv, (out,in) fc)."""
    ks = jax.random.split(key, 12)
    p = {}
    p["w0"] = 0.1 * jax.random.normal(ks[0], (128, in_channels, 1, 1), jnp.float32)
    p["g0"] = 1.0 + 0.1 * jax.random.normal(ks[1], (128,), jnp.float32)
    p["be0"] = 0.1 * jax.random.normal(ks[2], (128,), jnp.float32)
    p["m0"] = 0.1 * jax.random.normal(ks[3], (128,), jnp.float32)
    p["v0"] = jnp.abs(jax.random.normal(ks[4], (128,), jnp.float32)) + 0.5
    p["w1"] = 0.01 * jax.random.normal(ks[5], (768, 128, 5, 5), jnp.float32)
    p["g1"] = 1.0 + 0.1 * jax.random.normal(ks[6], (768,), jnp.float32)
    p["be1"] = 0.1 * jax.random.normal(ks[7], (768,), jnp.float32)
    p["m1"] = 0.1 * jax.random.normal(ks[8], (768,), jnp.float32)
    p["v1"] = jnp.abs(jax.random.normal(ks[9], (768,), jnp.float32)) + 0.5
    p["wfc"] = 0.001 * jax.random.normal(ks[10], (num_classes, 768), jnp.float32)
    p["bfc"] = 0.001 * jax.random.normal(ks[11], (num_classes,), jnp.float32)
    return p


def reference_forward(x_nchw, p):
    """Pure-JAX/XLA reference reproducing the PyTorch forward (eval-mode BN)."""
    xp = lax.reduce_window(x_nchw, 0.0, lax.add,
                           (1, 1, 5, 5), (1, 1, 3, 3), "VALID") / 25.0

    def basic_conv(h, w, g, be, m, v):
        y = lax.conv_general_dilated(h, w, window_strides=(1, 1), padding="VALID",
                                     dimension_numbers=("NCHW", "OIHW", "NCHW"))
        s = (g / jnp.sqrt(v + BN_EPS)).reshape(1, -1, 1, 1)
        b = (be - m * g / jnp.sqrt(v + BN_EPS)).reshape(1, -1, 1, 1)
        return jnp.maximum(y * s + b, 0.0)

    h = basic_conv(xp, p["w0"], p["g0"], p["be0"], p["m0"], p["v0"])
    h = basic_conv(h, p["w1"], p["g1"], p["be1"], p["m1"], p["v1"])
    h = jnp.mean(h, axis=(2, 3))          # adaptive_avg_pool2d((1,1)) + view
    return h @ p["wfc"].T + p["bfc"]


if __name__ == "__main__":
    key = jax.random.PRNGKey(0)
    kx, kp = jax.random.split(key)

    # Spatial must be 17 so that avg_pool2d(5,3) gives 5x5 and conv1(5x5) gives 1x1.
    # N=16 with batch tile 8 exercises a 2-step parallel grid with resident weights.
    N, Cin, H, W = 16, 8, 17, 17
    num_classes = 10

    x = jax.random.normal(kx, (N, Cin, H, W), jnp.float32)
    params = make_params(kp, Cin, num_classes)

    out = inception_aux_forward(x, params, batch_tile=8)
    out = jax.block_until_ready(out)

    ref = jax.block_until_ready(reference_forward(x, params))

    if not np.allclose(np.asarray(out), np.asarray(ref), rtol=5e-2, atol=1e-2):
        max_diff = float(np.max(np.abs(np.asarray(out) - np.asarray(ref))))
        raise SystemExit(f"mismatch vs reference, max abs diff = {max_diff:e}")

    print("KERNEL_OK")
</pallas_src>

<mosaic_0001>
module attributes {stable_mosaic.version = 11 : i64} {
  func.func @_inception_aux_kernel(%arg0: i32, %arg1: memref<8x17x17x8xbf16, #tpu.memory_space<vmem>>, %arg2: memref<8x128xbf16, #tpu.memory_space<vmem>>, %arg3: memref<1x128xf32, #tpu.memory_space<vmem>>, %arg4: memref<3200x768xbf16, #tpu.memory_space<vmem>>, %arg5: memref<1x768xf32, #tpu.memory_space<vmem>>, %arg6: memref<768x128xbf16, #tpu.memory_space<vmem>>, %arg7: memref<1x128xf32, #tpu.memory_space<vmem>>, %arg8: memref<8x128xf32, #tpu.memory_space<vmem>>) attributes {dimension_semantics = [#tpu.dimension_semantics<parallel>], iteration_bounds = array<i64: 2>, scalar_prefetch = 0 : i64, scratch_operands = 0 : i64, tpu.core_type = #tpu.core_type<tc>, window_params = [{transform_indices = @transform_0, window_bounds = array<i64: 8, 17, 17, 8>}, {pipeline_mode = #tpu.pipeline_mode<synchronous>, transform_indices = @transform_1, window_bounds = array<i64: 8, 128>}, {pipeline_mode = #tpu.pipeline_mode<synchronous>, transform_indices = @transform_2, window_bounds = array<i64: 1, 128>}, {pipeline_mode = #tpu.pipeline_mode<synchronous>, transform_indices = @transform_3, window_bounds = array<i64: 3200, 768>}, {pipeline_mode = #tpu.pipeline_mode<synchronous>, transform_indices = @transform_4, window_bounds = array<i64: 1, 768>}, {pipeline_mode = #tpu.pipeline_mode<synchronous>, transform_indices = @transform_5, window_bounds = array<i64: 768, 128>}, {pipeline_mode = #tpu.pipeline_mode<synchronous>, transform_indices = @transform_6, window_bounds = array<i64: 1, 128>}, {transform_indices = @transform_7, window_bounds = array<i64: 8, 128>}]} {
    %c0 = arith.constant 0 : index
    %c0_0 = arith.constant 0 : index
    %c0_1 = arith.constant 0 : index
    %c0_2 = arith.constant 0 : index
    %0 = vector.load %arg1[%c0, %c0_0, %c0_1, %c0_2] : memref<8x17x17x8xbf16, #tpu.memory_space<vmem>>, vector<8x5x17x8xbf16>
    %1 = arith.extf %0 : vector<8x5x17x8xbf16> to vector<8x5x17x8xf32>
    %cst = arith.constant dense<0.000000e+00> : vector<8x17x8xf32>
    %2 = vector.multi_reduction <add>, %1, %cst [1] : vector<8x5x17x8xf32> to vector<8x17x8xf32>
    %c0_3 = arith.constant 0 : index
    %c3 = arith.constant 3 : index
    %c0_4 = arith.constant 0 : index
    %c0_5 = arith.constant 0 : index
    %3 = vector.load %arg1[%c0_3, %c3, %c0_4, %c0_5] : memref<8x17x17x8xbf16, #tpu.memory_space<vmem>>, vector<8x5x17x8xbf16>
    %4 = arith.extf %3 : vector<8x5x17x8xbf16> to vector<8x5x17x8xf32>
    %cst_6 = arith.constant dense<0.000000e+00> : vector<8x17x8xf32>
    %5 = vector.multi_reduction <add>, %4, %cst_6 [1] : vector<8x5x17x8xf32> to vector<8x17x8xf32>
    %c0_7 = arith.constant 0 : index
    %c6 = arith.constant 6 : index
    %c0_8 = arith.constant 0 : index
    %c0_9 = arith.constant 0 : index
    %6 = vector.load %arg1[%c0_7, %c6, %c0_8, %c0_9] : memref<8x17x17x8xbf16, #tpu.memory_space<vmem>>, vector<8x5x17x8xbf16>
    %7 = arith.extf %6 : vector<8x5x17x8xbf16> to vector<8x5x17x8xf32>
    %cst_10 = arith.constant dense<0.000000e+00> : vector<8x17x8xf32>
    %8 = vector.multi_reduction <add>, %7, %cst_10 [1] : vector<8x5x17x8xf32> to vector<8x17x8xf32>
    %c0_11 = arith.constant 0 : index
    %c9 = arith.constant 9 : index
    %c0_12 = arith.constant 0 : index
    %c0_13 = arith.constant 0 : index
    %9 = vector.load %arg1[%c0_11, %c9, %c0_12, %c0_13] : memref<8x17x17x8xbf16, #tpu.memory_space<vmem>>, vector<8x5x17x8xbf16>
    %10 = arith.extf %9 : vector<8x5x17x8xbf16> to vector<8x5x17x8xf32>
    %cst_14 = arith.constant dense<0.000000e+00> : vector<8x17x8xf32>
    %11 = vector.multi_reduction <add>, %10, %cst_14 [1] : vector<8x5x17x8xf32> to vector<8x17x8xf32>
    %c0_15 = arith.constant 0 : index
    %c12 = arith.constant 12 : index
    %c0_16 = arith.constant 0 : index
    %c0_17 = arith.constant 0 : index
    %12 = vector.load %arg1[%c0_15, %c12, %c0_16, %c0_17] : memref<8x17x17x8xbf16, #tpu.memory_space<vmem>>, vector<8x5x17x8xbf16>
    %13 = arith.extf %12 : vector<8x5x17x8xbf16> to vector<8x5x17x8xf32>
    %cst_18 = arith.constant dense<0.000000e+00> : vector<8x17x8xf32>
    %14 = vector.multi_reduction <add>, %13, %cst_18 [1] : vector<8x5x17x8xf32> to vector<8x17x8xf32>
    %15 = vector.extract_strided_slice %2 {offsets = [0, 0, 0], sizes = [8, 5, 8], strides = [1, 1, 1]} : vector<8x17x8xf32> to vector<8x5x8xf32>
    %cst_19 = arith.constant dense<0.000000e+00> : vector<8x8xf32>
    %16 = vector.multi_reduction <add>, %15, %cst_19 [1] : vector<8x5x8xf32> to vector<8x8xf32>
    %17 = vector.extract_strided_slice %2 {offsets = [0, 3, 0], sizes = [8, 5, 8], strides = [1, 1, 1]} : vector<8x17x8xf32> to vector<8x5x8xf32>
    %cst_20 = arith.constant dense<0.000000e+00> : vector<8x8xf32>
    %18 = vector.multi_reduction <add>, %17, %cst_20 [1] : vector<8x5x8xf32> to vector<8x8xf32>
    %19 = vector.extract_strided_slice %2 {offsets = [0, 6, 0], sizes = [8, 5, 8], strides = [1, 1, 1]} : vector<8x17x8xf32> to vector<8x5x8xf32>
    %cst_21 = arith.constant dense<0.000000e+00> : vector<8x8xf32>
    %20 = vector.multi_reduction <add>, %19, %cst_21 [1] : vector<8x5x8xf32> to vector<8x8xf32>
    %21 = vector.extract_strided_slice %2 {offsets = [0, 9, 0], sizes = [8, 5, 8], strides = [1, 1, 1]} : vector<8x17x8xf32> to vector<8x5x8xf32>
    %cst_22 = arith.constant dense<0.000000e+00> : vector<8x8xf32>
    %22 = vector.multi_reduction <add>, %21, %cst_22 [1] : vector<8x5x8xf32> to vector<8x8xf32>
    %23 = vector.extract_strided_slice %2 {offsets = [0, 12, 0], sizes = [8, 5, 8], strides = [1, 1, 1]} : vector<8x17x8xf32> to vector<8x5x8xf32>
    %cst_23 = arith.constant dense<0.000000e+00> : vector<8x8xf32>
    %24 = vector.multi_reduction <add>, %23, %cst_23 [1] : vector<8x5x8xf32> to vector<8x8xf32>
    %25 = vector.extract_strided_slice %5 {offsets = [0, 0, 0], sizes = [8, 5, 8], strides = [1, 1, 1]} : vector<8x17x8xf32> to vector<8x5x8xf32>
    %cst_24 = arith.constant dense<0.000000e+00> : vector<8x8xf32>
    %26 = vector.multi_reduction <add>, %25, %cst_24 [1] : vector<8x5x8xf32> to vector<8x8xf32>
    %27 = vector.extract_strided_slice %5 {offsets = [0, 3, 0], sizes = [8, 5, 8], strides = [1, 1, 1]} : vector<8x17x8xf32> to vector<8x5x8xf32>
    %cst_25 = arith.constant dense<0.000000e+00> : vector<8x8xf32>
    %28 = vector.multi_reduction <add>, %27, %cst_25 [1] : vector<8x5x8xf32> to vector<8x8xf32>
    %29 = vector.extract_strided_slice %5 {offsets = [0, 6, 0], sizes = [8, 5, 8], strides = [1, 1, 1]} : vector<8x17x8xf32> to vector<8x5x8xf32>
    %cst_26 = arith.constant dense<0.000000e+00> : vector<8x8xf32>
    %30 = vector.multi_reduction <add>, %29, %cst_26 [1] : vector<8x5x8xf32> to vector<8x8xf32>
    %31 = vector.extract_strided_slice %5 {offsets = [0, 9, 0], sizes = [8, 5, 8], strides = [1, 1, 1]} : vector<8x17x8xf32> to vector<8x5x8xf32>
    %cst_27 = arith.constant dense<0.000000e+00> : vector<8x8xf32>
    %32 = vector.multi_reduction <add>, %31, %cst_27 [1] : vector<8x5x8xf32> to vector<8x8xf32>
    %33 = vector.extract_strided_slice %5 {offsets = [0, 12, 0], sizes = [8, 5, 8], strides = [1, 1, 1]} : vector<8x17x8xf32> to vector<8x5x8xf32>
    %cst_28 = arith.constant dense<0.000000e+00> : vector<8x8xf32>
    %34 = vector.multi_reduction <add>, %33, %cst_28 [1] : vector<8x5x8xf32> to vector<8x8xf32>
    %35 = vector.extract_strided_slice %8 {offsets = [0, 0, 0], sizes = [8, 5, 8], strides = [1, 1, 1]} : vector<8x17x8xf32> to vector<8x5x8xf32>
    %cst_29 = arith.constant dense<0.000000e+00> : vector<8x8xf32>
    %36 = vector.multi_reduction <add>, %35, %cst_29 [1] : vector<8x5x8xf32> to vector<8x8xf32>
    %37 = vector.extract_strided_slice %8 {offsets = [0, 3, 0], sizes = [8, 5, 8], strides = [1, 1, 1]} : vector<8x17x8xf32> to vector<8x5x8xf32>
    %cst_30 = arith.constant dense<0.000000e+00> : vector<8x8xf32>
    %38 = vector.multi_reduction <add>, %37, %cst_30 [1] : vector<8x5x8xf32> to vector<8x8xf32>
    %39 = vector.extract_strided_slice %8 {offsets = [0, 6, 0], sizes = [8, 5, 8], strides = [1, 1, 1]} : vector<8x17x8xf32> to vector<8x5x8xf32>
    %cst_31 = arith.constant dense<0.000000e+00> : vector<8x8xf32>
    %40 = vector.multi_reduction <add>, %39, %cst_31 [1] : vector<8x5x8xf32> to vector<8x8xf32>
    %41 = vector.extract_strided_slice %8 {offsets = [0, 9, 0], sizes = [8, 5, 8], strides = [1, 1, 1]} : vector<8x17x8xf32> to vector<8x5x8xf32>
    %cst_32 = arith.constant dense<0.000000e+00> : vector<8x8xf32>
    %42 = vector.multi_reduction <add>, %41, %cst_32 [1] : vector<8x5x8xf32> to vector<8x8xf32>
    %43 = vector.extract_strided_slice %8 {offsets = [0, 12, 0], sizes = [8, 5, 8], strides = [1, 1, 1]} : vector<8x17x8xf32> to vector<8x5x8xf32>
    %cst_33 = arith.constant dense<0.000000e+00> : vector<8x8xf32>
    %44 = vector.multi_reduction <add>, %43, %cst_33 [1] : vector<8x5x8xf32> to vector<8x8xf32>
    %45 = vector.extract_strided_slice %11 {offsets = [0, 0, 0], sizes = [8, 5, 8], strides = [1, 1, 1]} : vector<8x17x8xf32> to vector<8x5x8xf32>
    %cst_34 = arith.constant dense<0.000000e+00> : vector<8x8xf32>
    %46 = vector.multi_reduction <add>, %45, %cst_34 [1] : vector<8x5x8xf32> to vector<8x8xf32>
    %47 = vector.extract_strided_slice %11 {offsets = [0, 3, 0], sizes = [8, 5, 8], strides = [1, 1, 1]} : vector<8x17x8xf32> to vector<8x5x8xf32>
    %cst_35 = arith.constant dense<0.000000e+00> : vector<8x8xf32>
    %48 = vector.multi_reduction <add>, %47, %cst_35 [1] : vector<8x5x8xf32> to vector<8x8xf32>
    %49 = vector.extract_strided_slice %11 {offsets = [0, 6, 0], sizes = [8, 5, 8], strides = [1, 1, 1]} : vector<8x17x8xf32> to vector<8x5x8xf32>
    %cst_36 = arith.constant dense<0.000000e+00> : vector<8x8xf32>
    %50 = vector.multi_reduction <add>, %49, %cst_36 [1] : vector<8x5x8xf32> to vector<8x8xf32>
    %51 = vector.extract_strided_slice %11 {offsets = [0, 9, 0], sizes = [8, 5, 8], strides = [1, 1, 1]} : vector<8x17x8xf32> to vector<8x5x8xf32>
    %cst_37 = arith.constant dense<0.000000e+00> : vector<8x8xf32>
    %52 = vector.multi_reduction <add>, %51, %cst_37 [1] : vector<8x5x8xf32> to vector<8x8xf32>
    %53 = vector.extract_strided_slice %11 {offsets = [0, 12, 0], sizes = [8, 5, 8], strides = [1, 1, 1]} : vector<8x17x8xf32> to vector<8x5x8xf32>
    %cst_38 = arith.constant dense<0.000000e+00> : vector<8x8xf32>
    %54 = vector.multi_reduction <add>, %53, %cst_38 [1] : vector<8x5x8xf32> to vector<8x8xf32>
    %55 = vector.extract_strided_slice %14 {offsets = [0, 0, 0], sizes = [8, 5, 8], strides = [1, 1, 1]} : vector<8x17x8xf32> to vector<8x5x8xf32>
    %cst_39 = arith.constant dense<0.000000e+00> : vector<8x8xf32>
    %56 = vector.multi_reduction <add>, %55, %cst_39 [1] : vector<8x5x8xf32> to vector<8x8xf32>
    %57 = vector.extract_strided_slice %14 {offsets = [0, 3, 0], sizes = [8, 5, 8], strides = [1, 1, 1]} : vector<8x17x8xf32> to vector<8x5x8xf32>
    %cst_40 = arith.constant dense<0.000000e+00> : vector<8x8xf32>
    %58 = vector.multi_reduction <add>, %57, %cst_40 [1] : vector<8x5x8xf32> to vector<8x8xf32>
    %59 = vector.extract_strided_slice %14 {offsets = [0, 6, 0], sizes = [8, 5, 8], strides = [1, 1, 1]} : vector<8x17x8xf32> to vector<8x5x8xf32>
    %cst_41 = arith.constant dense<0.000000e+00> : vector<8x8xf32>
    %60 = vector.multi_reduction <add>, %59, %cst_41 [1] : vector<8x5x8xf32> to vector<8x8xf32>
    %61 = vector.extract_strided_slice %14 {offsets = [0, 9, 0], sizes = [8, 5, 8], strides = [1, 1, 1]} : vector<8x17x8xf32> to vector<8x5x8xf32>
    %cst_42 = arith.constant dense<0.000000e+00> : vector<8x8xf32>
    %62 = vector.multi_reduction <add>, %61, %cst_42 [1] : vector<8x5x8xf32> to vector<8x8xf32>
    %63 = vector.extract_strided_slice %14 {offsets = [0, 12, 0], sizes = [8, 5, 8], strides = [1, 1, 1]} : vector<8x17x8xf32> to vector<8x5x8xf32>
    %cst_43 = arith.constant dense<0.000000e+00> : vector<8x8xf32>
    %64 = vector.multi_reduction <add>, %63, %cst_43 [1] : vector<8x5x8xf32> to vector<8x8xf32>
    %65 = tpu.concatenate %16, %18, %20, %22, %24, %26, %28, %30, %32, %34, %36, %38, %40, %42, %44, %46 in 0 : vector<8x8xf32>, vector<8x8xf32>, vector<8x8xf32>, vector<8x8xf32>, vector<8x8xf32>, vector<8x8xf32>, vector<8x8xf32>, vector<8x8xf32>, vector<8x8xf32>, vector<8x8xf32>, vector<8x8xf32>, vector<8x8xf32>, vector<8x8xf32>, vector<8x8xf32>, vector<8x8xf32>, vector<8x8xf32> -> vector<128x8xf32>
    %66 = tpu.concatenate %48, %50, %52, %54, %56, %58, %60, %62, %64 in 0 : vector<8x8xf32>, vector<8x8xf32>, vector<8x8xf32>, vector<8x8xf32>, vector<8x8xf32>, vector<8x8xf32>, vector<8x8xf32>, vector<8x8xf32>, vector<8x8xf32> -> vector<72x8xf32>
    %67 = tpu.concatenate %65, %66 in 0 : vector<128x8xf32>, vector<72x8xf32> -> vector<200x8xf32>
    %68 = arith.truncf %67 : vector<200x8xf32> to vector<200x8xbf16>
    %c0_44 = arith.constant 0 : index
    %c0_45 = arith.constant 0 : index
    %69 = vector.load %arg2[%c0_44, %c0_45] : memref<8x128xbf16, #tpu.memory_space<vmem>>, vector<8x128xbf16>
    %cst_46 = arith.constant dense<0.000000e+00> : vector<200x128xf32>
    %70 = tpu.matmul %68, %69, %cst_46 {dimension_numbers = #tpu.dot_dimension_numbers<[1], [0], [0], [1], [0, 0, 1, 1], [], []>} : vector<200x8xbf16>, vector<8x128xbf16>, vector<200x128xf32> -> vector<200x128xf32>
    %c0_47 = arith.constant 0 : index
    %c0_48 = arith.constant 0 : index
    %71 = vector.load %arg3[%c0_47, %c0_48] : memref<1x128xf32, #tpu.memory_space<vmem>>, vector<1x128xf32>
    %72 = vector.broadcast %71 : vector<1x128xf32> to vector<200x128xf32>
    %73 = arith.addf %70, %72 : vector<200x128xf32>
    %cst_49 = arith.constant 0.000000e+00 : f32
    %74 = vector.broadcast %cst_49 : f32 to vector<200x128xf32>
    %75 = arith.maximumf %73, %74 : vector<200x128xf32>
    %76 = vector.extract_strided_slice %75 {offsets = [0, 0], sizes = [8, 128], strides = [1, 1]} : vector<200x128xf32> to vector<8x128xf32>
    %77 = vector.extract_strided_slice %75 {offsets = [8, 0], sizes = [8, 128], strides = [1, 1]} : vector<200x128xf32> to vector<8x128xf32>
    %78 = vector.extract_strided_slice %75 {offsets = [16, 0], sizes = [8, 128], strides = [1, 1]} : vector<200x128xf32> to vector<8x128xf32>
    %79 = vector.extract_strided_slice %75 {offsets = [24, 0], sizes = [8, 128], strides = [1, 1]} : vector<200x128xf32> to vector<8x128xf32>
    %80 = vector.extract_strided_slice %75 {offsets = [32, 0], sizes = [8, 128], strides = [1, 1]} : vector<200x128xf32> to vector<8x128xf32>
    %81 = vector.extract_strided_slice %75 {offsets = [40, 0], sizes = [8, 128], strides = [1, 1]} : vector<200x128xf32> to vector<8x128xf32>
    %82 = vector.extract_strided_slice %75 {offsets = [48, 0], sizes = [8, 128], strides = [1, 1]} : vector<200x128xf32> to vector<8x128xf32>
    %83 = vector.extract_strided_slice %75 {offsets = [56, 0], sizes = [8, 128], strides = [1, 1]} : vector<200x128xf32> to vector<8x128xf32>
    %84 = vector.extract_strided_slice %75 {offsets = [64, 0], sizes = [8, 128], strides = [1, 1]} : vector<200x128xf32> to vector<8x128xf32>
    %85 = vector.extract_strided_slice %75 {offsets = [72, 0], sizes = [8, 128], strides = [1, 1]} : vector<200x128xf32> to vector<8x128xf32>
    %86 = vector.extract_strided_slice %75 {offsets = [80, 0], sizes = [8, 128], strides = [1, 1]} : vector<200x128xf32> to vector<8x128xf32>
    %87 = vector.extract_strided_slice %75 {offsets = [88, 0], sizes = [8, 128], strides = [1, 1]} : vector<200x128xf32> to vector<8x128xf32>
    %88 = vector.extract_strided_slice %75 {offsets = [96, 0], sizes = [8, 128], strides = [1, 1]} : vector<200x128xf32> to vector<8x128xf32>
    %89 = vector.extract_strided_slice %75 {offsets = [104, 0], sizes = [8, 128], strides = [1, 1]} : vector<200x128xf32> to vector<8x128xf32>
    %90 = vector.extract_strided_slice %75 {offsets = [112, 0], sizes = [8, 128], strides = [1, 1]} : vector<200x128xf32> to vector<8x128xf32>
    %91 = vector.extract_strided_slice %75 {offsets = [120, 0], sizes = [8, 128], strides = [1, 1]} : vector<200x128xf32> to vector<8x128xf32>
    %92 = vector.extract_strided_slice %75 {offsets = [128, 0], sizes = [8, 128], strides = [1, 1]} : vector<200x128xf32> to vector<8x128xf32>
    %93 = vector.extract_strided_slice %75 {offsets = [136, 0], sizes = [8, 128], strides = [1, 1]} : vector<200x128xf32> to vector<8x128xf32>
    %94 = vector.extract_strided_slice %75 {offsets = [144, 0], sizes = [8, 128], strides = [1, 1]} : vector<200x128xf32> to vector<8x128xf32>
    %95 = vector.extract_strided_slice %75 {offsets = [152, 0], sizes = [8, 128], strides = [1, 1]} : vector<200x128xf32> to vector<8x128xf32>
    %96 = vector.extract_strided_slice %75 {offsets = [160, 0], sizes = [8, 128], strides = [1, 1]} : vector<200x128xf32> to vector<8x128xf32>
    %97 = vector.extract_strided_slice %75 {offsets = [168, 0], sizes = [8, 128], strides = [1, 1]} : vector<200x128xf32> to vector<8x128xf32>
    %98 = vector.extract_strided_slice %75 {offsets = [176, 0], sizes = [8, 128], strides = [1, 1]} : vector<200x128xf32> to vector<8x128xf32>
    %99 = vector.extract_strided_slice %75 {offsets = [184, 0], sizes = [8, 128], strides = [1, 1]} : vector<200x128xf32> to vector<8x128xf32>
    %100 = vector.extract_strided_slice %75 {offsets = [192, 0], sizes = [8, 128], strides = [1, 1]} : vector<200x128xf32> to vector<8x128xf32>
    %101 = tpu.concatenate %76, %77, %78, %79, %80, %81, %82, %83, %84, %85, %86, %87, %88, %89, %90, %91 in 1 : vector<8x128xf32>, vector<8x128xf32>, vector<8x128xf32>, vector<8x128xf32>, vector<8x128xf32>, vector<8x128xf32>, vector<8x128xf32>, vector<8x128xf32>, vector<8x128xf32>, vector<8x128xf32>, vector<8x128xf32>, vector<8x128xf32>, vector<8x128xf32>, vector<8x128xf32>, vector<8x128xf32>, vector<8x128xf32> -> vector<8x2048xf32>
    %102 = tpu.concatenate %92, %93, %94, %95, %96, %97, %98, %99, %100 in 1 : vector<8x128xf32>, vector<8x128xf32>, vector<8x128xf32>, vector<8x128xf32>, vector<8x128xf32>, vector<8x128xf32>, vector<8x128xf32>, vector<8x128xf32>, vector<8x128xf32> -> vector<8x1152xf32>
    %103 = tpu.concatenate %101, %102 in 1 : vector<8x2048xf32>, vector<8x1152xf32> -> vector<8x3200xf32>
    %104 = arith.truncf %103 : vector<8x3200xf32> to vector<8x3200xbf16>
    %c0_50 = arith.constant 0 : index
    %c0_51 = arith.constant 0 : index
    %105 = vector.load %arg4[%c0_50, %c0_51] : memref<3200x768xbf16, #tpu.memory_space<vmem>>, vector<3200x768xbf16>
    %cst_52 = arith.constant dense<0.000000e+00> : vector<8x768xf32>
    %106 = tpu.matmul %104, %105, %cst_52 {dimension_numbers = #tpu.dot_dimension_numbers<[1], [0], [0], [1], [0, 0, 1, 1], [], []>} : vector<8x3200xbf16>, vector<3200x768xbf16>, vector<8x768xf32> -> vector<8x768xf32>
    %c0_53 = arith.constant 0 : index
    %c0_54 = arith.constant 0 : index
    %107 = vector.load %arg5[%c0_53, %c0_54] : memref<1x768xf32, #tpu.memory_space<vmem>>, vector<1x768xf32>
    %108 = vector.broadcast %107 : vector<1x768xf32> to vector<8x768xf32>
    %109 = arith.addf %106, %108 : vector<8x768xf32>
    %cst_55 = arith.constant 0.000000e+00 : f32
    %110 = vector.broadcast %cst_55 : f32 to vector<8x768xf32>
    %111 = arith.maximumf %109, %110 : vector<8x768xf32>
    %112 = arith.truncf %111 : vector<8x768xf32> to vector<8x768xbf16>
    %c0_56 = arith.constant 0 : index
    %c0_57 = arith.constant 0 : index
    %113 = vector.load %arg6[%c0_56, %c0_57] : memref<768x128xbf16, #tpu.memory_space<vmem>>, vector<768x128xbf16>
    %cst_58 = arith.constant dense<0.000000e+00> : vector<8x128xf32>
    %114 = tpu.matmul %112, %113, %cst_58 {dimension_numbers = #tpu.dot_dimension_numbers<[1], [0], [0], [1], [0, 0, 1, 1], [], []>} : vector<8x768xbf16>, vector<768x128xbf16>, vector<8x128xf32> -> vector<8x128xf32>
    %c0_59 = arith.constant 0 : index
    %c0_60 = arith.constant 0 : index
    %115 = vector.load %arg7[%c0_59, %c0_60] : memref<1x128xf32, #tpu.memory_space<vmem>>, vector<1x128xf32>
    %116 = vector.broadcast %115 : vector<1x128xf32> to vector<8x128xf32>
    %117 = arith.addf %114, %116 : vector<8x128xf32>
    %c0_61 = arith.constant 0 : index
    %c0_62 = arith.constant 0 : index
    %118 = vector.load %arg8[%c0_61, %c0_62] : memref<8x128xf32, #tpu.memory_space<vmem>>, vector<8x128xf32>
    tpu.vector_store %arg8[%c0_61, %c0_62], %117 {strides = array<i32>} : memref<8x128xf32, #tpu.memory_space<vmem>>, vector<8x128xf32>,
    return
  }
  func.func @transform_0(%arg0: i32) -> (i32, i32, i32, i32) {
    %c0_i32 = arith.constant 0 : i32
    %c0_i32_0 = arith.constant 0 : i32
    %c0_i32_1 = arith.constant 0 : i32
    %c0_i32_2 = arith.constant 0 : i32
    return %arg0, %c0_i32, %c0_i32_0, %c0_i32_1 : i32, i32, i32, i32
  }
  func.func @transform_1(%arg0: i32) -> (i32, i32) {
    %c0_i32 = arith.constant 0 : i32
    %c0_i32_0 = arith.constant 0 : i32
    %c0_i32_1 = arith.constant 0 : i32
    return %c0_i32, %c0_i32_0 : i32, i32
  }
  func.func @transform_2(%arg0: i32) -> (i32, i32) {
    %c0_i32 = arith.constant 0 : i32
    %c0_i32_0 = arith.constant 0 : i32
    %c0_i32_1 = arith.constant 0 : i32
    return %c0_i32, %c0_i32_0 : i32, i32
  }
  func.func @transform_3(%arg0: i32) -> (i32, i32) {
    %c0_i32 = arith.constant 0 : i32
    %c0_i32_0 = arith.constant 0 : i32
    %c0_i32_1 = arith.constant 0 : i32
    return %c0_i32, %c0_i32_0 : i32, i32
  }
  func.func @transform_4(%arg0: i32) -> (i32, i32) {
    %c0_i32 = arith.constant 0 : i32
    %c0_i32_0 = arith.constant 0 : i32
    %c0_i32_1 = arith.constant 0 : i32
    return %c0_i32, %c0_i32_0 : i32, i32
  }
  func.func @transform_5(%arg0: i32) -> (i32, i32) {
    %c0_i32 = arith.constant 0 : i32
    %c0_i32_0 = arith.constant 0 : i32
    %c0_i32_1 = arith.constant 0 : i32
    return %c0_i32, %c0_i32_0 : i32, i32
  }
  func.func @transform_6(%arg0: i32) -> (i32, i32) {
    %c0_i32 = arith.constant 0 : i32
    %c0_i32_0 = arith.constant 0 : i32
    %c0_i32_1 = arith.constant 0 : i32
    return %c0_i32, %c0_i32_0 : i32, i32
  }
  func.func @transform_7(%arg0: i32) -> (i32, i32) {
    %c0_i32 = arith.constant 0 : i32
    %c0_i32_0 = arith.constant 0 : i32
    return %arg0, %c0_i32 : i32, i32
  }
}

</mosaic_0001>

<bundles_post_ra>
// kernel: tpu_custom_call.1
= control target key start
LH: loop header
LB: loop body
LE: loop exit
PB: predicated region body
PF: predicated region fallthrough
CT: control target
= control target key end

     0   :  { %s24353_s0 = inlined_call_operand.vmem [shape: bf16[16,17,17,8], index: 0, kind: input, shape index: {}]   ;;  %s24354_s1 = inlined_call_operand.hbm [shape: bf16[8,128], index: 1, kind: input, shape index: {}]   ;;  %s24355_s2 = inlined_call_operand.hbm [shape: f32[1,128], index: 2, kind: input, shape index: {}]   ;;  %s24356_s3 = inlined_call_operand.hbm [shape: bf16[3200,768], index: 3, kind: input, shape index: {}]   ;;  %s24357_s4 = inlined_call_operand.hbm [shape: f32[1,768], index: 4, kind: input, shape index: {}]   ;;  %s24358_s5 = inlined_call_operand.hbm [shape: bf16[768,128], index: 5, kind: input, shape index: {}]   ;;  %s24359_s6 = inlined_call_operand.hbm [shape: f32[1,128], index: 6, kind: input, shape index: {}]   ;;  %s24360_s7 = inlined_call_operand.hbm [shape: f32[16,128], index: 7, kind: output, shape index: {}]  }
   0x1   :  { %24395 = sst [smem:[#allocation34_spill]] %s24354_s1 }
   0x2   :  { %24396 = sst [smem:[#allocation35_spill]] %s24355_s2 }
   0x3   :  { %12 = vsyncpa [#allocation3], 0 }
   0x4   :  { %13 = vsyncpa [#allocation6], 0 }
   0x5   :  { %14 = vsyncpa [#allocation9], 0 }
   0x6   :  { %15 = vsyncpa [#allocation12], 0 }
   0x7   :  { %16 = vsyncpa [#allocation4], 0 }
   0x8   :  { %18 = vsyncpa [#allocation4 + $0x1], 0  ;;  %s19604_s24 = smov 0   ;;  %s19606_s25 = smov 0  }
   0x9   :  { %s19608_s26 = smov 0   ;;  %s19610_s27 = smov 0  }
   0xa LB: > { %s19625_s28 = sadd.s32 4294967295, %s19548_s27   ;;  %s14796_s29 = sadd.s32 4294967294, %s19548_s27   ;;  %s19548_s27 = sphi %s19610_s27, %s24712_s27   ;;  %s19544_s26 = sphi %s19608_s26, %s24711_s26   ;;  %s19540_s25 = sphi %s19606_s25, %s24710_s25   ;;  %s19536_s24 = sphi %s19604_s24, %s24709_s24  }
   0xb   : > { %s19629_s30 = sadd.s32 1, %s19548_s27   ;;  %s183_s8 = sadd.s32 1, %s19544_s26 }
   0xc   : > { %s180_s9 = ssub.s32 %s19548_s27, %s19629_s30  ;;  %p193_p0 = scmp.ne.s32.totalorder %s19544_s26, %s19540_s25 }
   0xd   : > { %p181_p1 = scmp.eq.s32.totalorder %s180_s9, 0  ;;  %p194_p2 = scmp.eq.s32.totalorder %s19625_s28, 1 }
   0xe   : > { %p199_p3 = scmp.ne.s32.totalorder %s19540_s25, %s19536_s24  ;;  %p200_p4 = scmp.eq.s32.totalorder %s14796_s29, 1 }
   0xf   : > { %s19640_s10 = scalar_select %p181_p1, %s19544_s26, %s183_s8  }
  0x10   : > { %p19642_p5 = por %p194_p2, %p193_p0  ;;  %p19646_p6 = por %p200_p4, %p199_p3 }
  0x11   : > { %24397 = sst [smem:[#allocation19_spill]] %s19640_s10  ;;  %p14797_p7 = scmp.ge.s32.totalorder %s19548_s27, 1 }
  0x12   : > { %s24398_s11 = scalar_select %p19642_p5, 1, 0 }
  0x13   : > { %s24399_s12 = scalar_select %p19646_p6, 1, 0 }
  0x14   : > { %p207_p8 = scmp.lt.s32.totalorder %s19548_s27, 3  ;;  %p24361_p9 = scmp.eq.s32.totalorder %s19625_s28, 0 }
  0x15   : > { %s19550_s14 = smov [#allocation5]   ;;  %s19551_s16 = smov [#allocation8]  }
  0x16   : > { %p19653_p10 = pnand %p14797_p7, %p207_p8  ;;  %s231_s15 = sshll.u32 %s19550_s14, 4  ;;  %s232_s15 = int_to_ptr.vmem [resolvable:$true] %s231_s15 }
  0x17   : > { %s255_s17 = sshll.u32 %s19551_s16, 4  ;;  %s19552_s19 = smov [#allocation2]   ;;  %s19665_s17 = int_to_ptr.vmem [resolvable:$true] %s255_s17 }
  0x18   : > { %s24400_s13 = scalar_select %p19653_p10, 1, 0 }
  0x19   : > { %p17370_p11 = pneg %p19653_p10  ;;  %s220_s20 = sshll.u32 %s19552_s19, 4  ;;  %s19667_s20 = int_to_ptr.vmem [resolvable:$true] %s220_s20 }
  0x1a   : > { %s24402_s2 = sld [smem:[#allocation35_spill]] }
  0x1b   : > { %p19661_p12 = pnand %p24361_p9, %p17370_p11 }
  0x1d   : > { %p19677_p0 = pneg %p19661_p12 }
  0x20   : > { %s19302_s23 = scalar_lea.hbm %s24402_s2, 16 }
  0x21   : > { %p19303_p13 = scmp.ne.s32.totalorder %s24402_s2, %s19302_s23  ;;  %p19309_p3 = scmp.lt.u32.totalorder %s19302_s23, %s24402_s2 }
  0x23   : > { %p19305_p1 = pnand %p19677_p0, %p19303_p13 }
  0x25   : > { %p19306_p2 = pneg %p19305_p1 }
  0x27   : > { %p19311_p4 = pnand %p19309_p3, %p19306_p2 }
  0x29   : > { %19314 = shalt.err (!%p19311_p4)
}
  0x2a   : > { %s19315_s19 = scalar_lea.vmem %s232_s15, 16  ;;  %s19322_s21 = scalar_lea.vmem %s232_s15, 32 }
  0x2b   : > { %p19316_p7 = scmp.ne.s32.totalorder %s232_s15, %s19315_s19  ;;  %p19323_p9 = scmp.lt.s32.totalorder %s232_s15, %s232_s15 }
  0x2c   : > { %p19324_p6 = scmp.lt.s32.totalorder %s19322_s21, %s19315_s19 }
  0x2d   : > { %p19318_p8 = pnand %p19316_p7, %p19677_p0 }
  0x2e   : > { %p19325_p5 = por %p19324_p6, %p19323_p9 }
  0x2f   : > { %p19319_p11 = pneg %p19318_p8 }
  0x31   : > { %p19326_p10 = pnand %p19325_p5, %p19319_p11 }
  0x33   : > { %19329 = shalt.err (!%p19326_p10)
}
  0x34   : > { %17376 = dma.hbm_to_vmem [thread:$0]  (!%p19661_p12), %s24402_s2, 16, %s232_s15, [#allocation6]  }
  0x35   : > { %s19330_s14 = scalar_lea.hbm %s24357_s4, 96 }
  0x36   : > { %p19331_p13 = scmp.ne.s32.totalorder %s24357_s4, %s19330_s14  ;;  %p19337_p5 = scmp.lt.u32.totalorder %s19330_s14, %s24357_s4 }
  0x38   : > { %p19333_p1 = pnand %p19331_p13, %p19677_p0 }
  0x3a   : > { %p19334_p6 = pneg %p19333_p1 }
  0x3c   : > { %p19339_p9 = pnand %p19337_p5, %p19334_p6 }
  0x3e   : > { %19342 = shalt.err (!%p19339_p9)
}
  0x3f   : > { %s19343_s15 = scalar_lea.vmem %s19665_s17, 96  ;;  %p19351_p4 = scmp.lt.s32.totalorder %s19665_s17, %s19665_s17 }
  0x40   : > { %p19344_p10 = scmp.ne.s32.totalorder %s19665_s17, %s19343_s15  ;;  %p19352_p7 = scmp.lt.s32.totalorder %s19343_s15, %s19343_s15 }
  0x42   : > { %p19346_p2 = pnand %p19344_p10, %p19677_p0  ;;  %p19353_p8 = por %p19352_p7, %p19351_p4 }
  0x44   : > { %p19347_p3 = pneg %p19346_p2 }
  0x46   : > { %p19354_p11 = pnand %p19353_p8, %p19347_p3 }
  0x48   : > { %19357 = shalt.err (!%p19354_p11)
}
  0x49   : > { %17382 = dma.hbm_to_vmem [thread:$0]  (!%p19661_p12), %s24357_s4, 96, %s19665_s17, [#allocation9]  }
  0x4a   : > { %s24404_s1 = sld [smem:[#allocation34_spill]] }
  0x50   : > { %s19358_s8 = scalar_lea.hbm %s24404_s1, 64 }
  0x51   : > { %p19359_p13 = scmp.ne.s32.totalorder %s24404_s1, %s19358_s8  ;;  %p19365_p5 = scmp.lt.u32.totalorder %s19358_s8, %s24404_s1 }
  0x53   : > { %p19361_p1 = pnand %p19359_p13, %p19677_p0 }
  0x55   : > { %p19362_p6 = pneg %p19361_p1 }
  0x57   : > { %p19367_p9 = pnand %p19365_p5, %p19362_p6 }
  0x59   : > { %19370 = shalt.err (!%p19367_p9)
}
  0x5a   : > { %s19371_s17 = scalar_lea.vmem %s19667_s20, 64  ;;  %p19379_p4 = scmp.lt.s32.totalorder %s19667_s20, %s19667_s20 }
  0x5b   : > { %p19372_p10 = scmp.ne.s32.totalorder %s19667_s20, %s19371_s17  ;;  %p19380_p7 = scmp.lt.s32.totalorder %s19371_s17, %s19371_s17 }
  0x5d   : > { %p19374_p2 = pnand %p19372_p10, %p19677_p0  ;;  %p19381_p8 = por %p19380_p7, %p19379_p4 }
  0x5f   : > { %p19375_p3 = pneg %p19374_p2 }
  0x61   : > { %p19382_p11 = pnand %p19381_p8, %p19375_p3 }
  0x63   : > { %19385 = shalt.err (!%p19382_p11)
}
  0x64   : > { %17373 = dma.hbm_to_vmem [thread:$0]  (!%p19661_p12), %s24404_s1, 64, %s19667_s20, [#allocation3]  }
  0x65   : > { %s19553_s22 = smov [#allocation7]   ;;  %s19386_s14 = scalar_lea.hbm %s24356_s3, 153600 }
  0x66   : > { %s241_s29 = sshll.u32 %s19553_s22, 4  ;;  %p19387_p13 = scmp.ne.s32.totalorder %s24356_s3, %s19386_s14  ;;  %s242_s29 = int_to_ptr.vmem [resolvable:$true] %s241_s29 }
  0x67   : > { %p19393_p5 = scmp.lt.u32.totalorder %s19386_s14, %s24356_s3 }
  0x68   : > { %p19389_p1 = pnand %p19387_p13, %p19677_p0 }
  0x6a   : > { %p19390_p6 = pneg %p19389_p1 }
  0x6c   : > { %p19395_p9 = pnand %p19393_p5, %p19390_p6 }
  0x6e   : > { %19398 = shalt.err (!%p19395_p9)
}
  0x6f   : > { %s19399_s20 = scalar_lea.vmem %s242_s29, 153600  ;;  %p19407_p4 = scmp.lt.s32.totalorder %s242_s29, %s242_s29 }
  0x70   : > { %p19400_p10 = scmp.ne.s32.totalorder %s242_s29, %s19399_s20  ;;  %p19408_p7 = scmp.lt.s32.totalorder %s19399_s20, %s19399_s20 }
  0x72   : > { %p19402_p2 = pnand %p19400_p10, %p19677_p0  ;;  %p19409_p8 = por %p19408_p7, %p19407_p4 }
  0x74   : > { %p19403_p3 = pneg %p19402_p2 }
  0x76   : > { %p19410_p11 = pnand %p19409_p8, %p19403_p3 }
  0x78   : > { %19413 = shalt.err (!%p19410_p11)
}
  0x79   : > { %s19554_s15 = smov 384   ;;  %s19555_s10 = smov 24  }
  0x7a   : > { %17379 = dma.hbm_to_vmem [thread:$0]  (!%p19661_p12), %s24356_s3, 153600, %s242_s29, [#allocation6], %s19554_s15, %s19554_s15, %s19555_s10  }
  0x7b   : > { %s19556_s8 = smov [#allocation10]   ;;  %s19414_s21 = scalar_lea.hbm %s24358_s5, 6144 }
  0x7c   : > { %s265_s14 = sshll.u32 %s19556_s8, 4  ;;  %p19415_p13 = scmp.ne.s32.totalorder %s24358_s5, %s19414_s21  ;;  %s266_s14 = int_to_ptr.vmem [resolvable:$true] %s265_s14 }
  0x7d   : > { %p19421_p5 = scmp.lt.u32.totalorder %s19414_s21, %s24358_s5 }
  0x7e   : > { %p19417_p1 = pnand %p19415_p13, %p19677_p0 }
  0x80   : > { %p19418_p6 = pneg %p19417_p1 }
  0x82   : > { %p19423_p9 = pnand %p19421_p5, %p19418_p6 }
  0x84   : > { %19426 = shalt.err (!%p19423_p9)
}
  0x85   : > { %s19427_s29 = scalar_lea.vmem %s266_s14, 6144  ;;  %p19435_p4 = scmp.lt.s32.totalorder %s266_s14, %s266_s14 }
  0x86   : > { %p19428_p10 = scmp.ne.s32.totalorder %s266_s14, %s19427_s29  ;;  %p19436_p7 = scmp.lt.s32.totalorder %s19427_s29, %s19427_s29 }
  0x88   : > { %p19430_p2 = pnand %p19428_p10, %p19677_p0  ;;  %p19437_p8 = por %p19436_p7, %p19435_p4 }
  0x8a   : > { %p19431_p3 = pneg %p19430_p2 }
  0x8c   : > { %p19438_p11 = pnand %p19437_p8, %p19431_p3 }
  0x8e   : > { %19441 = shalt.err (!%p19438_p11)
}
  0x8f   : > { %s19557_s15 = smov 64   ;;  %s19558_s10 = smov 4  }
  0x90   : > { %17385 = dma.hbm_to_vmem [thread:$0]  (!%p19661_p12), %s24358_s5, 6144, %s266_s14, [#allocation9], %s19557_s15, %s19557_s15, %s19558_s10  }
  0x91   : > { %s19559_s22 = smov [#allocation11]   ;;  %s19442_s19 = scalar_lea.hbm %s24359_s6, 16 }
  0x92   : > { %s279_s23 = sshll.u32 %s19559_s22, 4  ;;  %p19443_p13 = scmp.ne.s32.totalorder %s24359_s6, %s19442_s19  ;;  %s280_s23 = int_to_ptr.vmem [resolvable:$true] %s279_s23 }
  0x93   : > { %p19449_p5 = scmp.lt.u32.totalorder %s19442_s19, %s24359_s6 }
  0x94   : > { %p19445_p1 = pnand %p19443_p13, %p19677_p0 }
  0x96   : > { %p19446_p6 = pneg %p19445_p1 }
  0x98   : > { %p19451_p9 = pnand %p19449_p5, %p19446_p6 }
  0x9a   : > { %19454 = shalt.err (!%p19451_p9)
}
  0x9b   : > { %s19455_s14 = scalar_lea.vmem %s280_s23, 16  ;;  %s19462_s15 = scalar_lea.vmem %s280_s23, 32 }
  0x9c   : > { %p19456_p10 = scmp.ne.s32.totalorder %s280_s23, %s19455_s14  ;;  %p19463_p4 = scmp.lt.s32.totalorder %s280_s23, %s280_s23 }
  0x9d   : > { %p19464_p7 = scmp.lt.s32.totalorder %s19462_s15, %s19455_s14 }
  0x9e   : > { %p19458_p2 = pnand %p19456_p10, %p19677_p0 }
  0x9f   : > { %p19465_p8 = por %p19464_p7, %p19463_p4 }
  0xa0   : > { %p19459_p3 = pneg %p19458_p2 }
  0xa2   : > { %p19466_p11 = pnand %p19465_p8, %p19459_p3 }
  0xa4   : > { %19469 = shalt.err (!%p19466_p11)
}
  0xa5   : > { %17388 = dma.hbm_to_vmem [thread:$0]  (!%p19661_p12), %s24359_s6, 16, %s280_s23, [#allocation12]  }
  0xa6   : > { %p24405_p13 = scmp.ne.s32.totalorder %s24400_s13, 0 }
  0xa8   : > { %302 = sbr.rel (%p24405_p13) target bundleno = 2772 (0xad4), region = 48 }
  0xaf   : > { %p24406_p1 = scmp.eq.s32.totalorder %s19625_s28, 0 }
  0xb1   : > { %19515 = dma.done.wait (%p24406_p1), [#allocation3], 64   ;;  %p24407_p0 = pmov %p24406_p1 }
  0xb3   : > { %19517 = vsyncadd (%p24407_p0), [#allocation3], 4294967232  ;;  %p24408_p6 = pmov %p24407_p0 }
  0xb4   : > { %p24409_p5 = pmov %p24407_p0 }
  0xb5   : > { %19519 = dma.done.wait (%p24408_p6), [#allocation6], 153616  }
  0xb6   : > { %19521 = vsyncadd (%p24409_p5), [#allocation6], 4294813680  ;;  %p24410_p9 = pmov %p24407_p0 }
  0xb7   : > { %p24411_p12 = pmov %p24407_p0 }
  0xb8   : > { %19523 = dma.done.wait (%p24410_p9), [#allocation9], 6240  }
  0xb9   : > { %19525 = vsyncadd (%p24411_p12), [#allocation9], 4294961056  ;;  %p24412_p10 = pmov %p24407_p0 }
  0xba   : > { %p24413_p2 = pmov %p24407_p0 }
  0xbb   : > { %19527 = dma.done.wait (%p24412_p10), [#allocation12], 16  }
  0xbc   : > { %19529 = vsyncadd (%p24413_p2), [#allocation12], 4294967280  ;;  %s14813_s13 = sshll.u32 %s19625_s28, 3  ;;  %v24364_v0 = vmov 0.0   ;;  %vm19561_vm0 = vmmov 0   ;;  %vm2963_vm1 = vcmask 1043456  }
  0xbd   : > { %17141 = vmatprep.subr.bf16.mxu0 %v24364_v0  ;;  %17143 = vmatprep.mubr.msk.bf16.mxu0 %vm19561_vm0, %v24364_v0  ;;  %p356_p3 = scmp.lt.s32.totalorder %s14813_s13, 15  ;;  %v5072_v1 = vld [vmem:[#allocation2] sm:$0xf]  ;;  %vm603_vm2 = vcmask 64512   ;;  %vm2649_vm3 = vcmask 61440   ;;  %vm4660_vm4 = vcmask 1041409  }
  0xbe   : > { %v5120_v2 = vsel %vm2963_vm1, %v5072_v1, 0  ;;  %vm4662_vm5 = vcmask 1042434   ;;  %vm4664_vm6 = vcmask 1043459   ;;  %vm4666_vm7 = vcmask 1044484   ;;  %s352_s23 = sand.u32 1, %s19540_s25   ;;  %s16559_s16 = sshll.u32 %s19625_s28, 7 }
  0xbf   : > { %s24714_s13 = smov (!%p356_p3, %s14813_s13), 15  ;;  %17142 = vmatpush3.bf16.msra.mxu0 %v5120_v2  ;;  %vm4668_vm8 = vcmask 1045509   ;;  %vm4670_vm9 = vcmask 1046534   ;;  %vm4672_vm10 = vcmask 1047559   ;;  %vm2794_vm11 = vcmask 1041408   ;;  %s14812_s8 = sshll.u32 %s352_s23, 3 }
  0xc0   : > { %s17343_s18 = smul.u32 204, %s24714_s13  ;;  %vm622_vm12 = vcmask 57344   ;;  %s354_s19 = scalar_lea.vmem [#allocation13], %s14812_s8 }
  0xc1   : > { %s14677_s21 = sshll.u32 %s354_s19, 4  ;;  %s24311_s29 = scalar_lea.hbm %s24360_s7, %s16559_s16  ;;  %s24313_s21 = int_to_ptr.vmem [resolvable:$true] %s14677_s21 }
  0xc2   : > { %s19818_s22 = scalar_lea.vmem %s24353_s0, %s17343_s18  ;;  %s14664_s14 = scalar_lea.sflag [#allocation4], %s352_s23 }
  0xc3   : > { %v19822_v3 = vld [vmem:[%s19818_s22] sm:$0xff]   ;;  %v19828_v5 = vld [vmem:[%s19818_s22 + $0x18] sm:$0xff]   ;;  %v19833_v8 = vld [vmem:[%s19818_s22 + $0x30] sm:$0xff]   ;;  %s19470_s15 = scalar_lea.vmem %s24313_s21, 128  ;;  %p24706_p7 = scmp.ne.s32.totalorder %s24398_s11, 0 }
  0xc4   : > { %v19825_v4 = vld [vmem:[%s19818_s22 + $0xc] ss:$24 sps:$4 sm:$0xff]   ;;  %v16564_v6 = vunpack.c.l.bf16 %v19822_v3  ;;  %v16568_v7 = vunpack.c.l.bf16 %v19828_v5  ;;  %v19839_v10 = vld [vmem:[%s19818_s22 + $0xd8] sm:$0xff]   ;;  %v16572_v13 = vunpack.c.l.bf16 %v19833_v8  ;;  %v19846_v15 = vld [vmem:[%s19818_s22 + $0xf0] sm:$0xff]   ;;  %p19471_p4 = scmp.ne.s32.totalorder %s24313_s21, %s19470_s15  ;;  %s19563_s28 = smov [#allocation13]  }
  0xc5   : > { %v19836_v9 = vld [vmem:[%s19818_s22 + $0xcc] ss:$24 sps:$4 sm:$0xff]   ;;  %v486_v11 = vunpack.c.l.bf16 %v19825_v4  ;;  %v492_v12 = vunpack.c.h.bf16 %v19825_v4  ;;  %v16576_v14 = vunpack.c.l.bf16 %v19839_v10  ;;  %v19852_v17 = vld [vmem:[%s19818_s22 + $0x198] sm:$0xff]   ;;  %v16580_v20 = vunpack.c.l.bf16 %v19846_v15  ;;  %v19859_v22 = vld [vmem:[%s19818_s22 + $0x1b0] sm:$0xff]   ;;  %s19474_s10 = sshll.u32 %s19563_s28, 4  ;;  %s19475_s10 = int_to_ptr.vmem [resolvable:$false] %s19474_s10 }
  0xc6   : > { %v19849_v16 = vld [vmem:[%s19818_s22 + $0xfc] ss:$168 sps:$4 sm:$0xff]   ;;  %v498_v18 = vunpack.c.l.bf16 %v19836_v9  ;;  %v504_v19 = vunpack.c.h.bf16 %v19836_v9  ;;  %v16584_v21 = vunpack.c.l.bf16 %v19852_v17  ;;  %v19865_v24 = vld [vmem:[%s19818_s22 + $0x1c8] sm:$0xff]   ;;  %v16588_v27 = vunpack.c.l.bf16 %v19859_v22  ;;  %v19872_v29 = vld [vmem:[%s19818_s22 + $0x270] sm:$0xff]   ;;  %p19472_p8 = pnand %p19471_p4, %p24706_p7  ;;  %s19476_s1 = scalar_lea.vmem %s19475_s10, 256 }
  0xc7   : > { %v19862_v23 = vld [vmem:[%s19818_s22 + $0x1bc] ss:$168 sps:$4 sm:$0xff]   ;;  %v510_v25 = vunpack.c.l.bf16 %v19849_v16  ;;  %v516_v26 = vunpack.c.h.bf16 %v19849_v16  ;;  %v16592_v28 = vunpack.c.l.bf16 %v19865_v24  ;;  %v19878_v31 = vld [vmem:[%s19818_s22 + $0x288] sm:$0xff]   ;;  %v16596_v34 = vunpack.c.l.bf16 %v19872_v29  ;;  %v19885_v36 = vld [vmem:[%s19818_s22 + $0x330] sm:$0xff]   ;;  %p19477_p13 = scmp.lt.s32.totalorder %s24313_s21, %s19475_s10  ;;  %p19478_p1 = scmp.lt.s32.totalorder %s19476_s1, %s19470_s15 }
  0xc8   : > { %v19875_v30 = vld [vmem:[%s19818_s22 + $0x27c] ss:$24 sps:$4 sm:$0xff]   ;;  %v522_v32 = vunpack.c.l.bf16 %v19862_v23  ;;  %v528_v33 = vunpack.c.h.bf16 %v19862_v23  ;;  %v16600_v35 = vunpack.c.l.bf16 %v19878_v31  ;;  %v19891_v38 = vld [vmem:[%s19818_s22 + $0x348] sm:$0xff]   ;;  %v16604_v41 = vunpack.c.l.bf16 %v19885_v36  ;;  %v19898_v43 = vld [vmem:[%s19818_s22 + $0x360] sm:$0xff]   ;;  %p19473_p11 = pneg %p19472_p8 }
  0xc9   : > { %v19888_v37 = vld [vmem:[%s19818_s22 + $0x33c] ss:$24 sps:$4 sm:$0xff]   ;;  %v534_v39 = vunpack.c.l.bf16 %v19875_v30  ;;  %v540_v40 = vunpack.c.h.bf16 %v19875_v30  ;;  %v16608_v42 = vunpack.c.l.bf16 %v19891_v38  ;;  %v19904_v45 = vld [vmem:[%s19818_s22 + $0x408] sm:$0xff]   ;;  %v16612_v48 = vunpack.c.l.bf16 %v19898_v43  ;;  %v19911_v50 = vld [vmem:[%s19818_s22 + $0x420] sm:$0xff]   ;;  %p19479_p0 = por %p19478_p1, %p19477_p13 }
  0xca   : > { %v19901_v44 = vld [vmem:[%s19818_s22 + $0x3fc] ss:$24 sps:$4 sm:$0xff]   ;;  %v546_v46 = vunpack.c.l.bf16 %v19888_v37  ;;  %v552_v47 = vunpack.c.h.bf16 %v19888_v37  ;;  %v16616_v49 = vunpack.c.l.bf16 %v19904_v45  ;;  %v19917_v52 = vld [vmem:[%s19818_s22 + $0x4c8] sm:$0xff]   ;;  %v19924_v57 = vld [vmem:[%s19818_s22 + $0x4e0] sm:$0xff]   ;;  %v604_v63 = vsel %vm603_vm2, %v16564_v6, 0.0 }
  0xcb   : > { %v19914_v51 = vld [vmem:[%s19818_s22 + $0x42c] ss:$168 sps:$4 sm:$0xff]   ;;  %v558_v53 = vunpack.c.l.bf16 %v19901_v44  ;;  %v19930_v59 = vld [vmem:[%s19818_s22 + $0x4f8] sm:$0xff]   ;;  %v19937_v1 = vld [vmem:[%s19818_s22 + $0x5a0] sm:$0xff]   ;;  %v605_v54 = vsel %vm603_vm2, %v486_v11, 0.0  ;;  %v607_v0 = vsel %vm603_vm2, %v16568_v7, 0.0  ;;  %p19480_p6 = pnand %p19479_p0, %p19473_p11 }
  0xcc   : > { %v19927_v58 = vld [vmem:[%s19818_s22 + $0x4ec] ss:$168 sps:$4 sm:$0xff]   ;;  %v570_v60 = vunpack.c.l.bf16 %v19914_v51  ;;  %v19943_v16 = vld [vmem:[%s19818_s22 + $0x5b8] sm:$0xff]   ;;  %v609_v55 = vsel %vm603_vm2, %v492_v12, 0.0  ;;  %v606_v56 = vadd.f32 %v605_v54, %v604_v63  ;;  %v611_v62 = vsel %vm603_vm2, %v16572_v13, 0.0 }
  0xcd   : > { %v19940_v2 = vld [vmem:[%s19818_s22 + $0x5ac] ss:$24 sps:$4 sm:$0xff]   ;;  %v582_v23 = vunpack.c.l.bf16 %v19927_v58  ;;  %v632_v61 = vsel %vm603_vm2, %v498_v18, 0.0  ;;  %v633_v6 = vsel %vm603_vm2, %v16576_v14, 0.0  ;;  %v635_v7 = vsel %vm603_vm2, %v504_v19, 0.0 }
  0xce   : > { %v634_v11 = vadd.f32 %v633_v6, %v632_v61  ;;  %v637_v4 = vsel %vm603_vm2, %v16580_v20, 0.0  ;;  %v639_v12 = vsel %vm603_vm2, %v510_v25, 0.0  ;;  %v608_v54 = vadd.f32 %v607_v0, %v606_v56 }
  0xcf   : > { %v659_v13 = vsel %vm603_vm2, %v16584_v21, 0.0  ;;  %v660_v18 = vsel %vm603_vm2, %v516_v26, 0.0  ;;  %v662_v14 = vsel %vm603_vm2, %v16588_v27, 0.0  ;;  %v664_v9 = vsel %vm603_vm2, %v522_v32, 0.0 }
  0xd0   : > { %v636_v61 = vadd.f32 %v635_v7, %v634_v11  ;;  %v661_v63 = vadd.f32 %v660_v18, %v659_v13  ;;  %v666_v19 = vsel %vm603_vm2, %v16592_v28, 0.0  ;;  %v610_v20 = vadd.f32 %v609_v55, %v608_v54 }
  0xd1   : > { %v686_v25 = vsel %vm603_vm2, %v528_v33, 0.0  ;;  %v687_v0 = vsel %vm603_vm2, %v16596_v34, 0.0  ;;  %v689_v56 = vsel %vm603_vm2, %v534_v39, 0.0  ;;  %v691_v27 = vsel %vm603_vm2, %v16600_v35, 0.0 }
  0xd2   : > { %v638_v21 = vadd.f32 %v637_v4, %v636_v61  ;;  %v663_v26 = vadd.f32 %v662_v14, %v661_v63  ;;  %v688_v6 = vadd.f32 %v687_v0, %v686_v25  ;;  %v19992_v32 = vadd.f32 %v611_v62, %v610_v20 }
  0xd3   : > { %v693_v28 = vsel %vm603_vm2, %v540_v40, 0.0  ;;  %v713_v33 = vsel %vm603_vm2, %v16604_v41, 0.0  ;;  %v714_v34 = vsel %vm603_vm2, %v546_v46, 0.0  ;;  %v716_v35 = vsel %vm603_vm2, %v16608_v42, 0.0 }
  0xd4   : > { %v20001_v39 = vadd.f32 %v639_v12, %v638_v21  ;;  %v665_v55 = vadd.f32 %v664_v9, %v663_v26  ;;  %v690_v11 = vadd.f32 %v689_v56, %v688_v6  ;;  %v715_v7 = vadd.f32 %v714_v34, %v713_v33 }
  0xd5   : > { %v718_v30 = vsel %vm603_vm2, %v552_v47, 0.0  ;;  %v720_v40 = vsel %vm603_vm2, %v16612_v48, 0.0  ;;  %v740_v41 = vsel %vm603_vm2, %v558_v53, 0.0  ;;  %v741_v12 = vsel %vm603_vm2, %v16616_v49, 0.0 }
  0xd6   : > { %v20013_v46 = vadd.f32 %v666_v19, %v665_v55  ;;  %v692_v62 = vadd.f32 %v691_v27, %v690_v11  ;;  %v717_v4 = vadd.f32 %v716_v35, %v715_v7  ;;  %v742_v54 = vadd.f32 %v741_v12, %v740_v41 }
  0xd7   : > { %v24414_v42 = vunpack.c.h.bf16 %v19901_v44  ;;  %v24415_v47 = vunpack.c.l.bf16 %v19911_v50  ;;  %v747_v48 = vsel %vm603_vm2, %v570_v60, 0.0  ;;  %v24416_v14 = vunpack.c.l.bf16 %v19917_v52 }
  0xd8   : > { %v20025_v53 = vadd.f32 %v693_v28, %v692_v62  ;;  %v719_v18 = vadd.f32 %v718_v30, %v717_v4  ;;  %v24417_v49 = vunpack.c.h.bf16 %v19914_v51  ;;  %v24418_v19 = vunpack.c.l.bf16 %v19924_v57 }
  0xd9   : > { %v743_v37 = vsel %vm603_vm2, %v24414_v42, 0.0  ;;  %v745_v13 = vsel %vm603_vm2, %v24415_v47, 0.0  ;;  %v767_v61 = vsel %vm603_vm2, %v24416_v14, 0.0  ;;  %v772_v25 = vsel %vm603_vm2, %v582_v23, 0.0 }
  0xda   : > { %v768_v63 = vsel %vm603_vm2, %v24417_v49, 0.0  ;;  %v744_v44 = vadd.f32 %v743_v37, %v742_v54  ;;  %v770_v20 = vsel %vm603_vm2, %v24418_v19, 0.0  ;;  %v20037_v60 = vadd.f32 %v720_v40, %v719_v18 }
  0xdb   : > { %v769_v9 = vadd.f32 %v768_v63, %v767_v61  ;;  %v24419_v0 = vunpack.c.l.bf16 %v19930_v59  ;;  %v24420_v21 = vunpack.c.h.bf16 %v19927_v58  ;;  %v24421_v26 = vunpack.c.l.bf16 %v19937_v1 }
  0xdc   : > { %v746_v27 = vadd.f32 %v745_v13, %v744_v44  ;;  %v24422_v34 = vunpack.c.l.bf16 %v19940_v2  ;;  %v24423_v55 = vunpack.c.l.bf16 %v19943_v16  ;;  %v24424_v7 = vunpack.c.h.bf16 %v19940_v2 }
  0xdd   : > { %v774_v56 = vsel %vm603_vm2, %v24419_v0, 0.0  ;;  %v794_v51 = vsel %vm603_vm2, %v24420_v21, 0.0  ;;  %v795_v6 = vsel %vm603_vm2, %v24421_v26, 0.0  ;;  %v771_v28 = vadd.f32 %v770_v20, %v769_v9 }
  0xde   : > { %v796_v33 = vadd.f32 %v795_v6, %v794_v51  ;;  %v797_v23 = vsel %vm603_vm2, %v24422_v34, 0.0  ;;  %v799_v11 = vsel %vm603_vm2, %v24423_v55, 0.0  ;;  %v801_v58 = vsel %vm603_vm2, %v24424_v7, 0.0 }
  0xdf   : > { %v2650_v35 = vsel %vm2649_vm3, %v19992_v32, 0.0  ;;  %v2657_v30 = vsel %vm2649_vm3, %v20001_v39, 0.0  ;;  %v20061_v40 = vadd.f32 %v747_v48, %v746_v27  ;;  %v773_v41 = vadd.f32 %v772_v25, %v771_v28 }
  0xe0   : > { %v798_v62 = vadd.f32 %v797_v23, %v796_v33  ;;  %v2651_v4 = vrot.slane %v2650_v35, 4  ;;  %v2658_v12 = vrot.slane %v2657_v30, 4  ;;  %v2664_v54 = vsel %vm2649_vm3, %v20013_v46, 0.0 }
  0xe1   : > { %24425 = vst [vmem:[#allocation20_spill] sm:$0xff] %v20061_v40  ;;  %v2671_v2 = vsel %vm2649_vm3, %v20025_v53, 0.0  ;;  %v2678_v42 = vsel %vm2649_vm3, %v20037_v60, 0.0  ;;  %v20069_v37 = vadd.f32 %v774_v56, %v773_v41  ;;  %v2665_v18 = vrot.slane %v2664_v54, 4 }
  0xe2   : > { %v800_v47 = vadd.f32 %v799_v11, %v798_v62  ;;  %v2652_v13 = vadd.f32 %v2651_v4, %v2650_v35  ;;  %v2659_v48 = vadd.f32 %v2658_v12, %v2657_v30  ;;  %v2672_v14 = vrot.slane %v2671_v2, 4 }
  0xe3   : > { %24426 = vst [vmem:[#allocation21_spill] sm:$0xff] %v20069_v37  ;;  %v2679_v61 = vrot.slane %v2678_v42, 4  ;;  %v2685_v49 = vsel %vm2649_vm3, %v20061_v40, 0.0  ;;  %v2666_v9 = vadd.f32 %v2665_v18, %v2664_v54  ;;  %v2692_v56 = vsel %vm2649_vm3, %v20069_v37, 0.0 }
  0xe4   : > { %v20073_v63 = vadd.f32 %v801_v58, %v800_v47  ;;  %v2653_v44 = vrot.slane %v2652_v13, 2  ;;  %v2686_v19 = vrot.slane %v2685_v49, 4  ;;  %v2660_v20 = vrot.slane %v2659_v48, 2 }
  0xe5   : > { %v2673_v25 = vadd.f32 %v2672_v14, %v2671_v2  ;;  %v2680_v0 = vadd.f32 %v2679_v61, %v2678_v42  ;;  %v2667_v51 = vrot.slane %v2666_v9, 2  ;;  %v2693_v6 = vrot.slane %v2692_v56, 4 }
  0xe6   : > { %24427 = vst [vmem:[#allocation22_spill] sm:$0xff] %v20073_v63  ;;  %v2654_v21 = vadd.f32 %v2653_v44, %v2652_v13  ;;  %v2687_v26 = vadd.f32 %v2686_v19, %v2685_v49  ;;  %v2661_v27 = vadd.f32 %v2660_v20, %v2659_v48  ;;  %v2699_v34 = vsel %vm2649_vm3, %v20073_v63, 0.0 }
  0xe7   : > { %v2674_v28 = vrot.slane %v2673_v25, 2  ;;  %v2681_v33 = vrot.slane %v2680_v0, 2  ;;  %v2668_v55 = vadd.f32 %v2667_v51, %v2666_v9  ;;  %v2694_v7 = vadd.f32 %v2693_v6, %v2692_v56 }
  0xe8   : > { %v2655_v23 = vrot.slane %v2654_v21, 1  ;;  %v2688_v11 = vrot.slane %v2687_v26, 2  ;;  %v2662_v58 = vrot.slane %v2661_v27, 1  ;;  %v2700_v41 = vrot.slane %v2699_v34, 4 }
  0xe9   : > { %v2675_v35 = vadd.f32 %v2674_v28, %v2673_v25  ;;  %v2682_v30 = vadd.f32 %v2681_v33, %v2680_v0  ;;  %v2669_v4 = vrot.slane %v2668_v55, 1  ;;  %v2695_v54 = vrot.slane %v2694_v7, 2 }
  0xea   : > { %v20079_v62 = vadd.f32 %v2655_v23, %v2654_v21  ;;  %v2689_v12 = vadd.f32 %v2688_v11, %v2687_v26  ;;  %v20081_v2 = vadd.f32 %v2662_v58, %v2661_v27  ;;  %v2701_v13 = vadd.f32 %v2700_v41, %v2699_v34 }
  0xeb   : > { %v2676_v42 = vrot.slane %v2675_v35, 1  ;;  %v2683_v47 = vrot.slane %v2682_v30, 1  ;;  %v20083_v18 = vadd.f32 %v2669_v4, %v2668_v55  ;;  %v2696_v14 = vadd.f32 %v2695_v54, %v2694_v7 }
  0xec   : > { %v2690_v48 = vrot.slane %v2689_v12, 1  ;;  %v2714_v61 = vrot.slane %v19992_v32, 3  ;;  %v2702_v9 = vrot.slane %v2701_v13, 2  ;;  %v2715_v19 = vrot.slane %v20001_v39, 3 }
  0xed   : > { %v20086_v49 = vadd.f32 %v2676_v42, %v2675_v35  ;;  %v20088_v44 = vadd.f32 %v2683_v47, %v2682_v30  ;;  %v2697_v25 = vrot.slane %v2696_v14, 1  ;;  %v2716_v0 = vrot.slane %v20013_v46, 3 }
  0xee   : > { %v20091_v20 = vadd.f32 %v2690_v48, %v2689_v12  ;;  %v2717_v56 = vrot.slane %v20025_v53, 3  ;;  %v2703_v21 = vadd.f32 %v2702_v9, %v2701_v13  ;;  %v2718_v51 = vrot.slane %v20037_v60, 3 }
  0xef   : > { %v2719_v26 = vrot.slane %v20061_v40, 3  ;;  %v2720_v6 = vrot.slane %v20069_v37, 3  ;;  %v20098_v27 = vadd.f32 %v2697_v25, %v2696_v14  ;;  %v2721_v28 = vrot.slane %v20073_v63, 3 }
  0xf0   : > { %v2730_v33 = vsel %vm2649_vm3, %v2714_v61, 0.0  ;;  %v2737_v34 = vsel %vm2649_vm3, %v2715_v19, 0.0  ;;  %v2704_v23 = vrot.slane %v2703_v21, 1  ;;  %v2744_v7 = vsel %vm2649_vm3, %v2716_v0, 0.0 }
  0xf1   : > { %v2731_v55 = vrot.slane %v2730_v33, 4  ;;  %v2738_v11 = vrot.slane %v2737_v34, 4  ;;  %v2745_v58 = vrot.slane %v2744_v7, 4  ;;  %v2751_v35 = vsel %vm2649_vm3, %v2717_v56, 0.0 }
  0xf2   : > { %v2758_v30 = vsel %vm2649_vm3, %v2718_v51, 0.0  ;;  %v2765_v41 = vsel %vm2649_vm3, %v2719_v26, 0.0  ;;  %v20107_v4 = vadd.f32 %v2704_v23, %v2703_v21  ;;  %v2752_v42 = vrot.slane %v2751_v35, 4 }
  0xf3   : > { %v2732_v12 = vadd.f32 %v2731_v55, %v2730_v33  ;;  %v2739_v54 = vadd.f32 %v2738_v11, %v2737_v34  ;;  %v2746_v47 = vadd.f32 %v2745_v58, %v2744_v7  ;;  %v2759_v13 = vrot.slane %v2758_v30, 4 }
  0xf4   : > { %v2766_v48 = vrot.slane %v2765_v41, 4  ;;  %v2772_v14 = vsel %vm2649_vm3, %v2720_v6, 0.0  ;;  %v2753_v19 = vadd.f32 %v2752_v42, %v2751_v35  ;;  %v2779_v21 = vsel %vm2649_vm3, %v2721_v28, 0.0 }
  0xf5   : > { %v2733_v61 = vrot.slane %v2732_v12, 2  ;;  %v2740_v9 = vrot.slane %v2739_v54, 2  ;;  %v2773_v25 = vrot.slane %v2772_v14, 4  ;;  %v2747_v0 = vrot.slane %v2746_v47, 2 }
  0xf6   : > { %v2760_v56 = vadd.f32 %v2759_v13, %v2758_v30  ;;  %v2767_v51 = vadd.f32 %v2766_v48, %v2765_v41  ;;  %v2754_v34 = vrot.slane %v2753_v19, 2  ;;  %v2780_v7 = vrot.slane %v2779_v21, 4 }
  0xf7   : > { %v2734_v26 = vadd.f32 %v2733_v61, %v2732_v12  ;;  %v2741_v33 = vadd.f32 %v2740_v9, %v2739_v54  ;;  %v2774_v23 = vadd.f32 %v2773_v25, %v2772_v14  ;;  %v2748_v55 = vadd.f32 %v2747_v0, %v2746_v47 }
  0xf8   : > { %v2761_v11 = vrot.slane %v2760_v56, 2  ;;  %v2768_v6 = vrot.slane %v2767_v51, 2  ;;  %v2755_v42 = vadd.f32 %v2754_v34, %v2753_v19  ;;  %v2781_v13 = vadd.f32 %v2780_v7, %v2779_v21 }
  0xf9   : > { %v2735_v58 = vrot.slane %v2734_v26, 1  ;;  %v2742_v35 = vrot.slane %v2741_v33, 1  ;;  %v2775_v63 = vrot.slane %v2774_v23, 2  ;;  %v2749_v37 = vrot.slane %v2748_v55, 1 }
  0xfa   : > { %v2762_v30 = vadd.f32 %v2761_v11, %v2760_v56  ;;  %v2769_v41 = vadd.f32 %v2768_v6, %v2767_v51  ;;  %v2756_v12 = vrot.slane %v2755_v42, 1  ;;  %v2782_v47 = vrot.slane %v2781_v13, 2 }
  0xfb   : > { %v2736_v28 = vadd.f32 %v2735_v58, %v2734_v26  ;;  %v2743_v48 = vadd.f32 %v2742_v35, %v2741_v33  ;;  %v2776_v54 = vadd.f32 %v2775_v63, %v2774_v23  ;;  %v2750_v61 = vadd.f32 %v2749_v37, %v2748_v55  ;;  %v367_v58 = vld [vmem:[%s19818_s22 + $0x10] ss:$24 sps:$4 sm:$0xff]  }
  0xfc   : > { %v2763_v14 = vrot.slane %v2762_v30, 1  ;;  %v2770_v9 = vrot.slane %v2769_v41, 1  ;;  %v2757_v25 = vadd.f32 %v2756_v12, %v2755_v42  ;;  %v4661_v40 = vsel %vm4660_vm4, %v20081_v2, %v20079_v62 }
  0xfd   : > { %v2777_v0 = vrot.slane %v2776_v54, 1  ;;  %v4683_v19 = vsel %vm4660_vm4, %v2743_v48, %v2736_v28  ;;  %v2783_v51 = vadd.f32 %v2782_v47, %v2781_v13  ;;  %v4663_v21 = vsel %vm4662_vm5, %v20083_v18, %v4661_v40  ;;  %v20144_v13 = vld [vmem:[%s19818_s22 + $0x1c0] ss:$168 sps:$4 sm:$0xff]   ;;  %v20164_v47 = vld [vmem:[%s19818_s22 + $0x430] ss:$168 sps:$4 sm:$0xff]  }
  0xfe   : > { %v2764_v34 = vadd.f32 %v2763_v14, %v2762_v30  ;;  %v2771_v56 = vadd.f32 %v2770_v9, %v2769_v41  ;;  %v4665_v37 = vsel %vm4664_vm6, %v20086_v49, %v4663_v21  ;;  %v4684_v26 = vsel %vm4662_vm5, %v2750_v61, %v4683_v19  ;;  %v391_v41 = vld [vmem:[%s19818_s22 + $0x100] ss:$168 sps:$4 sm:$0xff]   ;;  %v20170_v19 = vld [vmem:[%s19818_s22 + $0x4f0] ss:$168 sps:$4 sm:$0xff]  }
  0xff   : > { %v2778_v63 = vadd.f32 %v2777_v0, %v2776_v54  ;;  %v16565_v33 = vunpack.c.h.bf16 %v19822_v3  ;;  %v2784_v23 = vrot.slane %v2783_v51, 1  ;;  %v4667_v62 = vsel %vm4666_vm7, %v20088_v44, %v4665_v37  ;;  %v20159_v14 = vld [vmem:[%s19818_s22 + $0x400] ss:$24 sps:$4 sm:$0xff]  }
 0x100   : > { %v4685_v2 = vsel %vm4664_vm6, %v2757_v25, %v4684_v26  ;;  %v16569_v55 = vunpack.c.h.bf16 %v19828_v5  ;;  %v4669_v40 = vsel %vm4668_vm8, %v20091_v20, %v4667_v62  ;;  %v16573_v49 = vunpack.c.h.bf16 %v19833_v8  ;;  %v379_v8 = vld [vmem:[%s19818_s22 + $0xd0] ss:$24 sps:$4 sm:$0xff]  }
 0x101   : > { %v4686_v18 = vsel %vm4666_vm7, %v2764_v34, %v4685_v2  ;;  %v16577_v11 = vunpack.c.h.bf16 %v19839_v10  ;;  %v2785_v6 = vadd.f32 %v2784_v23, %v2783_v51  ;;  %v4671_v44 = vsel %vm4670_vm9, %v20098_v27, %v4669_v40  ;;  %v20175_v51 = vld [vmem:[%s19818_s22 + $0x5b0] ss:$24 sps:$4 sm:$0xff]  }
 0x102   : > { %v4687_v7 = vsel %vm4668_vm8, %v2771_v56, %v4686_v18  ;;  %v16581_v5 = vunpack.c.h.bf16 %v19846_v15  ;;  %v4673_v20 = vsel %vm4672_vm10, %v20107_v4, %v4671_v44  ;;  %v16585_v42 = vunpack.c.h.bf16 %v19852_v17  ;;  %v20149_v4 = vld [vmem:[%s19818_s22 + $0x280] ss:$24 sps:$4 sm:$0xff]  }
 0x103   : > { %v4688_v35 = vsel %vm4670_vm9, %v2778_v63, %v4687_v7  ;;  %v16589_v30 = vunpack.c.h.bf16 %v19859_v22  ;;  %v16593_v28 = vunpack.c.h.bf16 %v19865_v24  ;;  %v16597_v15 = vunpack.c.h.bf16 %v19872_v29  ;;  %v20154_v22 = vld [vmem:[%s19818_s22 + $0x340] ss:$24 sps:$4 sm:$0xff]  }
 0x104   : > { %v4689_v27 = vsel %vm4672_vm10, %v2785_v6, %v4688_v35  ;;  %v16601_v48 = vunpack.c.h.bf16 %v19878_v31  ;;  %v16605_v17 = vunpack.c.h.bf16 %v19885_v36  ;;  %v16609_v54 = vunpack.c.h.bf16 %v19891_v38 }
 0x105   : > { %v5059_v12 = vpack.c.bf16 %v4689_v27, %v4673_v20  ;;  %v16613_v61 = vunpack.c.h.bf16 %v19898_v43  ;;  %v16617_v24 = vunpack.c.h.bf16 %v19904_v45  ;;  %v16621_v9 = vunpack.c.h.bf16 %v19911_v50 }
 0x106   : > { %v487_v63 = vunpack.c.l.bf16 %v367_v58  ;;  %v24428_v37 = vmov 0.0   ;;  %v493_v26 = vunpack.c.h.bf16 %v367_v58  ;;  %v499_v23 = vunpack.c.l.bf16 %v379_v8 }
 0x107   : > { %17144 = vmatmul.mubr.msk.bf16.vlgmr.msra.gmra.mrb[0].mxu0 %vm603_vm2, %v5059_v12  ;;  %v505_v62 = vunpack.c.h.bf16 %v379_v8  ;;  %v511_v2 = vunpack.c.l.bf16 %v391_v41  ;;  %v517_v40 = vunpack.c.h.bf16 %v391_v41  ;;  %v523_v18 = vunpack.c.l.bf16 %v20144_v13 }
 0x108   : > { %17147 = vmatprep.mubr.msk.bf16.mxu0 %vm19561_vm0, %v24428_v37  ;;  %v529_v6 = vunpack.c.h.bf16 %v20144_v13  ;;  %v535_v44 = vunpack.c.l.bf16 %v20149_v4  ;;  %v541_v7 = vunpack.c.h.bf16 %v20149_v4  ;;  %v547_v20 = vunpack.c.l.bf16 %v20154_v22 }
 0x109   : > { %v553_v35 = vunpack.c.h.bf16 %v20154_v22  ;;  %v559_v27 = vunpack.c.l.bf16 %v20159_v14  ;;  %v565_v58 = vunpack.c.h.bf16 %v20159_v14  ;;  %v571_v8 = vunpack.c.l.bf16 %v20164_v47 }
 0x10a   : > { %v577_v41 = vunpack.c.h.bf16 %v20164_v47  ;;  %v583_v12 = vunpack.c.l.bf16 %v20170_v19  ;;  %v613_v22 = vsel %vm603_vm2, %v16565_v33, 0.0  ;;  %v614_v56 = vsel %vm603_vm2, %v487_v63, 0.0 }
 0x10b   : > { %v616_v14 = vsel %vm603_vm2, %v16569_v55, 0.0  ;;  %v618_v34 = vsel %vm603_vm2, %v493_v26, 0.0  ;;  %v620_v47 = vsel %vm603_vm2, %v16573_v49, 0.0  ;;  %v615_v0 = vadd.f32 %v614_v56, %v613_v22 }
 0x10c   : > { %v641_v25 = vsel %vm603_vm2, %v499_v23, 0.0  ;;  %v642_v21 = vsel %vm603_vm2, %v16577_v11, 0.0  ;;  %v644_v4 = vsel %vm603_vm2, %v505_v62, 0.0  ;;  %v646_v33 = vsel %vm603_vm2, %v16581_v5, 0.0 }
 0x10d   : > { %v643_v3 = vadd.f32 %v642_v21, %v641_v25  ;;  %v648_v63 = vsel %vm603_vm2, %v511_v2, 0.0  ;;  %v668_v55 = vsel %vm603_vm2, %v16585_v42, 0.0  ;;  %v617_v13 = vadd.f32 %v616_v14, %v615_v0 }
 0x10e   : > { %v669_v26 = vsel %vm603_vm2, %v517_v40, 0.0  ;;  %v671_v49 = vsel %vm603_vm2, %v16589_v30, 0.0  ;;  %v673_v56 = vsel %vm603_vm2, %v523_v18, 0.0  ;;  %v675_v11 = vsel %vm603_vm2, %v16593_v28, 0.0 }
 0x10f   : > { %v645_v23 = vadd.f32 %v644_v4, %v643_v3  ;;  %v670_v10 = vadd.f32 %v669_v26, %v668_v55  ;;  %v695_v62 = vsel %vm603_vm2, %v529_v6, 0.0  ;;  %v619_v25 = vadd.f32 %v618_v34, %v617_v13 }
 0x110   : > { %v696_v5 = vsel %vm603_vm2, %v16597_v15, 0.0  ;;  %v698_v42 = vsel %vm603_vm2, %v535_v44, 0.0  ;;  %v700_v0 = vsel %vm603_vm2, %v16601_v48, 0.0  ;;  %v702_v40 = vsel %vm603_vm2, %v541_v7, 0.0 }
 0x111   : > { %v647_v30 = vadd.f32 %v646_v33, %v645_v23  ;;  %v672_v21 = vadd.f32 %v671_v49, %v670_v10  ;;  %v697_v2 = vadd.f32 %v696_v5, %v695_v62  ;;  %v20222_v18 = vadd.f32 %v620_v47, %v619_v25 }
 0x112   : > { %v722_v28 = vsel %vm603_vm2, %v16605_v17, 0.0  ;;  %v723_v29 = vsel %vm603_vm2, %v547_v20, 0.0  ;;  %v725_v15 = vsel %vm603_vm2, %v16609_v54, 0.0  ;;  %v727_v44 = vsel %vm603_vm2, %v553_v35, 0.0 }
 0x113   : > { %v20231_v31 = vadd.f32 %v648_v63, %v647_v30  ;;  %v674_v48 = vadd.f32 %v673_v56, %v672_v21  ;;  %v699_v34 = vadd.f32 %v698_v42, %v697_v2  ;;  %v724_v6 = vadd.f32 %v723_v29, %v722_v28 }
 0x114   : > { %v729_v36 = vsel %vm603_vm2, %v16613_v61, 0.0  ;;  %v749_v17 = vsel %vm603_vm2, %v559_v27, 0.0  ;;  %v750_v38 = vsel %vm603_vm2, %v16617_v24, 0.0  ;;  %v752_v4 = vsel %vm603_vm2, %v565_v58, 0.0 }
 0x115   : > { %v20241_v7 = vadd.f32 %v675_v11, %v674_v48  ;;  %v701_v54 = vadd.f32 %v700_v0, %v699_v34  ;;  %v726_v20 = vadd.f32 %v725_v15, %v724_v6  ;;  %v751_v13 = vadd.f32 %v750_v38, %v749_v17  ;;  %v24437_v48 = vld [vmem:[#allocation20_spill] sm:$0xff] }
 0x116   : > { %v754_v35 = vsel %vm603_vm2, %v16621_v9, 0.0  ;;  %v756_v43 = vsel %vm603_vm2, %v571_v8, 0.0  ;;  %v24429_v61 = vunpack.c.h.bf16 %v19917_v52  ;;  %v777_v14 = vsel %vm603_vm2, %v577_v41, 0.0 }
 0x117   : > { %v20251_v45 = vadd.f32 %v702_v40, %v701_v54  ;;  %v728_v24 = vadd.f32 %v727_v44, %v726_v20  ;;  %v753_v22 = vadd.f32 %v752_v4, %v751_v13  ;;  %v24430_v3 = vunpack.c.h.bf16 %v19924_v57  ;;  %v24439_v44 = vld [vmem:[#allocation21_spill] sm:$0xff]  ;;  %v24440_v54 = vld [vmem:[#allocation22_spill] sm:$0xff] }
 0x118   : > { %v776_v27 = vsel %vm603_vm2, %v24429_v61, 0.0  ;;  %v781_v50 = vsel %vm603_vm2, %v583_v12, 0.0  ;;  %v24431_v9 = vunpack.c.h.bf16 %v19930_v59  ;;  %v24432_v63 = vunpack.c.h.bf16 %v20170_v19 }
 0x119   : > { %v778_v47 = vadd.f32 %v777_v14, %v776_v27  ;;  %v779_v58 = vsel %vm603_vm2, %v24430_v3, 0.0  ;;  %v20261_v52 = vadd.f32 %v729_v36, %v728_v24  ;;  %v755_v33 = vadd.f32 %v754_v35, %v753_v22 }
 0x11a   : > { %v783_v8 = vsel %vm603_vm2, %v24431_v9, 0.0  ;;  %v803_v55 = vsel %vm603_vm2, %v24432_v63, 0.0  ;;  %v24433_v41 = vunpack.c.h.bf16 %v19937_v1  ;;  %v24434_v56 = vunpack.c.l.bf16 %v20175_v51 }
 0x11b   : > { %v780_v57 = vadd.f32 %v779_v58, %v778_v47  ;;  %v24435_v59 = vunpack.c.h.bf16 %v19943_v16  ;;  %v20275_v10 = vadd.f32 %v756_v43, %v755_v33  ;;  %v24436_v19 = vunpack.c.h.bf16 %v20175_v51 }
 0x11c   : > { %v804_v26 = vsel %vm603_vm2, %v24433_v41, 0.0  ;;  %v806_v12 = vsel %vm603_vm2, %v24434_v56, 0.0  ;;  %v2795_v1 = vrot.slane %v19992_v32, 6  ;;  %v2796_v62 = vrot.slane %v20222_v18, 6 }
 0x11d   : > { %v805_v49 = vadd.f32 %v804_v26, %v803_v55  ;;  %v808_v23 = vsel %vm603_vm2, %v24435_v59, 0.0  ;;  %v810_v11 = vsel %vm603_vm2, %v24436_v19, 0.0  ;;  %v782_v25 = vadd.f32 %v781_v50, %v780_v57 }
 0x11e   : > { %v2798_v42 = vrot.slane %v20001_v39, 6  ;;  %v2799_v0 = vrot.slane %v20231_v31, 6  ;;  %v2797_v16 = vsel %vm2794_vm11, %v2795_v1, %v2796_v62  ;;  %v2801_v30 = vrot.slane %v20013_v46, 6 }
 0x11f   : > { %v807_v5 = vadd.f32 %v806_v12, %v805_v49  ;;  %v2802_v21 = vrot.slane %v20241_v7, 6  ;;  %v2804_v51 = vrot.slane %v20025_v53, 6  ;;  %v20288_v2 = vadd.f32 %v783_v8, %v782_v25 }
 0x120   : > { %v2800_v32 = vsel %vm2794_vm11, %v2798_v42, %v2799_v0  ;;  %v2805_v28 = vrot.slane %v20251_v45, 6  ;;  %v2807_v39 = vrot.slane %v20037_v60, 6  ;;  %v2808_v15 = vrot.slane %v20261_v52, 6 }
 0x121   : > { %v809_v40 = vadd.f32 %v808_v23, %v807_v5  ;;  %v2803_v29 = vsel %vm2794_vm11, %v2801_v30, %v2802_v21  ;;  %v2810_v34 = vrot.slane %v24437_v48, 6  ;;  %v2811_v53 = vrot.slane %v20275_v10, 6 }
 0x122   : > { %v2806_v6 = vsel %vm2794_vm11, %v2804_v51, %v2805_v28  ;;  %v2813_v36 = vrot.slane %v24439_v44, 6  ;;  %v2809_v17 = vsel %vm2794_vm11, %v2807_v39, %v2808_v15  ;;  %v2814_v38 = vrot.slane %v20288_v2, 6 }
 0x123   : > { %v20296_v46 = vadd.f32 %v810_v11, %v809_v40  ;;  %v2816_v20 = vrot.slane %v24440_v54, 6  ;;  %v2827_v60 = vsel %vm2649_vm3, %v2797_v16, 0.0  ;;  %v2812_v13 = vsel %vm2794_vm11, %v2810_v34, %v2811_v53 }
 0x124   : > { %v2828_v35 = vrot.slane %v2827_v60, 4  ;;  %v2834_v43 = vsel %vm2649_vm3, %v2800_v32, 0.0  ;;  %v2815_v61 = vsel %vm2794_vm11, %v2813_v36, %v2814_v38  ;;  %v2841_v24 = vsel %vm2649_vm3, %v2803_v29, 0.0 }
 0x125   : > { %24438 = vst [vmem:[#allocation20_spill] sm:$0xff] %v20296_v46  ;;  %v2817_v4 = vrot.slane %v20296_v46, 6  ;;  %v2835_v27 = vrot.slane %v2834_v43, 4  ;;  %v2848_v22 = vsel %vm2649_vm3, %v2806_v6, 0.0  ;;  %v2842_v3 = vrot.slane %v2841_v24, 4 }
 0x126   : > { %v2829_v47 = vadd.f32 %v2828_v35, %v2827_v60  ;;  %v2849_v58 = vrot.slane %v2848_v22, 4  ;;  %v2855_v9 = vsel %vm2649_vm3, %v2809_v17, 0.0  ;;  %v2862_v8 = vsel %vm2649_vm3, %v2812_v13, 0.0 }
 0x127   : > { %v2818_v14 = vsel %vm2794_vm11, %v2816_v20, %v2817_v4  ;;  %v2836_v50 = vadd.f32 %v2835_v27, %v2834_v43  ;;  %v2869_v33 = vsel %vm2649_vm3, %v2815_v61, 0.0  ;;  %v2843_v55 = vadd.f32 %v2842_v3, %v2841_v24 }
 0x128   : > { %v2830_v63 = vrot.slane %v2829_v47, 2  ;;  %v2850_v41 = vadd.f32 %v2849_v58, %v2848_v22  ;;  %v2856_v26 = vrot.slane %v2855_v9, 4  ;;  %v2863_v49 = vrot.slane %v2862_v8, 4 }
 0x129   : > { %v2837_v57 = vrot.slane %v2836_v50, 2  ;;  %v2870_v56 = vrot.slane %v2869_v33, 4  ;;  %v2876_v12 = vsel %vm2649_vm3, %v2818_v14, 0.0  ;;  %v2844_v23 = vrot.slane %v2843_v55, 2 }
 0x12a   : > { %v2831_v59 = vadd.f32 %v2830_v63, %v2829_v47  ;;  %v2851_v19 = vrot.slane %v2850_v41, 2  ;;  %v2857_v11 = vadd.f32 %v2856_v26, %v2855_v9  ;;  %v2864_v62 = vadd.f32 %v2863_v49, %v2862_v8 }
 0x12b   : > { %v2838_v1 = vadd.f32 %v2837_v57, %v2836_v50  ;;  %v2871_v25 = vadd.f32 %v2870_v56, %v2869_v33  ;;  %v2877_v5 = vrot.slane %v2876_v12, 4  ;;  %v2845_v0 = vadd.f32 %v2844_v23, %v2843_v55 }
 0x12c   : > { %v2832_v42 = vrot.slane %v2831_v59, 1  ;;  %v2852_v16 = vadd.f32 %v2851_v19, %v2850_v41  ;;  %v2858_v30 = vrot.slane %v2857_v11, 2  ;;  %v2865_v51 = vrot.slane %v2864_v62, 2 }
 0x12d   : > { %v2839_v21 = vrot.slane %v2838_v1, 1  ;;  %v2872_v40 = vrot.slane %v2871_v25, 2  ;;  %v2878_v32 = vadd.f32 %v2877_v5, %v2876_v12  ;;  %v2846_v29 = vrot.slane %v2845_v0, 1 }
 0x12e   : > { %v20316_v28 = vadd.f32 %v2832_v42, %v2831_v59  ;;  %v2853_v39 = vrot.slane %v2852_v16, 1  ;;  %v2859_v15 = vadd.f32 %v2858_v30, %v2857_v11  ;;  %v2866_v34 = vadd.f32 %v2865_v51, %v2864_v62 }
 0x12f   : > { %v20318_v48 = vadd.f32 %v2839_v21, %v2838_v1  ;;  %v2873_v6 = vadd.f32 %v2872_v40, %v2871_v25  ;;  %v2879_v53 = vrot.slane %v2878_v32, 2  ;;  %v20320_v44 = vadd.f32 %v2846_v29, %v2845_v0 }
 0x130   : > { %v20322_v36 = vadd.f32 %v2853_v39, %v2852_v16  ;;  %v2860_v17 = vrot.slane %v2859_v15, 1  ;;  %v2883_v38 = vrot.slane %v20222_v18, 1  ;;  %v2867_v54 = vrot.slane %v2866_v34, 1 }
 0x131   : > { %v2874_v20 = vrot.slane %v2873_v6, 1  ;;  %v2880_v60 = vadd.f32 %v2879_v53, %v2878_v32  ;;  %v2884_v13 = vrot.slane %v20231_v31, 1  ;;  %v2885_v35 = vrot.slane %v20241_v7, 1 }
 0x132   : > { %v20326_v4 = vadd.f32 %v2860_v17, %v2859_v15  ;;  %v2886_v43 = vrot.slane %v20251_v45, 1  ;;  %v2887_v61 = vrot.slane %v20261_v52, 1  ;;  %v20331_v27 = vadd.f32 %v2867_v54, %v2866_v34 }
 0x133   : > { %v20333_v24 = vadd.f32 %v2874_v20, %v2873_v6  ;;  %v2881_v22 = vrot.slane %v2880_v60, 1  ;;  %v2888_v14 = vrot.slane %v20275_v10, 1  ;;  %v2889_v47 = vrot.slane %v20288_v2, 1 }
 0x134   : > { %v2890_v3 = vrot.slane %v20296_v46, 1  ;;  %v2899_v58 = vsel %vm2649_vm3, %v2883_v38, 0.0  ;;  %v2906_v50 = vsel %vm2649_vm3, %v2884_v13, 0.0  ;;  %v2913_v63 = vsel %vm2649_vm3, %v2885_v35, 0.0 }
 0x135   : > { %v20340_v9 = vadd.f32 %v2881_v22, %v2880_v60  ;;  %v2900_v8 = vrot.slane %v2899_v58, 4  ;;  %v2907_v33 = vrot.slane %v2906_v50, 4  ;;  %v2914_v55 = vrot.slane %v2913_v63, 4 }
 0x136   : > { %v2920_v41 = vsel %vm2649_vm3, %v2886_v43, 0.0  ;;  %v2927_v26 = vsel %vm2649_vm3, %v2887_v61, 0.0  ;;  %v2934_v57 = vsel %vm2649_vm3, %v2888_v14, 0.0  ;;  %v2941_v11 = vsel %vm2649_vm3, %v2889_v47, 0.0  ;;  %v20349_v43 = vld [vmem:[%s19818_s22 + $0x8] sm:$0x1] }
 0x137   : > { %v2901_v49 = vadd.f32 %v2900_v8, %v2899_v58  ;;  %v2908_v56 = vadd.f32 %v2907_v33, %v2906_v50  ;;  %v2921_v12 = vrot.slane %v2920_v41, 4  ;;  %v2928_v59 = vrot.slane %v2927_v26, 4  ;;  %v20352_v61 = vld [vmem:[%s19818_s22 + $0x14] sm:$0x1] }
 0x138   : > { %v2915_v23 = vadd.f32 %v2914_v55, %v2913_v63  ;;  %v2935_v19 = vrot.slane %v2934_v57, 4  ;;  %v2948_v1 = vsel %vm2649_vm3, %v2890_v3, 0.0  ;;  %v2942_v30 = vrot.slane %v2941_v11, 4  ;;  %v20355_v63 = vld [vmem:[%s19818_s22 + $0x20] sm:$0x1] }
 0x139   : > { %v2902_v62 = vrot.slane %v2901_v49, 2  ;;  %v2909_v25 = vrot.slane %v2908_v56, 2  ;;  %v2922_v5 = vadd.f32 %v2921_v12, %v2920_v41  ;;  %v2929_v42 = vadd.f32 %v2928_v59, %v2927_v26  ;;  %v20358_v55 = vld [vmem:[%s19818_s22 + $0x2c] sm:$0x1]  ;;  %v20368_v12 = vld [vmem:[%s19818_s22 + $0xd4] sm:$0x1] }
 0x13a   : > { %v2916_v0 = vrot.slane %v2915_v23, 2  ;;  %v2936_v16 = vadd.f32 %v2935_v19, %v2934_v57  ;;  %v2949_v21 = vrot.slane %v2948_v1, 4  ;;  %v2943_v34 = vadd.f32 %v2942_v30, %v2941_v11 }
 0x13b   : > { %v2903_v51 = vadd.f32 %v2902_v62, %v2901_v49  ;;  %v2910_v40 = vadd.f32 %v2909_v25, %v2908_v56  ;;  %v2923_v32 = vrot.slane %v2922_v5, 2  ;;  %v2930_v29 = vrot.slane %v2929_v42, 2  ;;  %v20365_v56 = vld [vmem:[%s19818_s22 + $0x38] sm:$0x1]  ;;  %v20376_v62 = vld [vmem:[%s19818_s22 + $0xec] sm:$0x1] }
 0x13c   : > { %v2917_v39 = vadd.f32 %v2916_v0, %v2915_v23  ;;  %v2937_v15 = vrot.slane %v2936_v16, 2  ;;  %v2950_v6 = vadd.f32 %v2949_v21, %v2948_v1  ;;  %v2944_v13 = vrot.slane %v2943_v34, 2  ;;  %v20373_v1 = vld [vmem:[%s19818_s22 + $0xe0] sm:$0x1]  ;;  %v20382_v25 = vld [vmem:[%s19818_s22 + $0xf8] sm:$0x1] }
 0x13d   : > { %v2904_v53 = vrot.slane %v2903_v51, 1  ;;  %v2911_v17 = vrot.slane %v2910_v40, 1  ;;  %v2924_v38 = vadd.f32 %v2923_v32, %v2922_v5  ;;  %v2931_v54 = vadd.f32 %v2930_v29, %v2929_v42  ;;  %v20385_v5 = vld [vmem:[%s19818_s22 + $0x104] sm:$0x1]  ;;  %v20388_v42 = vld [vmem:[%s19818_s22 + $0x1a0] sm:$0x1] }
 0x13e   : > { %v2918_v20 = vrot.slane %v2917_v39, 1  ;;  %v2938_v60 = vadd.f32 %v2937_v15, %v2936_v16  ;;  %v2951_v35 = vrot.slane %v2950_v6, 2  ;;  %v2945_v8 = vadd.f32 %v2944_v13, %v2943_v34  ;;  %v20402_v32 = vld [vmem:[%s19818_s22 + $0x1c4] sm:$0x1]  ;;  %v20408_v15 = vld [vmem:[%s19818_s22 + $0x1d0] sm:$0x1] }
 0x13f   : > { %v2905_v22 = vadd.f32 %v2904_v53, %v2903_v51  ;;  %v2912_v14 = vadd.f32 %v2911_v17, %v2910_v40  ;;  %v2925_v47 = vrot.slane %v2924_v38, 1  ;;  %v2932_v3 = vrot.slane %v2931_v54, 1  ;;  %v20396_v51 = vld [vmem:[%s19818_s22 + $0x1ac] sm:$0x1]  ;;  %v20399_v40 = vld [vmem:[%s19818_s22 + $0x1b8] sm:$0x1] }
 0x140   : > { %v2919_v58 = vadd.f32 %v2918_v20, %v2917_v39  ;;  %v2939_v50 = vrot.slane %v2938_v60, 1  ;;  %v2952_v33 = vadd.f32 %v2951_v35, %v2950_v6  ;;  %v4699_v57 = vsel %vm4660_vm4, %v20318_v48, %v20316_v28  ;;  %v20414_v34 = vld [vmem:[%s19818_s22 + $0x278] sm:$0x1]  ;;  %v20417_v6 = vld [vmem:[%s19818_s22 + $0x284] sm:$0x1] }
 0x141   : > { %v2926_v41 = vadd.f32 %v2925_v47, %v2924_v38  ;;  %v2933_v26 = vadd.f32 %v2932_v3, %v2931_v54  ;;  %v4715_v49 = vsel %vm4660_vm4, %v2912_v14, %v2905_v22  ;;  %v2946_v23 = vrot.slane %v2945_v8, 1  ;;  %v20425_v54 = vld [vmem:[%s19818_s22 + $0x290] sm:$0x1]  ;;  %v20428_v20 = vld [vmem:[%s19818_s22 + $0x29c] sm:$0x1] }
 0x142   : > { %v2940_v59 = vadd.f32 %v2939_v50, %v2938_v60  ;;  %v2953_v19 = vrot.slane %v2952_v33, 1  ;;  %v4700_v11 = vsel %vm4662_vm5, %v20320_v44, %v4699_v57  ;;  %v4716_v48 = vsel %vm4662_vm5, %v2919_v58, %v4715_v49  ;;  %v20431_v60 = vld [vmem:[%s19818_s22 + $0x338] sm:$0x1]  ;;  %v20434_v13 = vld [vmem:[%s19818_s22 + $0x344] sm:$0x1] }
 0x143   : > { %v4701_v28 = vsel %vm4664_vm6, %v20322_v36, %v4700_v11  ;;  %v485_v44 = vunpack.c.l.bf16 %v20349_v43  ;;  %v488_v0 = vunpack.c.l.bf16 %v20352_v61  ;;  %v2947_v16 = vadd.f32 %v2946_v23, %v2945_v8  ;;  %v20442_v47 = vld [vmem:[%s19818_s22 + $0x350] sm:$0x1]  ;;  %v20445_v3 = vld [vmem:[%s19818_s22 + $0x35c] sm:$0x1]  ;;  %v20448_v58 = vld [vmem:[%s19818_s22 + $0x368] sm:$0x1] }
 0x144   : > { %v2954_v30 = vadd.f32 %v2953_v19, %v2952_v33  ;;  %v4702_v36 = vsel %vm4666_vm7, %v20326_v4, %v4701_v28  ;;  %v4717_v21 = vsel %vm4664_vm6, %v2926_v41, %v4716_v48  ;;  %v20411_v4 = vld [vmem:[%s19818_s22 + $0x26c] sm:$0x1]  ;;  %v491_v53 = vunpack.c.l.bf16 %v20355_v63  ;;  %v20451_v50 = vld [vmem:[%s19818_s22 + $0x404] sm:$0x1]  ;;  %v20457_v41 = vld [vmem:[%s19818_s22 + $0x410] sm:$0x1] }
 0x145   : > { %v4703_v29 = vsel %vm4668_vm8, %v20331_v27, %v4702_v36  ;;  %v4718_v39 = vsel %vm4666_vm7, %v2933_v26, %v4717_v21  ;;  %v494_v17 = vunpack.c.l.bf16 %v20358_v55  ;;  %v503_v8 = vunpack.c.l.bf16 %v20373_v1  ;;  %v20460_v26 = vld [vmem:[%s19818_s22 + $0x41c] sm:$0x1]  ;;  %v20463_v57 = vld [vmem:[%s19818_s22 + $0x428] sm:$0x1]  ;;  %v20466_v49 = vld [vmem:[%s19818_s22 + $0x434] sm:$0x1] }
 0x146   : > { %v4704_v27 = vsel %vm4670_vm9, %v20333_v24, %v4703_v29  ;;  %v4719_v38 = vsel %vm4668_vm8, %v2940_v59, %v4718_v39  ;;  %v509_v59 = vunpack.c.l.bf16 %v20382_v25  ;;  %v512_v23 = vunpack.c.l.bf16 %v20385_v5  ;;  %v20472_v1 = vld [vmem:[%s19818_s22 + $0x4d0] sm:$0x1]  ;;  %v20475_v28 = vld [vmem:[%s19818_s22 + $0x4dc] sm:$0x1]  ;;  %v20478_v48 = vld [vmem:[%s19818_s22 + $0x4e8] sm:$0x1] }
 0x147   : > { %v4705_v24 = vsel %vm4672_vm10, %v20340_v9, %v4704_v27  ;;  %v4720_v14 = vsel %vm4670_vm9, %v2947_v16, %v4719_v38  ;;  %v515_v19 = vunpack.c.l.bf16 %v20388_v42  ;;  %v20481_v16 = vld [vmem:[%s19818_s22 + $0x4f4] sm:$0x1]  ;;  %v521_v36 = vunpack.c.l.bf16 %v20399_v40  ;;  %v20487_v5 = vld [vmem:[%s19818_s22 + $0x500] sm:$0x1]  ;;  %v20490_v42 = vld [vmem:[%s19818_s22 + $0x59c] sm:$0x1] }
 0x148   : > { %v4721_v9 = vsel %vm4672_vm10, %v2954_v30, %v4720_v14  ;;  %v518_v30 = vunpack.c.l.bf16 %v20396_v51  ;;  %v524_v25 = vunpack.c.l.bf16 %v20402_v32  ;;  %v20493_v21 = vld [vmem:[%s19818_s22 + $0x5a8] sm:$0x1]  ;;  %v20496_v29 = vld [vmem:[%s19818_s22 + $0x5b4] sm:$0x1]  ;;  %v527_v39 = vunpack.c.l.bf16 %v20408_v15  ;;  %v20504_v40 = vld [vmem:[%s19818_s22 + $0x5c0] sm:$0x1] }
 0x149   : > { %v5060_v11 = vpack.c.bf16 %v4721_v9, %v4705_v24  ;;  %v530_v27 = vunpack.c.l.bf16 %v20411_v4  ;;  %v533_v38 = vunpack.c.l.bf16 %v20414_v34  ;;  %v536_v51 = vunpack.c.l.bf16 %v20417_v6  ;;  %v20507_v32 = vld [vmem:[%s19818_s22 + $0x5cc] sm:$0x1]  ;;  %v20514_v33 = vld [vmem:[%s19818_s22 + $0x30] sm:$0xff]  }
 0x14a   : > { %v539_v24 = vunpack.c.l.bf16 %v20425_v54  ;;  %v542_v14 = vunpack.c.l.bf16 %v20428_v20  ;;  %v545_v9 = vunpack.c.l.bf16 %v20431_v60  ;;  %v548_v15 = vunpack.c.l.bf16 %v20434_v13  ;;  %24441 = vst [vmem:[#allocation21_spill] sm:$0xff] %v20514_v33 }
 0x14b   : > { %17148 = vmatmul.mubr.msk.bf16.gmra.mrb[4].mxu0 %vm603_vm2, %v5060_v11  ;;  %v551_v4 = vunpack.c.l.bf16 %v20442_v47  ;;  %v554_v34 = vunpack.c.l.bf16 %v20445_v3  ;;  %v557_v6 = vunpack.c.l.bf16 %v20448_v58  ;;  %v560_v11 = vunpack.c.l.bf16 %v20451_v50 }
 0x14c   : > { %17151 = vmatprep.mubr.msk.bf16.mxu0 %vm19561_vm0, %v24428_v37  ;;  %v563_v54 = vunpack.c.l.bf16 %v20457_v41  ;;  %v566_v20 = vunpack.c.l.bf16 %v20460_v26  ;;  %v569_v60 = vunpack.c.l.bf16 %v20463_v57  ;;  %v572_v13 = vunpack.c.l.bf16 %v20466_v49 }
 0x14d   : > { %v575_v22 = vunpack.c.l.bf16 %v20472_v1  ;;  %v578_v35 = vunpack.c.l.bf16 %v20475_v28  ;;  %v581_v47 = vunpack.c.l.bf16 %v20478_v48  ;;  %v584_v3 = vunpack.c.l.bf16 %v20481_v16 }
 0x14e   : > { %v590_v50 = vunpack.c.l.bf16 %v20490_v42  ;;  %v623_v28 = vsel %vm622_vm12, %v485_v44, 0.0  ;;  %v624_v58 = vsel %vm622_vm12, %v488_v0, 0.0  ;;  %v626_v41 = vsel %vm622_vm12, %v491_v53, 0.0 }
 0x14f   : > { %v628_v57 = vsel %vm622_vm12, %v494_v17, 0.0  ;;  %v625_v49 = vadd.f32 %v624_v58, %v623_v28  ;;  %v24442_v26 = vunpack.c.l.bf16 %v20365_v56  ;;  %v24443_v43 = vunpack.c.l.bf16 %v20368_v12 }
 0x150   : > { %v651_v61 = vsel %vm622_vm12, %v503_v8, 0.0  ;;  %v24444_v63 = vunpack.c.l.bf16 %v20376_v62  ;;  %v655_v55 = vsel %vm622_vm12, %v509_v59, 0.0  ;;  %v657_v17 = vsel %vm622_vm12, %v512_v23, 0.0 }
 0x151   : > { %v630_v1 = vsel %vm622_vm12, %v24442_v26, 0.0  ;;  %v650_v44 = vsel %vm622_vm12, %v24443_v43, 0.0  ;;  %v627_v58 = vadd.f32 %v626_v41, %v625_v49  ;;  %v677_v56 = vsel %vm622_vm12, %v515_v19, 0.0 }
 0x152   : > { %v652_v0 = vadd.f32 %v651_v61, %v650_v44  ;;  %v653_v53 = vsel %vm622_vm12, %v24444_v63, 0.0  ;;  %v678_v26 = vsel %vm622_vm12, %v518_v30, 0.0  ;;  %v680_v12 = vsel %vm622_vm12, %v521_v36, 0.0 }
 0x153   : > { %v679_v43 = vadd.f32 %v678_v26, %v677_v56  ;;  %v682_v8 = vsel %vm622_vm12, %v524_v25, 0.0  ;;  %v684_v44 = vsel %vm622_vm12, %v527_v39, 0.0  ;;  %v629_v62 = vadd.f32 %v628_v57, %v627_v58 }
 0x154   : > { %v654_v28 = vadd.f32 %v653_v53, %v652_v0  ;;  %v704_v61 = vsel %vm622_vm12, %v530_v27, 0.0  ;;  %v705_v59 = vsel %vm622_vm12, %v533_v38, 0.0  ;;  %v707_v23 = vsel %vm622_vm12, %v536_v51, 0.0 }
 0x155   : > { %v681_v49 = vadd.f32 %v680_v12, %v679_v43  ;;  %v706_v19 = vadd.f32 %v705_v59, %v704_v61  ;;  %v709_v30 = vsel %vm622_vm12, %v539_v24, 0.0  ;;  %v20570_v63 = vadd.f32 %v630_v1, %v629_v62  ;;  %v20615_v62 = vld [vmem:[%s19818_s22 + $0xf0] sm:$0xff]   ;;  %v20618_v61 = vld [vmem:[%s19818_s22 + $0x108] sm:$0xff]  }
 0x156   : > { %v656_v41 = vadd.f32 %v655_v55, %v654_v28  ;;  %v711_v36 = vsel %vm622_vm12, %v542_v14, 0.0  ;;  %v731_v25 = vsel %vm622_vm12, %v545_v9, 0.0  ;;  %v732_v39 = vsel %vm622_vm12, %v548_v15, 0.0  ;;  %24449 = vst [vmem:[#allocation23_spill] sm:$0xff] %v20618_v61 }
 0x157   : > { %v683_v27 = vadd.f32 %v682_v8, %v681_v49  ;;  %v708_v0 = vadd.f32 %v707_v23, %v706_v19  ;;  %v733_v38 = vadd.f32 %v732_v39, %v731_v25  ;;  %v734_v51 = vsel %vm622_vm12, %v551_v4, 0.0  ;;  %v20641_v25 = vld [vmem:[%s19818_s22 + $0x288] sm:$0xff]  }
 0x158   : > { %v20575_v57 = vadd.f32 %v657_v17, %v656_v41  ;;  %v736_v53 = vsel %vm622_vm12, %v554_v34, 0.0  ;;  %v738_v55 = vsel %vm622_vm12, %v557_v6, 0.0  ;;  %v758_v24 = vsel %vm622_vm12, %v560_v11, 0.0  ;;  %v20629_v41 = vld [vmem:[%s19818_s22 + $0x120] sm:$0xff]  }
 0x159   : > { %v20581_v1 = vadd.f32 %v684_v44, %v683_v27  ;;  %v710_v14 = vadd.f32 %v709_v30, %v708_v0  ;;  %v735_v9 = vadd.f32 %v734_v51, %v733_v38  ;;  %v759_v15 = vsel %vm622_vm12, %v563_v54, 0.0  ;;  %24452 = vst [vmem:[#allocation24_spill] sm:$0xff] %v20629_v41  ;;  %v20648_v51 = vld [vmem:[%s19818_s22 + $0x2a0] sm:$0xff]  }
 0x15a   : > { %v760_v17 = vadd.f32 %v759_v15, %v758_v24  ;;  %v761_v58 = vsel %vm622_vm12, %v566_v20, 0.0  ;;  %v763_v56 = vsel %vm622_vm12, %v569_v60, 0.0  ;;  %v765_v4 = vsel %vm622_vm12, %v572_v13, 0.0  ;;  %v20598_v60 = vld [vmem:[%s19818_s22 + $0x48] sm:$0xff]  }
 0x15b   : > { %v20587_v26 = vadd.f32 %v711_v36, %v710_v14  ;;  %v737_v34 = vadd.f32 %v736_v53, %v735_v9  ;;  %v785_v6 = vsel %vm622_vm12, %v575_v22, 0.0  ;;  %v786_v11 = vsel %vm622_vm12, %v578_v35, 0.0  ;;  %24445 = vst [vmem:[#allocation22_spill] sm:$0xff] %v20598_v60  ;;  %v20638_v36 = vld [vmem:[%s19818_s22 + $0x1e0] sm:$0xff]   ;;  %v20651_v53 = vld [vmem:[%s19818_s22 + $0x2b8] sm:$0xff]  }
 0x15c   : > { %v762_v12 = vadd.f32 %v761_v58, %v760_v17  ;;  %v787_v28 = vadd.f32 %v786_v11, %v785_v6  ;;  %v788_v54 = vsel %vm622_vm12, %v581_v47, 0.0  ;;  %v790_v20 = vsel %vm622_vm12, %v584_v3, 0.0  ;;  %24454 = vst [vmem:[#allocation26_spill] sm:$0xff] %v20638_v36  ;;  %v20661_v17 = vld [vmem:[%s19818_s22 + $0x378] sm:$0xff]   ;;  %v20664_v58 = vld [vmem:[%s19818_s22 + $0x420] sm:$0xff]  }
 0x15d   : > { %v20600_v13 = vadd.f32 %v738_v55, %v737_v34  ;;  %v24446_v22 = vunpack.c.l.bf16 %v20487_v5  ;;  %v812_v35 = vsel %vm622_vm12, %v590_v50, 0.0  ;;  %v24447_v48 = vunpack.c.l.bf16 %v20493_v21  ;;  %v20654_v55 = vld [vmem:[%s19818_s22 + $0x360] sm:$0xff]   ;;  %v20716_v15 = vld [vmem:[%s19818_s22 + $0x354] ss:$24 sps:$4 sm:$0xff]  }
 0x15e   : > { %v764_v16 = vadd.f32 %v763_v56, %v762_v12  ;;  %v789_v3 = vadd.f32 %v788_v54, %v787_v28  ;;  %v24448_v44 = vunpack.c.l.bf16 %v20496_v29  ;;  %v24450_v42 = vunpack.c.l.bf16 %v20504_v40  ;;  %v20667_v56 = vld [vmem:[%s19818_s22 + $0x438] sm:$0xff]   ;;  %v20674_v12 = vld [vmem:[%s19818_s22 + $0x450] sm:$0xff]   ;;  %v20723_v23 = vld [vmem:[%s19818_s22 + $0x384] ss:$168 sps:$4 sm:$0xff]  }
 0x15f   : > { %v792_v43 = vsel %vm622_vm12, %v24446_v22, 0.0  ;;  %v813_v47 = vsel %vm622_vm12, %v24447_v48, 0.0  ;;  %v24451_v50 = vunpack.c.l.bf16 %v20507_v32  ;;  %v20635_v32 = vld [vmem:[%s19818_s22 + $0x1c8] sm:$0xff]   ;;  %v20677_v28 = vld [vmem:[%s19818_s22 + $0x4f8] sm:$0xff]   ;;  %v20680_v54 = vld [vmem:[%s19818_s22 + $0x510] sm:$0xff]   ;;  %v1002_v9 = vunpack.c.l.bf16 %v20716_v15 }
 0x160   : > { %v814_v8 = vadd.f32 %v813_v47, %v812_v35  ;;  %v815_v5 = vsel %vm622_vm12, %v24448_v44, 0.0  ;;  %v817_v21 = vsel %vm622_vm12, %v24450_v42, 0.0  ;;  %v20631_v49 = vadd.f32 %v765_v4, %v764_v16  ;;  %24453 = vst [vmem:[#allocation25_spill] sm:$0xff] %v20635_v32  ;;  %v20688_v48 = vld [vmem:[%s19818_s22 + $0x5b8] sm:$0xff]   ;;  %v20691_v47 = vld [vmem:[%s19818_s22 + $0x5d0] sm:$0xff]   ;;  %v20699_v42 = vld [vmem:[%s19818_s22 + $0x5e8] sm:$0xff]  }
 0x161   : > { %v819_v59 = vsel %vm622_vm12, %v24451_v50, 0.0  ;;  %v791_v19 = vadd.f32 %v790_v20, %v789_v3  ;;  %v14815_v16 = vld [vmem:[%s19818_s22 + $0x24] ss:$24 sps:$4 sm:$0xff]   ;;  %v14851_v3 = vld [vmem:[%s19818_s22 + $0x1d4] ss:$24 sps:$4 sm:$0xff]   ;;  %v1008_v27 = vunpack.c.h.bf16 %v20716_v15  ;;  %v1014_v40 = vunpack.c.l.bf16 %v20723_v23 }
 0x162   : > { %v816_v30 = vadd.f32 %v815_v5, %v814_v8  ;;  %v20726_v44 = vld [vmem:[%s19818_s22 + $0x444] ss:$168 sps:$4 sm:$0xff]   ;;  %v942_v5 = vunpack.c.l.bf16 %v14815_v16  ;;  %v948_v8 = vunpack.c.h.bf16 %v14815_v16  ;;  %v978_v4 = vunpack.c.l.bf16 %v14851_v3 }
 0x163   : > { %v20656_v24 = vadd.f32 %v792_v43, %v791_v19  ;;  %v20709_v43 = vld [vmem:[%s19818_s22 + $0x294] ss:$24 sps:$4 sm:$0xff]   ;;  %v984_v34 = vunpack.c.h.bf16 %v14851_v3  ;;  %v1020_v38 = vunpack.c.h.bf16 %v20723_v23  ;;  %v1026_v16 = vunpack.c.l.bf16 %v20726_v44 }
 0x164   : > { %v818_v14 = vadd.f32 %v817_v21, %v816_v30  ;;  %v14827_v21 = vld [vmem:[%s19818_s22 + $0x54] ss:$168 sps:$4 sm:$0xff]   ;;  %v990_v11 = vunpack.c.l.bf16 %v20709_v43  ;;  %v996_v19 = vunpack.c.h.bf16 %v20709_v43  ;;  %v1062_v39 = vsel %vm603_vm2, %v942_v5, 0.0 }
 0x165   : > { %24455 = vst [vmem:[#allocation27_spill] sm:$0xff] %v20656_v24  ;;  %v20729_v30 = vld [vmem:[%s19818_s22 + $0x504] ss:$24 sps:$4 sm:$0xff]   ;;  %v954_v35 = vunpack.c.l.bf16 %v14827_v21  ;;  %v960_v22 = vunpack.c.h.bf16 %v14827_v21  ;;  %v1032_v21 = vunpack.c.h.bf16 %v20726_v44  ;;  %v24457_v15 = vunpack.c.l.bf16 %v20514_v33 }
 0x166   : > { %v20682_v20 = vadd.f32 %v819_v59, %v818_v14  ;;  %v14839_v14 = vld [vmem:[%s19818_s22 + $0x114] ss:$168 sps:$4 sm:$0xff]   ;;  %v1044_v3 = vunpack.c.h.bf16 %v20729_v30  ;;  %v1065_v23 = vsel %vm603_vm2, %v948_v8, 0.0  ;;  %v24458_v37 = vunpack.c.l.bf16 %v20598_v60 }
 0x167   : > { %v20736_v59 = vld [vmem:[%s19818_s22 + $0x5c4] ss:$24 sps:$4 sm:$0xff]   ;;  %v966_v6 = vunpack.c.l.bf16 %v14839_v14  ;;  %v972_v50 = vunpack.c.h.bf16 %v14839_v14  ;;  %v1038_v14 = vunpack.c.l.bf16 %v20729_v30  ;;  %v1063_v29 = vsel %vm603_vm2, %v24457_v15, 0.0 }
 0x168   : > { %24456 = vst [vmem:[#allocation28_spill] sm:$0xff] %v20682_v20  ;;  %v1050_v0 = vunpack.c.l.bf16 %v20736_v59  ;;  %v1067_v44 = vsel %vm603_vm2, %v24458_v37, 0.0  ;;  %v1069_v20 = vsel %vm603_vm2, %v954_v35, 0.0  ;;  %v1064_v46 = vadd.f32 %v1063_v29, %v1062_v39 }
 0x169   : > { %v24459_v30 = vunpack.c.l.bf16 %v20615_v62  ;;  %v1090_v43 = vsel %vm603_vm2, %v960_v22, 0.0  ;;  %v24460_v5 = vunpack.c.l.bf16 %v20618_v61  ;;  %v1094_v8 = vsel %vm603_vm2, %v966_v6, 0.0 }
 0x16a   : > { %v24461_v60 = vunpack.c.l.bf16 %v20629_v41  ;;  %v1116_v35 = vsel %vm603_vm2, %v972_v50, 0.0  ;;  %v1066_v29 = vadd.f32 %v1065_v23, %v1064_v46  ;;  %v24462_v39 = vunpack.c.l.bf16 %v20635_v32 }
 0x16b   : > { %v1089_v24 = vsel %vm603_vm2, %v24459_v30, 0.0  ;;  %v1092_v33 = vsel %vm603_vm2, %v24460_v5, 0.0  ;;  %v1119_v22 = vsel %vm603_vm2, %v978_v4, 0.0  ;;  %v24463_v61 = vunpack.c.l.bf16 %v20638_v36 }
 0x16c   : > { %v1091_v15 = vadd.f32 %v1090_v43, %v1089_v24  ;;  %v1096_v37 = vsel %vm603_vm2, %v24461_v60, 0.0  ;;  %v1117_v30 = vsel %vm603_vm2, %v24462_v39, 0.0  ;;  %v1123_v6 = vsel %vm603_vm2, %v984_v34, 0.0 }
 0x16d   : > { %v1121_v5 = vsel %vm603_vm2, %v24463_v61, 0.0  ;;  %v1118_v43 = vadd.f32 %v1117_v30, %v1116_v35  ;;  %v24464_v41 = vunpack.c.l.bf16 %v20641_v25  ;;  %v1068_v50 = vadd.f32 %v1067_v44, %v1066_v29 }
 0x16e   : > { %v1093_v24 = vadd.f32 %v1092_v33, %v1091_v15  ;;  %v1144_v46 = vsel %vm603_vm2, %v990_v11, 0.0  ;;  %v24465_v23 = vunpack.c.l.bf16 %v20648_v51  ;;  %v1148_v4 = vsel %vm603_vm2, %v996_v19, 0.0 }
 0x16f   : > { %v1143_v60 = vsel %vm603_vm2, %v24464_v41, 0.0  ;;  %v1120_v32 = vadd.f32 %v1119_v22, %v1118_v43  ;;  %v24466_v33 = vunpack.c.l.bf16 %v20651_v53  ;;  %v20793_v15 = vadd.f32 %v1069_v20, %v1068_v50 }
 0x170   : > { %v1146_v39 = vsel %vm603_vm2, %v24465_v23, 0.0  ;;  %v1095_v36 = vadd.f32 %v1094_v8, %v1093_v24  ;;  %v1145_v61 = vadd.f32 %v1144_v46, %v1143_v60  ;;  %v1170_v41 = vsel %vm603_vm2, %v1002_v9, 0.0 }
 0x171   : > { %v1150_v34 = vsel %vm603_vm2, %v24466_v33, 0.0  ;;  %v24467_v44 = vunpack.c.l.bf16 %v20654_v55  ;;  %v1173_v35 = vsel %vm603_vm2, %v1008_v27, 0.0  ;;  %v1122_v19 = vadd.f32 %v1121_v5, %v1120_v32 }
 0x172   : > { %v20800_v29 = vadd.f32 %v1096_v37, %v1095_v36  ;;  %v1147_v8 = vadd.f32 %v1146_v39, %v1145_v61  ;;  %v24468_v22 = vunpack.c.l.bf16 %v20661_v17  ;;  %v1177_v20 = vsel %vm603_vm2, %v1014_v40, 0.0 }
 0x173   : > { %v1171_v11 = vsel %vm603_vm2, %v24467_v44, 0.0  ;;  %v24469_v43 = vunpack.c.l.bf16 %v20664_v58  ;;  %v1198_v60 = vsel %vm603_vm2, %v1020_v38, 0.0  ;;  %v20810_v50 = vadd.f32 %v1123_v6, %v1122_v19 }
 0x174   : > { %v1172_v30 = vadd.f32 %v1171_v11, %v1170_v41  ;;  %v1175_v24 = vsel %vm603_vm2, %v24468_v22, 0.0  ;;  %v1149_v27 = vadd.f32 %v1148_v4, %v1147_v8  ;;  %v24470_v32 = vunpack.c.l.bf16 %v20667_v56 }
 0x175   : > { %v1197_v9 = vsel %vm603_vm2, %v24469_v43, 0.0  ;;  %v1202_v46 = vsel %vm603_vm2, %v1026_v16, 0.0  ;;  %v24471_v23 = vunpack.c.l.bf16 %v20674_v12  ;;  %v1224_v39 = vsel %vm603_vm2, %v1032_v21, 0.0 }
 0x176   : > { %v1174_v36 = vadd.f32 %v1173_v35, %v1172_v30  ;;  %v1199_v37 = vadd.f32 %v1198_v60, %v1197_v9  ;;  %v1200_v5 = vsel %vm603_vm2, %v24470_v32, 0.0  ;;  %v20820_v61 = vadd.f32 %v1150_v34, %v1149_v27 }
 0x177   : > { %v1204_v40 = vsel %vm603_vm2, %v24471_v23, 0.0  ;;  %v24472_v4 = vunpack.c.l.bf16 %v20677_v28  ;;  %v1227_v44 = vsel %vm603_vm2, %v1038_v14, 0.0  ;;  %v24473_v11 = vunpack.c.l.bf16 %v20680_v54 }
 0x178   : > { %v1176_v38 = vadd.f32 %v1175_v24, %v1174_v36  ;;  %v1201_v6 = vadd.f32 %v1200_v5, %v1199_v37  ;;  %v1231_v35 = vsel %vm603_vm2, %v1044_v3, 0.0  ;;  %v24474_v34 = vunpack.c.l.bf16 %v20688_v48 }
 0x179   : > { %v1225_v33 = vsel %vm603_vm2, %v24472_v4, 0.0  ;;  %v1229_v16 = vsel %vm603_vm2, %v24473_v11, 0.0  ;;  %v1252_v30 = vsel %vm603_vm2, %v1050_v0, 0.0  ;;  %v24475_v43 = vunpack.c.l.bf16 %v20691_v47  ;;  %v24478_v11 = vld [vmem:[#allocation27_spill] sm:$0xff] }
 0x17a   : > { %v1226_v41 = vadd.f32 %v1225_v33, %v1224_v39  ;;  %v20830_v19 = vadd.f32 %v1177_v20, %v1176_v38  ;;  %v1203_v21 = vadd.f32 %v1202_v46, %v1201_v6  ;;  %v1251_v8 = vsel %vm603_vm2, %v24474_v34, 0.0 }
 0x17b   : > { %v1253_v24 = vadd.f32 %v1252_v30, %v1251_v8  ;;  %v1254_v14 = vsel %vm603_vm2, %v24475_v43, 0.0  ;;  %v24476_v9 = vunpack.c.h.bf16 %v20736_v59  ;;  %v24477_v20 = vunpack.c.l.bf16 %v20699_v42 }
 0x17c   : > { %v1228_v22 = vadd.f32 %v1227_v44, %v1226_v41  ;;  %v20842_v3 = vadd.f32 %v1204_v40, %v1203_v21  ;;  %v2964_v36 = vrot.slane %v20222_v18, 4  ;;  %v2965_v0 = vrot.slane %v20570_v63, 4  ;;  %v24480_v21 = vld [vmem:[#allocation28_spill] sm:$0xff] }
 0x17d   : > { %v1256_v60 = vsel %vm603_vm2, %v24476_v9, 0.0  ;;  %v1258_v27 = vsel %vm603_vm2, %v24477_v20, 0.0  ;;  %v1255_v32 = vadd.f32 %v1254_v14, %v1253_v24  ;;  %v2967_v5 = vrot.slane %v20231_v31, 4 }
 0x17e   : > { %v1230_v37 = vadd.f32 %v1229_v16, %v1228_v22  ;;  %v2968_v46 = vrot.slane %v20575_v57, 4  ;;  %v2966_v59 = vsel %vm2963_vm1, %v2964_v36, %v2965_v0  ;;  %v2970_v23 = vrot.slane %v20241_v7, 4  ;;  %v24479_v16 = vld [vmem:[#allocation20_spill] sm:$0xff] }
 0x17f   : > { %v2971_v40 = vrot.slane %v20581_v1, 4  ;;  %v2973_v39 = vrot.slane %v20251_v45, 4  ;;  %v1257_v6 = vadd.f32 %v1256_v60, %v1255_v32  ;;  %v2974_v63 = vrot.slane %v20587_v26, 4 }
 0x180   : > { %v20855_v38 = vadd.f32 %v1231_v35, %v1230_v37  ;;  %v2969_v18 = vsel %vm2963_vm1, %v2967_v5, %v2968_v46  ;;  %v2976_v31 = vrot.slane %v20261_v52, 4  ;;  %v2977_v57 = vrot.slane %v20600_v13, 4 }
 0x181   : > { %v2972_v4 = vsel %vm2963_vm1, %v2970_v23, %v2971_v40  ;;  %v2979_v33 = vrot.slane %v20275_v10, 4  ;;  %v20863_v7 = vadd.f32 %v1258_v27, %v1257_v6  ;;  %v2975_v1 = vsel %vm2963_vm1, %v2973_v39, %v2974_v63 }
 0x182   : > { %v2980_v45 = vrot.slane %v20631_v49, 4  ;;  %v2982_v41 = vrot.slane %v20288_v2, 4  ;;  %v2978_v44 = vsel %vm2963_vm1, %v2976_v31, %v2977_v57  ;;  %v2983_v26 = vrot.slane %v24478_v11, 4 }
 0x183   : > { %v2985_v35 = vrot.slane %v24479_v16, 4  ;;  %v2986_v52 = vrot.slane %v24480_v21, 4  ;;  %v2996_v10 = vsel %vm2649_vm3, %v2966_v59, 0.0  ;;  %v3003_v34 = vsel %vm2649_vm3, %v2969_v18, 0.0 }
 0x184   : > { %v2981_v13 = vsel %vm2963_vm1, %v2979_v33, %v2980_v45  ;;  %v3010_v8 = vsel %vm2649_vm3, %v2972_v4, 0.0  ;;  %v2984_v49 = vsel %vm2963_vm1, %v2982_v41, %v2983_v26  ;;  %v2997_v30 = vrot.slane %v2996_v10, 4 }
 0x185   : > { %v2987_v2 = vsel %vm2963_vm1, %v2985_v35, %v2986_v52  ;;  %v3004_v22 = vrot.slane %v3003_v34, 4  ;;  %v3011_v24 = vrot.slane %v3010_v8, 4  ;;  %v3017_v43 = vsel %vm2649_vm3, %v2975_v1, 0.0 }
 0x186   : > { %v3024_v14 = vsel %vm2649_vm3, %v2978_v44, 0.0  ;;  %v3031_v9 = vsel %vm2649_vm3, %v2981_v13, 0.0  ;;  %v2998_v60 = vadd.f32 %v2997_v30, %v2996_v10  ;;  %v3018_v27 = vrot.slane %v3017_v43, 4 }
 0x187   : > { %v3005_v20 = vadd.f32 %v3004_v22, %v3003_v34  ;;  %v3025_v36 = vrot.slane %v3024_v14, 4  ;;  %v3012_v0 = vadd.f32 %v3011_v24, %v3010_v8  ;;  %v3032_v37 = vrot.slane %v3031_v9, 4 }
 0x188   : > { %v3038_v32 = vsel %vm2649_vm3, %v2984_v49, 0.0  ;;  %v3045_v5 = vsel %vm2649_vm3, %v2987_v2, 0.0  ;;  %v2999_v46 = vrot.slane %v2998_v60, 2  ;;  %v3019_v23 = vadd.f32 %v3018_v27, %v3017_v43 }
 0x189   : > { %v3006_v59 = vrot.slane %v3005_v20, 2  ;;  %v3026_v40 = vadd.f32 %v3025_v36, %v3024_v14  ;;  %v3013_v39 = vrot.slane %v3012_v0, 2  ;;  %v3033_v6 = vadd.f32 %v3032_v37, %v3031_v9 }
 0x18a   : > { %v3039_v18 = vrot.slane %v3038_v32, 4  ;;  %v3046_v63 = vrot.slane %v3045_v5, 4  ;;  %v3000_v4 = vadd.f32 %v2999_v46, %v2998_v60  ;;  %v3020_v57 = vrot.slane %v3019_v23, 2 }
 0x18b   : > { %v3007_v31 = vadd.f32 %v3006_v59, %v3005_v20  ;;  %v3027_v33 = vrot.slane %v3026_v40, 2  ;;  %v3014_v1 = vadd.f32 %v3013_v39, %v3012_v0  ;;  %v3034_v45 = vrot.slane %v3033_v6, 2 }
 0x18c   : > { %v3040_v41 = vadd.f32 %v3039_v18, %v3038_v32  ;;  %v3047_v44 = vadd.f32 %v3046_v63, %v3045_v5  ;;  %v3001_v11 = vrot.slane %v3000_v4, 1  ;;  %v3021_v16 = vadd.f32 %v3020_v57, %v3019_v23 }
 0x18d   : > { %v3008_v26 = vrot.slane %v3007_v31, 1  ;;  %v3028_v35 = vadd.f32 %v3027_v33, %v3026_v40  ;;  %v3015_v21 = vrot.slane %v3014_v1, 1  ;;  %v3035_v52 = vadd.f32 %v3034_v45, %v3033_v6 }
 0x18e   : > { %v3041_v13 = vrot.slane %v3040_v41, 2  ;;  %v3048_v10 = vrot.slane %v3047_v44, 2  ;;  %v20883_v34 = vadd.f32 %v3001_v11, %v3000_v4  ;;  %v3022_v49 = vrot.slane %v3021_v16, 1 }
 0x18f   : > { %v20885_v8 = vadd.f32 %v3008_v26, %v3007_v31  ;;  %v3029_v2 = vrot.slane %v3028_v35, 1  ;;  %v20887_v30 = vadd.f32 %v3015_v21, %v3014_v1  ;;  %v3036_v22 = vrot.slane %v3035_v52, 1 }
 0x190   : > { %v3042_v24 = vadd.f32 %v3041_v13, %v3040_v41  ;;  %v3049_v43 = vadd.f32 %v3048_v10, %v3047_v44  ;;  %v20889_v14 = vadd.f32 %v3022_v49, %v3021_v16  ;;  %v3052_v60 = vsel %vm2649_vm3, %v20793_v15, 0.0 }
 0x191   : > { %v20891_v9 = vadd.f32 %v3029_v2, %v3028_v35  ;;  %v3059_v20 = vsel %vm2649_vm3, %v20800_v29, 0.0  ;;  %v20897_v27 = vadd.f32 %v3036_v22, %v3035_v52  ;;  %v3053_v37 = vrot.slane %v3052_v60, 4 }
 0x192   : > { %v3043_v36 = vrot.slane %v3042_v24, 1  ;;  %v3050_v0 = vrot.slane %v3049_v43, 1  ;;  %v3060_v32 = vrot.slane %v3059_v20, 4  ;;  %v3066_v5 = vsel %vm2649_vm3, %v20810_v50, 0.0 }
 0x193   : > { %v3073_v46 = vsel %vm2649_vm3, %v20820_v61, 0.0  ;;  %v3080_v59 = vsel %vm2649_vm3, %v20830_v19, 0.0  ;;  %v3054_v39 = vadd.f32 %v3053_v37, %v3052_v60  ;;  %v3067_v6 = vrot.slane %v3066_v5, 4 }
 0x194   : > { %v20905_v23 = vadd.f32 %v3043_v36, %v3042_v24  ;;  %v20907_v40 = vadd.f32 %v3050_v0, %v3049_v43  ;;  %v3061_v18 = vadd.f32 %v3060_v32, %v3059_v20  ;;  %v3074_v63 = vrot.slane %v3073_v46, 4 }
 0x195   : > { %v3081_v4 = vrot.slane %v3080_v59, 4  ;;  %v3087_v31 = vsel %vm2649_vm3, %v20842_v3, 0.0  ;;  %v3055_v57 = vrot.slane %v3054_v39, 2  ;;  %v3068_v33 = vadd.f32 %v3067_v6, %v3066_v5 }
 0x196   : > { %v3088_v1 = vrot.slane %v3087_v31, 4  ;;  %v3094_v45 = vsel %vm2649_vm3, %v20855_v38, 0.0  ;;  %v3062_v41 = vrot.slane %v3061_v18, 2  ;;  %v3075_v44 = vadd.f32 %v3074_v63, %v3073_v46 }
 0x197   : > { %v3082_v11 = vadd.f32 %v3081_v4, %v3080_v59  ;;  %v3095_v26 = vrot.slane %v3094_v45, 4  ;;  %v3056_v16 = vadd.f32 %v3055_v57, %v3054_v39  ;;  %v3069_v35 = vrot.slane %v3068_v33, 2  ;;  %v20916_v39 = vld [vmem:[%s19818_s22 + $0x28] ss:$24 sps:$4 sm:$0xff]  }
 0x198   : > { %v3089_v21 = vadd.f32 %v3088_v1, %v3087_v31  ;;  %v3101_v52 = vsel %vm2649_vm3, %v20863_v7, 0.0  ;;  %v3063_v13 = vadd.f32 %v3062_v41, %v3061_v18  ;;  %v3076_v10 = vrot.slane %v3075_v44, 2 }
 0x199   : > { %v3083_v49 = vrot.slane %v3082_v11, 2  ;;  %v3096_v2 = vadd.f32 %v3095_v26, %v3094_v45  ;;  %v3057_v22 = vrot.slane %v3056_v16, 1  ;;  %v3070_v24 = vadd.f32 %v3069_v35, %v3068_v33  ;;  %v14828_v45 = vld [vmem:[%s19818_s22 + $0x58] ss:$168 sps:$4 sm:$0xff]  }
 0x19a   : > { %v3090_v43 = vrot.slane %v3089_v21, 2  ;;  %v3102_v60 = vrot.slane %v3101_v52, 4  ;;  %v3064_v20 = vrot.slane %v3063_v13, 1  ;;  %v3077_v36 = vadd.f32 %v3076_v10, %v3075_v44  ;;  %v14852_v10 = vld [vmem:[%s19818_s22 + $0x1d8] ss:$24 sps:$4 sm:$0xff]  }
 0x19b   : > { %v3084_v0 = vadd.f32 %v3083_v49, %v3082_v11  ;;  %v3097_v37 = vrot.slane %v3096_v2, 2  ;;  %v3058_v32 = vadd.f32 %v3057_v22, %v3056_v16  ;;  %v3071_v5 = vrot.slane %v3070_v24, 1 }
 0x19c   : > { %v3091_v46 = vadd.f32 %v3090_v43, %v3089_v21  ;;  %v3103_v59 = vadd.f32 %v3102_v60, %v3101_v52  ;;  %v3065_v6 = vadd.f32 %v3064_v20, %v3063_v13  ;;  %v3078_v18 = vrot.slane %v3077_v36, 1  ;;  %v14840_v13 = vld [vmem:[%s19818_s22 + $0x118] ss:$168 sps:$4 sm:$0xff]  }
 0x19d   : > { %v3085_v63 = vrot.slane %v3084_v0, 1  ;;  %v3098_v4 = vadd.f32 %v3097_v37, %v3096_v2  ;;  %v3072_v31 = vadd.f32 %v3071_v5, %v3070_v24  ;;  %v4731_v1 = vsel %vm4660_vm4, %v20885_v8, %v20883_v34  ;;  %v20933_v2 = vld [vmem:[%s19818_s22 + $0x298] ss:$24 sps:$4 sm:$0xff]  }
 0x19e   : > { %v3092_v57 = vrot.slane %v3091_v46, 1  ;;  %v3104_v33 = vrot.slane %v3103_v59, 2  ;;  %v3079_v41 = vadd.f32 %v3078_v18, %v3077_v36  ;;  %v4732_v26 = vsel %vm4662_vm5, %v20887_v30, %v4731_v1  ;;  %v20944_v20 = vld [vmem:[%s19818_s22 + $0x358] ss:$24 sps:$4 sm:$0xff]  }
 0x19f   : > { %v3086_v44 = vadd.f32 %v3085_v63, %v3084_v0  ;;  %v3099_v11 = vrot.slane %v3098_v4, 1  ;;  %v4733_v21 = vsel %vm4664_vm6, %v20889_v14, %v4732_v26  ;;  %v4747_v52 = vsel %vm4660_vm4, %v3065_v6, %v3058_v32  ;;  %v20947_v36 = vld [vmem:[%s19818_s22 + $0x388] ss:$168 sps:$4 sm:$0xff]  }
 0x1a0   : > { %v3093_v16 = vadd.f32 %v3092_v57, %v3091_v46  ;;  %v3105_v35 = vadd.f32 %v3104_v33, %v3103_v59  ;;  %v4734_v8 = vsel %vm4666_vm7, %v20891_v9, %v4733_v21  ;;  %v4748_v49 = vsel %vm4662_vm5, %v3072_v31, %v4747_v52  ;;  %v20950_v0 = vld [vmem:[%s19818_s22 + $0x448] ss:$168 sps:$4 sm:$0xff]  }
 0x1a1   : > { %v3100_v34 = vadd.f32 %v3099_v11, %v3098_v4  ;;  %v943_v30 = vunpack.c.l.bf16 %v20916_v39  ;;  %v4735_v14 = vsel %vm4668_vm8, %v20897_v27, %v4734_v8  ;;  %v4749_v24 = vsel %vm4664_vm6, %v3079_v41, %v4748_v49  ;;  %v20961_v31 = vld [vmem:[%s19818_s22 + $0x5c8] ss:$24 sps:$4 sm:$0xff]  }
 0x1a2   : > { %v3106_v22 = vrot.slane %v3105_v35, 1  ;;  %v949_v43 = vunpack.c.h.bf16 %v20916_v39  ;;  %v4736_v60 = vsel %vm4670_vm9, %v20905_v23, %v4735_v14  ;;  %v4750_v9 = vsel %vm4666_vm7, %v3086_v44, %v4749_v24  ;;  %v20957_v39 = vld [vmem:[%s19818_s22 + $0x508] ss:$24 sps:$4 sm:$0xff]   ;;  %v24484_v14 = vld [vmem:[#allocation22_spill] sm:$0xff] }
 0x1a3   : > { %v955_v37 = vunpack.c.l.bf16 %v14828_v45  ;;  %v961_v32 = vunpack.c.h.bf16 %v14828_v45  ;;  %v4737_v27 = vsel %vm4672_vm10, %v20907_v40, %v4736_v60  ;;  %v4751_v46 = vsel %vm4668_vm8, %v3093_v16, %v4750_v9 }
 0x1a4   : > { %v3107_v5 = vadd.f32 %v3106_v22, %v3105_v35  ;;  %v967_v59 = vunpack.c.l.bf16 %v14840_v13  ;;  %v4752_v23 = vsel %vm4670_vm9, %v3100_v34, %v4751_v46  ;;  %v973_v6 = vunpack.c.h.bf16 %v14840_v13 }
 0x1a5   : > { %v979_v18 = vunpack.c.l.bf16 %v14852_v10  ;;  %v985_v63 = vunpack.c.h.bf16 %v14852_v10  ;;  %v991_v57 = vunpack.c.l.bf16 %v20933_v2  ;;  %v997_v33 = vunpack.c.h.bf16 %v20933_v2  ;;  %v24481_v10 = vld [vmem:[#allocation21_spill] sm:$0xff] }
 0x1a6   : > { %v4753_v4 = vsel %vm4672_vm10, %v3107_v5, %v4752_v23  ;;  %v1003_v40 = vunpack.c.l.bf16 %v20944_v20  ;;  %v1009_v45 = vunpack.c.h.bf16 %v20944_v20  ;;  %v1015_v41 = vunpack.c.l.bf16 %v20947_v36 }
 0x1a7   : > { %v5061_v1 = vpack.c.bf16 %v4753_v4, %v4737_v27  ;;  %v1021_v44 = vunpack.c.h.bf16 %v20947_v36  ;;  %v1027_v11 = vunpack.c.l.bf16 %v20950_v0  ;;  %v1033_v26 = vunpack.c.h.bf16 %v20950_v0  ;;  %v24487_v0 = vld [vmem:[#allocation23_spill] sm:$0xff] }
 0x1a8   : > { %v1039_v16 = vunpack.c.l.bf16 %v20957_v39  ;;  %v1045_v35 = vunpack.c.h.bf16 %v20957_v39  ;;  %v1051_v21 = vunpack.c.l.bf16 %v20961_v31  ;;  %v1057_v52 = vunpack.c.h.bf16 %v20961_v31  ;;  %v24489_v39 = vld [vmem:[#allocation24_spill] sm:$0xff] }
 0x1a9   : > { %17152 = vmatmul.mubr.msk.bf16.gmra.mrb[8].mxu0 %vm603_vm2, %v5061_v1  ;;  %v1071_v13 = vsel %vm603_vm2, %v943_v30, 0.0  ;;  %v24482_v34 = vunpack.c.h.bf16 %v24481_v10  ;;  %v24483_v49 = vmov 0.0   ;;  %v1074_v22 = vsel %vm603_vm2, %v949_v43, 0.0 }
 0x1aa   : > { %17155 = vmatprep.mubr.msk.bf16.mxu0 %vm19561_vm0, %v24483_v49  ;;  %v24485_v24 = vunpack.c.h.bf16 %v24484_v14  ;;  %v1078_v9 = vsel %vm603_vm2, %v955_v37, 0.0  ;;  %v24486_v20 = vunpack.c.h.bf16 %v20615_v62  ;;  %v1099_v36 = vsel %vm603_vm2, %v961_v32, 0.0 }
 0x1ab   : > { %v1072_v8 = vsel %vm603_vm2, %v24482_v34, 0.0  ;;  %v24488_v5 = vunpack.c.h.bf16 %v24487_v0  ;;  %v1103_v46 = vsel %vm603_vm2, %v967_v59, 0.0  ;;  %v24490_v4 = vunpack.c.h.bf16 %v24489_v39  ;;  %v24493_v34 = vld [vmem:[#allocation26_spill] sm:$0xff] }
 0x1ac   : > { %v1073_v2 = vadd.f32 %v1072_v8, %v1071_v13  ;;  %v1076_v60 = vsel %vm603_vm2, %v24485_v24, 0.0  ;;  %v1098_v30 = vsel %vm603_vm2, %v24486_v20, 0.0  ;;  %v1125_v37 = vsel %vm603_vm2, %v973_v6, 0.0  ;;  %v24491_v13 = vld [vmem:[#allocation25_spill] sm:$0xff] }
 0x1ad   : > { %v1101_v27 = vsel %vm603_vm2, %v24488_v5, 0.0  ;;  %v1100_v43 = vadd.f32 %v1099_v36, %v1098_v30  ;;  %v1105_v1 = vsel %vm603_vm2, %v24490_v4, 0.0  ;;  %v24492_v62 = vunpack.c.h.bf16 %v24491_v13 }
 0x1ae   : > { %v1075_v23 = vadd.f32 %v1074_v22, %v1073_v2  ;;  %v1128_v32 = vsel %vm603_vm2, %v979_v18, 0.0  ;;  %v24494_v8 = vunpack.c.h.bf16 %v24493_v34  ;;  %v1132_v59 = vsel %vm603_vm2, %v985_v63, 0.0 }
 0x1af   : > { %v1126_v10 = vsel %vm603_vm2, %v24492_v62, 0.0  ;;  %v1102_v22 = vadd.f32 %v1101_v27, %v1100_v43  ;;  %v24495_v20 = vunpack.c.h.bf16 %v20641_v25  ;;  %v1153_v6 = vsel %vm603_vm2, %v991_v57, 0.0 }
 0x1b0   : > { %v1130_v14 = vsel %vm603_vm2, %v24494_v8, 0.0  ;;  %v1077_v2 = vadd.f32 %v1076_v60, %v1075_v23  ;;  %v1127_v24 = vadd.f32 %v1126_v10, %v1125_v37  ;;  %v24496_v36 = vunpack.c.h.bf16 %v20648_v51 }
 0x1b1   : > { %v1152_v30 = vsel %vm603_vm2, %v24495_v20, 0.0  ;;  %v1157_v18 = vsel %vm603_vm2, %v997_v33, 0.0  ;;  %v24497_v5 = vunpack.c.h.bf16 %v20651_v53  ;;  %v1104_v60 = vadd.f32 %v1103_v46, %v1102_v22 }
 0x1b2   : > { %v1155_v0 = vsel %vm603_vm2, %v24496_v36, 0.0  ;;  %v21018_v63 = vadd.f32 %v1078_v9, %v1077_v2  ;;  %v1129_v27 = vadd.f32 %v1128_v32, %v1127_v24  ;;  %v1154_v23 = vadd.f32 %v1153_v6, %v1152_v30 }
 0x1b3   : > { %v1159_v39 = vsel %vm603_vm2, %v24497_v5, 0.0  ;;  %v1179_v25 = vsel %vm603_vm2, %v1003_v40, 0.0  ;;  %v24498_v43 = vunpack.c.h.bf16 %v20654_v55  ;;  %v1182_v51 = vsel %vm603_vm2, %v1009_v45, 0.0 }
 0x1b4   : > { %v24499_v4 = vunpack.c.h.bf16 %v20661_v17  ;;  %v21028_v53 = vadd.f32 %v1105_v1, %v1104_v60  ;;  %v1131_v37 = vadd.f32 %v1130_v14, %v1129_v27  ;;  %v1156_v9 = vadd.f32 %v1155_v0, %v1154_v23 }
 0x1b5   : > { %v1180_v57 = vsel %vm603_vm2, %v24498_v43, 0.0  ;;  %v1186_v46 = vsel %vm603_vm2, %v1015_v41, 0.0  ;;  %v24500_v62 = vunpack.c.h.bf16 %v20664_v58  ;;  %v1207_v55 = vsel %vm603_vm2, %v1021_v44, 0.0 }
 0x1b6   : > { %v1184_v33 = vsel %vm603_vm2, %v24499_v4, 0.0  ;;  %v1181_v13 = vadd.f32 %v1180_v57, %v1179_v25  ;;  %v24501_v10 = vunpack.c.h.bf16 %v20667_v56  ;;  %v21038_v17 = vadd.f32 %v1132_v59, %v1131_v37 }
 0x1b7   : > { %v1206_v40 = vsel %vm603_vm2, %v24500_v62, 0.0  ;;  %v1158_v32 = vadd.f32 %v1157_v18, %v1156_v9  ;;  %v1211_v8 = vsel %vm603_vm2, %v1027_v11, 0.0  ;;  %v24502_v14 = vunpack.c.h.bf16 %v20674_v12 }
 0x1b8   : > { %v1209_v45 = vsel %vm603_vm2, %v24501_v10, 0.0  ;;  %v1183_v1 = vadd.f32 %v1182_v51, %v1181_v13  ;;  %v1208_v34 = vadd.f32 %v1207_v55, %v1206_v40  ;;  %v1233_v58 = vsel %vm603_vm2, %v1033_v26, 0.0 }
 0x1b9   : > { %v1213_v41 = vsel %vm603_vm2, %v24502_v14, 0.0  ;;  %v24503_v2 = vunpack.c.h.bf16 %v20677_v28  ;;  %v21048_v56 = vadd.f32 %v1159_v39, %v1158_v32  ;;  %v1236_v20 = vsel %vm603_vm2, %v1039_v16, 0.0 }
 0x1ba   : > { %v1185_v22 = vadd.f32 %v1184_v33, %v1183_v1  ;;  %v1210_v59 = vadd.f32 %v1209_v45, %v1208_v34  ;;  %v24504_v30 = vunpack.c.h.bf16 %v20680_v54  ;;  %v1240_v12 = vsel %vm603_vm2, %v1045_v35, 0.0 }
 0x1bb   : > { %v1234_v44 = vsel %vm603_vm2, %v24503_v2, 0.0  ;;  %v24505_v6 = vunpack.c.h.bf16 %v20688_v48  ;;  %v1261_v18 = vsel %vm603_vm2, %v1051_v21, 0.0  ;;  %v24506_v16 = vunpack.c.h.bf16 %v20691_v47 }
 0x1bc   : > { %v1235_v24 = vadd.f32 %v1234_v44, %v1233_v58  ;;  %v1238_v11 = vsel %vm603_vm2, %v24504_v30, 0.0  ;;  %v21058_v28 = vadd.f32 %v1186_v46, %v1185_v22  ;;  %v1212_v36 = vadd.f32 %v1211_v8, %v1210_v59 }
 0x1bd   : > { %v1260_v26 = vsel %vm603_vm2, %v24505_v6, 0.0  ;;  %v1263_v54 = vsel %vm603_vm2, %v24506_v16, 0.0  ;;  %v1265_v35 = vsel %vm603_vm2, %v1057_v52, 0.0  ;;  %v24507_v48 = vunpack.c.h.bf16 %v20699_v42 }
 0x1be   : > { %v1237_v0 = vadd.f32 %v1236_v20, %v1235_v24  ;;  %v1262_v5 = vadd.f32 %v1261_v18, %v1260_v26  ;;  %v21072_v60 = vadd.f32 %v1213_v41, %v1212_v36  ;;  %v3116_v23 = vrot.slane %v20793_v15, 3 }
 0x1bf   : > { %v1267_v39 = vsel %vm603_vm2, %v24507_v48, 0.0  ;;  %v3117_v21 = vrot.slane %v20800_v29, 3  ;;  %v3118_v47 = vrot.slane %v20810_v50, 3  ;;  %v3119_v43 = vrot.slane %v20820_v61, 3 }
 0x1c0   : > { %v1239_v27 = vadd.f32 %v1238_v11, %v1237_v0  ;;  %v1264_v25 = vadd.f32 %v1263_v54, %v1262_v5  ;;  %v3120_v31 = vrot.slane %v20830_v19, 3  ;;  %v3121_v42 = vrot.slane %v20842_v3, 3 }
 0x1c1   : > { %v3122_v52 = vrot.slane %v20855_v38, 3  ;;  %v3123_v51 = vrot.slane %v20863_v7, 3  ;;  %v3132_v33 = vsel %vm2649_vm3, %v3116_v23, 0.0  ;;  %v3139_v37 = vsel %vm2649_vm3, %v3117_v21, 0.0 }
 0x1c2   : > { %v21079_v57 = vadd.f32 %v1240_v12, %v1239_v27  ;;  %v1266_v4 = vadd.f32 %v1265_v35, %v1264_v25  ;;  %v3146_v9 = vsel %vm2649_vm3, %v3118_v47, 0.0  ;;  %v3133_v13 = vrot.slane %v3132_v33, 4 }
 0x1c3   : > { %v3140_v46 = vrot.slane %v3139_v37, 4  ;;  %v3147_v62 = vrot.slane %v3146_v9, 4  ;;  %v3153_v40 = vsel %vm2649_vm3, %v3119_v43, 0.0  ;;  %v3160_v45 = vsel %vm2649_vm3, %v3120_v31, 0.0 }
 0x1c4   : > { %v21088_v55 = vadd.f32 %v1267_v39, %v1266_v4  ;;  %v3154_v10 = vrot.slane %v3153_v40, 4  ;;  %v3167_v32 = vsel %vm2649_vm3, %v3121_v42, 0.0  ;;  %v3134_v1 = vadd.f32 %v3133_v13, %v3132_v33 }
 0x1c5   : > { %v3141_v34 = vadd.f32 %v3140_v46, %v3139_v37  ;;  %v3148_v8 = vadd.f32 %v3147_v62, %v3146_v9  ;;  %v3161_v14 = vrot.slane %v3160_v45, 4  ;;  %v3168_v58 = vrot.slane %v3167_v32, 4 }
 0x1c6   : > { %v3155_v41 = vadd.f32 %v3154_v10, %v3153_v40  ;;  %v3174_v2 = vsel %vm2649_vm3, %v3122_v52, 0.0  ;;  %v3181_v44 = vsel %vm2649_vm3, %v3123_v51, 0.0  ;;  %v3135_v22 = vrot.slane %v3134_v1, 2 }
 0x1c7   : > { %v3142_v59 = vrot.slane %v3141_v34, 2  ;;  %v3149_v24 = vrot.slane %v3148_v8, 2  ;;  %v3162_v20 = vadd.f32 %v3161_v14, %v3160_v45  ;;  %v3169_v11 = vadd.f32 %v3168_v58, %v3167_v32 }
 0x1c8   : > { %v3156_v30 = vrot.slane %v3155_v41, 2  ;;  %v3175_v12 = vrot.slane %v3174_v2, 4  ;;  %v3182_v6 = vrot.slane %v3181_v44, 4  ;;  %v3136_v26 = vadd.f32 %v3135_v22, %v3134_v1 }
 0x1c9   : > { %v3143_v36 = vadd.f32 %v3142_v59, %v3141_v34  ;;  %v3150_v0 = vadd.f32 %v3149_v24, %v3148_v8  ;;  %v3163_v18 = vrot.slane %v3162_v20, 2  ;;  %v3170_v16 = vrot.slane %v3169_v11, 2 }
 0x1ca   : > { %v3157_v5 = vadd.f32 %v3156_v30, %v3155_v41  ;;  %v3176_v54 = vadd.f32 %v3175_v12, %v3174_v2  ;;  %v3183_v35 = vadd.f32 %v3182_v6, %v3181_v44  ;;  %v3137_v48 = vrot.slane %v3136_v26, 1 }
 0x1cb   : > { %v3144_v39 = vrot.slane %v3143_v36, 1  ;;  %v3151_v27 = vrot.slane %v3150_v0, 1  ;;  %v3164_v23 = vadd.f32 %v3163_v18, %v3162_v20  ;;  %v3171_v25 = vadd.f32 %v3170_v16, %v3169_v11 }
 0x1cc   : > { %v3158_v21 = vrot.slane %v3157_v5, 1  ;;  %v3177_v47 = vrot.slane %v3176_v54, 2  ;;  %v3184_v43 = vrot.slane %v3183_v35, 2  ;;  %v21094_v31 = vadd.f32 %v3137_v48, %v3136_v26 }
 0x1cd   : > { %v21096_v42 = vadd.f32 %v3144_v39, %v3143_v36  ;;  %v21098_v52 = vadd.f32 %v3151_v27, %v3150_v0  ;;  %v3165_v51 = vrot.slane %v3164_v23, 1  ;;  %v3172_v33 = vrot.slane %v3171_v25, 1 }
 0x1ce   : > { %v21100_v4 = vadd.f32 %v3158_v21, %v3157_v5  ;;  %v3178_v37 = vadd.f32 %v3177_v47, %v3176_v54  ;;  %v3185_v9 = vadd.f32 %v3184_v43, %v3183_v35  ;;  %v3196_v46 = vrot.slane %v20793_v15, 6 }
 0x1cf   : > { %v21102_v13 = vadd.f32 %v3165_v51, %v3164_v23  ;;  %v3197_v62 = vrot.slane %v21018_v63, 6  ;;  %v3199_v40 = vrot.slane %v20800_v29, 6  ;;  %v21107_v10 = vadd.f32 %v3172_v33, %v3171_v25 }
 0x1d0   : > { %v3179_v45 = vrot.slane %v3178_v37, 1  ;;  %v3186_v32 = vrot.slane %v3185_v9, 1  ;;  %v3200_v1 = vrot.slane %v21028_v53, 6  ;;  %v3202_v8 = vrot.slane %v20810_v50, 6 }
 0x1d1   : > { %v3198_v34 = vsel %vm2794_vm11, %v3196_v46, %v3197_v62  ;;  %v3203_v14 = vrot.slane %v21038_v17, 6  ;;  %v3205_v41 = vrot.slane %v20820_v61, 6  ;;  %v3206_v2 = vrot.slane %v21048_v56, 6 }
 0x1d2   : > { %v21114_v58 = vadd.f32 %v3179_v45, %v3178_v37  ;;  %v21116_v15 = vadd.f32 %v3186_v32, %v3185_v9  ;;  %v3201_v29 = vsel %vm2794_vm11, %v3199_v40, %v3200_v1  ;;  %v3208_v22 = vrot.slane %v20830_v19, 6 }
 0x1d3   : > { %v3204_v44 = vsel %vm2794_vm11, %v3202_v8, %v3203_v14  ;;  %v3209_v59 = vrot.slane %v21058_v28, 6  ;;  %v3211_v50 = vrot.slane %v20842_v3, 6  ;;  %v3207_v24 = vsel %vm2794_vm11, %v3205_v41, %v3206_v2 }
 0x1d4   : > { %v3212_v61 = vrot.slane %v21072_v60, 6  ;;  %v3214_v20 = vrot.slane %v20855_v38, 6  ;;  %v3215_v30 = vrot.slane %v21079_v57, 6  ;;  %v3217_v12 = vrot.slane %v20863_v7, 6 }
 0x1d5   : > { %v3210_v11 = vsel %vm2794_vm11, %v3208_v22, %v3209_v59  ;;  %v3218_v6 = vrot.slane %v21088_v55, 6  ;;  %v3228_v19 = vsel %vm2649_vm3, %v3198_v34, 0.0  ;;  %v3235_v0 = vsel %vm2649_vm3, %v3201_v29, 0.0 }
 0x1d6   : > { %v3213_v26 = vsel %vm2794_vm11, %v3211_v50, %v3212_v61  ;;  %v3216_v3 = vsel %vm2794_vm11, %v3214_v20, %v3215_v30  ;;  %v3229_v36 = vrot.slane %v3228_v19, 4  ;;  %v3236_v38 = vrot.slane %v3235_v0, 4  ;;  %v21143_v61 = vld [vmem:[%s19818_s22 + $0x2c] sm:$0x1] }
 0x1d7   : > { %v3219_v18 = vsel %vm2794_vm11, %v3217_v12, %v3218_v6  ;;  %v3242_v5 = vsel %vm2649_vm3, %v3204_v44, 0.0  ;;  %v3249_v16 = vsel %vm2649_vm3, %v3207_v24, 0.0  ;;  %v3256_v48 = vsel %vm2649_vm3, %v3210_v11, 0.0 }
 0x1d8   : > { %v3230_v54 = vadd.f32 %v3229_v36, %v3228_v19  ;;  %v3243_v7 = vrot.slane %v3242_v5, 4  ;;  %v3250_v35 = vrot.slane %v3249_v16, 4  ;;  %v3237_v39 = vadd.f32 %v3236_v38, %v3235_v0  ;;  %v21146_v36 = vld [vmem:[%s19818_s22 + $0x38] sm:$0x1]  ;;  %v21149_v0 = vld [vmem:[%s19818_s22 + $0x44] sm:$0x1] }
 0x1d9   : > { %v3257_v27 = vrot.slane %v3256_v48, 4  ;;  %v3263_v23 = vsel %vm2649_vm3, %v3213_v26, 0.0  ;;  %v3270_v21 = vsel %vm2649_vm3, %v3216_v3, 0.0  ;;  %v3277_v46 = vsel %vm2649_vm3, %v3219_v18, 0.0 }
 0x1da   : > { %v3231_v25 = vrot.slane %v3230_v54, 2  ;;  %v3244_v47 = vadd.f32 %v3243_v7, %v3242_v5  ;;  %v3251_v43 = vadd.f32 %v3250_v35, %v3249_v16  ;;  %v3264_v51 = vrot.slane %v3263_v23, 4 }
 0x1db   : > { %v3238_v33 = vrot.slane %v3237_v39, 2  ;;  %v3258_v37 = vadd.f32 %v3257_v27, %v3256_v48  ;;  %v3271_v9 = vrot.slane %v3270_v21, 4  ;;  %v3278_v14 = vrot.slane %v3277_v46, 4  ;;  %v21160_v27 = vld [vmem:[%s19818_s22 + $0x5c] sm:$0x1] }
 0x1dc   : > { %v3232_v62 = vadd.f32 %v3231_v25, %v3230_v54  ;;  %v3245_v40 = vrot.slane %v3244_v47, 2  ;;  %v3252_v45 = vrot.slane %v3251_v43, 2  ;;  %v3265_v32 = vadd.f32 %v3264_v51, %v3263_v23  ;;  %v21155_v54 = vld [vmem:[%s19818_s22 + $0x50] sm:$0x1]  ;;  %v21163_v23 = vld [vmem:[%s19818_s22 + $0xf8] sm:$0x1] }
 0x1dd   : > { %v3239_v1 = vadd.f32 %v3238_v33, %v3237_v39  ;;  %v3259_v34 = vrot.slane %v3258_v37, 2  ;;  %v3272_v8 = vadd.f32 %v3271_v9, %v3270_v21  ;;  %v3279_v24 = vadd.f32 %v3278_v14, %v3277_v46  ;;  %v21169_v25 = vld [vmem:[%s19818_s22 + $0x104] sm:$0x1]  ;;  %v21182_v9 = vld [vmem:[%s19818_s22 + $0x128] sm:$0x1] }
 0x1de   : > { %v3233_v41 = vrot.slane %v3232_v62, 1  ;;  %v3246_v29 = vadd.f32 %v3245_v40, %v3244_v47  ;;  %v3253_v2 = vadd.f32 %v3252_v45, %v3251_v43  ;;  %v3266_v44 = vrot.slane %v3265_v32, 2  ;;  %v21172_v47 = vld [vmem:[%s19818_s22 + $0x110] sm:$0x1]  ;;  %v21175_v43 = vld [vmem:[%s19818_s22 + $0x11c] sm:$0x1] }
 0x1df   : > { %v3240_v22 = vrot.slane %v3239_v1, 1  ;;  %v3260_v59 = vadd.f32 %v3259_v34, %v3258_v37  ;;  %v3273_v50 = vrot.slane %v3272_v8, 2  ;;  %v3280_v3 = vrot.slane %v3279_v24, 2  ;;  %v21185_v46 = vld [vmem:[%s19818_s22 + $0x1c4] sm:$0x1] }
 0x1e0   : > { %v3234_v20 = vadd.f32 %v3233_v41, %v3232_v62  ;;  %v3247_v30 = vrot.slane %v3246_v29, 1  ;;  %v3254_v11 = vrot.slane %v3253_v2, 1  ;;  %v3267_v12 = vadd.f32 %v3266_v44, %v3265_v32  ;;  %v21188_v62 = vld [vmem:[%s19818_s22 + $0x1d0] sm:$0x1]  ;;  %v21194_v32 = vld [vmem:[%s19818_s22 + $0x1dc] sm:$0x1] }
 0x1e1   : > { %v3241_v6 = vadd.f32 %v3240_v22, %v3239_v1  ;;  %v3261_v19 = vrot.slane %v3260_v59, 1  ;;  %v3274_v26 = vadd.f32 %v3273_v50, %v3272_v8  ;;  %v4763_v16 = vsel %vm4660_vm4, %v21096_v42, %v21094_v31  ;;  %v21200_v1 = vld [vmem:[%s19818_s22 + $0x1f4] sm:$0x1]  ;;  %v21214_v44 = vld [vmem:[%s19818_s22 + $0x2a8] sm:$0x1] }
 0x1e2   : > { %v3248_v18 = vadd.f32 %v3247_v30, %v3246_v29  ;;  %v3255_v38 = vadd.f32 %v3254_v11, %v3253_v2  ;;  %v3268_v5 = vrot.slane %v3267_v12, 1  ;;  %v3281_v48 = vadd.f32 %v3280_v3, %v3279_v24  ;;  %v21208_v29 = vld [vmem:[%s19818_s22 + $0x290] sm:$0x1]  ;;  %v21211_v2 = vld [vmem:[%s19818_s22 + $0x29c] sm:$0x1] }
 0x1e3   : > { %v3262_v7 = vadd.f32 %v3261_v19, %v3260_v59  ;;  %v3275_v35 = vrot.slane %v3274_v26, 1  ;;  %v4764_v39 = vsel %vm4662_vm5, %v21098_v52, %v4763_v16  ;;  %v4779_v42 = vsel %vm4660_vm4, %v3241_v6, %v3234_v20  ;;  %v21217_v22 = vld [vmem:[%s19818_s22 + $0x2b4] sm:$0x1]  ;;  %v21224_v24 = vld [vmem:[%s19818_s22 + $0x2c0] sm:$0x1] }
 0x1e4   : > { %v3269_v21 = vadd.f32 %v3268_v5, %v3267_v12  ;;  %v4765_v31 = vsel %vm4664_vm6, %v21100_v4, %v4764_v39  ;;  %v944_v52 = vunpack.c.l.bf16 %v21143_v61  ;;  %v3282_v33 = vrot.slane %v3281_v48, 1  ;;  %v21227_v20 = vld [vmem:[%s19818_s22 + $0x35c] sm:$0x1]  ;;  %v21230_v30 = vld [vmem:[%s19818_s22 + $0x368] sm:$0x1] }
 0x1e5   : > { %v3276_v51 = vadd.f32 %v3275_v35, %v3274_v26  ;;  %v4766_v37 = vsel %vm4666_vm7, %v21102_v13, %v4765_v31  ;;  %v4780_v4 = vsel %vm4662_vm5, %v3248_v18, %v4779_v42  ;;  %v21197_v13 = vld [vmem:[%s19818_s22 + $0x1e8] sm:$0x1]  ;;  %v947_v34 = vunpack.c.l.bf16 %v21146_v36  ;;  %v21233_v11 = vld [vmem:[%s19818_s22 + $0x374] sm:$0x1]  ;;  %v21239_v19 = vld [vmem:[%s19818_s22 + $0x380] sm:$0x1] }
 0x1e6   : > { %v4767_v40 = vsel %vm4668_vm8, %v21107_v10, %v4766_v37  ;;  %v4781_v45 = vsel %vm4664_vm6, %v3255_v38, %v4780_v4  ;;  %v950_v8 = vunpack.c.l.bf16 %v21149_v0  ;;  %v3283_v14 = vadd.f32 %v3282_v33, %v3281_v48  ;;  %v21242_v26 = vld [vmem:[%s19818_s22 + $0x38c] sm:$0x1]  ;;  %v21245_v3 = vld [vmem:[%s19818_s22 + $0x428] sm:$0x1]  ;;  %v21248_v18 = vld [vmem:[%s19818_s22 + $0x434] sm:$0x1] }
 0x1e7   : > { %v4768_v10 = vsel %vm4670_vm9, %v21114_v58, %v4767_v40  ;;  %v4782_v41 = vsel %vm4666_vm7, %v3262_v7, %v4781_v45  ;;  %v953_v59 = vunpack.c.l.bf16 %v21155_v54  ;;  %v956_v12 = vunpack.c.l.bf16 %v21160_v27  ;;  %v21255_v35 = vld [vmem:[%s19818_s22 + $0x440] sm:$0x1]  ;;  %v21258_v48 = vld [vmem:[%s19818_s22 + $0x44c] sm:$0x1]  ;;  %v21261_v39 = vld [vmem:[%s19818_s22 + $0x458] sm:$0x1] }
 0x1e8   : > { %v4769_v50 = vsel %vm4672_vm10, %v21116_v15, %v4768_v10  ;;  %v4783_v58 = vsel %vm4668_vm8, %v3269_v21, %v4782_v41  ;;  %v962_v38 = vunpack.c.l.bf16 %v21169_v25  ;;  %v965_v5 = vunpack.c.l.bf16 %v21172_v47  ;;  %v21264_v21 = vld [vmem:[%s19818_s22 + $0x4f4] sm:$0x1]  ;;  %v21276_v33 = vld [vmem:[%s19818_s22 + $0x518] sm:$0x1]  ;;  %v21279_v37 = vld [vmem:[%s19818_s22 + $0x524] sm:$0x1] }
 0x1e9   : > { %v4784_v15 = vsel %vm4670_vm9, %v3276_v51, %v4783_v58  ;;  %v968_v16 = vunpack.c.l.bf16 %v21175_v43  ;;  %v971_v31 = vunpack.c.l.bf16 %v21182_v9  ;;  %v974_v42 = vunpack.c.l.bf16 %v21185_v46  ;;  %v21270_v43 = vld [vmem:[%s19818_s22 + $0x500] sm:$0x1]  ;;  %v21273_v51 = vld [vmem:[%s19818_s22 + $0x50c] sm:$0x1] }
 0x1ea   : > { %v4785_v7 = vsel %vm4672_vm10, %v3283_v14, %v4784_v15  ;;  %v977_v25 = vunpack.c.l.bf16 %v21188_v62  ;;  %v980_v4 = vunpack.c.l.bf16 %v21194_v32  ;;  %v983_v40 = vunpack.c.l.bf16 %v21197_v13  ;;  %v21285_v9 = vld [vmem:[%s19818_s22 + $0x5c0] sm:$0x1]  ;;  %v21288_v46 = vld [vmem:[%s19818_s22 + $0x5cc] sm:$0x1]  ;;  %v21291_v62 = vld [vmem:[%s19818_s22 + $0x5d8] sm:$0x1] }
 0x1eb   : > { %v5062_v47 = vpack.c.bf16 %v4785_v7, %v4769_v50  ;;  %v986_v45 = vunpack.c.l.bf16 %v21200_v1  ;;  %v21294_v14 = vld [vmem:[%s19818_s22 + $0x5e4] sm:$0x1]  ;;  %v989_v10 = vunpack.c.l.bf16 %v21208_v29  ;;  %v992_v41 = vunpack.c.l.bf16 %v21211_v2  ;;  %v21312_v7 = vld [vmem:[%s19818_s22 + $0x5f0] sm:$0x1] }
 0x1ec   : > { %v995_v50 = vunpack.c.l.bf16 %v21214_v44  ;;  %v998_v32 = vunpack.c.l.bf16 %v21217_v22  ;;  %v1001_v13 = vunpack.c.l.bf16 %v21224_v24  ;;  %v1004_v1 = vunpack.c.l.bf16 %v21227_v20 }
 0x1ed   : > { %17156 = vmatmul.mubr.msk.bf16.gmra.mrb[12].mxu0 %vm603_vm2, %v5062_v47  ;;  %v1007_v58 = vunpack.c.l.bf16 %v21230_v30  ;;  %v1010_v15 = vunpack.c.l.bf16 %v21233_v11  ;;  %v1013_v29 = vunpack.c.l.bf16 %v21239_v19  ;;  %v1016_v2 = vunpack.c.l.bf16 %v21242_v26 }
 0x1ee   : > { %17159 = vmatprep.mubr.msk.bf16.mxu0 %vm19561_vm0, %v24483_v49  ;;  %v1019_v44 = vunpack.c.l.bf16 %v21245_v3  ;;  %v1022_v22 = vunpack.c.l.bf16 %v21248_v18  ;;  %v1025_v24 = vunpack.c.l.bf16 %v21255_v35  ;;  %v1028_v20 = vunpack.c.l.bf16 %v21258_v48 }
 0x1ef   : > { %v1031_v30 = vunpack.c.l.bf16 %v21261_v39  ;;  %v1034_v11 = vunpack.c.l.bf16 %v21264_v21  ;;  %v1037_v47 = vunpack.c.l.bf16 %v21270_v43  ;;  %v1040_v19 = vunpack.c.l.bf16 %v21273_v51 }
 0x1f0   : > { %v1043_v26 = vunpack.c.l.bf16 %v21276_v33  ;;  %v1046_v3 = vunpack.c.l.bf16 %v21279_v37  ;;  %v1049_v18 = vunpack.c.l.bf16 %v21285_v9  ;;  %v1052_v6 = vunpack.c.l.bf16 %v21288_v46 }
 0x1f1   : > { %v1055_v35 = vunpack.c.l.bf16 %v21291_v62  ;;  %v1058_v48 = vunpack.c.l.bf16 %v21294_v14  ;;  %v1061_v39 = vunpack.c.l.bf16 %v21312_v7  ;;  %v1080_v21 = vsel %vm622_vm12, %v944_v52, 0.0 }
 0x1f2   : > { %v1081_v43 = vsel %vm622_vm12, %v947_v34, 0.0  ;;  %v1083_v51 = vsel %vm622_vm12, %v950_v8, 0.0  ;;  %v1085_v37 = vsel %vm622_vm12, %v953_v59, 0.0  ;;  %v1087_v9 = vsel %vm622_vm12, %v956_v12, 0.0 }
 0x1f3   : > { %v1082_v33 = vadd.f32 %v1081_v43, %v1080_v21  ;;  %v24508_v61 = vunpack.c.l.bf16 %v21163_v23  ;;  %v1108_v36 = vsel %vm622_vm12, %v962_v38, 0.0  ;;  %v1110_v34 = vsel %vm622_vm12, %v965_v5, 0.0 }
 0x1f4   : > { %v1112_v0 = vsel %vm622_vm12, %v968_v16, 0.0  ;;  %v1114_v8 = vsel %vm622_vm12, %v971_v31, 0.0  ;;  %v1134_v59 = vsel %vm622_vm12, %v974_v42, 0.0  ;;  %v1135_v27 = vsel %vm622_vm12, %v977_v25, 0.0 }
 0x1f5   : > { %v1107_v52 = vsel %vm622_vm12, %v24508_v61, 0.0  ;;  %v1084_v46 = vadd.f32 %v1083_v51, %v1082_v33  ;;  %v1136_v21 = vadd.f32 %v1135_v27, %v1134_v59  ;;  %v1137_v12 = vsel %vm622_vm12, %v980_v4, 0.0 }
 0x1f6   : > { %v1109_v54 = vadd.f32 %v1108_v36, %v1107_v52  ;;  %v1139_v23 = vsel %vm622_vm12, %v983_v40, 0.0  ;;  %v1141_v43 = vsel %vm622_vm12, %v986_v45, 0.0  ;;  %v1161_v5 = vsel %vm622_vm12, %v989_v10, 0.0 }
 0x1f7   : > { %v1086_v38 = vadd.f32 %v1085_v37, %v1084_v46  ;;  %v1162_v16 = vsel %vm622_vm12, %v992_v41, 0.0  ;;  %v1138_v31 = vadd.f32 %v1137_v12, %v1136_v21  ;;  %v1164_v33 = vsel %vm622_vm12, %v995_v50, 0.0 }
 0x1f8   : > { %v1111_v61 = vadd.f32 %v1110_v34, %v1109_v54  ;;  %v1163_v51 = vadd.f32 %v1162_v16, %v1161_v5  ;;  %v1166_v42 = vsel %vm622_vm12, %v998_v32, 0.0  ;;  %v1168_v4 = vsel %vm622_vm12, %v1001_v13, 0.0 }
 0x1f9   : > { %v21358_v25 = vadd.f32 %v1087_v9, %v1086_v38  ;;  %v1188_v40 = vsel %vm622_vm12, %v1004_v1, 0.0  ;;  %v1140_v45 = vadd.f32 %v1139_v23, %v1138_v31  ;;  %v1189_v36 = vsel %vm622_vm12, %v1007_v58, 0.0 }
 0x1fa   : > { %v1113_v52 = vadd.f32 %v1112_v0, %v1111_v61  ;;  %v1165_v37 = vadd.f32 %v1164_v33, %v1163_v51  ;;  %v1191_v10 = vsel %vm622_vm12, %v1010_v15, 0.0  ;;  %v1190_v34 = vadd.f32 %v1189_v36, %v1188_v40 }
 0x1fb   : > { %v1193_v50 = vsel %vm622_vm12, %v1013_v29, 0.0  ;;  %v1195_v32 = vsel %vm622_vm12, %v1016_v2, 0.0  ;;  %v21368_v9 = vadd.f32 %v1141_v43, %v1140_v45  ;;  %v1215_v13 = vsel %vm622_vm12, %v1019_v44, 0.0 }
 0x1fc   : > { %v21364_v41 = vadd.f32 %v1114_v8, %v1113_v52  ;;  %v1167_v0 = vadd.f32 %v1166_v42, %v1165_v37  ;;  %v1216_v1 = vsel %vm622_vm12, %v1022_v22, 0.0  ;;  %v1192_v46 = vadd.f32 %v1191_v10, %v1190_v34 }
 0x1fd   : > { %v1217_v54 = vadd.f32 %v1216_v1, %v1215_v13  ;;  %v1218_v58 = vsel %vm622_vm12, %v1025_v24, 0.0  ;;  %v1220_v15 = vsel %vm622_vm12, %v1028_v20, 0.0  ;;  %v1222_v59 = vsel %vm622_vm12, %v1031_v30, 0.0 }
 0x1fe   : > { %v21374_v8 = vadd.f32 %v1168_v4, %v1167_v0  ;;  %v1242_v29 = vsel %vm622_vm12, %v1034_v11, 0.0  ;;  %v1243_v2 = vsel %vm622_vm12, %v1037_v47, 0.0  ;;  %v1194_v27 = vadd.f32 %v1193_v50, %v1192_v46 }
 0x1ff   : > { %v1219_v21 = vadd.f32 %v1218_v58, %v1217_v54  ;;  %v1244_v12 = vadd.f32 %v1243_v2, %v1242_v29  ;;  %v1245_v44 = vsel %vm622_vm12, %v1040_v19, 0.0  ;;  %v1247_v22 = vsel %vm622_vm12, %v1043_v26, 0.0 }
 0x200   : > { %v1249_v23 = vsel %vm622_vm12, %v1046_v3, 0.0  ;;  %v1269_v24 = vsel %vm622_vm12, %v1049_v18, 0.0  ;;  %v1270_v20 = vsel %vm622_vm12, %v1052_v6, 0.0  ;;  %v21384_v43 = vadd.f32 %v1195_v32, %v1194_v27 }
 0x201   : > { %v1221_v30 = vadd.f32 %v1220_v15, %v1219_v21  ;;  %v1246_v38 = vadd.f32 %v1245_v44, %v1244_v12  ;;  %v1271_v11 = vadd.f32 %v1270_v20, %v1269_v24  ;;  %v1272_v47 = vsel %vm622_vm12, %v1055_v35, 0.0 }
 0x202   : > { %v1274_v19 = vsel %vm622_vm12, %v1058_v48, 0.0  ;;  %v1276_v26 = vsel %vm622_vm12, %v1061_v39, 0.0  ;;  %v3284_v3 = vrot.slane %v21018_v63, 1  ;;  %v3285_v5 = vrot.slane %v21028_v53, 1 }
 0x203   : > { %v21396_v6 = vadd.f32 %v1222_v59, %v1221_v30  ;;  %v1248_v18 = vadd.f32 %v1247_v22, %v1246_v38  ;;  %v1273_v61 = vadd.f32 %v1272_v47, %v1271_v11  ;;  %v3286_v62 = vrot.slane %v21038_v17, 1 }
 0x204   : > { %v3287_v35 = vrot.slane %v21048_v56, 1  ;;  %v3288_v14 = vrot.slane %v21058_v28, 1  ;;  %v3289_v48 = vrot.slane %v21072_v60, 1  ;;  %v3290_v39 = vrot.slane %v21079_v57, 1 }
 0x205   : > { %v21403_v16 = vadd.f32 %v1249_v23, %v1248_v18  ;;  %v1275_v7 = vadd.f32 %v1274_v19, %v1273_v61  ;;  %v3291_v31 = vrot.slane %v21088_v55, 1  ;;  %v3300_v51 = vsel %vm2649_vm3, %v3284_v3, 0.0 }
 0x206   : > { %v3307_v33 = vsel %vm2649_vm3, %v3285_v5, 0.0  ;;  %v3314_v42 = vsel %vm2649_vm3, %v3286_v62, 0.0  ;;  %v3321_v52 = vsel %vm2649_vm3, %v3287_v35, 0.0  ;;  %v3301_v40 = vrot.slane %v3300_v51, 4 }
 0x207   : > { %v21411_v4 = vadd.f32 %v1276_v26, %v1275_v7  ;;  %v3308_v45 = vrot.slane %v3307_v33, 4  ;;  %v3315_v37 = vrot.slane %v3314_v42, 4  ;;  %v3322_v36 = vrot.slane %v3321_v52, 4 }
 0x208   : > { %v3328_v10 = vsel %vm2649_vm3, %v3288_v14, 0.0  ;;  %v3335_v34 = vsel %vm2649_vm3, %v3289_v48, 0.0  ;;  %v3342_v50 = vsel %vm2649_vm3, %v3290_v39, 0.0  ;;  %v3302_v32 = vadd.f32 %v3301_v40, %v3300_v51 }
 0x209   : > { %v3309_v0 = vadd.f32 %v3308_v45, %v3307_v33  ;;  %v3316_v13 = vadd.f32 %v3315_v37, %v3314_v42  ;;  %v3329_v1 = vrot.slane %v3328_v10, 4  ;;  %v3323_v46 = vadd.f32 %v3322_v36, %v3321_v52 }
 0x20a   : > { %v3336_v54 = vrot.slane %v3335_v34, 4  ;;  %v3343_v58 = vrot.slane %v3342_v50, 4  ;;  %v3349_v15 = vsel %vm2649_vm3, %v3291_v31, 0.0  ;;  %v3303_v59 = vrot.slane %v3302_v32, 2 }
 0x20b   : > { %v3310_v29 = vrot.slane %v3309_v0, 2  ;;  %v3317_v2 = vrot.slane %v3316_v13, 2  ;;  %v3330_v27 = vadd.f32 %v3329_v1, %v3328_v10  ;;  %v3324_v21 = vrot.slane %v3323_v46, 2 }
 0x20c   : > { %v3337_v12 = vadd.f32 %v3336_v54, %v3335_v34  ;;  %v3344_v44 = vadd.f32 %v3343_v58, %v3342_v50  ;;  %v3350_v22 = vrot.slane %v3349_v15, 4  ;;  %v3304_v23 = vadd.f32 %v3303_v59, %v3302_v32 }
 0x20d   : > { %v3311_v24 = vadd.f32 %v3310_v29, %v3309_v0  ;;  %v3318_v20 = vadd.f32 %v3317_v2, %v3316_v13  ;;  %v3331_v30 = vrot.slane %v3330_v27, 2  ;;  %v3325_v38 = vadd.f32 %v3324_v21, %v3323_v46 }
 0x20e   : > { %v3338_v11 = vrot.slane %v3337_v12, 2  ;;  %v3345_v47 = vrot.slane %v3344_v44, 2  ;;  %v3351_v19 = vadd.f32 %v3350_v22, %v3349_v15  ;;  %v3305_v26 = vrot.slane %v3304_v23, 1 }
 0x20f   : > { %v3312_v3 = vrot.slane %v3311_v24, 1  ;;  %v3319_v18 = vrot.slane %v3318_v20, 1  ;;  %v3332_v61 = vadd.f32 %v3331_v30, %v3330_v27  ;;  %v3326_v5 = vrot.slane %v3325_v38, 1 }
 0x210   : > { %v3339_v62 = vadd.f32 %v3338_v11, %v3337_v12  ;;  %v3346_v35 = vadd.f32 %v3345_v47, %v3344_v44  ;;  %v3352_v14 = vrot.slane %v3351_v19, 2  ;;  %v21417_v48 = vadd.f32 %v3305_v26, %v3304_v23 }
 0x211   : > { %v21419_v7 = vadd.f32 %v3312_v3, %v3311_v24  ;;  %v21421_v39 = vadd.f32 %v3319_v18, %v3318_v20  ;;  %v3333_v31 = vrot.slane %v3332_v61, 1  ;;  %v21423_v51 = vadd.f32 %v3326_v5, %v3325_v38 }
 0x212   : > { %v3340_v33 = vrot.slane %v3339_v62, 1  ;;  %v3347_v42 = vrot.slane %v3346_v35, 1  ;;  %v3353_v52 = vadd.f32 %v3352_v14, %v3351_v19  ;;  %v3364_v45 = vrot.slane %v21018_v63, 4 }
 0x213   : > { %v21425_v40 = vadd.f32 %v3333_v31, %v3332_v61  ;;  %v3365_v37 = vrot.slane %v21358_v25, 4  ;;  %v3367_v36 = vrot.slane %v21028_v53, 4  ;;  %v3368_v32 = vrot.slane %v21364_v41, 4 }
 0x214   : > { %v21430_v10 = vadd.f32 %v3340_v33, %v3339_v62  ;;  %v21432_v34 = vadd.f32 %v3347_v42, %v3346_v35  ;;  %v3354_v50 = vrot.slane %v3353_v52, 1  ;;  %v3370_v13 = vrot.slane %v21038_v17, 4 }
 0x215   : > { %v3366_v0 = vsel %vm2963_vm1, %v3364_v45, %v3365_v37  ;;  %v3371_v1 = vrot.slane %v21368_v9, 4  ;;  %v3373_v46 = vrot.slane %v21048_v56, 4  ;;  %v3369_v25 = vsel %vm2963_vm1, %v3367_v36, %v3368_v32 }
 0x216   : > { %v21439_v63 = vadd.f32 %v3354_v50, %v3353_v52  ;;  %v3374_v53 = vrot.slane %v21374_v8, 4  ;;  %v3376_v54 = vrot.slane %v21058_v28, 4  ;;  %v3377_v41 = vrot.slane %v21384_v43, 4 }
 0x217   : > { %v3372_v58 = vsel %vm2963_vm1, %v3370_v13, %v3371_v1  ;;  %v3379_v15 = vrot.slane %v21072_v60, 4  ;;  %v3380_v17 = vrot.slane %v21396_v6, 4  ;;  %v3382_v56 = vrot.slane %v21079_v57, 4 }
 0x218   : > { %v3375_v9 = vsel %vm2963_vm1, %v3373_v46, %v3374_v53  ;;  %v3383_v59 = vrot.slane %v21403_v16, 4  ;;  %v3385_v29 = vrot.slane %v21088_v55, 4  ;;  %v3378_v8 = vsel %vm2963_vm1, %v3376_v54, %v3377_v41  ;;  %v21466_v41 = vld [vmem:[%s19818_s22 + $0x48] sm:$0xff]  }
 0x219   : > { %v3381_v28 = vsel %vm2963_vm1, %v3379_v15, %v3380_v17  ;;  %v3386_v2 = vrot.slane %v21411_v4, 4  ;;  %v3396_v43 = vsel %vm2649_vm3, %v3366_v0, 0.0  ;;  %v3403_v6 = vsel %vm2649_vm3, %v3369_v25, 0.0  ;;  %v21469_v15 = vld [vmem:[%s19818_s22 + $0x60] sm:$0xff]  }
 0x21a   : > { %v3384_v60 = vsel %vm2963_vm1, %v3382_v56, %v3383_v59  ;;  %v3397_v27 = vrot.slane %v3396_v43, 4  ;;  %v3410_v21 = vsel %vm2649_vm3, %v3372_v58, 0.0  ;;  %v3404_v16 = vrot.slane %v3403_v6, 4 }
 0x21b   : > { %v3387_v57 = vsel %vm2963_vm1, %v3385_v29, %v3386_v2  ;;  %v3411_v12 = vrot.slane %v3410_v21, 4  ;;  %v3417_v55 = vsel %vm2649_vm3, %v3375_v9, 0.0  ;;  %v3424_v23 = vsel %vm2649_vm3, %v3378_v8, 0.0 }
 0x21c   : > { %v3398_v44 = vadd.f32 %v3397_v27, %v3396_v43  ;;  %v3418_v22 = vrot.slane %v3417_v55, 4  ;;  %v3431_v4 = vsel %vm2649_vm3, %v3381_v28, 0.0  ;;  %v3405_v24 = vadd.f32 %v3404_v16, %v3403_v6  ;;  %v21475_v43 = vld [vmem:[%s19818_s22 + $0x78] sm:$0xff]  }
 0x21d   : > { %v3412_v20 = vadd.f32 %v3411_v12, %v3410_v21  ;;  %v3425_v30 = vrot.slane %v3424_v23, 4  ;;  %v3432_v38 = vrot.slane %v3431_v4, 4  ;;  %v3438_v19 = vsel %vm2649_vm3, %v3384_v60, 0.0  ;;  %v21478_v60 = vld [vmem:[%s19818_s22 + $0x120] sm:$0xff]   ;;  %v21484_v16 = vld [vmem:[%s19818_s22 + $0x138] sm:$0xff]  }
 0x21e   : > { %v3399_v11 = vrot.slane %v3398_v44, 2  ;;  %v3419_v47 = vadd.f32 %v3418_v22, %v3417_v55  ;;  %v3445_v26 = vsel %vm2649_vm3, %v3387_v57, 0.0  ;;  %v3406_v3 = vrot.slane %v3405_v24, 2  ;;  %v21487_v12 = vld [vmem:[%s19818_s22 + $0x1e0] sm:$0xff]   ;;  %v21493_v22 = vld [vmem:[%s19818_s22 + $0x1f8] sm:$0xff]  }
 0x21f   : > { %v3413_v18 = vrot.slane %v3412_v20, 2  ;;  %v3426_v61 = vadd.f32 %v3425_v30, %v3424_v23  ;;  %v3433_v5 = vadd.f32 %v3432_v38, %v3431_v4  ;;  %v3439_v14 = vrot.slane %v3438_v19, 4  ;;  %v21499_v23 = vld [vmem:[%s19818_s22 + $0x2b8] sm:$0xff]   ;;  %v21507_v30 = vld [vmem:[%s19818_s22 + $0x2d0] sm:$0xff]  }
 0x220   : > { %v3400_v62 = vadd.f32 %v3399_v11, %v3398_v44  ;;  %v3420_v35 = vrot.slane %v3419_v47, 2  ;;  %v3446_v31 = vrot.slane %v3445_v26, 4  ;;  %v3407_v33 = vadd.f32 %v3406_v3, %v3405_v24  ;;  %v21510_v38 = vld [vmem:[%s19818_s22 + $0x378] sm:$0xff]   ;;  %v21513_v11 = vld [vmem:[%s19818_s22 + $0x390] sm:$0xff]   ;;  %v21519_v3 = vld [vmem:[%s19818_s22 + $0x3a8] sm:$0xff]  }
 0x221   : > { %v3414_v42 = vadd.f32 %v3413_v18, %v3412_v20  ;;  %v3427_v52 = vrot.slane %v3426_v61, 2  ;;  %v3434_v45 = vrot.slane %v3433_v5, 2  ;;  %v3440_v50 = vadd.f32 %v3439_v14, %v3438_v19  ;;  %v21522_v18 = vld [vmem:[%s19818_s22 + $0x450] sm:$0xff]  }
 0x222   : > { %v3401_v37 = vrot.slane %v3400_v62, 1  ;;  %v3421_v36 = vadd.f32 %v3420_v35, %v3419_v47  ;;  %v3447_v32 = vadd.f32 %v3446_v31, %v3445_v26  ;;  %v3408_v0 = vrot.slane %v3407_v33, 1  ;;  %v21536_v31 = vld [vmem:[%s19818_s22 + $0x528] sm:$0xff]  }
 0x223   : > { %v3415_v13 = vrot.slane %v3414_v42, 1  ;;  %v3428_v1 = vadd.f32 %v3427_v52, %v3426_v61  ;;  %v3435_v46 = vadd.f32 %v3434_v45, %v3433_v5  ;;  %v3441_v54 = vrot.slane %v3440_v50, 2  ;;  %v21525_v61 = vld [vmem:[%s19818_s22 + $0x468] sm:$0xff]   ;;  %v21528_v5 = vld [vmem:[%s19818_s22 + $0x510] sm:$0xff]   ;;  %v21545_v52 = vld [vmem:[%s19818_s22 + $0x600] sm:$0xff]  }
 0x224   : > { %v3402_v25 = vadd.f32 %v3401_v37, %v3400_v62  ;;  %v3422_v53 = vrot.slane %v3421_v36, 1  ;;  %v3448_v58 = vrot.slane %v3447_v32, 2  ;;  %v3409_v17 = vadd.f32 %v3408_v0, %v3407_v33  ;;  %v21539_v33 = vld [vmem:[%s19818_s22 + $0x540] sm:$0xff]   ;;  %v14938_v37 = vld [vmem:[%s19818_s22 + $0x54] ss:$24 sps:$4 sm:$0xff]  }
 0x225   : > { %v3416_v9 = vadd.f32 %v3415_v13, %v3414_v42  ;;  %v3429_v56 = vrot.slane %v3428_v1, 1  ;;  %v3436_v59 = vrot.slane %v3435_v46, 1  ;;  %v3442_v8 = vadd.f32 %v3441_v54, %v3440_v50  ;;  %v21542_v42 = vld [vmem:[%s19818_s22 + $0x5e8] sm:$0xff]   ;;  %v21567_v54 = vld [vmem:[%s19818_s22 + $0x2c4] ss:$24 sps:$4 sm:$0xff]  }
 0x226   : > { %v3423_v29 = vadd.f32 %v3422_v53, %v3421_v36  ;;  %v3449_v28 = vadd.f32 %v3448_v58, %v3447_v32  ;;  %v4795_v2 = vsel %vm4660_vm4, %v21419_v7, %v21417_v48  ;;  %v4811_v57 = vsel %vm4660_vm4, %v3409_v17, %v3402_v25  ;;  %v21552_v36 = vld [vmem:[%s19818_s22 + $0x114] ss:$24 sps:$4 sm:$0xff]  }
 0x227   : > { %v3430_v27 = vadd.f32 %v3429_v56, %v3428_v1  ;;  %v3437_v6 = vadd.f32 %v3436_v59, %v3435_v46  ;;  %v4796_v21 = vsel %vm4662_vm5, %v21421_v39, %v4795_v2  ;;  %v3443_v55 = vrot.slane %v3442_v8, 1  ;;  %v21496_v39 = vld [vmem:[%s19818_s22 + $0x210] sm:$0xff]   ;;  %v21558_v13 = vld [vmem:[%s19818_s22 + $0x144] ss:$168 sps:$4 sm:$0xff]  }
 0x228   : > { %v3450_v48 = vrot.slane %v3449_v28, 1  ;;  %v4797_v7 = vsel %vm4664_vm6, %v21423_v51, %v4796_v21  ;;  %v4812_v44 = vsel %vm4662_vm5, %v3416_v9, %v4811_v57  ;;  %v16724_v20 = vunpack.c.l.bf16 %v21466_v41  ;;  %v21562_v46 = vld [vmem:[%s19818_s22 + $0x204] ss:$168 sps:$4 sm:$0xff]   ;;  %v21582_v2 = vld [vmem:[%s19818_s22 + $0x474] ss:$168 sps:$4 sm:$0xff]  }
 0x229   : > { %v4798_v4 = vsel %vm4666_vm7, %v21425_v40, %v4797_v7  ;;  %v4813_v24 = vsel %vm4664_vm6, %v3423_v29, %v4812_v44  ;;  %v16728_v51 = vunpack.c.l.bf16 %v21469_v15  ;;  %v3444_v47 = vadd.f32 %v3443_v55, %v3442_v8  ;;  %v21572_v9 = vld [vmem:[%s19818_s22 + $0x384] ss:$24 sps:$4 sm:$0xff]  }
 0x22a   : > { %v3451_v19 = vadd.f32 %v3450_v48, %v3449_v28  ;;  %v4799_v40 = vsel %vm4668_vm8, %v21430_v10, %v4798_v4  ;;  %v4814_v26 = vsel %vm4666_vm7, %v3430_v27, %v4813_v24  ;;  %v16732_v10 = vunpack.c.l.bf16 %v21475_v43  ;;  %v21577_v29 = vld [vmem:[%s19818_s22 + $0x444] ss:$24 sps:$4 sm:$0xff]  }
 0x22b   : > { %v4800_v62 = vsel %vm4670_vm9, %v21432_v34, %v4799_v40  ;;  %v4815_v35 = vsel %vm4668_vm8, %v3437_v6, %v4814_v26  ;;  %v16736_v14 = vunpack.c.l.bf16 %v21478_v60  ;;  %v16740_v50 = vunpack.c.l.bf16 %v21484_v16  ;;  %v21588_v21 = vld [vmem:[%s19818_s22 + $0x534] ss:$168 sps:$4 sm:$0xff]   ;;  %v17459_v6 = vld [vmem:[#allocation7 + $0x64] ss:$24 sps:$4 sm:$0xff]  }
 0x22c   : > { %v4801_v45 = vsel %vm4672_vm10, %v21439_v63, %v4800_v62  ;;  %v4816_v34 = vsel %vm4670_vm9, %v3444_v47, %v4815_v35  ;;  %v16744_v32 = vunpack.c.l.bf16 %v21487_v12  ;;  %v16748_v1 = vunpack.c.l.bf16 %v21493_v22  ;;  %v21598_v47 = vld [vmem:[%s19818_s22 + $0x5f4] ss:$24 sps:$4 sm:$0xff]   ;;  %v17451_v35 = vld [vmem:[#allocation7] ss:$24 sps:$4 sm:$0xff]  }
 0x22d   : > { %v4817_v0 = vsel %vm4672_vm10, %v3451_v19, %v4816_v34  ;;  %v16752_v63 = vunpack.c.l.bf16 %v21496_v39  ;;  %v16756_v25 = vunpack.c.l.bf16 %v21499_v23  ;;  %v16760_v58 = vunpack.c.l.bf16 %v21507_v30 }
 0x22e   : > { %v5063_v53 = vpack.c.bf16 %v4817_v0, %v4801_v45  ;;  %v16764_v17 = vunpack.c.l.bf16 %v21510_v38  ;;  %v16768_v56 = vunpack.c.l.bf16 %v21513_v11  ;;  %v16772_v59 = vunpack.c.l.bf16 %v21519_v3  ;;  %v17453_v45 = vld [vmem:[#allocation7 + $0x4] ss:$24 sps:$4 sm:$0xff]  }
 0x22f   : > { %v16776_v8 = vunpack.c.l.bf16 %v21522_v18  ;;  %v1402_v7 = vunpack.c.l.bf16 %v14938_v37  ;;  %v1408_v44 = vunpack.c.h.bf16 %v14938_v37  ;;  %v1414_v4 = vunpack.c.l.bf16 %v21552_v36  ;;  %12540 = vmatprep.subr.bf16.mxu0 %v17453_v45 }
 0x230   : > { %17160 = vmatmul.mubr.msk.bf16.gmra.mrb[16].mxu0 %vm603_vm2, %v5063_v53  ;;  %v1420_v24 = vunpack.c.h.bf16 %v21552_v36  ;;  %v1426_v19 = vunpack.c.l.bf16 %v21558_v13  ;;  %v1432_v40 = vunpack.c.h.bf16 %v21558_v13  ;;  %v1438_v26 = vunpack.c.l.bf16 %v21562_v46  ;;  %v17456_v53 = vld [vmem:[#allocation7 + $0x34] ss:$24 sps:$4 sm:$0xff]  }
 0x231   : > { %17163 = vmatprep.mubr.msk.bf16.mxu0 %vm19561_vm0, %v24483_v49  ;;  %v1444_v62 = vunpack.c.h.bf16 %v21562_v46  ;;  %v1450_v34 = vunpack.c.l.bf16 %v21567_v54  ;;  %v1456_v37 = vunpack.c.h.bf16 %v21567_v54  ;;  %v1462_v0 = vunpack.c.l.bf16 %v21572_v9  ;;  %12541 = vmatpush1.bf16.msra.mxu0 %v17451_v35 }
 0x232   : > { %v1468_v36 = vunpack.c.h.bf16 %v21572_v9  ;;  %v1474_v48 = vunpack.c.l.bf16 %v21577_v29  ;;  %v1480_v55 = vunpack.c.h.bf16 %v21577_v29  ;;  %v1486_v13 = vunpack.c.l.bf16 %v21582_v2  ;;  %v17454_v9 = vld [vmem:[#allocation7 + $0x30] ss:$24 sps:$4 sm:$0xff]   ;;  %12542 = vmatprep.subr.bf16.mxu0 %v17456_v53 }
 0x233   : > { %v1519_v28 = vsel %vm603_vm2, %v16724_v20, 0.0  ;;  %v1520_v29 = vsel %vm603_vm2, %v1402_v7, 0.0  ;;  %v1522_v45 = vsel %vm603_vm2, %v16728_v51, 0.0  ;;  %v1524_v46 = vsel %vm603_vm2, %v1408_v44, 0.0 }
 0x234   : > { %v1521_v57 = vadd.f32 %v1520_v29, %v1519_v28  ;;  %v1526_v35 = vsel %vm603_vm2, %v16732_v10, 0.0  ;;  %v1546_v27 = vsel %vm603_vm2, %v1414_v4, 0.0  ;;  %v1547_v20 = vsel %vm603_vm2, %v16736_v14, 0.0 }
 0x235   : > { %v1548_v7 = vadd.f32 %v1547_v20, %v1546_v27  ;;  %v1549_v54 = vsel %vm603_vm2, %v1420_v24, 0.0  ;;  %v1551_v51 = vsel %vm603_vm2, %v16740_v50, 0.0  ;;  %v1553_v44 = vsel %vm603_vm2, %v1426_v19, 0.0  ;;  %12543 = vmatpush1.bf16.msra.mxu0 %v17454_v9  ;;  %v17457_v27 = vld [vmem:[#allocation7 + $0x60] ss:$24 sps:$4 sm:$0xff]  }
 0x236   : > { %v1523_v28 = vadd.f32 %v1522_v45, %v1521_v57  ;;  %v1573_v10 = vsel %vm603_vm2, %v16744_v32, 0.0  ;;  %v1574_v4 = vsel %vm603_vm2, %v1432_v40, 0.0  ;;  %v1576_v14 = vsel %vm603_vm2, %v16748_v1, 0.0  ;;  %12544 = vmatprep.subr.bf16.mxu0 %v17459_v6 }
 0x237   : > { %v1550_v24 = vadd.f32 %v1549_v54, %v1548_v7  ;;  %v1575_v53 = vadd.f32 %v1574_v4, %v1573_v10  ;;  %v1578_v29 = vsel %vm603_vm2, %v1438_v26, 0.0  ;;  %v1580_v50 = vsel %vm603_vm2, %v16752_v63, 0.0 }
 0x238   : > { %v1525_v57 = vadd.f32 %v1524_v46, %v1523_v28  ;;  %v1600_v32 = vsel %vm603_vm2, %v1444_v62, 0.0  ;;  %v1601_v19 = vsel %vm603_vm2, %v16756_v25, 0.0  ;;  %v1603_v1 = vsel %vm603_vm2, %v1450_v34, 0.0 }
 0x239   : > { %v1552_v40 = vadd.f32 %v1551_v51, %v1550_v24  ;;  %v1577_v9 = vadd.f32 %v1576_v14, %v1575_v53  ;;  %v1602_v54 = vadd.f32 %v1601_v19, %v1600_v32  ;;  %v1605_v26 = vsel %vm603_vm2, %v16760_v58, 0.0  ;;  %12545 = vmatpush1.bf16.msra.mxu0 %v17457_v27 }
 0x23a   : > { %v21655_v45 = vadd.f32 %v1526_v35, %v1525_v57  ;;  %v1607_v63 = vsel %vm603_vm2, %v1456_v37, 0.0  ;;  %v1627_v6 = vsel %vm603_vm2, %v16764_v17, 0.0  ;;  %v1628_v62 = vsel %vm603_vm2, %v1462_v0, 0.0 }
 0x23b   : > { %v21662_v25 = vadd.f32 %v1553_v44, %v1552_v40  ;;  %v1579_v34 = vadd.f32 %v1578_v29, %v1577_v9  ;;  %v1604_v46 = vadd.f32 %v1603_v1, %v1602_v54  ;;  %v1629_v20 = vadd.f32 %v1628_v62, %v1627_v6 }
 0x23c   : > { %v1630_v58 = vsel %vm603_vm2, %v16768_v56, 0.0  ;;  %v1632_v35 = vsel %vm603_vm2, %v1468_v36, 0.0  ;;  %v1634_v37 = vsel %vm603_vm2, %v16772_v59, 0.0  ;;  %v1654_v17 = vsel %vm603_vm2, %v1474_v48, 0.0 }
 0x23d   : > { %v21672_v7 = vadd.f32 %v1580_v50, %v1579_v34  ;;  %v1606_v0 = vadd.f32 %v1605_v26, %v1604_v46  ;;  %v1631_v51 = vadd.f32 %v1630_v58, %v1629_v20  ;;  %v1655_v44 = vsel %vm603_vm2, %v16776_v8, 0.0 }
 0x23e   : > { %v1656_v28 = vadd.f32 %v1655_v44, %v1654_v17  ;;  %v1657_v10 = vsel %vm603_vm2, %v1480_v55, 0.0  ;;  %v24510_v56 = vunpack.c.l.bf16 %v21525_v61  ;;  %v1661_v4 = vsel %vm603_vm2, %v1486_v13, 0.0 }
 0x23f   : > { %24509 = vst [vmem:[#allocation27_spill] sm:$0xff] %v21672_v7  ;;  %v21682_v59 = vadd.f32 %v1607_v63, %v1606_v0  ;;  %v1633_v48 = vadd.f32 %v1632_v35, %v1631_v51  ;;  %v24512_v14 = vunpack.c.l.bf16 %v21528_v5  ;;  %v24513_v24 = vunpack.c.h.bf16 %v21582_v2 }
 0x240   : > { %v1659_v36 = vsel %vm603_vm2, %v24510_v56, 0.0  ;;  %v1658_v53 = vadd.f32 %v1657_v10, %v1656_v28  ;;  %v24514_v55 = vunpack.c.l.bf16 %v21536_v31  ;;  %v24515_v57 = vunpack.c.l.bf16 %v21588_v21 }
 0x241   : > { %24511 = vst [vmem:[#allocation20_spill] sm:$0xff] %v21682_v59  ;;  %v1681_v27 = vsel %vm603_vm2, %v24512_v14, 0.0  ;;  %v1682_v8 = vsel %vm603_vm2, %v24513_v24, 0.0  ;;  %v21696_v32 = vadd.f32 %v1634_v37, %v1633_v48  ;;  %v24517_v19 = vunpack.c.l.bf16 %v21539_v33 }
 0x242   : > { %v1683_v29 = vadd.f32 %v1682_v8, %v1681_v27  ;;  %v1684_v50 = vsel %vm603_vm2, %v24514_v55, 0.0  ;;  %v1686_v13 = vsel %vm603_vm2, %v24515_v57, 0.0  ;;  %v24518_v2 = vunpack.c.h.bf16 %v21588_v21 }
 0x243   : > { %24516 = vst [vmem:[#allocation28_spill] sm:$0xff] %v21696_v32  ;;  %v1688_v1 = vsel %vm603_vm2, %v24517_v19, 0.0  ;;  %v24519_v9 = vunpack.c.l.bf16 %v21542_v42  ;;  %v1660_v26 = vadd.f32 %v1659_v36, %v1658_v53  ;;  %v24520_v62 = vunpack.c.l.bf16 %v21598_v47 }
 0x244   : > { %v1708_v40 = vsel %vm603_vm2, %v24518_v2, 0.0  ;;  %v1685_v63 = vadd.f32 %v1684_v50, %v1683_v29  ;;  %v24521_v46 = vunpack.c.l.bf16 %v21545_v52  ;;  %v24522_v58 = vunpack.c.h.bf16 %v21598_v47 }
 0x245   : > { %v1709_v54 = vsel %vm603_vm2, %v24519_v9, 0.0  ;;  %v1711_v34 = vsel %vm603_vm2, %v24520_v62, 0.0  ;;  %v3452_v35 = vsel %vm2649_vm3, %v21655_v45, 0.0  ;;  %v3459_v37 = vsel %vm2649_vm3, %v21662_v25, 0.0 }
 0x246   : > { %v1710_v6 = vadd.f32 %v1709_v54, %v1708_v40  ;;  %v1713_v20 = vsel %vm603_vm2, %v24521_v46, 0.0  ;;  %v1715_v21 = vsel %vm603_vm2, %v24522_v58, 0.0  ;;  %v21720_v17 = vadd.f32 %v1661_v4, %v1660_v26 }
 0x247   : > { %v1687_v0 = vadd.f32 %v1686_v13, %v1685_v63  ;;  %v3453_v44 = vrot.slane %v3452_v35, 4  ;;  %v3460_v28 = vrot.slane %v3459_v37, 4  ;;  %v3466_v10 = vsel %vm2649_vm3, %v21672_v7, 0.0 }
 0x248   : > { %24523 = vst [vmem:[#allocation21_spill] sm:$0xff] %v21720_v17  ;;  %v1712_v51 = vadd.f32 %v1711_v34, %v1710_v6  ;;  %v3473_v47 = vsel %vm2649_vm3, %v21682_v59, 0.0  ;;  %v3480_v56 = vsel %vm2649_vm3, %v21696_v32, 0.0  ;;  %v3467_v27 = vrot.slane %v3466_v10, 4 }
 0x249   : > { %v21728_v36 = vadd.f32 %v1688_v1, %v1687_v0  ;;  %v3454_v14 = vadd.f32 %v3453_v44, %v3452_v35  ;;  %v3461_v4 = vadd.f32 %v3460_v28, %v3459_v37  ;;  %v3474_v24 = vrot.slane %v3473_v47, 4 }
 0x24a   : > { %v1714_v48 = vadd.f32 %v1713_v20, %v1712_v51  ;;  %v3481_v8 = vrot.slane %v3480_v56, 4  ;;  %v3487_v53 = vsel %vm2649_vm3, %v21720_v17, 0.0  ;;  %v3468_v50 = vadd.f32 %v3467_v27, %v3466_v10 }
 0x24b   : > { %24524 = vst [vmem:[#allocation22_spill] sm:$0xff] %v21728_v36  ;;  %v3455_v55 = vrot.slane %v3454_v14, 2  ;;  %v3488_v57 = vrot.slane %v3487_v53, 4  ;;  %v3462_v13 = vrot.slane %v3461_v4, 2  ;;  %v3475_v19 = vadd.f32 %v3474_v24, %v3473_v47 }
 0x24c   : > { %v21732_v29 = vadd.f32 %v1715_v21, %v1714_v48  ;;  %v3482_v2 = vadd.f32 %v3481_v8, %v3480_v56  ;;  %v3494_v1 = vsel %vm2649_vm3, %v21728_v36, 0.0  ;;  %v3469_v9 = vrot.slane %v3468_v50, 2 }
 0x24d   : > { %v3456_v40 = vadd.f32 %v3455_v55, %v3454_v14  ;;  %v3489_v54 = vadd.f32 %v3488_v57, %v3487_v53  ;;  %v3495_v26 = vrot.slane %v3494_v1, 4  ;;  %v3463_v63 = vadd.f32 %v3462_v13, %v3461_v4 }
 0x24e   : > { %24525 = vst [vmem:[#allocation23_spill] sm:$0xff] %v21732_v29  ;;  %v3476_v6 = vrot.slane %v3475_v19, 2  ;;  %v3483_v62 = vrot.slane %v3482_v2, 2  ;;  %v3501_v34 = vsel %vm2649_vm3, %v21732_v29, 0.0  ;;  %v3470_v20 = vadd.f32 %v3469_v9, %v3468_v50 }
 0x24f   : > { %v3457_v46 = vrot.slane %v3456_v40, 1  ;;  %v3490_v58 = vrot.slane %v3489_v54, 2  ;;  %v3496_v21 = vadd.f32 %v3495_v26, %v3494_v1  ;;  %v3464_v35 = vrot.slane %v3463_v63, 1 }
 0x250   : > { %v3477_v37 = vadd.f32 %v3476_v6, %v3475_v19  ;;  %v3484_v0 = vadd.f32 %v3483_v62, %v3482_v2  ;;  %v3502_v51 = vrot.slane %v3501_v34, 4  ;;  %v3471_v28 = vrot.slane %v3470_v20, 1 }
 0x251   : > { %v21738_v44 = vadd.f32 %v3457_v46, %v3456_v40  ;;  %v3491_v10 = vadd.f32 %v3490_v58, %v3489_v54  ;;  %v3497_v47 = vrot.slane %v3496_v21, 2  ;;  %v21740_v56 = vadd.f32 %v3464_v35, %v3463_v63 }
 0x252   : > { %v3478_v48 = vrot.slane %v3477_v37, 1  ;;  %v3485_v14 = vrot.slane %v3484_v0, 1  ;;  %v3503_v27 = vadd.f32 %v3502_v51, %v3501_v34  ;;  %v21742_v4 = vadd.f32 %v3471_v28, %v3470_v20 }
 0x253   : > { %v3492_v24 = vrot.slane %v3491_v10, 1  ;;  %v3498_v8 = vadd.f32 %v3497_v47, %v3496_v21  ;;  %v3516_v53 = vrot.slane %v21655_v45, 3  ;;  %v3517_v13 = vrot.slane %v21662_v25, 3 }
 0x254   : > { %v21745_v55 = vadd.f32 %v3478_v48, %v3477_v37  ;;  %v21747_v50 = vadd.f32 %v3485_v14, %v3484_v0  ;;  %v3504_v57 = vrot.slane %v3503_v27, 2  ;;  %v3518_v1 = vrot.slane %v21672_v7, 3 }
 0x255   : > { %v21750_v19 = vadd.f32 %v3492_v24, %v3491_v10  ;;  %v3499_v2 = vrot.slane %v3498_v8, 1  ;;  %v3519_v40 = vrot.slane %v21682_v59, 3  ;;  %v3520_v54 = vrot.slane %v21696_v32, 3 }
 0x256   : > { %v3505_v9 = vadd.f32 %v3504_v57, %v3503_v27  ;;  %v3521_v26 = vrot.slane %v21720_v17, 3  ;;  %v3522_v63 = vrot.slane %v21728_v36, 3  ;;  %v3523_v62 = vrot.slane %v21732_v29, 3 }
 0x257   : > { %v21757_v6 = vadd.f32 %v3499_v2, %v3498_v8  ;;  %v3532_v34 = vsel %vm2649_vm3, %v3516_v53, 0.0  ;;  %v3539_v46 = vsel %vm2649_vm3, %v3517_v13, 0.0  ;;  %v3546_v35 = vsel %vm2649_vm3, %v3518_v1, 0.0 }
 0x258   : > { %v3506_v20 = vrot.slane %v3505_v9, 1  ;;  %v3533_v58 = vrot.slane %v3532_v34, 4  ;;  %v3540_v21 = vrot.slane %v3539_v46, 4  ;;  %v3547_v37 = vrot.slane %v3546_v35, 4 }
 0x259   : > { %v3553_v0 = vsel %vm2649_vm3, %v3519_v40, 0.0  ;;  %v3560_v51 = vsel %vm2649_vm3, %v3520_v54, 0.0  ;;  %v3567_v28 = vsel %vm2649_vm3, %v3521_v26, 0.0  ;;  %v3574_v53 = vsel %vm2649_vm3, %v3522_v63, 0.0 }
 0x25a   : > { %v21766_v10 = vadd.f32 %v3506_v20, %v3505_v9  ;;  %v3534_v47 = vadd.f32 %v3533_v58, %v3532_v34  ;;  %v3541_v48 = vadd.f32 %v3540_v21, %v3539_v46  ;;  %v3554_v14 = vrot.slane %v3553_v0, 4 }
 0x25b   : > { %v3548_v27 = vadd.f32 %v3547_v37, %v3546_v35  ;;  %v3561_v24 = vrot.slane %v3560_v51, 4  ;;  %v3568_v8 = vrot.slane %v3567_v28, 4  ;;  %v3575_v1 = vrot.slane %v3574_v53, 4 }
 0x25c   : > { %v3535_v57 = vrot.slane %v3534_v47, 2  ;;  %v3542_v13 = vrot.slane %v3541_v48, 2  ;;  %v3555_v2 = vadd.f32 %v3554_v14, %v3553_v0  ;;  %v3581_v54 = vsel %vm2649_vm3, %v3523_v62, 0.0 }
 0x25d   : > { %v3549_v29 = vrot.slane %v3548_v27, 2  ;;  %v3562_v40 = vadd.f32 %v3561_v24, %v3560_v51  ;;  %v3569_v36 = vadd.f32 %v3568_v8, %v3567_v28  ;;  %v3576_v34 = vadd.f32 %v3575_v1, %v3574_v53 }
 0x25e   : > { %v3536_v26 = vadd.f32 %v3535_v57, %v3534_v47  ;;  %v3543_v9 = vadd.f32 %v3542_v13, %v3541_v48  ;;  %v3556_v20 = vrot.slane %v3555_v2, 2  ;;  %v3582_v35 = vrot.slane %v3581_v54, 4 }
 0x25f   : > { %v3550_v46 = vadd.f32 %v3549_v29, %v3548_v27  ;;  %v3563_v58 = vrot.slane %v3562_v40, 2  ;;  %v3570_v21 = vrot.slane %v3569_v36, 2  ;;  %v3577_v32 = vrot.slane %v3576_v34, 2 }
 0x260   : > { %v3537_v37 = vrot.slane %v3536_v26, 1  ;;  %v3544_v17 = vrot.slane %v3543_v9, 1  ;;  %v3557_v63 = vadd.f32 %v3556_v20, %v3555_v2  ;;  %v3583_v7 = vadd.f32 %v3582_v35, %v3581_v54 }
 0x261   : > { %v3551_v59 = vrot.slane %v3550_v46, 1  ;;  %v3564_v0 = vadd.f32 %v3563_v58, %v3562_v40  ;;  %v3571_v14 = vadd.f32 %v3570_v21, %v3569_v36  ;;  %v3578_v62 = vadd.f32 %v3577_v32, %v3576_v34  ;;  %v14939_v58 = vld [vmem:[%s19818_s22 + $0x58] ss:$24 sps:$4 sm:$0xff]  }
 0x262   : > { %v3538_v51 = vadd.f32 %v3537_v37, %v3536_v26  ;;  %v3545_v28 = vadd.f32 %v3544_v17, %v3543_v9  ;;  %v3558_v24 = vrot.slane %v3557_v63, 1  ;;  %v3584_v53 = vrot.slane %v3583_v7, 2 }
 0x263   : > { %v3552_v47 = vadd.f32 %v3551_v59, %v3550_v46  ;;  %v3565_v48 = vrot.slane %v3564_v0, 1  ;;  %v3572_v8 = vrot.slane %v3571_v14, 1  ;;  %v3579_v27 = vrot.slane %v3578_v62, 1 }
 0x264   : > { %v3559_v29 = vadd.f32 %v3558_v24, %v3557_v63  ;;  %v4827_v57 = vsel %vm4660_vm4, %v21740_v56, %v21738_v44  ;;  %v4843_v13 = vsel %vm4660_vm4, %v3545_v28, %v3538_v51  ;;  %v3585_v36 = vadd.f32 %v3584_v53, %v3583_v7  ;;  %v14963_v63 = vld [vmem:[%s19818_s22 + $0x148] ss:$168 sps:$4 sm:$0xff]  }
 0x265   : > { %v3566_v2 = vadd.f32 %v3565_v48, %v3564_v0  ;;  %v3573_v1 = vadd.f32 %v3572_v8, %v3571_v14  ;;  %v4828_v17 = vsel %vm4662_vm5, %v21742_v4, %v4827_v57  ;;  %v3580_v32 = vadd.f32 %v3579_v27, %v3578_v62  ;;  %v21803_v0 = vld [vmem:[%s19818_s22 + $0x208] ss:$168 sps:$4 sm:$0xff]   ;;  %v21823_v8 = vld [vmem:[%s19818_s22 + $0x478] ss:$168 sps:$4 sm:$0xff]  }
 0x266   : > { %v4829_v59 = vsel %vm4664_vm6, %v21745_v55, %v4828_v17  ;;  %v4844_v40 = vsel %vm4662_vm5, %v3552_v47, %v4843_v13  ;;  %v16725_v54 = vunpack.c.h.bf16 %v21466_v41  ;;  %v3586_v26 = vrot.slane %v3585_v36, 1  ;;  %v21818_v47 = vld [vmem:[%s19818_s22 + $0x448] ss:$24 sps:$4 sm:$0xff]  }
 0x267   : > { %v4830_v44 = vsel %vm4666_vm7, %v21747_v50, %v4829_v59  ;;  %v4845_v56 = vsel %vm4664_vm6, %v3559_v29, %v4844_v40  ;;  %v16729_v7 = vunpack.c.h.bf16 %v21469_v15  ;;  %v16733_v9 = vunpack.c.h.bf16 %v21475_v43  ;;  %v14951_v43 = vld [vmem:[%s19818_s22 + $0x118] ss:$24 sps:$4 sm:$0xff]  }
 0x268   : > { %v4831_v4 = vsel %vm4668_vm8, %v21750_v19, %v4830_v44  ;;  %v4846_v55 = vsel %vm4666_vm7, %v3566_v2, %v4845_v56  ;;  %v16737_v20 = vunpack.c.h.bf16 %v21478_v60  ;;  %v3587_v34 = vadd.f32 %v3586_v26, %v3585_v36  ;;  %v21829_v27 = vld [vmem:[%s19818_s22 + $0x538] ss:$168 sps:$4 sm:$0xff]  }
 0x269   : > { %v4832_v50 = vsel %vm4670_vm9, %v21757_v6, %v4831_v4  ;;  %v4847_v46 = vsel %vm4668_vm8, %v3573_v1, %v4846_v55  ;;  %v16741_v15 = vunpack.c.h.bf16 %v21484_v16  ;;  %v16745_v35 = vunpack.c.h.bf16 %v21487_v12  ;;  %v21834_v2 = vld [vmem:[%s19818_s22 + $0x5f8] ss:$24 sps:$4 sm:$0xff]  }
 0x26a   : > { %v4833_v19 = vsel %vm4672_vm10, %v21766_v10, %v4832_v50  ;;  %v4848_v21 = vsel %vm4670_vm9, %v3580_v32, %v4847_v46  ;;  %v16749_v37 = vunpack.c.h.bf16 %v21493_v22  ;;  %v16753_v14 = vunpack.c.h.bf16 %v21496_v39  ;;  %v21808_v10 = vld [vmem:[%s19818_s22 + $0x2c8] ss:$24 sps:$4 sm:$0xff]  }
 0x26b   : > { %v4849_v6 = vsel %vm4672_vm10, %v3587_v34, %v4848_v21  ;;  %v16757_v16 = vunpack.c.h.bf16 %v21499_v23  ;;  %v16761_v51 = vunpack.c.h.bf16 %v21507_v30  ;;  %v16765_v12 = vunpack.c.h.bf16 %v21510_v38  ;;  %v21813_v22 = vld [vmem:[%s19818_s22 + $0x388] ss:$24 sps:$4 sm:$0xff]  }
 0x26c   : > { %v5064_v28 = vpack.c.bf16 %v4849_v6, %v4833_v19  ;;  %v16769_v24 = vunpack.c.h.bf16 %v21513_v11  ;;  %v16773_v62 = vunpack.c.h.bf16 %v21519_v3  ;;  %v16777_v39 = vunpack.c.h.bf16 %v21522_v18 }
 0x26d   : > { %v16781_v48 = vunpack.c.h.bf16 %v21525_v61  ;;  %v16785_v53 = vunpack.c.h.bf16 %v21528_v5  ;;  %v16789_v29 = vunpack.c.h.bf16 %v21536_v31  ;;  %v16793_v57 = vunpack.c.h.bf16 %v21539_v33 }
 0x26e   : > { %17164 = vmatmul.mubr.msk.bf16.gmra.mrb[20].mxu0 %vm603_vm2, %v5064_v28  ;;  %v1403_v36 = vunpack.c.l.bf16 %v14939_v58  ;;  %v1409_v17 = vunpack.c.h.bf16 %v14939_v58  ;;  %v1415_v32 = vunpack.c.l.bf16 %v14951_v43  ;;  %v1421_v59 = vunpack.c.h.bf16 %v14951_v43 }
 0x26f   : > { %17167 = vmatprep.mubr.msk.bf16.mxu0 %vm19561_vm0, %v24483_v49  ;;  %v1427_v40 = vunpack.c.l.bf16 %v14963_v63  ;;  %v1433_v26 = vunpack.c.h.bf16 %v14963_v63  ;;  %v1439_v44 = vunpack.c.l.bf16 %v21803_v0  ;;  %v1445_v56 = vunpack.c.h.bf16 %v21803_v0 }
 0x270   : > { %v1451_v4 = vunpack.c.l.bf16 %v21808_v10  ;;  %v1457_v55 = vunpack.c.h.bf16 %v21808_v10  ;;  %v1463_v34 = vunpack.c.l.bf16 %v21813_v22  ;;  %v1469_v50 = vunpack.c.h.bf16 %v21813_v22 }
 0x271   : > { %v1475_v46 = vunpack.c.l.bf16 %v21818_v47  ;;  %v1481_v58 = vunpack.c.h.bf16 %v21818_v47  ;;  %v1487_v19 = vunpack.c.l.bf16 %v21823_v8  ;;  %v1493_v21 = vunpack.c.h.bf16 %v21823_v8 }
 0x272   : > { %v1499_v43 = vunpack.c.l.bf16 %v21829_v27  ;;  %v1505_v6 = vunpack.c.h.bf16 %v21829_v27  ;;  %v1528_v10 = vsel %vm603_vm2, %v16725_v54, 0.0  ;;  %v1529_v28 = vsel %vm603_vm2, %v1403_v36, 0.0 }
 0x273   : > { %v1531_v22 = vsel %vm603_vm2, %v16729_v7, 0.0  ;;  %v1533_v47 = vsel %vm603_vm2, %v1409_v17, 0.0  ;;  %v1535_v8 = vsel %vm603_vm2, %v16733_v9, 0.0  ;;  %v1530_v1 = vadd.f32 %v1529_v28, %v1528_v10 }
 0x274   : > { %v1555_v13 = vsel %vm603_vm2, %v1415_v32, 0.0  ;;  %v1556_v27 = vsel %vm603_vm2, %v16737_v20, 0.0  ;;  %v1558_v0 = vsel %vm603_vm2, %v1421_v59, 0.0  ;;  %v1560_v54 = vsel %vm603_vm2, %v16741_v15, 0.0 }
 0x275   : > { %v1557_v41 = vadd.f32 %v1556_v27, %v1555_v13  ;;  %v1562_v36 = vsel %vm603_vm2, %v1427_v40, 0.0  ;;  %v1582_v7 = vsel %vm603_vm2, %v16745_v35, 0.0  ;;  %v1532_v63 = vadd.f32 %v1531_v22, %v1530_v1 }
 0x276   : > { %v1583_v17 = vsel %vm603_vm2, %v1433_v26, 0.0  ;;  %v1585_v9 = vsel %vm603_vm2, %v16749_v37, 0.0  ;;  %v1587_v32 = vsel %vm603_vm2, %v1439_v44, 0.0  ;;  %v1589_v20 = vsel %vm603_vm2, %v16753_v14, 0.0 }
 0x277   : > { %v1559_v10 = vadd.f32 %v1558_v0, %v1557_v41  ;;  %v1584_v60 = vadd.f32 %v1583_v17, %v1582_v7  ;;  %v1609_v59 = vsel %vm603_vm2, %v1445_v56, 0.0  ;;  %v1534_v13 = vadd.f32 %v1533_v47, %v1532_v63 }
 0x278   : > { %v1610_v15 = vsel %vm603_vm2, %v16757_v16, 0.0  ;;  %v1612_v35 = vsel %vm603_vm2, %v1451_v4, 0.0  ;;  %v1614_v1 = vsel %vm603_vm2, %v16761_v51, 0.0  ;;  %v1616_v44 = vsel %vm603_vm2, %v1457_v55, 0.0 }
 0x279   : > { %v1561_v37 = vadd.f32 %v1560_v54, %v1559_v10  ;;  %v1586_v40 = vadd.f32 %v1585_v9, %v1584_v60  ;;  %v1611_v26 = vadd.f32 %v1610_v15, %v1609_v59  ;;  %v21881_v0 = vadd.f32 %v1535_v8, %v1534_v13  ;;  %v24530_v60 = vld [vmem:[#allocation27_spill] sm:$0xff]  ;;  %v24531_v13 = vld [vmem:[#allocation20_spill] sm:$0xff] }
 0x27a   : > { %v1636_v14 = vsel %vm603_vm2, %v16765_v12, 0.0  ;;  %v1637_v23 = vsel %vm603_vm2, %v1463_v34, 0.0  ;;  %v1639_v16 = vsel %vm603_vm2, %v16769_v24, 0.0  ;;  %v1641_v63 = vsel %vm603_vm2, %v1469_v50, 0.0 }
 0x27b   : > { %v21890_v30 = vadd.f32 %v1562_v36, %v1561_v37  ;;  %v1588_v51 = vadd.f32 %v1587_v32, %v1586_v40  ;;  %v1613_v56 = vadd.f32 %v1612_v35, %v1611_v26  ;;  %v1638_v4 = vadd.f32 %v1637_v23, %v1636_v14 }
 0x27c   : > { %v1643_v55 = vsel %vm603_vm2, %v16773_v62, 0.0  ;;  %v1663_v38 = vsel %vm603_vm2, %v1475_v46, 0.0  ;;  %v1664_v12 = vsel %vm603_vm2, %v16777_v39, 0.0  ;;  %v1666_v22 = vsel %vm603_vm2, %v1481_v58, 0.0 }
 0x27d   : > { %v21900_v11 = vadd.f32 %v1589_v20, %v1588_v51  ;;  %v1615_v24 = vadd.f32 %v1614_v1, %v1613_v56  ;;  %v1640_v34 = vadd.f32 %v1639_v16, %v1638_v4  ;;  %v1665_v28 = vadd.f32 %v1664_v12, %v1663_v38  ;;  %v24535_v56 = vld [vmem:[#allocation22_spill] sm:$0xff]  ;;  %v24536_v38 = vld [vmem:[#allocation23_spill] sm:$0xff] }
 0x27e   : > { %v1668_v50 = vsel %vm603_vm2, %v16781_v48, 0.0  ;;  %v1670_v3 = vsel %vm603_vm2, %v1487_v19, 0.0  ;;  %v1690_v62 = vsel %vm603_vm2, %v16785_v53, 0.0  ;;  %v1691_v47 = vsel %vm603_vm2, %v1493_v21, 0.0 }
 0x27f   : > { %v21910_v18 = vadd.f32 %v1616_v44, %v1615_v24  ;;  %v1642_v39 = vadd.f32 %v1641_v63, %v1640_v34  ;;  %v1667_v46 = vadd.f32 %v1666_v22, %v1665_v28  ;;  %v1692_v8 = vadd.f32 %v1691_v47, %v1690_v62  ;;  %v24533_v44 = vld [vmem:[#allocation21_spill] sm:$0xff] }
 0x280   : > { %v1693_v58 = vsel %vm603_vm2, %v16789_v29, 0.0  ;;  %v1695_v61 = vsel %vm603_vm2, %v1499_v43, 0.0  ;;  %v1697_v48 = vsel %vm603_vm2, %v16793_v57, 0.0  ;;  %v1717_v19 = vsel %vm603_vm2, %v1505_v6, 0.0 }
 0x281   : > { %v21920_v5 = vadd.f32 %v1643_v55, %v1642_v39  ;;  %v1669_v53 = vadd.f32 %v1668_v50, %v1667_v46  ;;  %v24526_v27 = vunpack.c.h.bf16 %v21542_v42  ;;  %v1694_v41 = vadd.f32 %v1693_v58, %v1692_v8 }
 0x282   : > { %v24527_v31 = vunpack.c.l.bf16 %v21834_v2  ;;  %v24528_v43 = vunpack.c.h.bf16 %v21545_v52  ;;  %v24529_v36 = vunpack.c.h.bf16 %v21834_v2  ;;  %v3596_v42 = vrot.slane %v21655_v45, 6 }
 0x283   : > { %v1718_v21 = vsel %vm603_vm2, %v24526_v27, 0.0  ;;  %v21932_v57 = vadd.f32 %v1670_v3, %v1669_v53  ;;  %v3597_v7 = vrot.slane %v21881_v0, 6  ;;  %v1696_v17 = vadd.f32 %v1695_v61, %v1694_v41 }
 0x284   : > { %v1719_v54 = vadd.f32 %v1718_v21, %v1717_v19  ;;  %v1720_v29 = vsel %vm603_vm2, %v24527_v31, 0.0  ;;  %v1722_v33 = vsel %vm603_vm2, %v24528_v43, 0.0  ;;  %v1724_v6 = vsel %vm603_vm2, %v24529_v36, 0.0 }
 0x285   : > { %v3599_v32 = vrot.slane %v21662_v25, 6  ;;  %v3600_v10 = vrot.slane %v21890_v30, 6  ;;  %v3598_v52 = vsel %vm2794_vm11, %v3596_v42, %v3597_v7  ;;  %v3602_v20 = vrot.slane %v24530_v60, 6  ;;  %v24532_v25 = vld [vmem:[#allocation28_spill] sm:$0xff] }
 0x286   : > { %v1721_v9 = vadd.f32 %v1720_v29, %v1719_v54  ;;  %v3603_v59 = vrot.slane %v21900_v11, 6  ;;  %v3605_v2 = vrot.slane %v24531_v13, 6  ;;  %v21945_v15 = vadd.f32 %v1697_v48, %v1696_v17 }
 0x287   : > { %v3601_v45 = vsel %vm2794_vm11, %v3599_v32, %v3600_v10  ;;  %v3606_v1 = vrot.slane %v21910_v18, 6  ;;  %v3608_v40 = vrot.slane %v24532_v25, 6  ;;  %v3609_v26 = vrot.slane %v21920_v5, 6 }
 0x288   : > { %v1723_v35 = vadd.f32 %v1722_v33, %v1721_v9  ;;  %v3604_v37 = vsel %vm2794_vm11, %v3602_v20, %v3603_v59  ;;  %v3611_v14 = vrot.slane %v24533_v44, 6  ;;  %v3612_v51 = vrot.slane %v21932_v57, 6  ;;  %v17460_v44 = vld [vmem:[#allocation7 + $0x90] ss:$24 sps:$4 sm:$0xff]  }
 0x289   : > { %v3607_v16 = vsel %vm2794_vm11, %v3605_v2, %v3606_v1  ;;  %v3614_v4 = vrot.slane %v24535_v56, 6  ;;  %v3610_v63 = vsel %vm2794_vm11, %v3608_v40, %v3609_v26  ;;  %v3615_v55 = vrot.slane %v21945_v15, 6 }
 0x28a   : > { %v21953_v23 = vadd.f32 %v1724_v6, %v1723_v35  ;;  %v3617_v12 = vrot.slane %v24536_v38, 6  ;;  %v3628_v24 = vsel %vm2649_vm3, %v3598_v52, 0.0  ;;  %v3613_v34 = vsel %vm2794_vm11, %v3611_v14, %v3612_v51  ;;  %v17462_v14 = vld [vmem:[#allocation7 + $0x94] ss:$24 sps:$4 sm:$0xff]  }
 0x28b   : > { %v3629_v22 = vrot.slane %v3628_v24, 4  ;;  %v3635_v50 = vsel %vm2649_vm3, %v3601_v45, 0.0  ;;  %v3616_v3 = vsel %vm2794_vm11, %v3614_v4, %v3615_v55  ;;  %v3642_v39 = vsel %vm2649_vm3, %v3604_v37, 0.0  ;;  %12546 = vmatprep.subr.bf16.mxu0 %v17462_v14 }
 0x28c   : > { %24534 = vst [vmem:[#allocation24_spill] sm:$0xff] %v21953_v23  ;;  %v3618_v28 = vrot.slane %v21953_v23, 6  ;;  %v3636_v62 = vrot.slane %v3635_v50, 4  ;;  %v3649_v46 = vsel %vm2649_vm3, %v3607_v16, 0.0  ;;  %v3643_v58 = vrot.slane %v3642_v39, 4  ;;  %12547 = vmatpush1.bf16.msra.mxu0 %v17460_v44 }
 0x28d   : > { %v3630_v8 = vadd.f32 %v3629_v22, %v3628_v24  ;;  %v3650_v61 = vrot.slane %v3649_v46, 4  ;;  %v3656_v53 = vsel %vm2649_vm3, %v3610_v63, 0.0  ;;  %v3663_v19 = vsel %vm2649_vm3, %v3613_v34, 0.0  ;;  %v17465_v63 = vld [vmem:[#allocation7 + $0xc4] ss:$24 sps:$4 sm:$0xff]  }
 0x28e   : > { %v3619_v47 = vsel %vm2794_vm11, %v3617_v12, %v3618_v28  ;;  %v3637_v48 = vadd.f32 %v3636_v62, %v3635_v50  ;;  %v3670_v27 = vsel %vm2649_vm3, %v3616_v3, 0.0  ;;  %v3644_v41 = vadd.f32 %v3643_v58, %v3642_v39  ;;  %v17463_v3 = vld [vmem:[#allocation7 + $0xc0] ss:$24 sps:$4 sm:$0xff]   ;;  %12548 = vmatprep.subr.bf16.mxu0 %v17465_v63 }
 0x28f   : > { %v3631_v21 = vrot.slane %v3630_v8, 2  ;;  %v3651_v54 = vadd.f32 %v3650_v61, %v3649_v46  ;;  %v3657_v31 = vrot.slane %v3656_v53, 4  ;;  %v3664_v43 = vrot.slane %v3663_v19, 4 }
 0x290   : > { %v3638_v29 = vrot.slane %v3637_v48, 2  ;;  %v3671_v33 = vrot.slane %v3670_v27, 4  ;;  %v3677_v36 = vsel %vm2649_vm3, %v3619_v47, 0.0  ;;  %v3645_v42 = vrot.slane %v3644_v41, 2  ;;  %12549 = vmatpush1.bf16.msra.mxu0 %v17463_v3 }
 0x291   : > { %v3632_v6 = vadd.f32 %v3631_v21, %v3630_v8  ;;  %v3652_v7 = vrot.slane %v3651_v54, 2  ;;  %v3658_v17 = vadd.f32 %v3657_v31, %v3656_v53  ;;  %v3665_v32 = vadd.f32 %v3664_v43, %v3663_v19  ;;  %v17468_v8 = vld [vmem:[#allocation7 + $0xf4] ss:$24 sps:$4 sm:$0xff]   ;;  %v17466_v19 = vld [vmem:[#allocation7 + $0xf0] ss:$24 sps:$4 sm:$0xff]  }
 0x292   : > { %v3639_v9 = vadd.f32 %v3638_v29, %v3637_v48  ;;  %v3672_v10 = vadd.f32 %v3671_v33, %v3670_v27  ;;  %v3678_v52 = vrot.slane %v3677_v36, 4  ;;  %v3646_v20 = vadd.f32 %v3645_v42, %v3644_v41  ;;  %v17471_v31 = vld [vmem:[#allocation7 + $0x124] ss:$24 sps:$4 sm:$0xff]   ;;  %12550 = vmatprep.subr.bf16.mxu0 %v17468_v8 }
 0x293   : > { %v3633_v60 = vrot.slane %v3632_v6, 1  ;;  %v3653_v59 = vadd.f32 %v3652_v7, %v3651_v54  ;;  %v3659_v13 = vrot.slane %v3658_v17, 2  ;;  %v3666_v35 = vrot.slane %v3665_v32, 2 }
 0x294   : > { %v3640_v2 = vrot.slane %v3639_v9, 1  ;;  %v3673_v45 = vrot.slane %v3672_v10, 2  ;;  %v3679_v1 = vadd.f32 %v3678_v52, %v3677_v36  ;;  %v3647_v25 = vrot.slane %v3646_v20, 1  ;;  %12551 = vmatpush1.bf16.msra.mxu0 %v17466_v19  ;;  %v22009_v19 = vld [vmem:[%s19818_s22 + $0x5c] sm:$0x1] }
 0x295   : > { %v21973_v37 = vadd.f32 %v3633_v60, %v3632_v6  ;;  %v3654_v40 = vrot.slane %v3653_v59, 1  ;;  %v3660_v26 = vadd.f32 %v3659_v13, %v3658_v17  ;;  %v3667_v51 = vadd.f32 %v3666_v35, %v3665_v32  ;;  %v17469_v60 = vld [vmem:[#allocation7 + $0x120] ss:$24 sps:$4 sm:$0xff]   ;;  %12552 = vmatprep.subr.bf16.mxu0 %v17471_v31 }
 0x296   : > { %v21975_v16 = vadd.f32 %v3640_v2, %v3639_v9  ;;  %v3674_v56 = vadd.f32 %v3673_v45, %v3672_v10  ;;  %v3680_v4 = vrot.slane %v3679_v1, 2  ;;  %v21977_v55 = vadd.f32 %v3647_v25, %v3646_v20 }
 0x297   : > { %v21979_v38 = vadd.f32 %v3654_v40, %v3653_v59  ;;  %v3661_v12 = vrot.slane %v3660_v26, 1  ;;  %v3684_v24 = vrot.slane %v21881_v0, 1  ;;  %v3668_v34 = vrot.slane %v3667_v51, 1 }
 0x298   : > { %v3675_v28 = vrot.slane %v3674_v56, 1  ;;  %v3681_v22 = vadd.f32 %v3680_v4, %v3679_v1  ;;  %v3685_v50 = vrot.slane %v21890_v30, 1  ;;  %v3686_v39 = vrot.slane %v21900_v11, 1  ;;  %12553 = vmatpush1.bf16.msra.mxu0 %v17469_v60 }
 0x299   : > { %v21983_v62 = vadd.f32 %v3661_v12, %v3660_v26  ;;  %v3687_v46 = vrot.slane %v21910_v18, 1  ;;  %v3688_v47 = vrot.slane %v21920_v5, 1  ;;  %v21988_v58 = vadd.f32 %v3668_v34, %v3667_v51 }
 0x29a   : > { %v21990_v61 = vadd.f32 %v3675_v28, %v3674_v56  ;;  %v3682_v48 = vrot.slane %v3681_v22, 1  ;;  %v3689_v53 = vrot.slane %v21932_v57, 1  ;;  %v3690_v27 = vrot.slane %v21945_v15, 1 }
 0x29b   : > { %v3691_v21 = vrot.slane %v21953_v23, 1  ;;  %v3700_v41 = vsel %vm2649_vm3, %v3684_v24, 0.0  ;;  %v3707_v54 = vsel %vm2649_vm3, %v3685_v50, 0.0  ;;  %v3714_v36 = vsel %vm2649_vm3, %v3686_v39, 0.0 }
 0x29c   : > { %v21997_v29 = vadd.f32 %v3682_v48, %v3681_v22  ;;  %v3701_v43 = vrot.slane %v3700_v41, 4  ;;  %v3708_v33 = vrot.slane %v3707_v54, 4  ;;  %v3715_v6 = vrot.slane %v3714_v36, 4 }
 0x29d   : > { %v3721_v42 = vsel %vm2649_vm3, %v3687_v46, 0.0  ;;  %v3728_v7 = vsel %vm2649_vm3, %v3688_v47, 0.0  ;;  %v3735_v17 = vsel %vm2649_vm3, %v3689_v53, 0.0  ;;  %v3742_v13 = vsel %vm2649_vm3, %v3690_v27, 0.0  ;;  %v22006_v53 = vld [vmem:[%s19818_s22 + $0x50] sm:$0x1] }
 0x29e   : > { %v3702_v9 = vadd.f32 %v3701_v43, %v3700_v41  ;;  %v3709_v32 = vadd.f32 %v3708_v33, %v3707_v54  ;;  %v3722_v10 = vrot.slane %v3721_v42, 4  ;;  %v3729_v52 = vrot.slane %v3728_v7, 4 }
 0x29f   : > { %v3716_v20 = vadd.f32 %v3715_v6, %v3714_v36  ;;  %v3736_v59 = vrot.slane %v3735_v17, 4  ;;  %v3749_v2 = vsel %vm2649_vm3, %v3691_v21, 0.0  ;;  %v3743_v44 = vrot.slane %v3742_v13, 4  ;;  %v22012_v6 = vld [vmem:[%s19818_s22 + $0x68] sm:$0x1] }
 0x2a0   : > { %v3703_v35 = vrot.slane %v3702_v9, 2  ;;  %v3710_v45 = vrot.slane %v3709_v32, 2  ;;  %v3723_v1 = vadd.f32 %v3722_v10, %v3721_v42  ;;  %v3730_v25 = vadd.f32 %v3729_v52, %v3728_v7  ;;  %v22015_v42 = vld [vmem:[%s19818_s22 + $0x74] sm:$0x1]  ;;  %v22022_v10 = vld [vmem:[%s19818_s22 + $0x80] sm:$0x1] }
 0x2a1   : > { %v3717_v40 = vrot.slane %v3716_v20, 2  ;;  %v3737_v26 = vadd.f32 %v3736_v59, %v3735_v17  ;;  %v3750_v14 = vrot.slane %v3749_v2, 4  ;;  %v3744_v34 = vadd.f32 %v3743_v44, %v3742_v13  ;;  %v22025_v52 = vld [vmem:[%s19818_s22 + $0x11c] sm:$0x1] }
 0x2a2   : > { %v3704_v51 = vadd.f32 %v3703_v35, %v3702_v9  ;;  %v3711_v56 = vadd.f32 %v3710_v45, %v3709_v32  ;;  %v3724_v4 = vrot.slane %v3723_v1, 2  ;;  %v3731_v63 = vrot.slane %v3730_v25, 2  ;;  %v22033_v35 = vld [vmem:[%s19818_s22 + $0x134] sm:$0x1]  ;;  %v22039_v45 = vld [vmem:[%s19818_s22 + $0x140] sm:$0x1] }
 0x2a3   : > { %v3718_v12 = vadd.f32 %v3717_v40, %v3716_v20  ;;  %v3738_v24 = vrot.slane %v3737_v26, 2  ;;  %v3751_v28 = vadd.f32 %v3750_v14, %v3749_v2  ;;  %v3745_v8 = vrot.slane %v3744_v34, 2  ;;  %v22030_v2 = vld [vmem:[%s19818_s22 + $0x128] sm:$0x1] }
 0x2a4   : > { %v3705_v22 = vrot.slane %v3704_v51, 1  ;;  %v3712_v50 = vrot.slane %v3711_v56, 1  ;;  %v3725_v3 = vadd.f32 %v3724_v4, %v3723_v1  ;;  %v3732_v39 = vadd.f32 %v3731_v63, %v3730_v25  ;;  %v22042_v1 = vld [vmem:[%s19818_s22 + $0x14c] sm:$0x1]  ;;  %v22045_v25 = vld [vmem:[%s19818_s22 + $0x1e8] sm:$0x1] }
 0x2a5   : > { %v3719_v46 = vrot.slane %v3718_v12, 1  ;;  %v3739_v47 = vadd.f32 %v3738_v24, %v3737_v26  ;;  %v3752_v48 = vrot.slane %v3751_v28, 2  ;;  %v3746_v33 = vadd.f32 %v3745_v8, %v3744_v34  ;;  %v22059_v4 = vld [vmem:[%s19818_s22 + $0x20c] sm:$0x1]  ;;  %v22065_v24 = vld [vmem:[%s19818_s22 + $0x218] sm:$0x1] }
 0x2a6   : > { %v3706_v27 = vadd.f32 %v3705_v22, %v3704_v51  ;;  %v3713_v21 = vadd.f32 %v3712_v50, %v3711_v56  ;;  %v3726_v41 = vrot.slane %v3725_v3, 1  ;;  %v3733_v54 = vrot.slane %v3732_v39, 1  ;;  %v22053_v51 = vld [vmem:[%s19818_s22 + $0x1f4] sm:$0x1]  ;;  %v22056_v56 = vld [vmem:[%s19818_s22 + $0x200] sm:$0x1] }
 0x2a7   : > { %v3720_v31 = vadd.f32 %v3719_v46, %v3718_v12  ;;  %v3740_v43 = vrot.slane %v3739_v47, 1  ;;  %v3753_v36 = vadd.f32 %v3752_v48, %v3751_v28  ;;  %v4859_v9 = vsel %vm4660_vm4, %v21975_v16, %v21973_v37  ;;  %v22071_v34 = vld [vmem:[%s19818_s22 + $0x2c0] sm:$0x1]  ;;  %v22074_v28 = vld [vmem:[%s19818_s22 + $0x2cc] sm:$0x1] }
 0x2a8   : > { %v3727_v7 = vadd.f32 %v3726_v41, %v3725_v3  ;;  %v3734_v17 = vadd.f32 %v3733_v54, %v3732_v39  ;;  %v4875_v32 = vsel %vm4660_vm4, %v3713_v21, %v3706_v27  ;;  %v3747_v20 = vrot.slane %v3746_v33, 1  ;;  %v22082_v39 = vld [vmem:[%s19818_s22 + $0x2d8] sm:$0x1]  ;;  %v22085_v46 = vld [vmem:[%s19818_s22 + $0x2e4] sm:$0x1] }
 0x2a9   : > { %v3741_v60 = vadd.f32 %v3740_v43, %v3739_v47  ;;  %v3754_v59 = vrot.slane %v3753_v36, 1  ;;  %v4860_v13 = vsel %vm4662_vm5, %v21977_v55, %v4859_v9  ;;  %v4876_v16 = vsel %vm4662_vm5, %v3720_v31, %v4875_v32  ;;  %v22088_v47 = vld [vmem:[%s19818_s22 + $0x380] sm:$0x1]  ;;  %v22091_v8 = vld [vmem:[%s19818_s22 + $0x38c] sm:$0x1] }
 0x2aa   : > { %v4861_v37 = vsel %vm4664_vm6, %v21979_v38, %v4860_v13  ;;  %v1401_v55 = vunpack.c.l.bf16 %v22006_v53  ;;  %v1404_v40 = vunpack.c.l.bf16 %v22009_v19  ;;  %v3748_v26 = vadd.f32 %v3747_v20, %v3746_v33  ;;  %v22099_v41 = vld [vmem:[%s19818_s22 + $0x398] sm:$0x1]  ;;  %v22102_v54 = vld [vmem:[%s19818_s22 + $0x3a4] sm:$0x1]  ;;  %v22105_v31 = vld [vmem:[%s19818_s22 + $0x3b0] sm:$0x1] }
 0x2ab   : > { %v3755_v44 = vadd.f32 %v3754_v59, %v3753_v36  ;;  %v4862_v38 = vsel %vm4666_vm7, %v21983_v62, %v4861_v37  ;;  %v4877_v14 = vsel %vm4664_vm6, %v3727_v7, %v4876_v16  ;;  %v22068_v62 = vld [vmem:[%s19818_s22 + $0x2b4] sm:$0x1]  ;;  %v1407_v22 = vunpack.c.l.bf16 %v22012_v6  ;;  %v22108_v43 = vld [vmem:[%s19818_s22 + $0x44c] sm:$0x1]  ;;  %v22114_v7 = vld [vmem:[%s19818_s22 + $0x458] sm:$0x1] }
 0x2ac   : > { %v4863_v63 = vsel %vm4668_vm8, %v21988_v58, %v4862_v38  ;;  %v4878_v12 = vsel %vm4666_vm7, %v3734_v17, %v4877_v14  ;;  %v1410_v50 = vunpack.c.l.bf16 %v22015_v42  ;;  %v1413_v48 = vunpack.c.l.bf16 %v22022_v10  ;;  %v22117_v17 = vld [vmem:[%s19818_s22 + $0x464] sm:$0x1]  ;;  %v22120_v9 = vld [vmem:[%s19818_s22 + $0x470] sm:$0x1]  ;;  %v22123_v32 = vld [vmem:[%s19818_s22 + $0x47c] sm:$0x1] }
 0x2ad   : > { %v4864_v58 = vsel %vm4670_vm9, %v21990_v61, %v4863_v63  ;;  %v4879_v3 = vsel %vm4668_vm8, %v3741_v60, %v4878_v12  ;;  %v1419_v33 = vunpack.c.l.bf16 %v22030_v2  ;;  %v1422_v36 = vunpack.c.l.bf16 %v22033_v35  ;;  %v22129_v2 = vld [vmem:[%s19818_s22 + $0x518] sm:$0x1]  ;;  %v22132_v35 = vld [vmem:[%s19818_s22 + $0x524] sm:$0x1]  ;;  %v22135_v37 = vld [vmem:[%s19818_s22 + $0x530] sm:$0x1] }
 0x2ae   : > { %v4865_v61 = vsel %vm4672_vm10, %v21997_v29, %v4864_v58  ;;  %v4880_v21 = vsel %vm4670_vm9, %v3748_v26, %v4879_v3  ;;  %v1425_v60 = vunpack.c.l.bf16 %v22039_v45  ;;  %v1428_v20 = vunpack.c.l.bf16 %v22042_v1  ;;  %v22138_v16 = vld [vmem:[%s19818_s22 + $0x53c] sm:$0x1]  ;;  %v22144_v1 = vld [vmem:[%s19818_s22 + $0x548] sm:$0x1]  ;;  %v22150_v38 = vld [vmem:[%s19818_s22 + $0x5f0] sm:$0x1] }
 0x2af   : > { %v4881_v29 = vsel %vm4672_vm10, %v3755_v44, %v4880_v21  ;;  %v1431_v59 = vunpack.c.l.bf16 %v22045_v25  ;;  %v1434_v26 = vunpack.c.l.bf16 %v22053_v51  ;;  %v1437_v44 = vunpack.c.l.bf16 %v22056_v56  ;;  %v22147_v25 = vld [vmem:[%s19818_s22 + $0x5e4] sm:$0x1]  ;;  %v22153_v14 = vld [vmem:[%s19818_s22 + $0x5fc] sm:$0x1]  ;;  %v22161_v56 = vld [vmem:[%s19818_s22 + $0x608] sm:$0x1] }
 0x2b0   : > { %v5065_v13 = vpack.c.bf16 %v4881_v29, %v4865_v61  ;;  %v1440_v45 = vunpack.c.l.bf16 %v22059_v4  ;;  %v1443_v63 = vunpack.c.l.bf16 %v22065_v24  ;;  %v1446_v12 = vunpack.c.l.bf16 %v22068_v62  ;;  %v22164_v4 = vld [vmem:[%s19818_s22 + $0x614] sm:$0x1] }
 0x2b1   : > { %v1449_v58 = vunpack.c.l.bf16 %v22071_v34  ;;  %v1452_v51 = vunpack.c.l.bf16 %v22074_v28  ;;  %v1455_v3 = vunpack.c.l.bf16 %v22082_v39  ;;  %v1458_v61 = vunpack.c.l.bf16 %v22085_v46 }
 0x2b2   : > { %17168 = vmatmul.mubr.msk.bf16.gmra.mrb[24].mxu0 %vm603_vm2, %v5065_v13  ;;  %v1461_v21 = vunpack.c.l.bf16 %v22088_v47  ;;  %v1464_v24 = vunpack.c.l.bf16 %v22091_v8  ;;  %v1467_v62 = vunpack.c.l.bf16 %v22099_v41  ;;  %v1470_v34 = vunpack.c.l.bf16 %v22102_v54 }
 0x2b3   : > { %17171 = vmatprep.mubr.msk.bf16.mxu0 %vm19561_vm0, %v24483_v49  ;;  %v1473_v28 = vunpack.c.l.bf16 %v22105_v31  ;;  %v1476_v29 = vunpack.c.l.bf16 %v22108_v43  ;;  %v1479_v13 = vunpack.c.l.bf16 %v22114_v7  ;;  %v1482_v39 = vunpack.c.l.bf16 %v22117_v17 }
 0x2b4   : > { %v1485_v46 = vunpack.c.l.bf16 %v22120_v9  ;;  %v1488_v47 = vunpack.c.l.bf16 %v22123_v32  ;;  %v1491_v8 = vunpack.c.l.bf16 %v22129_v2  ;;  %v1494_v27 = vunpack.c.l.bf16 %v22132_v35 }
 0x2b5   : > { %v1497_v41 = vunpack.c.l.bf16 %v22135_v37  ;;  %v1500_v54 = vunpack.c.l.bf16 %v22138_v16  ;;  %v1503_v31 = vunpack.c.l.bf16 %v22144_v1  ;;  %v1506_v43 = vunpack.c.l.bf16 %v22147_v25 }
 0x2b6   : > { %v1509_v7 = vunpack.c.l.bf16 %v22150_v38  ;;  %v1512_v17 = vunpack.c.l.bf16 %v22153_v14  ;;  %v1515_v9 = vunpack.c.l.bf16 %v22161_v56  ;;  %v1537_v2 = vsel %vm622_vm12, %v1401_v55, 0.0 }
 0x2b7   : > { %v1538_v35 = vsel %vm622_vm12, %v1404_v40, 0.0  ;;  %v1540_v16 = vsel %vm622_vm12, %v1407_v22, 0.0  ;;  %v1542_v1 = vsel %vm622_vm12, %v1410_v50, 0.0  ;;  %v1544_v25 = vsel %vm622_vm12, %v1413_v48, 0.0 }
 0x2b8   : > { %v1539_v37 = vadd.f32 %v1538_v35, %v1537_v2  ;;  %v24537_v53 = vunpack.c.l.bf16 %v22025_v52  ;;  %v1565_v19 = vsel %vm622_vm12, %v1419_v33, 0.0  ;;  %v1567_v40 = vsel %vm622_vm12, %v1422_v36, 0.0 }
 0x2b9   : > { %v1569_v6 = vsel %vm622_vm12, %v1425_v60, 0.0  ;;  %v1571_v42 = vsel %vm622_vm12, %v1428_v20, 0.0  ;;  %v1591_v50 = vsel %vm622_vm12, %v1431_v59, 0.0  ;;  %v1592_v10 = vsel %vm622_vm12, %v1434_v26, 0.0 }
 0x2ba   : > { %v1564_v55 = vsel %vm622_vm12, %v24537_v53, 0.0  ;;  %v1541_v2 = vadd.f32 %v1540_v16, %v1539_v37  ;;  %v1594_v48 = vsel %vm622_vm12, %v1437_v44, 0.0  ;;  %v1596_v52 = vsel %vm622_vm12, %v1440_v45, 0.0 }
 0x2bb   : > { %v1566_v22 = vadd.f32 %v1565_v19, %v1564_v55  ;;  %v1598_v35 = vsel %vm622_vm12, %v1443_v63, 0.0  ;;  %v1593_v32 = vadd.f32 %v1592_v10, %v1591_v50  ;;  %v1618_v36 = vsel %vm622_vm12, %v1446_v12, 0.0 }
 0x2bc   : > { %v1543_v53 = vadd.f32 %v1542_v1, %v1541_v2  ;;  %v1619_v60 = vsel %vm622_vm12, %v1449_v58, 0.0  ;;  %v1621_v37 = vsel %vm622_vm12, %v1452_v51, 0.0  ;;  %v1623_v20 = vsel %vm622_vm12, %v1455_v3, 0.0 }
 0x2bd   : > { %v1568_v33 = vadd.f32 %v1567_v40, %v1566_v22  ;;  %v1625_v59 = vsel %vm622_vm12, %v1458_v61, 0.0  ;;  %v1595_v16 = vadd.f32 %v1594_v48, %v1593_v32  ;;  %v1620_v45 = vadd.f32 %v1619_v60, %v1618_v36  ;;  %v22247_v48 = vld [vmem:[%s19818_s22 + $0x78] sm:$0xff]   ;;  %v22273_v36 = vld [vmem:[%s19818_s22 + $0x168] sm:$0xff]  }
 0x2be   : > { %v22222_v26 = vadd.f32 %v1544_v25, %v1543_v53  ;;  %v1645_v63 = vsel %vm622_vm12, %v1461_v21, 0.0  ;;  %v1646_v1 = vsel %vm622_vm12, %v1464_v24, 0.0  ;;  %v1648_v55 = vsel %vm622_vm12, %v1467_v62, 0.0  ;;  %24538 = vst [vmem:[#allocation25_spill] sm:$0xff] %v22247_v48 }
 0x2bf   : > { %v1570_v44 = vadd.f32 %v1569_v6, %v1568_v33  ;;  %v1650_v12 = vsel %vm622_vm12, %v1470_v34, 0.0  ;;  %v1597_v51 = vadd.f32 %v1596_v52, %v1595_v16  ;;  %v1622_v19 = vadd.f32 %v1621_v37, %v1620_v45  ;;  %v22286_v37 = vld [vmem:[%s19818_s22 + $0x2d0] sm:$0xff]   ;;  %v22292_v45 = vld [vmem:[%s19818_s22 + $0x2e8] sm:$0xff]  }
 0x2c0   : > { %v1647_v3 = vadd.f32 %v1646_v1, %v1645_v63  ;;  %v1652_v61 = vsel %vm622_vm12, %v1473_v28, 0.0  ;;  %v1672_v25 = vsel %vm622_vm12, %v1476_v29, 0.0  ;;  %v1673_v32 = vsel %vm622_vm12, %v1479_v13, 0.0  ;;  %v22295_v63 = vld [vmem:[%s19818_s22 + $0x300] sm:$0xff]   ;;  %v22298_v1 = vld [vmem:[%s19818_s22 + $0x3a8] sm:$0xff]  }
 0x2c1   : > { %v22228_v58 = vadd.f32 %v1571_v42, %v1570_v44  ;;  %v1675_v40 = vsel %vm622_vm12, %v1482_v39, 0.0  ;;  %v22234_v21 = vadd.f32 %v1598_v35, %v1597_v51  ;;  %v1624_v24 = vadd.f32 %v1623_v20, %v1622_v19  ;;  %v22255_v35 = vld [vmem:[%s19818_s22 + $0x90] sm:$0xff]  }
 0x2c2   : > { %v1649_v62 = vadd.f32 %v1648_v55, %v1647_v3  ;;  %v1674_v6 = vadd.f32 %v1673_v32, %v1672_v25  ;;  %v1677_v34 = vsel %vm622_vm12, %v1485_v46, 0.0  ;;  %v1679_v2 = vsel %vm622_vm12, %v1488_v47, 0.0  ;;  %v22306_v3 = vld [vmem:[%s19818_s22 + $0x3c0] sm:$0xff]  }
 0x2c3   : > { %v1699_v22 = vsel %vm622_vm12, %v1491_v8, 0.0  ;;  %v1700_v28 = vsel %vm622_vm12, %v1494_v27, 0.0  ;;  %v22240_v29 = vadd.f32 %v1625_v59, %v1624_v24  ;;  %v1702_v50 = vsel %vm622_vm12, %v1497_v41, 0.0  ;;  %v17475_v24 = vld [vmem:[#allocation7 + $0x180] ss:$24 sps:$4 sm:$0xff]  }
 0x2c4   : > { %v1651_v13 = vadd.f32 %v1650_v12, %v1649_v62  ;;  %v1676_v39 = vadd.f32 %v1675_v40, %v1674_v6  ;;  %v1701_v42 = vadd.f32 %v1700_v28, %v1699_v22  ;;  %v1704_v10 = vsel %vm622_vm12, %v1500_v54, 0.0  ;;  %v22258_v54 = vld [vmem:[%s19818_s22 + $0x138] sm:$0xff]   ;;  %v22315_v62 = vld [vmem:[%s19818_s22 + $0x480] sm:$0xff]  }
 0x2c5   : > { %v1706_v46 = vsel %vm622_vm12, %v1503_v31, 0.0  ;;  %v1726_v47 = vsel %vm622_vm12, %v1506_v43, 0.0  ;;  %v1727_v41 = vsel %vm622_vm12, %v1509_v7, 0.0  ;;  %24539 = vst [vmem:[#allocation26_spill] sm:$0xff] %v22258_v54  ;;  %v1729_v43 = vsel %vm622_vm12, %v1512_v17, 0.0  ;;  %v22270_v7 = vld [vmem:[%s19818_s22 + $0x150] sm:$0xff]  }
 0x2c6   : > { %v22249_v8 = vadd.f32 %v1652_v61, %v1651_v13  ;;  %v1678_v27 = vadd.f32 %v1677_v34, %v1676_v39  ;;  %v1703_v52 = vadd.f32 %v1702_v50, %v1701_v42  ;;  %v1728_v31 = vadd.f32 %v1727_v41, %v1726_v47  ;;  %24541 = vst [vmem:[#allocation27_spill] sm:$0xff] %v22270_v7  ;;  %v22309_v61 = vld [vmem:[%s19818_s22 + $0x468] sm:$0xff]   ;;  %v22318_v6 = vld [vmem:[%s19818_s22 + $0x498] sm:$0xff]   ;;  %v22325_v13 = vld [vmem:[%s19818_s22 + $0x540] sm:$0xff]  }
 0x2c7   : > { %v1731_v53 = vsel %vm622_vm12, %v1515_v9, 0.0  ;;  %v24540_v33 = vunpack.c.l.bf16 %v22164_v4  ;;  %v22280_v9 = vld [vmem:[%s19818_s22 + $0x210] sm:$0xff]   ;;  %v22283_v4 = vld [vmem:[%s19818_s22 + $0x228] sm:$0xff]   ;;  %v22328_v39 = vld [vmem:[%s19818_s22 + $0x558] sm:$0xff]  }
 0x2c8   : > { %v22275_v60 = vadd.f32 %v1679_v2, %v1678_v27  ;;  %v1705_v14 = vadd.f32 %v1704_v10, %v1703_v52  ;;  %24542 = vst [vmem:[#allocation20_spill] sm:$0xff] %v22283_v4  ;;  %v1730_v20 = vadd.f32 %v1729_v43, %v1728_v31  ;;  %v22336_v47 = vld [vmem:[%s19818_s22 + $0x600] sm:$0xff]   ;;  %v22339_v27 = vld [vmem:[%s19818_s22 + $0x618] sm:$0xff]  }
 0x2c9   : > { %v1733_v38 = vsel %vm622_vm12, %v24540_v33, 0.0  ;;  %v22342_v52 = vld [vmem:[%s19818_s22 + $0x6c] ss:$24 sps:$4 sm:$0xff]   ;;  %v22349_v33 = vld [vmem:[%s19818_s22 + $0x630] sm:$0xff]  }
 0x2ca   : > { %v22300_v55 = vadd.f32 %v1706_v46, %v1705_v14  ;;  %v1732_v25 = vadd.f32 %v1731_v53, %v1730_v20  ;;  %v22353_v14 = vld [vmem:[%s19818_s22 + $0x15c] ss:$168 sps:$4 sm:$0xff]   ;;  %v22380_v53 = vld [vmem:[%s19818_s22 + $0x48c] ss:$168 sps:$4 sm:$0xff]   ;;  %v1856_v46 = vunpack.c.l.bf16 %v22342_v52  ;;  %v1862_v44 = vunpack.c.h.bf16 %v22342_v52 }
 0x2cb   : > { %v22360_v50 = vld [vmem:[%s19818_s22 + $0x21c] ss:$24 sps:$4 sm:$0xff]   ;;  %v22383_v20 = vld [vmem:[%s19818_s22 + $0x54c] ss:$24 sps:$4 sm:$0xff]   ;;  %v1880_v19 = vunpack.c.l.bf16 %v22353_v14  ;;  %v1886_v40 = vunpack.c.h.bf16 %v22353_v14  ;;  %v1940_v14 = vunpack.c.l.bf16 %v22380_v53  ;;  %v1946_v17 = vunpack.c.h.bf16 %v22380_v53 }
 0x2cc   : > { %24543 = vst [vmem:[#allocation28_spill] sm:$0xff] %v22300_v55  ;;  %v22330_v42 = vadd.f32 %v1733_v38, %v1732_v25  ;;  %v15067_v38 = vld [vmem:[%s19818_s22 + $0x9c] ss:$168 sps:$4 sm:$0xff]   ;;  %v22373_v25 = vld [vmem:[%s19818_s22 + $0x3cc] ss:$168 sps:$4 sm:$0xff]   ;;  %v1892_v32 = vunpack.c.l.bf16 %v22360_v50  ;;  %v1898_v31 = vunpack.c.h.bf16 %v22360_v50  ;;  %v1952_v50 = vunpack.c.l.bf16 %v22383_v20 }
 0x2cd   : > { %v22363_v22 = vld [vmem:[%s19818_s22 + $0x2dc] ss:$24 sps:$4 sm:$0xff]   ;;  %v22390_v41 = vld [vmem:[%s19818_s22 + $0x60c] ss:$24 sps:$4 sm:$0xff]   ;;  %v1868_v2 = vunpack.c.l.bf16 %v15067_v38  ;;  %v1874_v34 = vunpack.c.h.bf16 %v15067_v38  ;;  %v1928_v38 = vunpack.c.l.bf16 %v22373_v25  ;;  %v1934_v59 = vunpack.c.h.bf16 %v22373_v25 }
 0x2ce   : > { %24544 = vst [vmem:[#allocation21_spill] sm:$0xff] %v22330_v42  ;;  %v22370_v12 = vld [vmem:[%s19818_s22 + $0x39c] ss:$24 sps:$4 sm:$0xff]   ;;  %v17477_v43 = vld [vmem:[#allocation7 + $0x184] ss:$24 sps:$4 sm:$0xff]   ;;  %v1904_v56 = vunpack.c.l.bf16 %v22363_v22  ;;  %v1910_v51 = vunpack.c.h.bf16 %v22363_v22  ;;  %v1958_v49 = vunpack.c.h.bf16 %v22383_v20  ;;  %v24545_v42 = vunpack.c.l.bf16 %v22247_v48 }
 0x2cf   : > { %v17472_v10 = vld [vmem:[#allocation7 + $0x150] ss:$24 sps:$4 sm:$0xff]   ;;  %v17474_v28 = vld [vmem:[#allocation7 + $0x154] ss:$24 sps:$4 sm:$0xff]   ;;  %v1916_v52 = vunpack.c.l.bf16 %v22370_v12  ;;  %v1922_v16 = vunpack.c.h.bf16 %v22370_v12  ;;  %v1976_v12 = vsel %vm603_vm2, %v1856_v46, 0.0  ;;  %v1979_v23 = vsel %vm603_vm2, %v1862_v44, 0.0 }
 0x2d0   : > { %12554 = vmatprep.subr.bf16.mxu0 %v17474_v28  ;;  %v1977_v25 = vsel %vm603_vm2, %v24545_v42, 0.0  ;;  %v24546_v53 = vunpack.c.l.bf16 %v22255_v35  ;;  %v1983_v20 = vsel %vm603_vm2, %v1868_v2, 0.0  ;;  %v2004_v28 = vsel %vm603_vm2, %v1874_v34, 0.0 }
 0x2d1   : > { %12555 = vmatpush1.bf16.msra.mxu0 %v17472_v10  ;;  %v1978_v10 = vadd.f32 %v1977_v25, %v1976_v12  ;;  %v24548_v46 = vunpack.c.l.bf16 %v22270_v7  ;;  %v2008_v42 = vsel %vm603_vm2, %v1880_v19, 0.0  ;;  %v24549_v25 = vunpack.c.l.bf16 %v22273_v36 }
 0x2d2   : > { %12556 = vmatprep.subr.bf16.mxu0 %v17477_v43  ;;  %v1981_v55 = vsel %vm603_vm2, %v24546_v53, 0.0  ;;  %v24547_v43 = vunpack.c.l.bf16 %v22258_v54  ;;  %v2030_v2 = vsel %vm603_vm2, %v1886_v40, 0.0  ;;  %v24550_v54 = vunpack.c.l.bf16 %v22280_v9 }
 0x2d3   : > { %v2006_v48 = vsel %vm603_vm2, %v24548_v46, 0.0  ;;  %v1980_v44 = vadd.f32 %v1979_v23, %v1978_v10  ;;  %v2010_v53 = vsel %vm603_vm2, %v24549_v25, 0.0  ;;  %v2033_v34 = vsel %vm603_vm2, %v1892_v32, 0.0 }
 0x2d4   : > { %v2003_v22 = vsel %vm603_vm2, %v24547_v43, 0.0  ;;  %v2031_v43 = vsel %vm603_vm2, %v24550_v54, 0.0  ;;  %v24551_v7 = vunpack.c.l.bf16 %v22283_v4  ;;  %v2037_v19 = vsel %vm603_vm2, %v1898_v31, 0.0 }
 0x2d5   : > { %12557 = vmatpush1.bf16.msra.mxu0 %v17475_v24  ;;  %v2005_v12 = vadd.f32 %v2004_v28, %v2003_v22  ;;  %v1982_v23 = vadd.f32 %v1981_v55, %v1980_v44  ;;  %v2032_v22 = vadd.f32 %v2031_v43, %v2030_v2  ;;  %v24552_v28 = vunpack.c.l.bf16 %v22286_v37 }
 0x2d6   : > { %v2035_v46 = vsel %vm603_vm2, %v24551_v7, 0.0  ;;  %v2058_v40 = vsel %vm603_vm2, %v1904_v56, 0.0  ;;  %v24553_v25 = vunpack.c.l.bf16 %v22292_v45  ;;  %v2062_v32 = vsel %vm603_vm2, %v1910_v51, 0.0 }
 0x2d7   : > { %v2007_v24 = vadd.f32 %v2006_v48, %v2005_v12  ;;  %v2057_v10 = vsel %vm603_vm2, %v24552_v28, 0.0  ;;  %v24554_v4 = vunpack.c.l.bf16 %v22295_v63  ;;  %v22452_v31 = vadd.f32 %v1983_v20, %v1982_v23 }
 0x2d8   : > { %v2060_v54 = vsel %vm603_vm2, %v24553_v25, 0.0  ;;  %v2034_v55 = vadd.f32 %v2033_v34, %v2032_v22  ;;  %v2059_v44 = vadd.f32 %v2058_v40, %v2057_v10  ;;  %v2084_v12 = vsel %vm603_vm2, %v1916_v52, 0.0 }
 0x2d9   : > { %v2064_v7 = vsel %vm603_vm2, %v24554_v4, 0.0  ;;  %v2009_v48 = vadd.f32 %v2008_v42, %v2007_v24  ;;  %v24555_v2 = vunpack.c.l.bf16 %v22298_v1  ;;  %v2087_v43 = vsel %vm603_vm2, %v1922_v16, 0.0 }
 0x2da   : > { %v24556_v28 = vunpack.c.l.bf16 %v22306_v3  ;;  %v2036_v4 = vadd.f32 %v2035_v46, %v2034_v55  ;;  %v2061_v20 = vadd.f32 %v2060_v54, %v2059_v44  ;;  %v2091_v42 = vsel %vm603_vm2, %v1928_v38, 0.0 }
 0x2db   : > { %v2085_v56 = vsel %vm603_vm2, %v24555_v2, 0.0  ;;  %v22462_v25 = vadd.f32 %v2010_v53, %v2009_v48  ;;  %v24557_v34 = vunpack.c.l.bf16 %v22309_v61  ;;  %v2112_v24 = vsel %vm603_vm2, %v1934_v59, 0.0 }
 0x2dc   : > { %v2089_v51 = vsel %vm603_vm2, %v24556_v28, 0.0  ;;  %v2086_v23 = vadd.f32 %v2085_v56, %v2084_v12  ;;  %v24558_v22 = vunpack.c.l.bf16 %v22315_v62  ;;  %v22472_v10 = vadd.f32 %v2037_v19, %v2036_v4 }
 0x2dd   : > { %v2111_v52 = vsel %vm603_vm2, %v24557_v34, 0.0  ;;  %v2063_v40 = vadd.f32 %v2062_v32, %v2061_v20  ;;  %v2116_v46 = vsel %vm603_vm2, %v1940_v14, 0.0  ;;  %v24559_v54 = vunpack.c.l.bf16 %v22318_v6 }
 0x2de   : > { %v2114_v16 = vsel %vm603_vm2, %v24558_v22, 0.0  ;;  %v2088_v53 = vadd.f32 %v2087_v43, %v2086_v23  ;;  %v2113_v48 = vadd.f32 %v2112_v24, %v2111_v52  ;;  %v2138_v55 = vsel %vm603_vm2, %v1946_v17, 0.0 }
 0x2df   : > { %v2118_v38 = vsel %vm603_vm2, %v24559_v54, 0.0  ;;  %v24560_v44 = vunpack.c.l.bf16 %v22325_v13  ;;  %v22482_v12 = vadd.f32 %v2064_v7, %v2063_v40  ;;  %v2141_v32 = vsel %vm603_vm2, %v1952_v50, 0.0 }
 0x2e0   : > { %v2090_v2 = vadd.f32 %v2089_v51, %v2088_v53  ;;  %v2115_v19 = vadd.f32 %v2114_v16, %v2113_v48  ;;  %v24561_v43 = vunpack.c.l.bf16 %v22328_v39  ;;  %v2145_v28 = vsel %vm603_vm2, %v1958_v49, 0.0 }
 0x2e1   : > { %v2139_v59 = vsel %vm603_vm2, %v24560_v44, 0.0  ;;  %v24562_v4 = vunpack.c.l.bf16 %v22336_v47  ;;  %v24563_v51 = vunpack.c.l.bf16 %v22390_v41  ;;  %v24564_v50 = vunpack.c.l.bf16 %v22339_v27 }
 0x2e2   : > { %v2140_v56 = vadd.f32 %v2139_v59, %v2138_v55  ;;  %v2143_v14 = vsel %vm603_vm2, %v24561_v43, 0.0  ;;  %v22492_v20 = vadd.f32 %v2091_v42, %v2090_v2  ;;  %v2117_v23 = vadd.f32 %v2116_v46, %v2115_v19 }
 0x2e3   : > { %v2165_v17 = vsel %vm603_vm2, %v24562_v4, 0.0  ;;  %v2166_v34 = vsel %vm603_vm2, %v24563_v51, 0.0  ;;  %v2168_v24 = vsel %vm603_vm2, %v24564_v50, 0.0  ;;  %v24565_v22 = vunpack.c.h.bf16 %v22390_v41 }
 0x2e4   : > { %v2142_v7 = vadd.f32 %v2141_v32, %v2140_v56  ;;  %v2167_v52 = vadd.f32 %v2166_v34, %v2165_v17  ;;  %v24566_v16 = vunpack.c.l.bf16 %v22349_v33  ;;  %v22506_v40 = vadd.f32 %v2118_v38, %v2117_v23  ;;  %v24568_v17 = vld [vmem:[#allocation24_spill] sm:$0xff] }
 0x2e5   : > { %v2170_v49 = vsel %vm603_vm2, %v24565_v22, 0.0  ;;  %v3764_v48 = vrot.slane %v21881_v0, 4  ;;  %v3765_v46 = vrot.slane %v22222_v26, 4  ;;  %v3767_v55 = vrot.slane %v21890_v30, 4 }
 0x2e6   : > { %v2172_v42 = vsel %vm603_vm2, %v24566_v16, 0.0  ;;  %v2144_v53 = vadd.f32 %v2143_v14, %v2142_v7  ;;  %v2169_v54 = vadd.f32 %v2168_v24, %v2167_v52  ;;  %v3768_v44 = vrot.slane %v22228_v58, 4  ;;  %v24569_v7 = vld [vmem:[#allocation21_spill] sm:$0xff] }
 0x2e7   : > { %v3770_v41 = vrot.slane %v21900_v11, 4  ;;  %v3766_v2 = vsel %vm2963_vm1, %v3764_v48, %v3765_v46  ;;  %v3771_v19 = vrot.slane %v22234_v21, 4  ;;  %v3773_v38 = vrot.slane %v21910_v18, 4 }
 0x2e8   : > { %v22513_v59 = vadd.f32 %v2145_v28, %v2144_v53  ;;  %v2171_v56 = vadd.f32 %v2170_v49, %v2169_v54  ;;  %v3769_v0 = vsel %vm2963_vm1, %v3767_v55, %v3768_v44  ;;  %v3774_v26 = vrot.slane %v22240_v29, 4  ;;  %v24567_v28 = vld [vmem:[#allocation28_spill] sm:$0xff] }
 0x2e9   : > { %v3776_v32 = vrot.slane %v21920_v5, 4  ;;  %v3772_v30 = vsel %vm2963_vm1, %v3770_v41, %v3771_v19  ;;  %v3777_v58 = vrot.slane %v22249_v8, 4  ;;  %v3779_v11 = vrot.slane %v21932_v57, 4 }
 0x2ea   : > { %v3780_v43 = vrot.slane %v22275_v60, 4  ;;  %v22525_v14 = vadd.f32 %v2172_v42, %v2171_v56  ;;  %v3775_v21 = vsel %vm2963_vm1, %v3773_v38, %v3774_v26  ;;  %v3782_v18 = vrot.slane %v21945_v15, 4 }
 0x2eb   : > { %v3783_v4 = vrot.slane %v24567_v28, 4  ;;  %v3778_v29 = vsel %vm2963_vm1, %v3776_v32, %v3777_v58  ;;  %v3785_v23 = vrot.slane %v24568_v17, 4  ;;  %v3786_v8 = vrot.slane %v24569_v7, 4 }
 0x2ec   : > { %v3781_v5 = vsel %vm2963_vm1, %v3779_v11, %v3780_v43  ;;  %v3796_v60 = vsel %vm2649_vm3, %v3766_v2, 0.0  ;;  %v3803_v51 = vsel %vm2649_vm3, %v3769_v0, 0.0  ;;  %v3810_v34 = vsel %vm2649_vm3, %v3772_v30, 0.0 }
 0x2ed   : > { %v3784_v57 = vsel %vm2963_vm1, %v3782_v18, %v3783_v4  ;;  %v3787_v15 = vsel %vm2963_vm1, %v3785_v23, %v3786_v8  ;;  %v3797_v52 = vrot.slane %v3796_v60, 4  ;;  %v3804_v50 = vrot.slane %v3803_v51, 4 }
 0x2ee   : > { %v3811_v24 = vrot.slane %v3810_v34, 4  ;;  %v3817_v22 = vsel %vm2649_vm3, %v3775_v21, 0.0  ;;  %v3824_v49 = vsel %vm2649_vm3, %v3778_v29, 0.0  ;;  %v3831_v16 = vsel %vm2649_vm3, %v3781_v5, 0.0 }
 0x2ef   : > { %v3838_v42 = vsel %vm2649_vm3, %v3784_v57, 0.0  ;;  %v3798_v53 = vadd.f32 %v3797_v52, %v3796_v60  ;;  %v3805_v48 = vadd.f32 %v3804_v50, %v3803_v51  ;;  %v3818_v54 = vrot.slane %v3817_v22, 4 }
 0x2f0   : > { %v3812_v46 = vadd.f32 %v3811_v24, %v3810_v34  ;;  %v3825_v55 = vrot.slane %v3824_v49, 4  ;;  %v3832_v44 = vrot.slane %v3831_v16, 4  ;;  %v3839_v41 = vrot.slane %v3838_v42, 4 }
 0x2f1   : > { %v3845_v2 = vsel %vm2649_vm3, %v3787_v15, 0.0  ;;  %v3799_v19 = vrot.slane %v3798_v53, 2  ;;  %v3806_v38 = vrot.slane %v3805_v48, 2  ;;  %v3819_v0 = vadd.f32 %v3818_v54, %v3817_v22 }
 0x2f2   : > { %v3813_v56 = vrot.slane %v3812_v46, 2  ;;  %v3826_v26 = vadd.f32 %v3825_v55, %v3824_v49  ;;  %v3833_v32 = vadd.f32 %v3832_v44, %v3831_v16  ;;  %v3840_v30 = vadd.f32 %v3839_v41, %v3838_v42 }
 0x2f3   : > { %v3846_v58 = vrot.slane %v3845_v2, 4  ;;  %v3800_v11 = vadd.f32 %v3799_v19, %v3798_v53  ;;  %v3807_v43 = vadd.f32 %v3806_v38, %v3805_v48  ;;  %v3820_v18 = vrot.slane %v3819_v0, 2 }
 0x2f4   : > { %v3814_v21 = vadd.f32 %v3813_v56, %v3812_v46  ;;  %v3827_v28 = vrot.slane %v3826_v26, 2  ;;  %v3834_v4 = vrot.slane %v3833_v32, 2  ;;  %v3841_v29 = vrot.slane %v3840_v30, 2 }
 0x2f5   : > { %v3847_v5 = vadd.f32 %v3846_v58, %v3845_v2  ;;  %v3801_v17 = vrot.slane %v3800_v11, 1  ;;  %v3808_v23 = vrot.slane %v3807_v43, 1  ;;  %v3821_v8 = vadd.f32 %v3820_v18, %v3819_v0 }
 0x2f6   : > { %v3815_v7 = vrot.slane %v3814_v21, 1  ;;  %v3828_v57 = vadd.f32 %v3827_v28, %v3826_v26  ;;  %v3835_v60 = vadd.f32 %v3834_v4, %v3833_v32  ;;  %v3842_v51 = vadd.f32 %v3841_v29, %v3840_v30 }
 0x2f7   : > { %v3848_v34 = vrot.slane %v3847_v5, 2  ;;  %v22544_v15 = vadd.f32 %v3801_v17, %v3800_v11  ;;  %v22546_v52 = vadd.f32 %v3808_v23, %v3807_v43  ;;  %v3822_v24 = vrot.slane %v3821_v8, 1 }
 0x2f8   : > { %v22548_v50 = vadd.f32 %v3815_v7, %v3814_v21  ;;  %v3829_v22 = vrot.slane %v3828_v57, 1  ;;  %v3836_v49 = vrot.slane %v3835_v60, 1  ;;  %v3843_v16 = vrot.slane %v3842_v51, 1 }
 0x2f9   : > { %v3849_v42 = vadd.f32 %v3848_v34, %v3847_v5  ;;  %v22550_v53 = vadd.f32 %v3822_v24, %v3821_v8  ;;  %v3852_v48 = vsel %vm2649_vm3, %v22452_v31, 0.0  ;;  %v3859_v46 = vsel %vm2649_vm3, %v22462_v25, 0.0 }
 0x2fa   : > { %v3866_v54 = vsel %vm2649_vm3, %v22472_v10, 0.0  ;;  %v22558_v55 = vadd.f32 %v3829_v22, %v3828_v57  ;;  %v22560_v44 = vadd.f32 %v3836_v49, %v3835_v60  ;;  %v22562_v41 = vadd.f32 %v3843_v16, %v3842_v51 }
 0x2fb   : > { %v3850_v2 = vrot.slane %v3849_v42, 1  ;;  %v3853_v19 = vrot.slane %v3852_v48, 4  ;;  %v3860_v38 = vrot.slane %v3859_v46, 4  ;;  %v3867_v56 = vrot.slane %v3866_v54, 4 }
 0x2fc   : > { %v3873_v0 = vsel %vm2649_vm3, %v22482_v12, 0.0  ;;  %v3880_v30 = vsel %vm2649_vm3, %v22492_v20, 0.0  ;;  %v3887_v58 = vsel %vm2649_vm3, %v22506_v40, 0.0  ;;  %v3894_v29 = vsel %vm2649_vm3, %v22513_v59, 0.0 }
 0x2fd   : > { %v22566_v26 = vadd.f32 %v3850_v2, %v3849_v42  ;;  %v3874_v32 = vrot.slane %v3873_v0, 4  ;;  %v3854_v11 = vadd.f32 %v3853_v19, %v3852_v48  ;;  %v3861_v43 = vadd.f32 %v3860_v38, %v3859_v46  ;;  %v22577_v2 = vld [vmem:[%s19818_s22 + $0x70] ss:$24 sps:$4 sm:$0xff]  }
 0x2fe   : > { %v3868_v21 = vadd.f32 %v3867_v56, %v3866_v54  ;;  %v3881_v18 = vrot.slane %v3880_v30, 4  ;;  %v3888_v4 = vrot.slane %v3887_v58, 4  ;;  %v3901_v5 = vsel %vm2649_vm3, %v22525_v14, 0.0 }
 0x2ff   : > { %v3875_v28 = vadd.f32 %v3874_v32, %v3873_v0  ;;  %v3855_v17 = vrot.slane %v3854_v11, 2  ;;  %v3862_v23 = vrot.slane %v3861_v43, 2  ;;  %v3895_v51 = vrot.slane %v3894_v29, 4 }
 0x300   : > { %v3869_v7 = vrot.slane %v3868_v21, 2  ;;  %v3882_v8 = vadd.f32 %v3881_v18, %v3880_v30  ;;  %v3889_v60 = vadd.f32 %v3888_v4, %v3887_v58  ;;  %v3902_v34 = vrot.slane %v3901_v5, 4 }
 0x301   : > { %v3876_v57 = vrot.slane %v3875_v28, 2  ;;  %v3856_v24 = vadd.f32 %v3855_v17, %v3854_v11  ;;  %v3863_v22 = vadd.f32 %v3862_v23, %v3861_v43  ;;  %v3896_v46 = vadd.f32 %v3895_v51, %v3894_v29  ;;  %v15068_v23 = vld [vmem:[%s19818_s22 + $0xa0] ss:$168 sps:$4 sm:$0xff]  }
 0x302   : > { %v3870_v49 = vadd.f32 %v3869_v7, %v3868_v21  ;;  %v3883_v16 = vrot.slane %v3882_v8, 2  ;;  %v3890_v48 = vrot.slane %v3889_v60, 2  ;;  %v3903_v54 = vadd.f32 %v3902_v34, %v3901_v5  ;;  %v22586_v51 = vld [vmem:[%s19818_s22 + $0x220] ss:$24 sps:$4 sm:$0xff]  }
 0x303   : > { %v3877_v42 = vadd.f32 %v3876_v57, %v3875_v28  ;;  %v3857_v19 = vrot.slane %v3856_v24, 1  ;;  %v3864_v38 = vrot.slane %v3863_v22, 1  ;;  %v3897_v58 = vrot.slane %v3896_v46, 2 }
 0x304   : > { %v3871_v56 = vrot.slane %v3870_v49, 1  ;;  %v3884_v0 = vadd.f32 %v3883_v16, %v3882_v8  ;;  %v3891_v30 = vadd.f32 %v3890_v48, %v3889_v60  ;;  %v3904_v11 = vrot.slane %v3903_v54, 2  ;;  %v15080_v60 = vld [vmem:[%s19818_s22 + $0x160] ss:$168 sps:$4 sm:$0xff]  }
 0x305   : > { %v3878_v32 = vrot.slane %v3877_v42, 1  ;;  %v3858_v43 = vadd.f32 %v3857_v19, %v3856_v24  ;;  %v3865_v21 = vadd.f32 %v3864_v38, %v3863_v22  ;;  %v3898_v5 = vadd.f32 %v3897_v58, %v3896_v46 }
 0x306   : > { %v3872_v18 = vadd.f32 %v3871_v56, %v3870_v49  ;;  %v3885_v28 = vrot.slane %v3884_v0, 1  ;;  %v3892_v29 = vrot.slane %v3891_v30, 1  ;;  %v3905_v17 = vadd.f32 %v3904_v11, %v3903_v54  ;;  %v22599_v56 = vld [vmem:[%s19818_s22 + $0x2e0] ss:$24 sps:$4 sm:$0xff]  }
 0x307   : > { %v3879_v4 = vadd.f32 %v3878_v32, %v3877_v42  ;;  %v4891_v8 = vsel %vm4660_vm4, %v22546_v52, %v22544_v15  ;;  %v4907_v57 = vsel %vm4660_vm4, %v3865_v21, %v3858_v43  ;;  %v1857_v34 = vunpack.c.l.bf16 %v22577_v2  ;;  %v22614_v11 = vld [vmem:[%s19818_s22 + $0x490] ss:$168 sps:$4 sm:$0xff]  }
 0x308   : > { %v3886_v7 = vadd.f32 %v3885_v28, %v3884_v0  ;;  %v3893_v24 = vadd.f32 %v3892_v29, %v3891_v30  ;;  %v3899_v22 = vrot.slane %v3898_v5, 1  ;;  %v3906_v49 = vrot.slane %v3905_v17, 1 }
 0x309   : > { %v4892_v16 = vsel %vm4662_vm5, %v22548_v50, %v4891_v8  ;;  %v4908_v15 = vsel %vm4662_vm5, %v3872_v18, %v4907_v57  ;;  %v1863_v52 = vunpack.c.h.bf16 %v22577_v2  ;;  %v1869_v48 = vunpack.c.l.bf16 %v15068_v23  ;;  %v22602_v50 = vld [vmem:[%s19818_s22 + $0x3a0] ss:$24 sps:$4 sm:$0xff]  }
 0x30a   : > { %v4893_v42 = vsel %vm4664_vm6, %v22550_v53, %v4892_v16  ;;  %v3900_v46 = vadd.f32 %v3899_v22, %v3898_v5  ;;  %v3907_v54 = vadd.f32 %v3906_v49, %v3905_v17  ;;  %v4909_v38 = vsel %vm4664_vm6, %v3879_v4, %v4908_v15  ;;  %v22605_v53 = vld [vmem:[%s19818_s22 + $0x3d0] ss:$168 sps:$4 sm:$0xff]   ;;  %v24570_v15 = vld [vmem:[#allocation25_spill] sm:$0xff] }
 0x30b   : > { %v4894_v19 = vsel %vm4666_vm7, %v22558_v55, %v4893_v42  ;;  %v4910_v2 = vsel %vm4666_vm7, %v3886_v7, %v4909_v38  ;;  %v1875_v32 = vunpack.c.h.bf16 %v15068_v23  ;;  %v1881_v30 = vunpack.c.l.bf16 %v15080_v60  ;;  %v22624_v4 = vld [vmem:[%s19818_s22 + $0x610] ss:$24 sps:$4 sm:$0xff]  }
 0x30c   : > { %v4895_v0 = vsel %vm4668_vm8, %v22560_v44, %v4894_v19  ;;  %v4911_v58 = vsel %vm4668_vm8, %v3893_v24, %v4910_v2  ;;  %v1887_v43 = vunpack.c.h.bf16 %v15080_v60  ;;  %v1893_v21 = vunpack.c.l.bf16 %v22586_v51  ;;  %v22621_v44 = vld [vmem:[%s19818_s22 + $0x550] ss:$24 sps:$4 sm:$0xff]  }
 0x30d   : > { %v4896_v55 = vsel %vm4670_vm9, %v22562_v41, %v4895_v0  ;;  %v4912_v28 = vsel %vm4670_vm9, %v3900_v46, %v4911_v58  ;;  %v1899_v29 = vunpack.c.h.bf16 %v22586_v51  ;;  %v1905_v41 = vunpack.c.l.bf16 %v22599_v56  ;;  %v24574_v2 = vld [vmem:[#allocation26_spill] sm:$0xff] }
 0x30e   : > { %v4897_v18 = vsel %vm4672_vm10, %v22566_v26, %v4896_v55  ;;  %v4913_v5 = vsel %vm4672_vm10, %v3907_v54, %v4912_v28  ;;  %v1911_v17 = vunpack.c.h.bf16 %v22599_v56  ;;  %v1917_v23 = vunpack.c.l.bf16 %v22602_v50 }
 0x30f   : > { %v1923_v7 = vunpack.c.h.bf16 %v22602_v50  ;;  %v5066_v8 = vpack.c.bf16 %v4913_v5, %v4897_v18  ;;  %v1929_v26 = vunpack.c.l.bf16 %v22605_v53  ;;  %v1935_v57 = vunpack.c.h.bf16 %v22605_v53  ;;  %v24576_v18 = vld [vmem:[#allocation27_spill] sm:$0xff] }
 0x310   : > { %v1941_v60 = vunpack.c.l.bf16 %v22614_v11  ;;  %v1947_v24 = vunpack.c.h.bf16 %v22614_v11  ;;  %v1953_v51 = vunpack.c.l.bf16 %v22621_v44  ;;  %v1959_v22 = vunpack.c.h.bf16 %v22621_v44 }
 0x311   : > { %v1965_v49 = vunpack.c.l.bf16 %v22624_v4  ;;  %17172 = vmatmul.mubr.msk.bf16.gmra.mrb[28].mxu0 %vm603_vm2, %v5066_v8  ;;  %v1971_v16 = vunpack.c.h.bf16 %v22624_v4  ;;  %v1985_v42 = vsel %vm603_vm2, %v1857_v34, 0.0  ;;  %v24571_v46 = vunpack.c.h.bf16 %v24570_v15 }
 0x312   : > { %v1988_v19 = vsel %vm603_vm2, %v1863_v52, 0.0  ;;  %v24572_v38 = vmov 0.0   ;;  %v24573_v50 = vunpack.c.h.bf16 %v22255_v35  ;;  %v1992_v0 = vsel %vm603_vm2, %v1869_v48, 0.0 }
 0x313   : > { %v1986_v54 = vsel %vm603_vm2, %v24571_v46, 0.0  ;;  %17175 = vmatprep.mubr.msk.bf16.mxu0 %vm19561_vm0, %v24572_v38  ;;  %v24575_v55 = vunpack.c.h.bf16 %v24574_v2  ;;  %v2013_v58 = vsel %vm603_vm2, %v1875_v32, 0.0  ;;  %v24577_v28 = vunpack.c.h.bf16 %v24576_v18  ;;  %v17480_v32 = vld [vmem:[#allocation7 + $0x1b4] ss:$24 sps:$4 sm:$0xff]   ;;  %v24580_v18 = vld [vmem:[#allocation20_spill] sm:$0xff] }
 0x314   : > { %v1987_v56 = vadd.f32 %v1986_v54, %v1985_v42  ;;  %v1990_v53 = vsel %vm603_vm2, %v24573_v50, 0.0  ;;  %v2017_v5 = vsel %vm603_vm2, %v1881_v30, 0.0  ;;  %v24578_v8 = vunpack.c.h.bf16 %v22273_v36  ;;  %v17478_v50 = vld [vmem:[#allocation7 + $0x1b0] ss:$24 sps:$4 sm:$0xff]   ;;  %12558 = vmatprep.subr.bf16.mxu0 %v17480_v32 }
 0x315   : > { %v2012_v34 = vsel %vm603_vm2, %v24575_v55, 0.0  ;;  %v2015_v52 = vsel %vm603_vm2, %v24577_v28, 0.0  ;;  %v2039_v48 = vsel %vm603_vm2, %v1887_v43, 0.0  ;;  %v24579_v46 = vunpack.c.h.bf16 %v22280_v9  ;;  %12559 = vmatpush1.bf16.msra.mxu0 %v17478_v50 }
 0x316   : > { %v2019_v35 = vsel %vm603_vm2, %v24578_v8, 0.0  ;;  %v1989_v42 = vadd.f32 %v1988_v19, %v1987_v56  ;;  %v2014_v15 = vadd.f32 %v2013_v58, %v2012_v34  ;;  %v2042_v55 = vsel %vm603_vm2, %v1893_v21, 0.0  ;;  %v17483_v34 = vld [vmem:[#allocation7 + $0x1e4] ss:$24 sps:$4 sm:$0xff]  }
 0x317   : > { %v2040_v54 = vsel %vm603_vm2, %v24579_v46, 0.0  ;;  %v24581_v28 = vunpack.c.h.bf16 %v24580_v18  ;;  %v2046_v36 = vsel %vm603_vm2, %v1899_v29, 0.0  ;;  %v24582_v56 = vunpack.c.h.bf16 %v22286_v37  ;;  %v17484_v58 = vld [vmem:[#allocation7 + $0xf04] ss:$24 sps:$4 sm:$0xff]   ;;  %v17481_v29 = vld [vmem:[#allocation7 + $0x1e0] ss:$24 sps:$4 sm:$0xff]   ;;  %12560 = vmatprep.subr.bf16.mxu0 %v17483_v34 }
 0x318   : > { %v2041_v2 = vadd.f32 %v2040_v54, %v2039_v48  ;;  %v1991_v8 = vadd.f32 %v1990_v53, %v1989_v42  ;;  %v2016_v19 = vadd.f32 %v2015_v52, %v2014_v15  ;;  %v2067_v9 = vsel %vm603_vm2, %v1905_v41, 0.0  ;;  %12745 = vmatprep.subr.bf16.mxu1 %v17484_v58 }
 0x319   : > { %v2044_v30 = vsel %vm603_vm2, %v24581_v28, 0.0  ;;  %v2066_v43 = vsel %vm603_vm2, %v24582_v56, 0.0  ;;  %v24583_v21 = vunpack.c.h.bf16 %v22292_v45  ;;  %v2071_v18 = vsel %vm603_vm2, %v1911_v17, 0.0  ;;  %12561 = vmatpush1.bf16.msra.mxu0 %v17481_v29 }
 0x31a   : > { %v2043_v48 = vadd.f32 %v2042_v55, %v2041_v2  ;;  %v2068_v46 = vadd.f32 %v2067_v9, %v2066_v43  ;;  %v22680_v53 = vadd.f32 %v1992_v0, %v1991_v8  ;;  %v2018_v37 = vadd.f32 %v2017_v5, %v2016_v19 }
 0x31b   : > { %v2069_v54 = vsel %vm603_vm2, %v24583_v21, 0.0  ;;  %v24584_v52 = vunpack.c.h.bf16 %v22295_v63  ;;  %v2093_v42 = vsel %vm603_vm2, %v1917_v23, 0.0  ;;  %v24585_v45 = vunpack.c.h.bf16 %v22298_v1 }
 0x31c   : > { %v2045_v15 = vadd.f32 %v2044_v30, %v2043_v48  ;;  %v2070_v32 = vadd.f32 %v2069_v54, %v2068_v46  ;;  %v2096_v17 = vsel %vm603_vm2, %v1923_v7, 0.0  ;;  %v22690_v50 = vadd.f32 %v2019_v35, %v2018_v37 }
 0x31d   : > { %v2073_v41 = vsel %vm603_vm2, %v24584_v52, 0.0  ;;  %v2094_v2 = vsel %vm603_vm2, %v24585_v45, 0.0  ;;  %v24586_v5 = vunpack.c.h.bf16 %v22306_v3  ;;  %v2100_v55 = vsel %vm603_vm2, %v1929_v26, 0.0 }
 0x31e   : > { %v2095_v0 = vadd.f32 %v2094_v2, %v2093_v42  ;;  %v22696_v23 = vadd.f32 %v2046_v36, %v2045_v15  ;;  %v2072_v28 = vadd.f32 %v2071_v18, %v2070_v32  ;;  %v24587_v30 = vunpack.c.h.bf16 %v22309_v61 }
 0x31f   : > { %v2098_v63 = vsel %vm603_vm2, %v24586_v5, 0.0  ;;  %v2121_v8 = vsel %vm603_vm2, %v1935_v57, 0.0  ;;  %v24588_v19 = vunpack.c.h.bf16 %v22315_v62  ;;  %v2125_v26 = vsel %vm603_vm2, %v1941_v60, 0.0 }
 0x320   : > { %v2120_v1 = vsel %vm603_vm2, %v24587_v30, 0.0  ;;  %v2097_v7 = vadd.f32 %v2096_v17, %v2095_v0  ;;  %v22708_v36 = vadd.f32 %v2073_v41, %v2072_v28  ;;  %v24589_v56 = vunpack.c.h.bf16 %v22318_v6 }
 0x321   : > { %v2122_v35 = vadd.f32 %v2121_v8, %v2120_v1  ;;  %v2123_v3 = vsel %vm603_vm2, %v24588_v19, 0.0  ;;  %v2147_v57 = vsel %vm603_vm2, %v1947_v24, 0.0  ;;  %v24590_v43 = vunpack.c.h.bf16 %v22325_v13 }
 0x322   : > { %v2127_v61 = vsel %vm603_vm2, %v24589_v56, 0.0  ;;  %v2099_v9 = vadd.f32 %v2098_v63, %v2097_v7  ;;  %v2150_v60 = vsel %vm603_vm2, %v1953_v51, 0.0  ;;  %v24591_v48 = vunpack.c.h.bf16 %v22328_v39 }
 0x323   : > { %v2148_v62 = vsel %vm603_vm2, %v24590_v43, 0.0  ;;  %v2124_v34 = vadd.f32 %v2123_v3, %v2122_v35  ;;  %v2154_v11 = vsel %vm603_vm2, %v1959_v22, 0.0  ;;  %v24592_v24 = vunpack.c.h.bf16 %v22336_v47 }
 0x324   : > { %v2149_v58 = vadd.f32 %v2148_v62, %v2147_v57  ;;  %v2152_v6 = vsel %vm603_vm2, %v24591_v48, 0.0  ;;  %v2175_v46 = vsel %vm603_vm2, %v1965_v49, 0.0  ;;  %v22734_v21 = vadd.f32 %v2100_v55, %v2099_v9 }
 0x325   : > { %v2174_v13 = vsel %vm603_vm2, %v24592_v24, 0.0  ;;  %v2126_v54 = vadd.f32 %v2125_v26, %v2124_v34  ;;  %v24593_v39 = vunpack.c.h.bf16 %v22339_v27  ;;  %v2179_v44 = vsel %vm603_vm2, %v1971_v16, 0.0 }
 0x326   : > { %v2151_v51 = vadd.f32 %v2150_v60, %v2149_v58  ;;  %v2176_v18 = vadd.f32 %v2175_v46, %v2174_v13  ;;  %v24594_v47 = vunpack.c.h.bf16 %v22349_v33  ;;  %v3916_v37 = vrot.slane %v22452_v31, 3 }
 0x327   : > { %v2177_v29 = vsel %vm603_vm2, %v24593_v39, 0.0  ;;  %v22746_v49 = vadd.f32 %v2127_v61, %v2126_v54  ;;  %v3917_v42 = vrot.slane %v22462_v25, 3  ;;  %v3918_v27 = vrot.slane %v22472_v10, 3 }
 0x328   : > { %v2181_v22 = vsel %vm603_vm2, %v24594_v47, 0.0  ;;  %v2153_v52 = vadd.f32 %v2152_v6, %v2151_v51  ;;  %v2178_v41 = vadd.f32 %v2177_v29, %v2176_v18  ;;  %v3919_v15 = vrot.slane %v22482_v12, 3 }
 0x329   : > { %v3920_v4 = vrot.slane %v22492_v20, 3  ;;  %v3921_v16 = vrot.slane %v22506_v40, 3  ;;  %v3922_v45 = vrot.slane %v22513_v59, 3  ;;  %v3923_v2 = vrot.slane %v22525_v14, 3 }
 0x32a   : > { %v22753_v32 = vadd.f32 %v2154_v11, %v2153_v52  ;;  %v2180_v33 = vadd.f32 %v2179_v44, %v2178_v41  ;;  %v3932_v17 = vsel %vm2649_vm3, %v3916_v37, 0.0  ;;  %v3939_v0 = vsel %vm2649_vm3, %v3917_v42, 0.0 }
 0x32b   : > { %v3946_v5 = vsel %vm2649_vm3, %v3918_v27, 0.0  ;;  %v3953_v63 = vsel %vm2649_vm3, %v3919_v15, 0.0  ;;  %v3933_v28 = vrot.slane %v3932_v17, 4  ;;  %v3940_v30 = vrot.slane %v3939_v0, 4 }
 0x32c   : > { %v22761_v55 = vadd.f32 %v2181_v22, %v2180_v33  ;;  %v3947_v1 = vrot.slane %v3946_v5, 4  ;;  %v3954_v8 = vrot.slane %v3953_v63, 4  ;;  %v3960_v7 = vsel %vm2649_vm3, %v3920_v4, 0.0 }
 0x32d   : > { %v3967_v35 = vsel %vm2649_vm3, %v3921_v16, 0.0  ;;  %v3974_v19 = vsel %vm2649_vm3, %v3922_v45, 0.0  ;;  %v3934_v3 = vadd.f32 %v3933_v28, %v3932_v17  ;;  %v3941_v26 = vadd.f32 %v3940_v30, %v3939_v0 }
 0x32e   : > { %v3948_v56 = vadd.f32 %v3947_v1, %v3946_v5  ;;  %v3961_v61 = vrot.slane %v3960_v7, 4  ;;  %v3955_v57 = vadd.f32 %v3954_v8, %v3953_v63  ;;  %v3968_v43 = vrot.slane %v3967_v35, 4 }
 0x32f   : > { %v3975_v62 = vrot.slane %v3974_v19, 4  ;;  %v3981_v9 = vsel %vm2649_vm3, %v3923_v2, 0.0  ;;  %v3935_v34 = vrot.slane %v3934_v3, 2  ;;  %v3942_v58 = vrot.slane %v3941_v26, 2 }
 0x330   : > { %v3949_v60 = vrot.slane %v3948_v56, 2  ;;  %v3962_v48 = vadd.f32 %v3961_v61, %v3960_v7  ;;  %v3956_v6 = vrot.slane %v3955_v57, 2  ;;  %v3969_v11 = vadd.f32 %v3968_v43, %v3967_v35 }
 0x331   : > { %v3976_v24 = vadd.f32 %v3975_v62, %v3974_v19  ;;  %v3982_v13 = vrot.slane %v3981_v9, 4  ;;  %v3936_v46 = vadd.f32 %v3935_v34, %v3934_v3  ;;  %v3943_v54 = vadd.f32 %v3942_v58, %v3941_v26 }
 0x332   : > { %v3950_v51 = vadd.f32 %v3949_v60, %v3948_v56  ;;  %v3963_v18 = vrot.slane %v3962_v48, 2  ;;  %v3957_v39 = vadd.f32 %v3956_v6, %v3955_v57  ;;  %v3970_v29 = vrot.slane %v3969_v11, 2 }
 0x333   : > { %v3977_v44 = vrot.slane %v3976_v24, 2  ;;  %v3983_v47 = vadd.f32 %v3982_v13, %v3981_v9  ;;  %v3937_v22 = vrot.slane %v3936_v46, 1  ;;  %v3944_v37 = vrot.slane %v3943_v54, 1 }
 0x334   : > { %v3951_v52 = vrot.slane %v3950_v51, 1  ;;  %v3964_v41 = vadd.f32 %v3963_v18, %v3962_v48  ;;  %v3958_v42 = vrot.slane %v3957_v39, 1  ;;  %v3971_v27 = vadd.f32 %v3970_v29, %v3969_v11 }
 0x335   : > { %v3978_v15 = vadd.f32 %v3977_v44, %v3976_v24  ;;  %v3984_v4 = vrot.slane %v3983_v47, 2  ;;  %v22767_v16 = vadd.f32 %v3937_v22, %v3936_v46  ;;  %v22769_v33 = vadd.f32 %v3944_v37, %v3943_v54 }
 0x336   : > { %v22771_v45 = vadd.f32 %v3951_v52, %v3950_v51  ;;  %v3965_v2 = vrot.slane %v3964_v41, 1  ;;  %v22773_v17 = vadd.f32 %v3958_v42, %v3957_v39  ;;  %v3972_v0 = vrot.slane %v3971_v27, 1 }
 0x337   : > { %v3979_v5 = vrot.slane %v3978_v15, 1  ;;  %v3985_v63 = vadd.f32 %v3984_v4, %v3983_v47  ;;  %v3996_v30 = vrot.slane %v22452_v31, 6  ;;  %v3997_v1 = vrot.slane %v22680_v53, 6 }
 0x338   : > { %v22775_v28 = vadd.f32 %v3965_v2, %v3964_v41  ;;  %v3999_v8 = vrot.slane %v22462_v25, 6  ;;  %v22780_v7 = vadd.f32 %v3972_v0, %v3971_v27  ;;  %v4000_v3 = vrot.slane %v22690_v50, 6 }
 0x339   : > { %v22782_v35 = vadd.f32 %v3979_v5, %v3978_v15  ;;  %v3986_v19 = vrot.slane %v3985_v63, 1  ;;  %v3998_v26 = vsel %vm2794_vm11, %v3996_v30, %v3997_v1  ;;  %v4002_v56 = vrot.slane %v22472_v10, 6 }
 0x33a   : > { %v4003_v61 = vrot.slane %v22696_v23, 6  ;;  %v4005_v57 = vrot.slane %v22482_v12, 6  ;;  %v4001_v43 = vsel %vm2794_vm11, %v3999_v8, %v4000_v3  ;;  %v4006_v25 = vrot.slane %v22708_v36, 6 }
 0x33b   : > { %v22789_v31 = vadd.f32 %v3986_v19, %v3985_v63  ;;  %v4008_v62 = vrot.slane %v22492_v20, 6  ;;  %v4009_v34 = vrot.slane %v22734_v21, 6  ;;  %v4011_v58 = vrot.slane %v22506_v40, 6 }
 0x33c   : > { %v4004_v9 = vsel %vm2794_vm11, %v4002_v56, %v4003_v61  ;;  %v4012_v10 = vrot.slane %v22746_v49, 6  ;;  %v4007_v60 = vsel %vm2794_vm11, %v4005_v57, %v4006_v25  ;;  %v4014_v12 = vrot.slane %v22513_v59, 6 }
 0x33d   : > { %v4015_v48 = vrot.slane %v22753_v32, 6  ;;  %v4017_v6 = vrot.slane %v22525_v14, 6  ;;  %v4010_v11 = vsel %vm2794_vm11, %v4008_v62, %v4009_v34  ;;  %v4018_v24 = vrot.slane %v22761_v55, 6 }
 0x33e   : > { %v4013_v20 = vsel %vm2794_vm11, %v4011_v58, %v4012_v10  ;;  %v4028_v13 = vsel %vm2649_vm3, %v3998_v26, 0.0  ;;  %v4035_v54 = vsel %vm2649_vm3, %v4001_v43, 0.0  ;;  %v4042_v51 = vsel %vm2649_vm3, %v4004_v9, 0.0 }
 0x33f   : > { %v4016_v40 = vsel %vm2794_vm11, %v4014_v12, %v4015_v48  ;;  %v4029_v46 = vrot.slane %v4028_v13, 4  ;;  %v4019_v59 = vsel %vm2794_vm11, %v4017_v6, %v4018_v24  ;;  %v4036_v18 = vrot.slane %v4035_v54, 4 }
 0x340   : > { %v4043_v39 = vrot.slane %v4042_v51, 4  ;;  %v4049_v14 = vsel %vm2649_vm3, %v4007_v60, 0.0  ;;  %v4056_v47 = vsel %vm2649_vm3, %v4010_v11, 0.0  ;;  %v4063_v22 = vsel %vm2649_vm3, %v4013_v20, 0.0 }
 0x341   : > { %v4030_v29 = vadd.f32 %v4029_v46, %v4028_v13  ;;  %v4050_v44 = vrot.slane %v4049_v14, 4  ;;  %v4037_v37 = vadd.f32 %v4036_v18, %v4035_v54  ;;  %v4057_v41 = vrot.slane %v4056_v47, 4  ;;  %v22819_v18 = vld [vmem:[%s19818_s22 + $0x74] sm:$0x1] }
 0x342   : > { %v4044_v52 = vadd.f32 %v4043_v39, %v4042_v51  ;;  %v4064_v42 = vrot.slane %v4063_v22, 4  ;;  %v4070_v4 = vsel %vm2649_vm3, %v4016_v40, 0.0  ;;  %v4077_v2 = vsel %vm2649_vm3, %v4019_v59, 0.0  ;;  %v22822_v39 = vld [vmem:[%s19818_s22 + $0x80] sm:$0x1] }
 0x343   : > { %v4031_v27 = vrot.slane %v4030_v29, 2  ;;  %v4051_v15 = vadd.f32 %v4050_v44, %v4049_v14  ;;  %v4038_v0 = vrot.slane %v4037_v37, 2  ;;  %v4058_v63 = vadd.f32 %v4057_v41, %v4056_v47 }
 0x344   : > { %v4045_v5 = vrot.slane %v4044_v52, 2  ;;  %v4065_v30 = vadd.f32 %v4064_v42, %v4063_v22  ;;  %v4071_v19 = vrot.slane %v4070_v4, 4  ;;  %v4078_v3 = vrot.slane %v4077_v2, 4  ;;  %v22828_v22 = vld [vmem:[%s19818_s22 + $0x8c] sm:$0x1] }
 0x345   : > { %v4032_v1 = vadd.f32 %v4031_v27, %v4030_v29  ;;  %v4052_v8 = vrot.slane %v4051_v15, 2  ;;  %v4039_v26 = vadd.f32 %v4038_v0, %v4037_v37  ;;  %v4059_v61 = vrot.slane %v4058_v63, 2  ;;  %v22831_v37 = vld [vmem:[%s19818_s22 + $0x140] sm:$0x1]  ;;  %v22837_v42 = vld [vmem:[%s19818_s22 + $0x98] sm:$0x1] }
 0x346   : > { %v4046_v56 = vadd.f32 %v4045_v5, %v4044_v52  ;;  %v4066_v57 = vrot.slane %v4065_v30, 2  ;;  %v4072_v62 = vadd.f32 %v4071_v19, %v4070_v4  ;;  %v4079_v9 = vadd.f32 %v4078_v3, %v4077_v2  ;;  %v22840_v27 = vld [vmem:[%s19818_s22 + $0x14c] sm:$0x1]  ;;  %v22855_v0 = vld [vmem:[%s19818_s22 + $0x170] sm:$0x1] }
 0x347   : > { %v4033_v43 = vrot.slane %v4032_v1, 1  ;;  %v4053_v25 = vadd.f32 %v4052_v8, %v4051_v15  ;;  %v4040_v34 = vrot.slane %v4039_v26, 1  ;;  %v4060_v10 = vadd.f32 %v4059_v61, %v4058_v63  ;;  %v22846_v15 = vld [vmem:[%s19818_s22 + $0x164] sm:$0x1]  ;;  %v22858_v5 = vld [vmem:[%s19818_s22 + $0x20c] sm:$0x1] }
 0x348   : > { %v4047_v58 = vrot.slane %v4046_v56, 1  ;;  %v4067_v60 = vadd.f32 %v4066_v57, %v4065_v30  ;;  %v4073_v6 = vrot.slane %v4072_v62, 2  ;;  %v4080_v11 = vrot.slane %v4079_v9, 2  ;;  %v22861_v63 = vld [vmem:[%s19818_s22 + $0x218] sm:$0x1] }
 0x349   : > { %v4034_v12 = vadd.f32 %v4033_v43, %v4032_v1  ;;  %v4054_v48 = vrot.slane %v4053_v25, 1  ;;  %v4041_v20 = vadd.f32 %v4040_v34, %v4039_v26  ;;  %v4061_v13 = vrot.slane %v4060_v10, 1  ;;  %v22869_v26 = vld [vmem:[%s19818_s22 + $0x224] sm:$0x1]  ;;  %v22875_v61 = vld [vmem:[%s19818_s22 + $0x23c] sm:$0x1] }
 0x34a   : > { %v4048_v24 = vadd.f32 %v4047_v58, %v4046_v56  ;;  %v4068_v40 = vrot.slane %v4067_v60, 1  ;;  %v4074_v54 = vadd.f32 %v4073_v6, %v4072_v62  ;;  %v4081_v51 = vadd.f32 %v4080_v11, %v4079_v9  ;;  %v22872_v56 = vld [vmem:[%s19818_s22 + $0x230] sm:$0x1]  ;;  %v22878_v57 = vld [vmem:[%s19818_s22 + $0x2d8] sm:$0x1] }
 0x34b   : > { %v4055_v46 = vadd.f32 %v4054_v48, %v4053_v25  ;;  %v4923_v59 = vsel %vm4660_vm4, %v22769_v33, %v22767_v16  ;;  %v4062_v14 = vadd.f32 %v4061_v13, %v4060_v10  ;;  %v4939_v47 = vsel %vm4660_vm4, %v4041_v20, %v4034_v12  ;;  %v22887_v62 = vld [vmem:[%s19818_s22 + $0x2f0] sm:$0x1]  ;;  %v22890_v9 = vld [vmem:[%s19818_s22 + $0x2fc] sm:$0x1]  ;;  %v22893_v34 = vld [vmem:[%s19818_s22 + $0x308] sm:$0x1] }
 0x34c   : > { %v4069_v29 = vadd.f32 %v4068_v40, %v4067_v60  ;;  %v4924_v44 = vsel %vm4662_vm5, %v22771_v45, %v4923_v59  ;;  %v4075_v16 = vrot.slane %v4074_v54, 1  ;;  %v4082_v33 = vrot.slane %v4081_v51, 1  ;;  %v22843_v45 = vld [vmem:[%s19818_s22 + $0x158] sm:$0x1]  ;;  %v22901_v12 = vld [vmem:[%s19818_s22 + $0x3a4] sm:$0x1] }
 0x34d   : > { %v4925_v52 = vsel %vm4664_vm6, %v22773_v17, %v4924_v44  ;;  %v4940_v41 = vsel %vm4662_vm5, %v4048_v24, %v4939_v47  ;;  %v22852_v17 = vld [vmem:[%s19818_s22 + $0xa4] sm:$0x1]  ;;  %v22904_v48 = vld [vmem:[%s19818_s22 + $0x3b0] sm:$0x1]  ;;  %v22907_v6 = vld [vmem:[%s19818_s22 + $0x3bc] sm:$0x1] }
 0x34e   : > { %v4926_v4 = vsel %vm4666_vm7, %v22775_v28, %v4925_v52  ;;  %v4941_v2 = vsel %vm4664_vm6, %v4055_v46, %v4940_v41  ;;  %v4076_v8 = vadd.f32 %v4075_v16, %v4074_v54  ;;  %v4083_v28 = vadd.f32 %v4082_v33, %v4081_v51  ;;  %v22910_v11 = vld [vmem:[%s19818_s22 + $0x3c8] sm:$0x1]  ;;  %v22916_v13 = vld [vmem:[%s19818_s22 + $0x3d4] sm:$0x1]  ;;  %v22919_v40 = vld [vmem:[%s19818_s22 + $0x470] sm:$0x1] }
 0x34f   : > { %v4927_v19 = vsel %vm4668_vm8, %v22780_v7, %v4926_v4  ;;  %v4942_v3 = vsel %vm4666_vm7, %v4062_v14, %v4941_v2  ;;  %v22884_v7 = vld [vmem:[%s19818_s22 + $0x2e4] sm:$0x1]  ;;  %v22922_v46 = vld [vmem:[%s19818_s22 + $0x47c] sm:$0x1]  ;;  %v22925_v54 = vld [vmem:[%s19818_s22 + $0x488] sm:$0x1]  ;;  %v24595_v14 = vunpack.c.l.bf16 %v22819_v18  ;;  %v24596_v51 = vunpack.c.l.bf16 %v22822_v39 }
 0x350   : > { %v4928_v43 = vsel %vm4670_vm9, %v22782_v35, %v4927_v19  ;;  %v4943_v25 = vsel %vm4668_vm8, %v4069_v29, %v4942_v3  ;;  %v22931_v44 = vld [vmem:[%s19818_s22 + $0x494] sm:$0x1]  ;;  %v22934_v47 = vld [vmem:[%s19818_s22 + $0x4a0] sm:$0x1]  ;;  %v22937_v16 = vld [vmem:[%s19818_s22 + $0x53c] sm:$0x1]  ;;  %v24599_v41 = vunpack.c.l.bf16 %v22852_v17 }
 0x351   : > { %v4929_v35 = vsel %vm4672_vm10, %v22789_v31, %v4928_v43  ;;  %v4944_v60 = vsel %vm4670_vm9, %v4076_v8, %v4943_v25  ;;  %v22940_v33 = vld [vmem:[%s19818_s22 + $0x548] sm:$0x1]  ;;  %v22946_v2 = vld [vmem:[%s19818_s22 + $0x554] sm:$0x1]  ;;  %v22949_v8 = vld [vmem:[%s19818_s22 + $0x560] sm:$0x1] }
 0x352   : > { %v4945_v31 = vsel %vm4672_vm10, %v4083_v28, %v4944_v60  ;;  %v22952_v28 = vld [vmem:[%s19818_s22 + $0x56c] sm:$0x1]  ;;  %v22963_v60 = vld [vmem:[%s19818_s22 + $0x614] sm:$0x1]  ;;  %v17486_v52 = vld [vmem:[#allocation7 + $0xf00] ss:$24 sps:$4 sm:$0xff]  }
 0x353   : > { %v5067_v29 = vpack.c.bf16 %v4945_v31, %v4929_v35  ;;  %v22960_v35 = vld [vmem:[%s19818_s22 + $0x608] sm:$0x1]  ;;  %v22972_v43 = vld [vmem:[%s19818_s22 + $0x620] sm:$0x1]  ;;  %v22975_v25 = vld [vmem:[%s19818_s22 + $0x62c] sm:$0x1]  ;;  %12746 = vmatpush1.bf16.msra.mxu1 %v17486_v52  ;;  %v24598_v31 = vunpack.c.l.bf16 %v22837_v42  ;;  %v24602_v42 = vunpack.c.l.bf16 %v22843_v45  ;;  %v24607_v45 = vunpack.c.l.bf16 %v22869_v26 }
 0x354   : > { %v17487_v24 = vld [vmem:[#allocation7 + $0x210] ss:$24 sps:$4 sm:$0xff]   ;;  %v17489_v20 = vld [vmem:[#allocation7 + $0x214] ss:$24 sps:$4 sm:$0xff]   ;;  %v17495_v19 = vld [vmem:[#allocation7 + $0x244] ss:$24 sps:$4 sm:$0xff]   ;;  %v1963_v52 = vunpack.c.l.bf16 %v22960_v35  ;;  %v24611_v26 = vunpack.c.l.bf16 %v22884_v7  ;;  %v24615_v7 = vunpack.c.l.bf16 %v22901_v12  ;;  %v24619_v12 = vunpack.c.l.bf16 %v22916_v13 }
 0x355   : > { %17176 = vmatmul.mubr.msk.bf16.gmra.mrb[32].mxu0 %vm603_vm2, %v5067_v29  ;;  %v22978_v29 = vld [vmem:[%s19818_s22 + $0x638] sm:$0x1]  ;;  %v17490_v10 = vld [vmem:[#allocation7 + $0xf34] ss:$24 sps:$4 sm:$0xff]   ;;  %12562 = vmatprep.subr.bf16.mxu0 %v17489_v20  ;;  %v17496_v1 = vld [vmem:[#allocation7 + $0xf64] ss:$24 sps:$4 sm:$0xff]   ;;  %v24623_v13 = vunpack.c.l.bf16 %v22931_v44  ;;  %v24627_v44 = vunpack.c.l.bf16 %v22946_v2 }
 0x356   : > { %17179 = vmatprep.mubr.msk.bf16.mxu0 %vm19561_vm0, %v24572_v38  ;;  %v17492_v58 = vld [vmem:[#allocation7 + $0xf30] ss:$24 sps:$4 sm:$0xff]   ;;  %12747 = vmatprep.subr.bf16.mxu1 %v17490_v10  ;;  %v17493_v30 = vld [vmem:[#allocation7 + $0x240] ss:$24 sps:$4 sm:$0xff]   ;;  %v1994_v59 = vsel %vm622_vm12, %v24595_v14, 0.0  ;;  %v1995_v20 = vsel %vm622_vm12, %v24596_v51, 0.0  ;;  %v24597_v10 = vunpack.c.l.bf16 %v22828_v22  ;;  %v24600_v14 = vunpack.c.l.bf16 %v22831_v37 }
 0x357   : > { %12563 = vmatpush1.bf16.msra.mxu0 %v17487_v24  ;;  %v1999_v4 = vsel %vm622_vm12, %v24598_v31, 0.0  ;;  %12748 = vmatpush1.bf16.msra.mxu1 %v17492_v58  ;;  %v1996_v24 = vadd.f32 %v1995_v20, %v1994_v59  ;;  %v2001_v18 = vsel %vm622_vm12, %v24599_v41, 0.0  ;;  %v24601_v51 = vunpack.c.l.bf16 %v22840_v27 }
 0x358   : > { %v1997_v3 = vsel %vm622_vm12, %v24597_v10, 0.0  ;;  %12564 = vmatprep.subr.bf16.mxu0 %v17495_v19  ;;  %v2021_v39 = vsel %vm622_vm12, %v24600_v14, 0.0  ;;  %12749 = vmatprep.subr.bf16.mxu1 %v17496_v1  ;;  %v2024_v58 = vsel %vm622_vm12, %v24602_v42, 0.0  ;;  %v24603_v59 = vunpack.c.l.bf16 %v22846_v15 }
 0x359   : > { %v2022_v22 = vsel %vm622_vm12, %v24601_v51, 0.0  ;;  %v24604_v41 = vunpack.c.l.bf16 %v22855_v0  ;;  %v1998_v19 = vadd.f32 %v1997_v3, %v1996_v24  ;;  %v24605_v31 = vunpack.c.l.bf16 %v22858_v5 }
 0x35a   : > { %v2023_v10 = vadd.f32 %v2022_v22, %v2021_v39  ;;  %v2026_v17 = vsel %vm622_vm12, %v24603_v59, 0.0  ;;  %v24606_v1 = vunpack.c.l.bf16 %v22861_v63  ;;  %v2051_v14 = vsel %vm622_vm12, %v24607_v45, 0.0 }
 0x35b   : > { %v2028_v37 = vsel %vm622_vm12, %v24604_v41, 0.0  ;;  %v2048_v27 = vsel %vm622_vm12, %v24605_v31, 0.0  ;;  %12565 = vmatpush1.bf16.msra.mxu0 %v17493_v30  ;;  %v24608_v0 = vunpack.c.l.bf16 %v22872_v56  ;;  %v24609_v3 = vunpack.c.l.bf16 %v22875_v61 }
 0x35c   : > { %v2049_v20 = vsel %vm622_vm12, %v24606_v1, 0.0  ;;  %v2025_v15 = vadd.f32 %v2024_v58, %v2023_v10  ;;  %v2000_v24 = vadd.f32 %v1999_v4, %v1998_v19  ;;  %v24610_v63 = vunpack.c.l.bf16 %v22878_v57 }
 0x35d   : > { %v2050_v39 = vadd.f32 %v2049_v20, %v2048_v27  ;;  %v2053_v51 = vsel %vm622_vm12, %v24608_v0, 0.0  ;;  %v2055_v5 = vsel %vm622_vm12, %v24609_v3, 0.0  ;;  %v2076_v42 = vsel %vm622_vm12, %v24611_v26, 0.0 }
 0x35e   : > { %v2075_v22 = vsel %vm622_vm12, %v24610_v63, 0.0  ;;  %v24612_v30 = vunpack.c.l.bf16 %v22887_v62  ;;  %v2027_v56 = vadd.f32 %v2026_v17, %v2025_v15  ;;  %v24613_v61 = vunpack.c.l.bf16 %v22890_v9 }
 0x35f   : > { %v2052_v58 = vadd.f32 %v2051_v14, %v2050_v39  ;;  %v2077_v59 = vadd.f32 %v2076_v42, %v2075_v22  ;;  %v23057_v4 = vadd.f32 %v2001_v18, %v2000_v24  ;;  %v24614_v57 = vunpack.c.l.bf16 %v22893_v34 }
 0x360   : > { %v2078_v10 = vsel %vm622_vm12, %v24612_v30, 0.0  ;;  %v2080_v41 = vsel %vm622_vm12, %v24613_v61, 0.0  ;;  %v2102_v31 = vsel %vm622_vm12, %v24615_v7, 0.0  ;;  %v24616_v62 = vunpack.c.l.bf16 %v22904_v48 }
 0x361   : > { %v2082_v19 = vsel %vm622_vm12, %v24614_v57, 0.0  ;;  %v23068_v27 = vadd.f32 %v2028_v37, %v2027_v56  ;;  %v2054_v1 = vadd.f32 %v2053_v51, %v2052_v58  ;;  %v2079_v9 = vadd.f32 %v2078_v10, %v2077_v59 }
 0x362   : > { %v2103_v17 = vsel %vm622_vm12, %v24616_v62, 0.0  ;;  %v24617_v18 = vunpack.c.l.bf16 %v22907_v6  ;;  %v24618_v34 = vunpack.c.l.bf16 %v22910_v11  ;;  %v2109_v15 = vsel %vm622_vm12, %v24619_v12, 0.0 }
 0x363   : > { %v2104_v20 = vadd.f32 %v2103_v17, %v2102_v31  ;;  %v24620_v48 = vunpack.c.l.bf16 %v22919_v40  ;;  %v23082_v39 = vadd.f32 %v2055_v5, %v2054_v1  ;;  %v2081_v0 = vadd.f32 %v2080_v41, %v2079_v9 }
 0x364   : > { %v2105_v45 = vsel %vm622_vm12, %v24617_v18, 0.0  ;;  %v2107_v14 = vsel %vm622_vm12, %v24618_v34, 0.0  ;;  %v24621_v6 = vunpack.c.l.bf16 %v22922_v46  ;;  %v24622_v11 = vunpack.c.l.bf16 %v22925_v54 }
 0x365   : > { %v2129_v37 = vsel %vm622_vm12, %v24620_v48, 0.0  ;;  %v2106_v51 = vadd.f32 %v2105_v45, %v2104_v20  ;;  %v2134_v22 = vsel %vm622_vm12, %v24623_v13, 0.0  ;;  %v24624_v40 = vunpack.c.l.bf16 %v22934_v47 }
 0x366   : > { %v2130_v3 = vsel %vm622_vm12, %v24621_v6, 0.0  ;;  %v2132_v63 = vsel %vm622_vm12, %v24622_v11, 0.0  ;;  %v23096_v26 = vadd.f32 %v2082_v19, %v2081_v0  ;;  %v24625_v46 = vunpack.c.l.bf16 %v22937_v16 }
 0x367   : > { %v2131_v24 = vadd.f32 %v2130_v3, %v2129_v37  ;;  %v2136_v5 = vsel %vm622_vm12, %v24624_v40, 0.0  ;;  %v2108_v42 = vadd.f32 %v2107_v14, %v2106_v51  ;;  %v24626_v10 = vunpack.c.l.bf16 %v22940_v33 }
 0x368   : > { %v2156_v30 = vsel %vm622_vm12, %v24625_v46, 0.0  ;;  %v2159_v59 = vsel %vm622_vm12, %v24627_v44, 0.0  ;;  %v24628_v47 = vunpack.c.l.bf16 %v22949_v8  ;;  %v24629_v16 = vunpack.c.l.bf16 %v22952_v28 }
 0x369   : > { %v2157_v54 = vsel %vm622_vm12, %v24626_v10, 0.0  ;;  %v2133_v56 = vadd.f32 %v2132_v63, %v2131_v24  ;;  %v23110_v41 = vadd.f32 %v2109_v15, %v2108_v42  ;;  %v2183_v33 = vsel %vm622_vm12, %v1963_v52, 0.0 }
 0x36a   : > { %v2158_v58 = vadd.f32 %v2157_v54, %v2156_v30  ;;  %v2161_v61 = vsel %vm622_vm12, %v24628_v47, 0.0  ;;  %v2163_v57 = vsel %vm622_vm12, %v24629_v16, 0.0  ;;  %v24630_v19 = vunpack.c.l.bf16 %v22963_v60 }
 0x36b   : > { %v2135_v7 = vadd.f32 %v2134_v22, %v2133_v56  ;;  %v24631_v8 = vunpack.c.l.bf16 %v22972_v43  ;;  %v24632_v1 = vunpack.c.l.bf16 %v22975_v25  ;;  %v24633_v9 = vunpack.c.l.bf16 %v22978_v29 }
 0x36c   : > { %v2184_v2 = vsel %vm622_vm12, %v24630_v19, 0.0  ;;  %v2160_v31 = vadd.f32 %v2159_v59, %v2158_v58  ;;  %v4084_v52 = vrot.slane %v22680_v53, 1  ;;  %v4085_v60 = vrot.slane %v22690_v50, 1 }
 0x36d   : > { %v2185_v62 = vadd.f32 %v2184_v2, %v2183_v33  ;;  %v2186_v17 = vsel %vm622_vm12, %v24631_v8, 0.0  ;;  %v2188_v28 = vsel %vm622_vm12, %v24632_v1, 0.0  ;;  %v2190_v35 = vsel %vm622_vm12, %v24633_v9, 0.0 }
 0x36e   : > { %v23132_v20 = vadd.f32 %v2136_v5, %v2135_v7  ;;  %v2162_v18 = vadd.f32 %v2161_v61, %v2160_v31  ;;  %v4086_v43 = vrot.slane %v22696_v23, 1  ;;  %v4087_v34 = vrot.slane %v22708_v36, 1 }
 0x36f   : > { %v2187_v45 = vadd.f32 %v2186_v17, %v2185_v62  ;;  %v4088_v25 = vrot.slane %v22734_v21, 1  ;;  %v4089_v14 = vrot.slane %v22746_v49, 1  ;;  %v4090_v29 = vrot.slane %v22753_v32, 1 }
 0x370   : > { %v23139_v12 = vadd.f32 %v2163_v57, %v2162_v18  ;;  %v4091_v48 = vrot.slane %v22761_v55, 1  ;;  %v4100_v37 = vsel %vm2649_vm3, %v4084_v52, 0.0  ;;  %v4107_v51 = vsel %vm2649_vm3, %v4085_v60, 0.0 }
 0x371   : > { %v2189_v15 = vadd.f32 %v2188_v28, %v2187_v45  ;;  %v4101_v0 = vrot.slane %v4100_v37, 4  ;;  %v4114_v6 = vsel %vm2649_vm3, %v4086_v43, 0.0  ;;  %v4121_v3 = vsel %vm2649_vm3, %v4087_v34, 0.0 }
 0x372   : > { %v4108_v11 = vrot.slane %v4107_v51, 4  ;;  %v4115_v63 = vrot.slane %v4114_v6, 4  ;;  %v4122_v13 = vrot.slane %v4121_v3, 4  ;;  %v4128_v40 = vsel %vm2649_vm3, %v4088_v25, 0.0 }
 0x373   : > { %v23146_v24 = vadd.f32 %v2190_v35, %v2189_v15  ;;  %v4102_v22 = vadd.f32 %v4101_v0, %v4100_v37  ;;  %v4135_v5 = vsel %vm2649_vm3, %v4089_v14, 0.0  ;;  %v4142_v42 = vsel %vm2649_vm3, %v4090_v29, 0.0 }
 0x374   : > { %v4109_v46 = vadd.f32 %v4108_v11, %v4107_v51  ;;  %v4116_v30 = vadd.f32 %v4115_v63, %v4114_v6  ;;  %v4123_v10 = vadd.f32 %v4122_v13, %v4121_v3  ;;  %v4129_v54 = vrot.slane %v4128_v40, 4 }
 0x375   : > { %v4103_v56 = vrot.slane %v4102_v22, 2  ;;  %v4136_v58 = vrot.slane %v4135_v5, 4  ;;  %v4143_v44 = vrot.slane %v4142_v42, 4  ;;  %v4149_v59 = vsel %vm2649_vm3, %v4091_v48, 0.0 }
 0x376   : > { %v4110_v47 = vrot.slane %v4109_v46, 2  ;;  %v4117_v61 = vrot.slane %v4116_v30, 2  ;;  %v4124_v16 = vrot.slane %v4123_v10, 2  ;;  %v4130_v57 = vadd.f32 %v4129_v54, %v4128_v40 }
 0x377   : > { %v4104_v33 = vadd.f32 %v4103_v56, %v4102_v22  ;;  %v4137_v19 = vadd.f32 %v4136_v58, %v4135_v5  ;;  %v4144_v2 = vadd.f32 %v4143_v44, %v4142_v42  ;;  %v4150_v7 = vrot.slane %v4149_v59, 4 }
 0x378   : > { %v4111_v31 = vadd.f32 %v4110_v47, %v4109_v46  ;;  %v4118_v62 = vadd.f32 %v4117_v61, %v4116_v30  ;;  %v4125_v8 = vadd.f32 %v4124_v16, %v4123_v10  ;;  %v4131_v17 = vrot.slane %v4130_v57, 2 }
 0x379   : > { %v4105_v1 = vrot.slane %v4104_v33, 1  ;;  %v4138_v28 = vrot.slane %v4137_v19, 2  ;;  %v4145_v9 = vrot.slane %v4144_v2, 2  ;;  %v4151_v35 = vadd.f32 %v4150_v7, %v4149_v59 }
 0x37a   : > { %v4112_v52 = vrot.slane %v4111_v31, 1  ;;  %v4119_v60 = vrot.slane %v4118_v62, 1  ;;  %v4126_v18 = vrot.slane %v4125_v8, 1  ;;  %v4132_v45 = vadd.f32 %v4131_v17, %v4130_v57 }
 0x37b   : > { %v23152_v43 = vadd.f32 %v4105_v1, %v4104_v33  ;;  %v4139_v34 = vadd.f32 %v4138_v28, %v4137_v19  ;;  %v4146_v25 = vadd.f32 %v4145_v9, %v4144_v2  ;;  %v4152_v14 = vrot.slane %v4151_v35, 2 }
 0x37c   : > { %v23154_v29 = vadd.f32 %v4112_v52, %v4111_v31  ;;  %v23156_v15 = vadd.f32 %v4119_v60, %v4118_v62  ;;  %v23158_v48 = vadd.f32 %v4126_v18, %v4125_v8  ;;  %v4133_v37 = vrot.slane %v4132_v45, 1 }
 0x37d   : > { %v4140_v0 = vrot.slane %v4139_v34, 1  ;;  %v4147_v51 = vrot.slane %v4146_v25, 1  ;;  %v4153_v6 = vadd.f32 %v4152_v14, %v4151_v35  ;;  %v4164_v3 = vrot.slane %v22680_v53, 4 }
 0x37e   : > { %v23161_v11 = vadd.f32 %v4133_v37, %v4132_v45  ;;  %v4165_v63 = vrot.slane %v23057_v4, 4  ;;  %v4167_v13 = vrot.slane %v22690_v50, 4  ;;  %v4168_v22 = vrot.slane %v23068_v27, 4 }
 0x37f   : > { %v23166_v40 = vadd.f32 %v4140_v0, %v4139_v34  ;;  %v23168_v5 = vadd.f32 %v4147_v51, %v4146_v25  ;;  %v4154_v42 = vrot.slane %v4153_v6, 1  ;;  %v4170_v46 = vrot.slane %v22696_v23, 4 }
 0x380   : > { %v4166_v30 = vsel %vm2963_vm1, %v4164_v3, %v4165_v63  ;;  %v4169_v10 = vsel %vm2963_vm1, %v4167_v13, %v4168_v22  ;;  %v4171_v53 = vrot.slane %v23082_v39, 4  ;;  %v4173_v54 = vrot.slane %v22708_v36, 4 }
 0x381   : > { %v23175_v4 = vadd.f32 %v4154_v42, %v4153_v6  ;;  %v4174_v50 = vrot.slane %v23096_v26, 4  ;;  %v4176_v27 = vrot.slane %v22734_v21, 4  ;;  %v4177_v56 = vrot.slane %v23110_v41, 4 }
 0x382   : > { %v4172_v58 = vsel %vm2963_vm1, %v4170_v46, %v4171_v53  ;;  %v4179_v23 = vrot.slane %v22746_v49, 4  ;;  %v4180_v44 = vrot.slane %v23132_v20, 4  ;;  %v4182_v59 = vrot.slane %v22753_v32, 4 }
 0x383   : > { %v4175_v39 = vsel %vm2963_vm1, %v4173_v54, %v4174_v50  ;;  %v4178_v36 = vsel %vm2963_vm1, %v4176_v27, %v4177_v56  ;;  %v4183_v47 = vrot.slane %v23139_v12, 4  ;;  %v4185_v26 = vrot.slane %v22761_v55, 4 }
 0x384   : > { %v4181_v21 = vsel %vm2963_vm1, %v4179_v23, %v4180_v44  ;;  %v4186_v41 = vrot.slane %v23146_v24, 4  ;;  %v4196_v61 = vsel %vm2649_vm3, %v4166_v30, 0.0  ;;  %v4203_v49 = vsel %vm2649_vm3, %v4169_v10, 0.0 }
 0x385   : > { %v4184_v20 = vsel %vm2963_vm1, %v4182_v59, %v4183_v47  ;;  %v4197_v16 = vrot.slane %v4196_v61, 4  ;;  %v4204_v32 = vrot.slane %v4203_v49, 4  ;;  %v4210_v57 = vsel %vm2649_vm3, %v4172_v58, 0.0  ;;  %v23204_v47 = vld [vmem:[%s19818_s22 + $0xa8] sm:$0xff]  }
 0x386   : > { %v4187_v33 = vsel %vm2963_vm1, %v4185_v26, %v4186_v41  ;;  %v4211_v19 = vrot.slane %v4210_v57, 4  ;;  %v4217_v12 = vsel %vm2649_vm3, %v4175_v39, 0.0  ;;  %v4224_v55 = vsel %vm2649_vm3, %v4178_v36, 0.0  ;;  %v23201_v36 = vld [vmem:[%s19818_s22 + $0x90] sm:$0xff]  }
 0x387   : > { %v4198_v2 = vadd.f32 %v4197_v16, %v4196_v61  ;;  %v4205_v7 = vadd.f32 %v4204_v32, %v4203_v49  ;;  %v4218_v24 = vrot.slane %v4217_v12, 4  ;;  %v4225_v31 = vrot.slane %v4224_v55, 4 }
 0x388   : > { %v4212_v62 = vadd.f32 %v4211_v19, %v4210_v57  ;;  %v4231_v8 = vsel %vm2649_vm3, %v4181_v21, 0.0  ;;  %v4238_v17 = vsel %vm2649_vm3, %v4184_v20, 0.0  ;;  %v4245_v1 = vsel %vm2649_vm3, %v4187_v33, 0.0  ;;  %v23213_v57 = vld [vmem:[%s19818_s22 + $0xc0] sm:$0xff]   ;;  %v23216_v33 = vld [vmem:[%s19818_s22 + $0x168] sm:$0xff]  }
 0x389   : > { %v4199_v28 = vrot.slane %v4198_v2, 2  ;;  %v4206_v9 = vrot.slane %v4205_v7, 2  ;;  %v4219_v35 = vadd.f32 %v4218_v24, %v4217_v12  ;;  %v4226_v52 = vadd.f32 %v4225_v31, %v4224_v55  ;;  %v23224_v55 = vld [vmem:[%s19818_s22 + $0x180] sm:$0xff]  }
 0x38a   : > { %v4213_v60 = vrot.slane %v4212_v62, 2  ;;  %v4232_v18 = vrot.slane %v4231_v8, 4  ;;  %v4239_v45 = vrot.slane %v4238_v17, 4  ;;  %v4246_v34 = vrot.slane %v4245_v1, 4  ;;  %v23232_v31 = vld [vmem:[%s19818_s22 + $0x240] sm:$0xff]  }
 0x38b   : > { %v4200_v25 = vadd.f32 %v4199_v28, %v4198_v2  ;;  %v4207_v14 = vadd.f32 %v4206_v9, %v4205_v7  ;;  %v4220_v37 = vrot.slane %v4219_v35, 2  ;;  %v4227_v0 = vrot.slane %v4226_v52, 2  ;;  %v23227_v2 = vld [vmem:[%s19818_s22 + $0x228] sm:$0xff]   ;;  %v23243_v9 = vld [vmem:[%s19818_s22 + $0x300] sm:$0xff]  }
 0x38c   : > { %v4214_v51 = vadd.f32 %v4213_v60, %v4212_v62  ;;  %v4233_v6 = vadd.f32 %v4232_v18, %v4231_v8  ;;  %v4240_v3 = vadd.f32 %v4239_v45, %v4238_v17  ;;  %v4247_v63 = vadd.f32 %v4246_v34, %v4245_v1  ;;  %v23235_v62 = vld [vmem:[%s19818_s22 + $0x258] sm:$0xff]  }
 0x38d   : > { %v4201_v13 = vrot.slane %v4200_v25, 1  ;;  %v4208_v22 = vrot.slane %v4207_v14, 1  ;;  %v4221_v42 = vadd.f32 %v4220_v37, %v4219_v35  ;;  %v4228_v46 = vadd.f32 %v4227_v0, %v4226_v52  ;;  %v23249_v35 = vld [vmem:[%s19818_s22 + $0x3c0] sm:$0xff]   ;;  %v23255_v60 = vld [vmem:[%s19818_s22 + $0x9c] ss:$24 sps:$4 sm:$0xff]  }
 0x38e   : > { %v4215_v30 = vrot.slane %v4214_v51, 1  ;;  %v4234_v10 = vrot.slane %v4233_v6, 2  ;;  %v4241_v53 = vrot.slane %v4240_v3, 2  ;;  %v4248_v54 = vrot.slane %v4247_v63, 2  ;;  %v23260_v34 = vld [vmem:[%s19818_s22 + $0x3d8] sm:$0xff]  }
 0x38f   : > { %v4202_v50 = vadd.f32 %v4201_v13, %v4200_v25  ;;  %v4209_v27 = vadd.f32 %v4208_v22, %v4207_v14  ;;  %v4222_v56 = vrot.slane %v4221_v42, 1  ;;  %v4229_v58 = vrot.slane %v4228_v46, 1  ;;  %v23263_v25 = vld [vmem:[%s19818_s22 + $0x3f0] sm:$0xff]   ;;  %v23266_v14 = vld [vmem:[%s19818_s22 + $0x498] sm:$0xff]  }
 0x390   : > { %v4216_v23 = vadd.f32 %v4215_v30, %v4214_v51  ;;  %v4235_v44 = vadd.f32 %v4234_v10, %v4233_v6  ;;  %v4242_v59 = vadd.f32 %v4241_v53, %v4240_v3  ;;  %v4249_v39 = vadd.f32 %v4248_v54, %v4247_v63  ;;  %v23274_v6 = vld [vmem:[%s19818_s22 + $0x4b0] sm:$0xff]   ;;  %v23277_v3 = vld [vmem:[%s19818_s22 + $0x558] sm:$0xff]   ;;  %v23293_v10 = vld [vmem:[%s19818_s22 + $0x648] sm:$0xff]  }
 0x391   : > { %v4223_v26 = vadd.f32 %v4222_v56, %v4221_v42  ;;  %v4230_v21 = vadd.f32 %v4229_v58, %v4228_v46  ;;  %v4955_v41 = vsel %vm4660_vm4, %v23154_v29, %v23152_v43  ;;  %v4971_v61 = vsel %vm4660_vm4, %v4209_v27, %v4202_v50  ;;  %v23280_v63 = vld [vmem:[%s19818_s22 + $0x570] sm:$0xff]   ;;  %v23287_v46 = vld [vmem:[%s19818_s22 + $0x588] sm:$0xff]  }
 0x392   : > { %v4236_v49 = vrot.slane %v4235_v44, 1  ;;  %v4243_v20 = vrot.slane %v4242_v59, 1  ;;  %v4250_v16 = vrot.slane %v4249_v39, 1  ;;  %v4956_v32 = vsel %vm4662_vm5, %v23156_v15, %v4955_v41  ;;  %v23290_v30 = vld [vmem:[%s19818_s22 + $0x630] sm:$0xff]   ;;  %v23315_v41 = vld [vmem:[%s19818_s22 + $0x3cc] ss:$24 sps:$4 sm:$0xff]  }
 0x393   : > { %v4957_v19 = vsel %vm4664_vm6, %v23158_v48, %v4956_v32  ;;  %v4972_v43 = vsel %vm4662_vm5, %v4216_v23, %v4971_v61  ;;  %v16884_v29 = vunpack.c.l.bf16 %v23201_v36  ;;  %v16888_v12 = vunpack.c.l.bf16 %v23204_v47  ;;  %v23297_v54 = vld [vmem:[%s19818_s22 + $0x15c] ss:$24 sps:$4 sm:$0xff]   ;;  %v23318_v61 = vld [vmem:[%s19818_s22 + $0x48c] ss:$24 sps:$4 sm:$0xff]  }
 0x394   : > { %v4237_v15 = vadd.f32 %v4236_v49, %v4235_v44  ;;  %v4244_v7 = vadd.f32 %v4243_v20, %v4242_v59  ;;  %v4251_v24 = vadd.f32 %v4250_v16, %v4249_v39  ;;  %v4958_v48 = vsel %vm4666_vm7, %v23161_v11, %v4957_v19  ;;  %v23246_v11 = vld [vmem:[%s19818_s22 + $0x318] sm:$0xff]   ;;  %v23303_v23 = vld [vmem:[%s19818_s22 + $0x18c] ss:$168 sps:$4 sm:$0xff]  }
 0x395   : > { %v4959_v8 = vsel %vm4668_vm8, %v23166_v40, %v4958_v48  ;;  %v4973_v17 = vsel %vm4664_vm6, %v4223_v26, %v4972_v43  ;;  %v16892_v1 = vunpack.c.l.bf16 %v23213_v57  ;;  %v16896_v28 = vunpack.c.l.bf16 %v23216_v33  ;;  %v23306_v44 = vld [vmem:[%s19818_s22 + $0x24c] ss:$168 sps:$4 sm:$0xff]   ;;  %v17498_v19 = vld [vmem:[#allocation7 + $0xf60] ss:$24 sps:$4 sm:$0xff]  }
 0x396   : > { %v4960_v52 = vsel %vm4670_vm9, %v23168_v5, %v4959_v8  ;;  %v4974_v40 = vsel %vm4666_vm7, %v4230_v21, %v4973_v17  ;;  %v16900_v18 = vunpack.c.l.bf16 %v23224_v55  ;;  %v16904_v45 = vunpack.c.l.bf16 %v23227_v2  ;;  %v23309_v59 = vld [vmem:[%s19818_s22 + $0x30c] ss:$24 sps:$4 sm:$0xff]   ;;  %12750 = vmatpush1.bf16.msra.mxu1 %v17498_v19 }
 0x397   : > { %v4961_v5 = vsel %vm4672_vm10, %v23175_v4, %v4960_v52  ;;  %v4975_v37 = vsel %vm4668_vm8, %v4237_v15, %v4974_v40  ;;  %v16908_v0 = vunpack.c.l.bf16 %v23232_v31  ;;  %v16912_v51 = vunpack.c.l.bf16 %v23235_v62  ;;  %v23326_v43 = vld [vmem:[%s19818_s22 + $0x4bc] ss:$168 sps:$4 sm:$0xff]   ;;  %v17504_v49 = vld [vmem:[#allocation7 + $0xf90] ss:$24 sps:$4 sm:$0xff]  }
 0x398   : > { %v4976_v13 = vsel %vm4670_vm9, %v4244_v7, %v4975_v37  ;;  %v16916_v22 = vunpack.c.l.bf16 %v23243_v9  ;;  %v16920_v4 = vunpack.c.l.bf16 %v23246_v11  ;;  %v16924_v42 = vunpack.c.l.bf16 %v23249_v35  ;;  %v23329_v15 = vld [vmem:[%s19818_s22 + $0x57c] ss:$168 sps:$4 sm:$0xff]  }
 0x399   : > { %v4977_v53 = vsel %vm4672_vm10, %v4251_v24, %v4976_v13  ;;  %v2316_v32 = vunpack.c.l.bf16 %v23255_v60  ;;  %v23332_v7 = vld [vmem:[%s19818_s22 + $0x63c] ss:$24 sps:$4 sm:$0xff]   ;;  %v2322_v24 = vunpack.c.h.bf16 %v23255_v60  ;;  %v2328_v48 = vunpack.c.l.bf16 %v23297_v54  ;;  %v17507_v39 = vld [vmem:[#allocation7 + $0x2a4] ss:$24 sps:$4 sm:$0xff]  }
 0x39a   : > { %v5068_v58 = vpack.c.bf16 %v4977_v53, %v4961_v5  ;;  %v2334_v8 = vunpack.c.h.bf16 %v23297_v54  ;;  %v2340_v17 = vunpack.c.l.bf16 %v23303_v23  ;;  %v2346_v52 = vunpack.c.h.bf16 %v23303_v23  ;;  %v17499_v13 = vld [vmem:[#allocation7 + $0x270] ss:$24 sps:$4 sm:$0xff]   ;;  %v17501_v60 = vld [vmem:[#allocation7 + $0x274] ss:$24 sps:$4 sm:$0xff]   ;;  %v23348_v23 = vpop.f32.mrb[0].mxu0 }
 0x39b   : > { %v2352_v40 = vunpack.c.l.bf16 %v23306_v44  ;;  %v2358_v5 = vunpack.c.h.bf16 %v23306_v44  ;;  %v2364_v37 = vunpack.c.l.bf16 %v23309_v59  ;;  %v17502_v53 = vld [vmem:[#allocation7 + $0xf94] ss:$24 sps:$4 sm:$0xff]   ;;  %v2376_v54 = vunpack.c.l.bf16 %v23315_v41  ;;  %24634 = vst [vmem:[#allocation22_spill] sm:$0xff] %v23348_v23  ;;  %12566 = vmatprep.subr.bf16.mxu0 %v17501_v60  ;;  %v17505_v44 = vld [vmem:[#allocation7 + $0x2a0] ss:$24 sps:$4 sm:$0xff]  }
 0x39c   : > { %17180 = vmatmul.mubr.msk.bf16.gmra.mrb[36].mxu0 %vm603_vm2, %v5068_v58  ;;  %v2370_v58 = vunpack.c.h.bf16 %v23309_v59  ;;  %v2382_v16 = vunpack.c.h.bf16 %v23315_v41  ;;  %v2388_v20 = vunpack.c.l.bf16 %v23318_v61  ;;  %v2412_v26 = vunpack.c.l.bf16 %v23329_v15  ;;  %12751 = vmatprep.subr.bf16.mxu1 %v17502_v53  ;;  %v17145_v59 = vpop.f32.mrb[1].mxu0  ;;  %v17508_v50 = vld [vmem:[#allocation7 + $0xfc4] ss:$24 sps:$4 sm:$0xff]  }
 0x39d   : > { %17183 = vmatprep.mubr.msk.bf16.mxu0 %vm19561_vm0, %v24572_v38  ;;  %v2433_v21 = vsel %vm603_vm2, %v16884_v29, 0.0  ;;  %12567 = vmatpush1.bf16.msra.mxu0 %v17499_v13  ;;  %v23360_v19 = vpop.f32.mrb[2].mxu0  ;;  %v2434_v60 = vsel %vm603_vm2, %v2316_v32, 0.0  ;;  %v2436_v53 = vsel %vm603_vm2, %v16888_v12, 0.0  ;;  %v2438_v59 = vsel %vm603_vm2, %v2322_v24, 0.0 }
 0x39e   : > { %24635 = vst [vmem:[#allocation23_spill] sm:$0xff] %v23360_v19  ;;  %v2440_v27 = vsel %vm603_vm2, %v16892_v1, 0.0  ;;  %12752 = vmatpush1.bf16.msra.mxu1 %v17504_v49  ;;  %12568 = vmatprep.subr.bf16.mxu0 %v17507_v39  ;;  %v17146_v29 = vpop.f32.mrb[3].mxu0  ;;  %v2435_v13 = vadd.f32 %v2434_v60, %v2433_v21  ;;  %v2460_v41 = vsel %vm603_vm2, %v2328_v48, 0.0  ;;  %v2461_v32 = vsel %vm603_vm2, %v16896_v28, 0.0 }
 0x39f   : > { %v2463_v56 = vsel %vm603_vm2, %v2334_v8, 0.0  ;;  %12753 = vmatprep.subr.bf16.mxu1 %v17508_v50  ;;  %v2462_v12 = vadd.f32 %v2461_v32, %v2460_v41  ;;  %v2465_v24 = vsel %vm603_vm2, %v16900_v18, 0.0  ;;  %v2467_v1 = vsel %vm603_vm2, %v2340_v17, 0.0 }
 0x3a0   : > { %v2487_v39 = vsel %vm603_vm2, %v16904_v45, 0.0  ;;  %v2437_v21 = vadd.f32 %v2436_v53, %v2435_v13  ;;  %v2488_v49 = vsel %vm603_vm2, %v2346_v52, 0.0  ;;  %v2490_v28 = vsel %vm603_vm2, %v16908_v0, 0.0 }
 0x3a1   : > { %v2492_v50 = vsel %vm603_vm2, %v2352_v40, 0.0  ;;  %12569 = vmatpush1.bf16.msra.mxu0 %v17505_v44  ;;  %v2464_v48 = vadd.f32 %v2463_v56, %v2462_v12  ;;  %v2489_v8 = vadd.f32 %v2488_v49, %v2487_v39  ;;  %v2494_v18 = vsel %vm603_vm2, %v16912_v51, 0.0 }
 0x3a2   : > { %v2514_v17 = vsel %vm603_vm2, %v2358_v5, 0.0  ;;  %v2439_v41 = vadd.f32 %v2438_v59, %v2437_v21  ;;  %v2515_v45 = vsel %vm603_vm2, %v16916_v22, 0.0  ;;  %v2517_v52 = vsel %vm603_vm2, %v2364_v37, 0.0 }
 0x3a3   : > { %v2519_v0 = vsel %vm603_vm2, %v16920_v4, 0.0  ;;  %v2466_v40 = vadd.f32 %v2465_v24, %v2464_v48  ;;  %v2491_v56 = vadd.f32 %v2490_v28, %v2489_v8  ;;  %v2516_v44 = vadd.f32 %v2515_v45, %v2514_v17 }
 0x3a4   : > { %v2521_v60 = vsel %vm603_vm2, %v2370_v58, 0.0  ;;  %v23399_v53 = vadd.f32 %v2440_v27, %v2439_v41  ;;  %v2541_v51 = vsel %vm603_vm2, %v16924_v42, 0.0  ;;  %v2542_v5 = vsel %vm603_vm2, %v2376_v54, 0.0 }
 0x3a5   : > { %v24636_v22 = vunpack.c.l.bf16 %v23260_v34  ;;  %v23408_v59 = vadd.f32 %v2467_v1, %v2466_v40  ;;  %v2493_v4 = vadd.f32 %v2492_v50, %v2491_v56  ;;  %v2518_v29 = vadd.f32 %v2517_v52, %v2516_v44 }
 0x3a6   : > { %v2543_v13 = vadd.f32 %v2542_v5, %v2541_v51  ;;  %v2546_v32 = vsel %vm603_vm2, %v2382_v16, 0.0  ;;  %v24637_v27 = vunpack.c.l.bf16 %v23263_v25  ;;  %v2568_v12 = vsel %vm603_vm2, %v2388_v20, 0.0 }
 0x3a7   : > { %v2544_v37 = vsel %vm603_vm2, %v24636_v22, 0.0  ;;  %v24638_v42 = vunpack.c.l.bf16 %v23266_v14  ;;  %v23418_v24 = vadd.f32 %v2494_v18, %v2493_v4  ;;  %v2520_v39 = vadd.f32 %v2519_v0, %v2518_v29 }
 0x3a8   : > { %v2548_v58 = vsel %vm603_vm2, %v24637_v27, 0.0  ;;  %v2545_v1 = vadd.f32 %v2544_v37, %v2543_v13  ;;  %v24640_v49 = vunpack.c.h.bf16 %v23318_v61  ;;  %v24641_v16 = vunpack.c.l.bf16 %v23274_v6 }
 0x3a9   : > { %v2569_v54 = vsel %vm603_vm2, %v24638_v42, 0.0  ;;  %24639 = vst [vmem:[#allocation28_spill] sm:$0xff] %v23418_v24  ;;  %v24642_v48 = vunpack.c.l.bf16 %v23326_v43  ;;  %v24643_v8 = vunpack.c.l.bf16 %v23277_v3  ;;  %v23432_v17 = vadd.f32 %v2521_v60, %v2520_v39 }
 0x3aa   : > { %v2570_v21 = vadd.f32 %v2569_v54, %v2568_v12  ;;  %v2571_v28 = vsel %vm603_vm2, %v24640_v49, 0.0  ;;  %v2573_v50 = vsel %vm603_vm2, %v24641_v16, 0.0  ;;  %v2547_v41 = vadd.f32 %v2546_v32, %v2545_v1 }
 0x3ab   : > { %v2575_v20 = vsel %vm603_vm2, %v24642_v48, 0.0  ;;  %v2595_v18 = vsel %vm603_vm2, %v24643_v8, 0.0  ;;  %24644 = vst [vmem:[#allocation24_spill] sm:$0xff] %v23432_v17  ;;  %v24645_v61 = vunpack.c.h.bf16 %v23326_v43  ;;  %v24646_v40 = vunpack.c.l.bf16 %v23280_v63 }
 0x3ac   : > { %v2572_v45 = vadd.f32 %v2571_v28, %v2570_v21  ;;  %v2600_v44 = vsel %vm603_vm2, %v2412_v26, 0.0  ;;  %v24647_v51 = vunpack.c.l.bf16 %v23287_v46  ;;  %v23446_v5 = vadd.f32 %v2548_v58, %v2547_v41 }
 0x3ad   : > { %v2596_v52 = vsel %vm603_vm2, %v24645_v61, 0.0  ;;  %v2598_v56 = vsel %vm603_vm2, %v24646_v40, 0.0  ;;  %v24649_v43 = vunpack.c.h.bf16 %v23329_v15  ;;  %v24650_v4 = vunpack.c.l.bf16 %v23290_v30 }
 0x3ae   : > { %v2597_v0 = vadd.f32 %v2596_v52, %v2595_v18  ;;  %v2602_v60 = vsel %vm603_vm2, %v24647_v51, 0.0  ;;  %24648 = vst [vmem:[#allocation21_spill] sm:$0xff] %v23446_v5  ;;  %v2574_v22 = vadd.f32 %v2573_v50, %v2572_v45  ;;  %v24651_v27 = vunpack.c.l.bf16 %v23332_v7 }
 0x3af   : > { %v2622_v37 = vsel %vm603_vm2, %v24649_v43, 0.0  ;;  %v2623_v29 = vsel %vm603_vm2, %v24650_v4, 0.0  ;;  %v24652_v12 = vunpack.c.l.bf16 %v23293_v10  ;;  %v24654_v15 = vunpack.c.h.bf16 %v23332_v7 }
 0x3b0   : > { %v2599_v13 = vadd.f32 %v2598_v56, %v2597_v0  ;;  %v2624_v32 = vadd.f32 %v2623_v29, %v2622_v37  ;;  %v2625_v26 = vsel %vm603_vm2, %v24651_v27, 0.0  ;;  %v23460_v42 = vadd.f32 %v2575_v20, %v2574_v22 }
 0x3b1   : > { %v2627_v58 = vsel %vm603_vm2, %v24652_v12, 0.0  ;;  %v2629_v54 = vsel %vm603_vm2, %v24654_v15, 0.0  ;;  %v4252_v39 = vsel %vm2649_vm3, %v23399_v53, 0.0  ;;  %v4259_v1 = vsel %vm2649_vm3, %v23408_v59, 0.0 }
 0x3b2   : > { %24653 = vst [vmem:[#allocation25_spill] sm:$0xff] %v23460_v42  ;;  %v2601_v21 = vadd.f32 %v2600_v44, %v2599_v13  ;;  %v2626_v49 = vadd.f32 %v2625_v26, %v2624_v32  ;;  %v4253_v28 = vrot.slane %v4252_v39, 4  ;;  %v4260_v16 = vrot.slane %v4259_v1, 4 }
 0x3b3   : > { %v4266_v50 = vsel %vm2649_vm3, %v23418_v24, 0.0  ;;  %v4273_v48 = vsel %vm2649_vm3, %v23432_v17, 0.0  ;;  %v4280_v7 = vsel %vm2649_vm3, %v23446_v5, 0.0  ;;  %v4287_v20 = vsel %vm2649_vm3, %v23460_v42, 0.0 }
 0x3b4   : > { %v23477_v8 = vadd.f32 %v2602_v60, %v2601_v21  ;;  %v2628_v18 = vadd.f32 %v2627_v58, %v2626_v49  ;;  %v4254_v41 = vadd.f32 %v4253_v28, %v4252_v39  ;;  %v4261_v45 = vadd.f32 %v4260_v16, %v4259_v1 }
 0x3b5   : > { %v4267_v61 = vrot.slane %v4266_v50, 4  ;;  %v4274_v52 = vrot.slane %v4273_v48, 4  ;;  %v4281_v0 = vrot.slane %v4280_v7, 4  ;;  %v4288_v40 = vrot.slane %v4287_v20, 4 }
 0x3b6   : > { %24655 = vst [vmem:[#allocation26_spill] sm:$0xff] %v23477_v8  ;;  %v23479_v56 = vadd.f32 %v2629_v54, %v2628_v18  ;;  %v4255_v44 = vrot.slane %v4254_v41, 2  ;;  %v4262_v51 = vrot.slane %v4261_v45, 2  ;;  %v4294_v22 = vsel %vm2649_vm3, %v23477_v8, 0.0 }
 0x3b7   : > { %v4268_v43 = vadd.f32 %v4267_v61, %v4266_v50  ;;  %v4275_v37 = vadd.f32 %v4274_v52, %v4273_v48  ;;  %v4282_v4 = vadd.f32 %v4281_v0, %v4280_v7  ;;  %v4289_v29 = vadd.f32 %v4288_v40, %v4287_v20 }
 0x3b8   : > { %24656 = vst [vmem:[#allocation27_spill] sm:$0xff] %v23479_v56  ;;  %v4256_v60 = vadd.f32 %v4255_v44, %v4254_v41  ;;  %v4263_v13 = vadd.f32 %v4262_v51, %v4261_v45  ;;  %v4295_v32 = vrot.slane %v4294_v22, 4  ;;  %v4301_v27 = vsel %vm2649_vm3, %v23479_v56, 0.0 }
 0x3b9   : > { %v4269_v26 = vrot.slane %v4268_v43, 2  ;;  %v4276_v12 = vrot.slane %v4275_v37, 2  ;;  %v4283_v58 = vrot.slane %v4282_v4, 2  ;;  %v4290_v15 = vrot.slane %v4289_v29, 2 }
 0x3ba   : > { %v4257_v54 = vrot.slane %v4256_v60, 1  ;;  %v4264_v39 = vrot.slane %v4263_v13, 1  ;;  %v4296_v1 = vadd.f32 %v4295_v32, %v4294_v22  ;;  %v4302_v21 = vrot.slane %v4301_v27, 4 }
 0x3bb   : > { %v4270_v49 = vadd.f32 %v4269_v26, %v4268_v43  ;;  %v4277_v28 = vadd.f32 %v4276_v12, %v4275_v37  ;;  %v4284_v16 = vadd.f32 %v4283_v58, %v4282_v4  ;;  %v4291_v50 = vadd.f32 %v4290_v15, %v4289_v29 }
 0x3bc   : > { %v23485_v48 = vadd.f32 %v4257_v54, %v4256_v60  ;;  %v23487_v7 = vadd.f32 %v4264_v39, %v4263_v13  ;;  %v4297_v20 = vrot.slane %v4296_v1, 2  ;;  %v4303_v18 = vadd.f32 %v4302_v21, %v4301_v27 }
 0x3bd   : > { %v4271_v41 = vrot.slane %v4270_v49, 1  ;;  %v4278_v45 = vrot.slane %v4277_v28, 1  ;;  %v4285_v61 = vrot.slane %v4284_v16, 1  ;;  %v4292_v52 = vrot.slane %v4291_v50, 1 }
 0x3be   : > { %v4298_v0 = vadd.f32 %v4297_v20, %v4296_v1  ;;  %v4304_v40 = vrot.slane %v4303_v18, 2  ;;  %v4316_v44 = vrot.slane %v23399_v53, 3  ;;  %v4317_v51 = vrot.slane %v23408_v59, 3 }
 0x3bf   : > { %v23491_v22 = vadd.f32 %v4271_v41, %v4270_v49  ;;  %v23493_v43 = vadd.f32 %v4278_v45, %v4277_v28  ;;  %v23495_v37 = vadd.f32 %v4285_v61, %v4284_v16  ;;  %v23497_v4 = vadd.f32 %v4292_v52, %v4291_v50 }
 0x3c0   : > { %v4299_v29 = vrot.slane %v4298_v0, 1  ;;  %v4305_v60 = vadd.f32 %v4304_v40, %v4303_v18  ;;  %v4318_v13 = vrot.slane %v23418_v24, 3  ;;  %v4319_v32 = vrot.slane %v23432_v17, 3 }
 0x3c1   : > { %v4320_v27 = vrot.slane %v23446_v5, 3  ;;  %v4321_v26 = vrot.slane %v23460_v42, 3  ;;  %v4322_v12 = vrot.slane %v23477_v8, 3  ;;  %v4323_v58 = vrot.slane %v23479_v56, 3 }
 0x3c2   : > { %v23505_v15 = vadd.f32 %v4299_v29, %v4298_v0  ;;  %v4306_v54 = vrot.slane %v4305_v60, 1  ;;  %v4332_v39 = vsel %vm2649_vm3, %v4316_v44, 0.0  ;;  %v4339_v1 = vsel %vm2649_vm3, %v4317_v51, 0.0 }
 0x3c3   : > { %v4333_v21 = vrot.slane %v4332_v39, 4  ;;  %v4340_v49 = vrot.slane %v4339_v1, 4  ;;  %v4346_v28 = vsel %vm2649_vm3, %v4318_v13, 0.0  ;;  %v4353_v16 = vsel %vm2649_vm3, %v4319_v32, 0.0 }
 0x3c4   : > { %v23511_v50 = vadd.f32 %v4306_v54, %v4305_v60  ;;  %v4347_v20 = vrot.slane %v4346_v28, 4  ;;  %v4354_v18 = vrot.slane %v4353_v16, 4  ;;  %v4360_v41 = vsel %vm2649_vm3, %v4320_v27, 0.0 }
 0x3c5   : > { %v4334_v45 = vadd.f32 %v4333_v21, %v4332_v39  ;;  %v4341_v61 = vadd.f32 %v4340_v49, %v4339_v1  ;;  %v4361_v52 = vrot.slane %v4360_v41, 4  ;;  %v4367_v0 = vsel %vm2649_vm3, %v4321_v26, 0.0 }
 0x3c6   : > { %v4348_v40 = vadd.f32 %v4347_v20, %v4346_v28  ;;  %v4355_v44 = vadd.f32 %v4354_v18, %v4353_v16  ;;  %v4368_v51 = vrot.slane %v4367_v0, 4  ;;  %v4374_v29 = vsel %vm2649_vm3, %v4322_v12, 0.0 }
 0x3c7   : > { %v4335_v23 = vrot.slane %v4334_v45, 2  ;;  %v4342_v13 = vrot.slane %v4341_v61, 2  ;;  %v4362_v19 = vadd.f32 %v4361_v52, %v4360_v41  ;;  %v4375_v32 = vrot.slane %v4374_v29, 4 }
 0x3c8   : > { %v4349_v60 = vrot.slane %v4348_v40, 2  ;;  %v4356_v54 = vrot.slane %v4355_v44, 2  ;;  %v4369_v56 = vadd.f32 %v4368_v51, %v4367_v0  ;;  %v4381_v8 = vsel %vm2649_vm3, %v4323_v58, 0.0 }
 0x3c9   : > { %v4336_v27 = vadd.f32 %v4335_v23, %v4334_v45  ;;  %v4343_v39 = vadd.f32 %v4342_v13, %v4341_v61  ;;  %v4363_v1 = vrot.slane %v4362_v19, 2  ;;  %v4376_v21 = vadd.f32 %v4375_v32, %v4374_v29  ;;  %v17510_v32 = vld [vmem:[#allocation7 + $0xfc0] ss:$24 sps:$4 sm:$0xff]  }
 0x3ca   : > { %v4350_v49 = vadd.f32 %v4349_v60, %v4348_v40  ;;  %v4357_v26 = vadd.f32 %v4356_v54, %v4355_v44  ;;  %v4370_v28 = vrot.slane %v4369_v56, 2  ;;  %v4382_v16 = vrot.slane %v4381_v8, 4  ;;  %12754 = vmatpush1.bf16.msra.mxu1 %v17510_v32  ;;  %v15191_v32 = vld [vmem:[%s19818_s22 + $0x160] ss:$24 sps:$4 sm:$0xff]  }
 0x3cb   : > { %v4337_v20 = vrot.slane %v4336_v27, 1  ;;  %v4344_v18 = vrot.slane %v4343_v39, 1  ;;  %v4364_v12 = vadd.f32 %v4363_v1, %v4362_v19  ;;  %v4377_v42 = vrot.slane %v4376_v21, 2 }
 0x3cc   : > { %v4351_v5 = vrot.slane %v4350_v49, 1  ;;  %v4358_v41 = vrot.slane %v4357_v26, 1  ;;  %v4371_v52 = vadd.f32 %v4370_v28, %v4369_v56  ;;  %v4383_v17 = vadd.f32 %v4382_v16, %v4381_v8 }
 0x3cd   : > { %v4338_v24 = vadd.f32 %v4337_v20, %v4336_v27  ;;  %v4345_v0 = vadd.f32 %v4344_v18, %v4343_v39  ;;  %v4365_v51 = vrot.slane %v4364_v12, 1  ;;  %v4378_v58 = vadd.f32 %v4377_v42, %v4376_v21 }
 0x3ce   : > { %v4352_v23 = vadd.f32 %v4351_v5, %v4350_v49  ;;  %v4359_v45 = vadd.f32 %v4358_v41, %v4357_v26  ;;  %v4372_v61 = vrot.slane %v4371_v52, 1  ;;  %v4384_v29 = vrot.slane %v4383_v17, 2  ;;  %v17516_v49 = vld [vmem:[#allocation7 + $0xff0] ss:$24 sps:$4 sm:$0xff]   ;;  %v23532_v26 = vpop.f32.mrb[4].mxu0 }
 0x3cf   : > { %v4366_v40 = vadd.f32 %v4365_v51, %v4364_v12  ;;  %v4379_v44 = vrot.slane %v4378_v58, 1  ;;  %v4987_v13 = vsel %vm4660_vm4, %v23487_v7, %v23485_v48  ;;  %v5003_v19 = vsel %vm4660_vm4, %v4345_v0, %v4338_v24  ;;  %v17511_v48 = vld [vmem:[#allocation7 + $0x2d0] ss:$24 sps:$4 sm:$0xff]   ;;  %v17513_v7 = vld [vmem:[#allocation7 + $0x2d4] ss:$24 sps:$4 sm:$0xff]   ;;  %24657 = vst [vmem:[#allocation20_spill] sm:$0xff] %v23532_v26 }
 0x3d0   : > { %v4373_v60 = vadd.f32 %v4372_v61, %v4371_v52  ;;  %v4385_v56 = vadd.f32 %v4384_v29, %v4383_v17  ;;  %v4988_v8 = vsel %vm4662_vm5, %v23491_v22, %v4987_v13  ;;  %v5004_v42 = vsel %vm4662_vm5, %v4352_v23, %v5003_v19  ;;  %v17514_v24 = vld [vmem:[#allocation7 + $0xff4] ss:$24 sps:$4 sm:$0xff]   ;;  %12570 = vmatprep.subr.bf16.mxu0 %v17513_v7  ;;  %v17149_v18 = vpop.f32.mrb[5].mxu0  ;;  %v17520_v12 = vld [vmem:[#allocation7 + $0x1024] ss:$24 sps:$4 sm:$0xff]  }
 0x3d1   : > { %v4380_v5 = vadd.f32 %v4379_v44, %v4378_v58  ;;  %v4989_v54 = vsel %vm4664_vm6, %v23493_v43, %v4988_v8  ;;  %v5005_v27 = vsel %vm4664_vm6, %v4359_v45, %v5004_v42  ;;  %v16885_v39 = vunpack.c.h.bf16 %v23201_v36  ;;  %12755 = vmatprep.subr.bf16.mxu1 %v17514_v24  ;;  %12571 = vmatpush1.bf16.msra.mxu0 %v17511_v48  ;;  %v23543_v51 = vpop.f32.mrb[6].mxu0 }
 0x3d2   : > { %v4386_v1 = vrot.slane %v4385_v56, 1  ;;  %v4990_v17 = vsel %vm4666_vm7, %v23495_v37, %v4989_v54  ;;  %v5006_v22 = vsel %vm4666_vm7, %v4366_v40, %v5005_v27  ;;  %v16889_v21 = vunpack.c.h.bf16 %v23204_v47  ;;  %v17519_v37 = vld [vmem:[#allocation7 + $0x304] ss:$24 sps:$4 sm:$0xff]   ;;  %12756 = vmatpush1.bf16.msra.mxu1 %v17516_v49  ;;  %v17526_v49 = vld [vmem:[#allocation7 + $0x1054] ss:$24 sps:$4 sm:$0xff]  }
 0x3d3   : > { %v4991_v43 = vsel %vm4668_vm8, %v23497_v4, %v4990_v17  ;;  %v5007_v28 = vsel %vm4668_vm8, %v4373_v60, %v5006_v22  ;;  %v16893_v16 = vunpack.c.h.bf16 %v23213_v57  ;;  %v16897_v20 = vunpack.c.h.bf16 %v23216_v33  ;;  %12581 = vmatprep.subr.bf16.mxu0 %v17519_v37  ;;  %v15179_v40 = vld [vmem:[%s19818_s22 + $0xa0] ss:$24 sps:$4 sm:$0xff]   ;;  %12757 = vmatprep.subr.bf16.mxu1 %v17520_v12  ;;  %v23566_v54 = vld [vmem:[%s19818_s22 + $0x310] ss:$24 sps:$4 sm:$0xff]  }
 0x3d4   : > { %v4387_v41 = vadd.f32 %v4386_v1, %v4385_v56  ;;  %v4992_v52 = vsel %vm4670_vm9, %v23505_v15, %v4991_v43  ;;  %v5008_v0 = vsel %vm4670_vm9, %v4380_v5, %v5007_v28  ;;  %v16901_v4 = vunpack.c.h.bf16 %v23224_v55  ;;  %v17150_v15 = vpop.f32.mrb[7].mxu0  ;;  %v23557_v60 = vld [vmem:[%s19818_s22 + $0x190] ss:$168 sps:$4 sm:$0xff]   ;;  %v17522_v1 = vld [vmem:[#allocation7 + $0x1020] ss:$24 sps:$4 sm:$0xff]  }
 0x3d5   : > { %v4993_v58 = vsel %vm4672_vm10, %v23511_v50, %v4992_v52  ;;  %v16905_v23 = vunpack.c.h.bf16 %v23227_v2  ;;  %v16909_v45 = vunpack.c.h.bf16 %v23232_v31  ;;  %v16913_v61 = vunpack.c.h.bf16 %v23235_v62  ;;  %v23563_v5 = vld [vmem:[%s19818_s22 + $0x250] ss:$168 sps:$4 sm:$0xff]   ;;  %v23584_v37 = vld [vmem:[%s19818_s22 + $0x4c0] ss:$168 sps:$4 sm:$0xff]   ;;  %v23612_v7 = vpop.f32.mrb[8].mxu0 }
 0x3d6   : > { %v5009_v29 = vsel %vm4672_vm10, %v4387_v41, %v5008_v0  ;;  %v16917_v44 = vunpack.c.h.bf16 %v23243_v9  ;;  %v16921_v13 = vunpack.c.h.bf16 %v23246_v11  ;;  %v16925_v50 = vunpack.c.h.bf16 %v23249_v35  ;;  %v23574_v17 = vld [vmem:[%s19818_s22 + $0x3d0] ss:$24 sps:$4 sm:$0xff]   ;;  %12758 = vmatpush1.bf16.msra.mxu1 %v17522_v1  ;;  %v23592_v15 = vld [vmem:[%s19818_s22 + $0x640] ss:$24 sps:$4 sm:$0xff]   ;;  %24658 = vst [vmem:[#allocation29_spill] sm:$0xff] %v23612_v7 }
 0x3d7   : > { %v5069_v19 = vpack.c.bf16 %v5009_v29, %v4993_v58  ;;  %v16929_v56 = vunpack.c.h.bf16 %v23260_v34  ;;  %v23577_v22 = vld [vmem:[%s19818_s22 + $0x490] ss:$24 sps:$4 sm:$0xff]   ;;  %v2317_v28 = vunpack.c.l.bf16 %v15179_v40  ;;  %v2323_v18 = vunpack.c.h.bf16 %v15179_v40  ;;  %12759 = vmatprep.subr.bf16.mxu1 %v17526_v49 }
 0x3d8   : > { %v23587_v12 = vld [vmem:[%s19818_s22 + $0x580] ss:$168 sps:$4 sm:$0xff]   ;;  %v2329_v41 = vunpack.c.l.bf16 %v15191_v32  ;;  %v2335_v52 = vunpack.c.h.bf16 %v15191_v32  ;;  %v2341_v0 = vunpack.c.l.bf16 %v23557_v60  ;;  %v2347_v58 = vunpack.c.h.bf16 %v23557_v60  ;;  %v17528_v1 = vld [vmem:[#allocation7 + $0x1050] ss:$24 sps:$4 sm:$0xff]  }
 0x3d9   : > { %17184 = vmatmul.mubr.msk.bf16.gmra.mrb[40].mxu0 %vm603_vm2, %v5069_v19  ;;  %v2353_v29 = vunpack.c.l.bf16 %v23563_v5  ;;  %v2359_v40 = vunpack.c.h.bf16 %v23563_v5  ;;  %v2365_v19 = vunpack.c.l.bf16 %v23566_v54  ;;  %v2371_v43 = vunpack.c.h.bf16 %v23566_v54  ;;  %v17153_v54 = vpop.f32.mrb[9].mxu0  ;;  %v17534_v33 = vld [vmem:[#allocation7 + $0x1080] ss:$24 sps:$4 sm:$0xff]  }
 0x3da   : > { %17187 = vmatprep.mubr.msk.bf16.mxu0 %vm19561_vm0, %v24572_v38  ;;  %v2377_v24 = vunpack.c.l.bf16 %v23574_v17  ;;  %v2383_v32 = vunpack.c.h.bf16 %v23574_v17  ;;  %v2407_v27 = vunpack.c.h.bf16 %v23584_v37  ;;  %v2419_v42 = vunpack.c.h.bf16 %v23587_v12  ;;  %12760 = vmatpush1.bf16.msra.mxu1 %v17528_v1 }
 0x3db   : > { %v2442_v17 = vsel %vm603_vm2, %v16885_v39, 0.0  ;;  %v2443_v60 = vsel %vm603_vm2, %v2317_v28, 0.0  ;;  %v2445_v5 = vsel %vm603_vm2, %v16889_v21, 0.0  ;;  %v2447_v49 = vsel %vm603_vm2, %v2323_v18, 0.0  ;;  %v17532_v21 = vld [vmem:[#allocation7 + $0x1084] ss:$24 sps:$4 sm:$0xff]  }
 0x3dc   : > { %v2444_v48 = vadd.f32 %v2443_v60, %v2442_v17  ;;  %v2449_v8 = vsel %vm603_vm2, %v16893_v16, 0.0  ;;  %v2469_v36 = vsel %vm603_vm2, %v2329_v41, 0.0  ;;  %v2470_v39 = vsel %vm603_vm2, %v16897_v20, 0.0  ;;  %v23633_v41 = vpop.f32.mrb[10].mxu0  ;;  %12761 = vmatprep.subr.bf16.mxu1 %v17532_v21  ;;  %v17544_v21 = vld [vmem:[#allocation7 + $0x10e4] ss:$24 sps:$4 sm:$0xff]  }
 0x3dd   : > { %v2472_v28 = vsel %vm603_vm2, %v2335_v52, 0.0  ;;  %v2474_v47 = vsel %vm603_vm2, %v16901_v4, 0.0  ;;  %v2471_v18 = vadd.f32 %v2470_v39, %v2469_v36  ;;  %v2476_v57 = vsel %vm603_vm2, %v2341_v0, 0.0  ;;  %24659 = vst [vmem:[#allocation30_spill] sm:$0xff] %v23633_v41  ;;  %v17154_v52 = vpop.f32.mrb[11].mxu0 }
 0x3de   : > { %v2446_v60 = vadd.f32 %v2445_v5, %v2444_v48  ;;  %v2496_v16 = vsel %vm603_vm2, %v16905_v23, 0.0  ;;  %v2497_v20 = vsel %vm603_vm2, %v2347_v58, 0.0  ;;  %v2499_v55 = vsel %vm603_vm2, %v16909_v45, 0.0  ;;  %12762 = vmatpush1.bf16.msra.mxu1 %v17534_v33  ;;  %v17538_v58 = vld [vmem:[#allocation7 + $0x10b4] ss:$24 sps:$4 sm:$0xff]  }
 0x3df   : > { %v2501_v4 = vsel %vm603_vm2, %v2353_v29, 0.0  ;;  %v2503_v48 = vsel %vm603_vm2, %v16913_v61, 0.0  ;;  %v2473_v0 = vadd.f32 %v2472_v28, %v2471_v18  ;;  %v2498_v23 = vadd.f32 %v2497_v20, %v2496_v16  ;;  %12763 = vmatprep.subr.bf16.mxu1 %v17538_v58  ;;  %v17546_v33 = vld [vmem:[#allocation7 + $0x10e0] ss:$24 sps:$4 sm:$0xff]  }
 0x3e0   : > { %v2448_v2 = vadd.f32 %v2447_v49, %v2446_v60  ;;  %v2523_v1 = vsel %vm603_vm2, %v2359_v40, 0.0  ;;  %v2524_v31 = vsel %vm603_vm2, %v16917_v44, 0.0  ;;  %v2526_v45 = vsel %vm603_vm2, %v2365_v19, 0.0  ;;  %v17540_v40 = vld [vmem:[#allocation7 + $0x10b0] ss:$24 sps:$4 sm:$0xff]  }
 0x3e1   : > { %v2528_v62 = vsel %vm603_vm2, %v16921_v13, 0.0  ;;  %v2530_v61 = vsel %vm603_vm2, %v2371_v43, 0.0  ;;  %v2475_v5 = vadd.f32 %v2474_v47, %v2473_v0  ;;  %v2500_v54 = vadd.f32 %v2499_v55, %v2498_v23  ;;  %v23662_v43 = vpop.f32.mrb[12].mxu0 }
 0x3e2   : > { %v23652_v29 = vadd.f32 %v2449_v8, %v2448_v2  ;;  %v2525_v17 = vadd.f32 %v2524_v31, %v2523_v1  ;;  %v2550_v9 = vsel %vm603_vm2, %v16925_v50, 0.0  ;;  %v2551_v44 = vsel %vm603_vm2, %v2377_v24, 0.0  ;;  %24660 = vst [vmem:[#allocation31_spill] sm:$0xff] %v23662_v43  ;;  %12764 = vmatpush1.bf16.msra.mxu1 %v17540_v40  ;;  %v17157_v35 = vpop.f32.mrb[13].mxu0  ;;  %v17550_v31 = vld [vmem:[#allocation7 + $0x1114] ss:$24 sps:$4 sm:$0xff]  }
 0x3e3   : > { %v2553_v11 = vsel %vm603_vm2, %v16929_v56, 0.0  ;;  %v2555_v13 = vsel %vm603_vm2, %v2383_v32, 0.0  ;;  %v23664_v8 = vadd.f32 %v2476_v57, %v2475_v5  ;;  %v2502_v19 = vadd.f32 %v2501_v4, %v2500_v54  ;;  %v23680_v16 = vpop.f32.mrb[14].mxu0  ;;  %12765 = vmatprep.subr.bf16.mxu1 %v17544_v21  ;;  %v17552_v5 = vld [vmem:[#allocation7 + $0x1110] ss:$24 sps:$4 sm:$0xff]  }
 0x3e4   : > { %v2527_v49 = vadd.f32 %v2526_v45, %v2525_v17  ;;  %v2552_v36 = vadd.f32 %v2551_v44, %v2550_v9  ;;  %v24661_v50 = vunpack.c.h.bf16 %v23263_v25  ;;  %v24662_v34 = vunpack.c.l.bf16 %v23577_v22  ;;  %24665 = vst [vmem:[#allocation32_spill] sm:$0xff] %v23680_v16  ;;  %v17158_v2 = vpop.f32.mrb[15].mxu0 }
 0x3e5   : > { %v24663_v32 = vunpack.c.h.bf16 %v23266_v14  ;;  %v24664_v28 = vunpack.c.h.bf16 %v23577_v22  ;;  %v23678_v60 = vadd.f32 %v2503_v48, %v2502_v19  ;;  %v24666_v20 = vunpack.c.h.bf16 %v23274_v6 }
 0x3e6   : > { %v2557_v24 = vsel %vm603_vm2, %v24661_v50, 0.0  ;;  %v2577_v56 = vsel %vm603_vm2, %v24662_v34, 0.0  ;;  %v2529_v18 = vadd.f32 %v2528_v62, %v2527_v49  ;;  %v2554_v57 = vadd.f32 %v2553_v11, %v2552_v36  ;;  %12766 = vmatpush1.bf16.msra.mxu1 %v17546_v33  ;;  %v23722_v49 = vpop.f32.mrb[16].mxu0 }
 0x3e7   : > { %v2578_v39 = vsel %vm603_vm2, %v24663_v32, 0.0  ;;  %v2580_v47 = vsel %vm603_vm2, %v24664_v28, 0.0  ;;  %v2582_v55 = vsel %vm603_vm2, %v24666_v20, 0.0  ;;  %v24667_v14 = vunpack.c.l.bf16 %v23584_v37  ;;  %12767 = vmatprep.subr.bf16.mxu1 %v17550_v31  ;;  %24676 = vst [vmem:[#allocation33_spill] sm:$0xff] %v23722_v49  ;;  %v24677_v32 = vld [vmem:[#allocation28_spill] sm:$0xff] }
 0x3e8   : > { %v2579_v25 = vadd.f32 %v2578_v39, %v2577_v56  ;;  %v24668_v22 = vunpack.c.h.bf16 %v23277_v3  ;;  %v2605_v48 = vsel %vm603_vm2, %v2407_v27, 0.0  ;;  %v23694_v0 = vadd.f32 %v2530_v61, %v2529_v18  ;;  %v17556_v39 = vld [vmem:[#allocation7 + $0x1144] ss:$24 sps:$4 sm:$0xff]  }
 0x3e9   : > { %v2584_v4 = vsel %vm603_vm2, %v24667_v14, 0.0  ;;  %v2556_v23 = vadd.f32 %v2555_v13, %v2554_v57  ;;  %v24669_v45 = vunpack.c.h.bf16 %v23280_v63  ;;  %v24670_v3 = vunpack.c.l.bf16 %v23587_v12  ;;  %v24679_v18 = vld [vmem:[#allocation24_spill] sm:$0xff]  ;;  %v24680_v14 = vld [vmem:[#allocation21_spill] sm:$0xff] }
 0x3ea   : > { %v2604_v52 = vsel %vm603_vm2, %v24668_v22, 0.0  ;;  %v2581_v6 = vadd.f32 %v2580_v47, %v2579_v25  ;;  %v24671_v37 = vunpack.c.h.bf16 %v23287_v46  ;;  %v2631_v61 = vsel %vm603_vm2, %v2419_v42, 0.0  ;;  %12768 = vmatpush1.bf16.msra.mxu1 %v17552_v5  ;;  %v17558_v25 = vld [vmem:[#allocation7 + $0x1140] ss:$24 sps:$4 sm:$0xff]   ;;  %v23978_v49 = vld [vmem:[%s19818_s22 + $0x644] sm:$0x1] }
 0x3eb   : > { %v2606_v1 = vadd.f32 %v2605_v48, %v2604_v52  ;;  %v2607_v62 = vsel %vm603_vm2, %v24669_v45, 0.0  ;;  %v2609_v58 = vsel %vm603_vm2, %v24670_v3, 0.0  ;;  %v23708_v54 = vadd.f32 %v2557_v24, %v2556_v23  ;;  %v17161_v24 = vpop.f32.mrb[17].mxu0  ;;  %12769 = vmatprep.subr.bf16.mxu1 %v17556_v39  ;;  %v24681_v48 = vld [vmem:[#allocation25_spill] sm:$0xff]  ;;  %v24682_v45 = vld [vmem:[#allocation26_spill] sm:$0xff] }
 0x3ec   : > { %v2611_v27 = vsel %vm603_vm2, %v24671_v37, 0.0  ;;  %v2583_v17 = vadd.f32 %v2582_v55, %v2581_v6  ;;  %v24672_v63 = vunpack.c.h.bf16 %v23290_v30  ;;  %v24673_v11 = vunpack.c.l.bf16 %v23592_v15  ;;  %v23731_v28 = vpop.f32.mrb[18].mxu0  ;;  %v17562_v6 = vld [vmem:[#allocation7 + $0x1174] ss:$24 sps:$4 sm:$0xff]  }
 0x3ed   : > { %v2608_v40 = vadd.f32 %v2607_v62, %v2606_v1  ;;  %v24674_v13 = vunpack.c.h.bf16 %v23293_v10  ;;  %v24675_v42 = vunpack.c.h.bf16 %v23592_v15  ;;  %v4396_v35 = vrot.slane %v23399_v53, 6  ;;  %24678 = vst [vmem:[#allocation28_spill] sm:$0xff] %v23731_v28  ;;  %v17162_v33 = vpop.f32.mrb[19].mxu0 }
 0x3ee   : > { %v2632_v9 = vsel %vm603_vm2, %v24672_v63, 0.0  ;;  %v2634_v46 = vsel %vm603_vm2, %v24673_v11, 0.0  ;;  %v23724_v36 = vadd.f32 %v2584_v4, %v2583_v17  ;;  %v4397_v50 = vrot.slane %v23652_v29, 6  ;;  %12770 = vmatpush1.bf16.msra.mxu1 %v17558_v25  ;;  %v23757_v11 = vpop.f32.mrb[20].mxu0 }
 0x3ef   : > { %v2633_v44 = vadd.f32 %v2632_v9, %v2631_v61  ;;  %v2636_v12 = vsel %vm603_vm2, %v24674_v13, 0.0  ;;  %v2638_v19 = vsel %vm603_vm2, %v24675_v42, 0.0  ;;  %v2610_v30 = vadd.f32 %v2609_v58, %v2608_v40  ;;  %v17564_v58 = vld [vmem:[#allocation7 + $0x1170] ss:$24 sps:$4 sm:$0xff]   ;;  %12771 = vmatprep.subr.bf16.mxu1 %v17562_v6 }
 0x3f0   : > { %v4399_v10 = vrot.slane %v23408_v59, 6  ;;  %v4400_v56 = vrot.slane %v23664_v8, 6  ;;  %v4402_v15 = vrot.slane %v24677_v32, 6  ;;  %v4398_v21 = vsel %vm2794_vm11, %v4396_v35, %v4397_v50  ;;  %v24683_v61 = vld [vmem:[#allocation27_spill] sm:$0xff] }
 0x3f1   : > { %v2635_v34 = vadd.f32 %v2634_v46, %v2633_v44  ;;  %v23733_v47 = vadd.f32 %v2611_v27, %v2610_v30  ;;  %v4403_v53 = vrot.slane %v23678_v60, 6  ;;  %v4405_v57 = vrot.slane %v24679_v18, 6 }
 0x3f2   : > { %v4401_v59 = vsel %vm2794_vm11, %v4399_v10, %v4400_v56  ;;  %v4406_v55 = vrot.slane %v23694_v0, 6  ;;  %v4408_v4 = vrot.slane %v24680_v14, 6  ;;  %v4409_v52 = vrot.slane %v23708_v54, 6  ;;  %12772 = vmatpush1.bf16.msra.mxu1 %v17564_v58 }
 0x3f3   : > { %v2637_v20 = vadd.f32 %v2636_v12, %v2635_v34  ;;  %v4404_v22 = vsel %vm2794_vm11, %v4402_v15, %v4403_v53  ;;  %v4411_v2 = vrot.slane %v24681_v48, 6  ;;  %v4412_v23 = vrot.slane %v23724_v36, 6  ;;  %v17568_v34 = vld [vmem:[#allocation7 + $0x11a4] ss:$24 sps:$4 sm:$0xff]  }
 0x3f4   : > { %v4407_v31 = vsel %vm2794_vm11, %v4405_v57, %v4406_v55  ;;  %v4414_v62 = vrot.slane %v24682_v45, 6  ;;  %v4415_v3 = vrot.slane %v23733_v47, 6  ;;  %v4410_v37 = vsel %vm2794_vm11, %v4408_v4, %v4409_v52  ;;  %12773 = vmatprep.subr.bf16.mxu1 %v17568_v34 }
 0x3f5   : > { %v23745_v1 = vadd.f32 %v2638_v19, %v2637_v20  ;;  %v4413_v27 = vsel %vm2794_vm11, %v4411_v2, %v4412_v23  ;;  %v4417_v5 = vrot.slane %v24683_v61, 6  ;;  %v4428_v17 = vsel %vm2649_vm3, %v4398_v21, 0.0  ;;  %v17165_v19 = vpop.f32.mrb[21].mxu0  ;;  %v17570_v21 = vld [vmem:[#allocation7 + $0x11a0] ss:$24 sps:$4 sm:$0xff]  }
 0x3f6   : > { %v4416_v40 = vsel %vm2794_vm11, %v4414_v62, %v4415_v3  ;;  %v4429_v9 = vrot.slane %v4428_v17, 4  ;;  %v4435_v44 = vsel %vm2649_vm3, %v4401_v59, 0.0  ;;  %v4442_v13 = vsel %vm2649_vm3, %v4404_v22, 0.0  ;;  %v23765_v39 = vpop.f32.mrb[22].mxu0  ;;  %12774 = vmatpush1.bf16.msra.mxu1 %v17570_v21  ;;  %v17574_v2 = vld [vmem:[#allocation7 + $0x11d4] ss:$24 sps:$4 sm:$0xff]  }
 0x3f7   : > { %v4418_v63 = vrot.slane %v23745_v1, 6  ;;  %v4436_v46 = vrot.slane %v4435_v44, 4  ;;  %v4449_v12 = vsel %vm2649_vm3, %v4407_v31, 0.0  ;;  %v4456_v42 = vsel %vm2649_vm3, %v4410_v37, 0.0  ;;  %24684 = vst [vmem:[#allocation24_spill] sm:$0xff] %v23765_v39  ;;  %v17166_v33 = vpop.f32.mrb[23].mxu0  ;;  %12775 = vmatprep.subr.bf16.mxu1 %v17574_v2 }
 0x3f8   : > { %v4430_v35 = vadd.f32 %v4429_v9, %v4428_v17  ;;  %v4443_v50 = vrot.slane %v4442_v13, 4  ;;  %v4450_v24 = vrot.slane %v4449_v12, 4  ;;  %v4457_v56 = vrot.slane %v4456_v42, 4  ;;  %v17576_v23 = vld [vmem:[#allocation7 + $0x11d0] ss:$24 sps:$4 sm:$0xff]  }
 0x3f9   : > { %v4419_v30 = vsel %vm2794_vm11, %v4417_v5, %v4418_v63  ;;  %v4437_v10 = vadd.f32 %v4436_v46, %v4435_v44  ;;  %v4463_v32 = vsel %vm2649_vm3, %v4413_v27, 0.0  ;;  %v4470_v15 = vsel %vm2649_vm3, %v4416_v40, 0.0  ;;  %v17582_v63 = vld [vmem:[#allocation7 + $0x1204] ss:$24 sps:$4 sm:$0xff]  }
 0x3fa   : > { %v4431_v53 = vrot.slane %v4430_v35, 2  ;;  %v4444_v18 = vadd.f32 %v4443_v50, %v4442_v13  ;;  %v4451_v57 = vadd.f32 %v4450_v24, %v4449_v12  ;;  %v4464_v25 = vrot.slane %v4463_v32, 4  ;;  %12776 = vmatpush1.bf16.msra.mxu1 %v17576_v23 }
 0x3fb   : > { %v4438_v20 = vrot.slane %v4437_v10, 2  ;;  %v4458_v59 = vadd.f32 %v4457_v56, %v4456_v42  ;;  %v4471_v55 = vrot.slane %v4470_v15, 4  ;;  %v4477_v14 = vsel %vm2649_vm3, %v4419_v30, 0.0  ;;  %12786 = vmatprep.subr.bf16.mxu1 %v17582_v63 }
 0x3fc   : > { %v4432_v4 = vadd.f32 %v4431_v53, %v4430_v35  ;;  %v4445_v22 = vrot.slane %v4444_v18, 2  ;;  %v4452_v52 = vrot.slane %v4451_v57, 2  ;;  %v4465_v48 = vadd.f32 %v4464_v25, %v4463_v32 }
 0x3fd   : > { %v4439_v6 = vadd.f32 %v4438_v20, %v4437_v10  ;;  %v4459_v31 = vrot.slane %v4458_v59, 2  ;;  %v4472_v45 = vadd.f32 %v4471_v55, %v4470_v15  ;;  %v4478_v62 = vrot.slane %v4477_v14, 4 }
 0x3fe   : > { %v4433_v3 = vrot.slane %v4432_v4, 1  ;;  %v4446_v58 = vadd.f32 %v4445_v22, %v4444_v18  ;;  %v4453_v37 = vadd.f32 %v4452_v52, %v4451_v57  ;;  %v4466_v27 = vrot.slane %v4465_v48, 2 }
 0x3ff   : > { %v4440_v61 = vrot.slane %v4439_v6, 1  ;;  %v23768_v5 = vadd.f32 %v4459_v31, %v4458_v59  ;;  %v4473_v17 = vrot.slane %v4472_v45, 2  ;;  %v4479_v40 = vadd.f32 %v4478_v62, %v4477_v14 }
 0x400   : > { %v4447_v9 = vrot.slane %v4446_v58, 1  ;;  %v4454_v44 = vrot.slane %v4453_v37, 1  ;;  %v23770_v46 = vadd.f32 %v4466_v27, %v4465_v48  ;;  %v23774_v42 = vadd.f32 %v4433_v3, %v4432_v4 }
 0x401   : > { %v23772_v13 = vadd.f32 %v4473_v17, %v4472_v45  ;;  %v4480_v12 = vrot.slane %v4479_v40, 2  ;;  %v23776_v19 = vadd.f32 %v4440_v61, %v4439_v6  ;;  %v4484_v30 = vrot.slane %v23652_v29, 1 }
 0x402   : > { %v23779_v35 = vadd.f32 %v4447_v9, %v4446_v58  ;;  %v4461_v50 = vrot.slane %v23768_v5, 1  ;;  %v4485_v34 = vrot.slane %v23664_v8, 1  ;;  %v23785_v10 = vadd.f32 %v4454_v44, %v4453_v37 }
 0x403   : > { %v23782_v24 = vadd.f32 %v4480_v12, %v4479_v40  ;;  %v4486_v56 = vrot.slane %v23678_v60, 1  ;;  %v4487_v32 = vrot.slane %v23694_v0, 1  ;;  %v4488_v15 = vrot.slane %v23708_v54, 1 }
 0x404   : > { %v4468_v21 = vrot.slane %v23770_v46, 1  ;;  %v4489_v18 = vrot.slane %v23724_v36, 1  ;;  %v4490_v57 = vrot.slane %v23733_v47, 1  ;;  %v4491_v25 = vrot.slane %v23745_v1, 1 }
 0x405   : > { %v4500_v33 = vsel %vm2649_vm3, %v4484_v30, 0.0  ;;  %v4507_v20 = vsel %vm2649_vm3, %v4485_v34, 0.0  ;;  %v4514_v59 = vsel %vm2649_vm3, %v4486_v56, 0.0  ;;  %v4521_v52 = vsel %vm2649_vm3, %v4487_v32, 0.0 }
 0x406   : > { %v4501_v14 = vrot.slane %v4500_v33, 4  ;;  %v4508_v4 = vrot.slane %v4507_v20, 4  ;;  %v4515_v22 = vrot.slane %v4514_v59, 4  ;;  %v4528_v48 = vsel %vm2649_vm3, %v4488_v15, 0.0 }
 0x407   : > { %v4535_v2 = vsel %vm2649_vm3, %v4489_v18, 0.0  ;;  %v4542_v23 = vsel %vm2649_vm3, %v4490_v57, 0.0  ;;  %v4522_v62 = vrot.slane %v4521_v52, 4  ;;  %v4529_v3 = vrot.slane %v4528_v48, 4 }
 0x408   : > { %v4502_v6 = vadd.f32 %v4501_v14, %v4500_v33  ;;  %v4509_v31 = vadd.f32 %v4508_v4, %v4507_v20  ;;  %v4516_v45 = vadd.f32 %v4515_v22, %v4514_v59  ;;  %v4536_v58 = vrot.slane %v4535_v2, 4 }
 0x409   : > { %v4543_v37 = vrot.slane %v4542_v23, 4  ;;  %v4549_v27 = vsel %vm2649_vm3, %v4491_v25, 0.0  ;;  %v4523_v63 = vadd.f32 %v4522_v62, %v4521_v52  ;;  %v4530_v9 = vadd.f32 %v4529_v3, %v4528_v48 }
 0x40a   : > { %v4503_v61 = vrot.slane %v4502_v6, 2  ;;  %v4510_v17 = vrot.slane %v4509_v31, 2  ;;  %v4517_v40 = vrot.slane %v4516_v45, 2  ;;  %v4537_v44 = vadd.f32 %v4536_v58, %v4535_v2 }
 0x40b   : > { %v4544_v12 = vadd.f32 %v4543_v37, %v4542_v23  ;;  %v4550_v30 = vrot.slane %v4549_v27, 4  ;;  %v4524_v15 = vrot.slane %v4523_v63, 2  ;;  %v4531_v18 = vrot.slane %v4530_v9, 2 }
 0x40c   : > { %v4504_v34 = vadd.f32 %v4503_v61, %v4502_v6  ;;  %v4511_v56 = vadd.f32 %v4510_v17, %v4509_v31  ;;  %v4518_v32 = vadd.f32 %v4517_v40, %v4516_v45  ;;  %v4538_v57 = vrot.slane %v4537_v44, 2 }
 0x40d   : > { %v4545_v33 = vrot.slane %v4544_v12, 2  ;;  %v4551_v20 = vadd.f32 %v4550_v30, %v4549_v27  ;;  %v4525_v25 = vadd.f32 %v4524_v15, %v4523_v63  ;;  %v4532_v22 = vadd.f32 %v4531_v18, %v4530_v9  ;;  %v23831_v30 = vld [vmem:[%s19818_s22 + $0x164] sm:$0x1]  ;;  %v23842_v15 = vld [vmem:[%s19818_s22 + $0xc8] sm:$0x1] }
 0x40e   : > { %v4505_v59 = vrot.slane %v4504_v34, 1  ;;  %v4512_v14 = vrot.slane %v4511_v56, 1  ;;  %v4519_v4 = vrot.slane %v4518_v32, 1  ;;  %v4539_v55 = vadd.f32 %v4538_v57, %v4537_v44  ;;  %v23813_v44 = vld [vmem:[%s19818_s22 + $0x98] sm:$0x1] }
 0x40f   : > { %v4546_v53 = vadd.f32 %v4545_v33, %v4544_v12  ;;  %v4552_v52 = vrot.slane %v4551_v20, 2  ;;  %v4526_v6 = vrot.slane %v4525_v25, 1  ;;  %v4533_v31 = vrot.slane %v4532_v22, 1  ;;  %v23816_v12 = vld [vmem:[%s19818_s22 + $0xa4] sm:$0x1] }
 0x410   : > { %v4506_v48 = vadd.f32 %v4505_v59, %v4504_v34  ;;  %v4513_v2 = vadd.f32 %v4512_v14, %v4511_v56  ;;  %v4520_v23 = vadd.f32 %v4519_v4, %v4518_v32  ;;  %v4540_v45 = vrot.slane %v4539_v55, 1  ;;  %v23839_v32 = vld [vmem:[#allocation5] ss:$0 sm:$0xff]  ;;  %v23845_v18 = vld [vmem:[%s19818_s22 + $0x170] sm:$0x1] }
 0x411   : > { %v4547_v62 = vrot.slane %v4546_v53, 1  ;;  %v4553_v3 = vadd.f32 %v4552_v52, %v4551_v20  ;;  %v4462_v58 = vadd.f32 %v4461_v50, %v23768_v5  ;;  %v4527_v37 = vadd.f32 %v4526_v6, %v4525_v25  ;;  %v23848_v57 = vld [vmem:[%s19818_s22 + $0x17c] sm:$0x1]  ;;  %v23851_v33 = vld [vmem:[%s19818_s22 + $0x188] sm:$0x1] }
 0x412   : > { %v5019_v27 = vsel %vm4660_vm4, %v23776_v19, %v23774_v42  ;;  %v5035_v61 = vsel %vm4660_vm4, %v4513_v2, %v4506_v48  ;;  %v4469_v17 = vadd.f32 %v4468_v21, %v23770_v46  ;;  %v4534_v40 = vadd.f32 %v4533_v31, %v4532_v22  ;;  %v23825_v21 = vld [vmem:[%s19818_s22 + $0xb0] sm:$0x1]  ;;  %v24687_v20 = vld [vmem:[#allocation23_spill] sm:$0xff]  ;;  %v23860_v14 = vld [vmem:[%s19818_s22 + $0x194] sm:$0x1] }
 0x413   : > { %v4541_v63 = vadd.f32 %v4540_v45, %v4539_v55  ;;  %v4554_v9 = vrot.slane %v4553_v3, 1  ;;  %v24685_v5 = vrot.slane %v23772_v13, 1  ;;  %v4548_v42 = vadd.f32 %v4547_v62, %v4546_v53  ;;  %v23828_v55 = vld [vmem:[%s19818_s22 + $0xbc] sm:$0x1]  ;;  %v23863_v4 = vld [vmem:[%s19818_s22 + $0x230] sm:$0x1] }
 0x414   : > { %v5020_v19 = vsel %vm4662_vm5, %v23779_v35, %v5019_v27  ;;  %v5036_v46 = vsel %vm4662_vm5, %v4520_v23, %v5035_v61  ;;  %v24686_v34 = vrot.slane %v23782_v24, 1  ;;  %v23857_v59 = vadd.f32 %v23839_v32, %v24687_v20  ;;  %v23866_v25 = vld [vmem:[%s19818_s22 + $0x23c] sm:$0x1]  ;;  %v23869_v22 = vld [vmem:[%s19818_s22 + $0x248] sm:$0x1] }
 0x415   : > { %v4476_v50 = vadd.f32 %v24685_v5, %v23772_v13  ;;  %v4555_v53 = vadd.f32 %v4554_v9, %v4553_v3  ;;  %v5021_v35 = vsel %vm4664_vm6, %v23785_v10, %v5020_v19  ;;  %v5037_v56 = vsel %vm4664_vm6, %v4527_v37, %v5036_v46  ;;  %v23874_v2 = vld [vmem:[%s19818_s22 + $0x254] sm:$0x1]  ;;  %v23877_v23 = vld [vmem:[%s19818_s22 + $0x260] sm:$0x1]  ;;  %v23880_v6 = vld [vmem:[%s19818_s22 + $0x2fc] sm:$0x1] }
 0x416   : > { %v4483_v13 = vadd.f32 %v24686_v34, %v23782_v24  ;;  %v5022_v24 = vsel %vm4666_vm7, %v4462_v58, %v5021_v35  ;;  %v5038_v10 = vsel %vm4666_vm7, %v4534_v40, %v5037_v56  ;;  %v23887_v58 = vld [vmem:[%s19818_s22 + $0x308] sm:$0x1]  ;;  %v23890_v37 = vld [vmem:[%s19818_s22 + $0x314] sm:$0x1]  ;;  %v23893_v27 = vld [vmem:[%s19818_s22 + $0x320] sm:$0x1]  ;;  %v2330_v19 = vunpack.c.l.bf16 %v23831_v30 }
 0x417   : > { %v5023_v52 = vsel %vm4668_vm8, %v4469_v17, %v5022_v24  ;;  %v5039_v48 = vsel %vm4668_vm8, %v4541_v63, %v5038_v10  ;;  %v23900_v9 = vld [vmem:[%s19818_s22 + $0x32c] sm:$0x1]  ;;  %v23903_v5 = vld [vmem:[%s19818_s22 + $0x3c8] sm:$0x1]  ;;  %v23911_v34 = vld [vmem:[%s19818_s22 + $0x3e0] sm:$0x1]  ;;  %v2336_v56 = vunpack.c.l.bf16 %v23848_v57  ;;  %v2339_v24 = vunpack.c.l.bf16 %v23851_v33 }
 0x418   : > { %v5024_v62 = vsel %vm4670_vm9, %v4476_v50, %v5023_v52  ;;  %v5040_v3 = vsel %vm4670_vm9, %v4548_v42, %v5039_v48  ;;  %v23906_v50 = vld [vmem:[%s19818_s22 + $0x3d4] sm:$0x1]  ;;  %v2327_v42 = vunpack.c.l.bf16 %v23842_v15  ;;  %v23917_v35 = vld [vmem:[%s19818_s22 + $0x3f8] sm:$0x1]  ;;  %v23926_v30 = vld [vmem:[%s19818_s22 + $0x4a0] sm:$0x1]  ;;  %v2342_v20 = vunpack.c.l.bf16 %v23860_v14 }
 0x419   : > { %v5025_v40 = vsel %vm4672_vm10, %v4483_v13, %v5024_v62  ;;  %v5041_v63 = vsel %vm4672_vm10, %v4555_v53, %v5040_v3  ;;  %v23914_v13 = vld [vmem:[%s19818_s22 + $0x3ec] sm:$0x1]  ;;  %v2333_v53 = vunpack.c.l.bf16 %v23845_v18  ;;  %v23923_v10 = vld [vmem:[%s19818_s22 + $0x494] sm:$0x1]  ;;  %v2345_v52 = vunpack.c.l.bf16 %v23863_v4  ;;  %v23937_v57 = vld [vmem:[%s19818_s22 + $0x4b8] sm:$0x1] }
 0x41a   : > { %v5070_v46 = vpack.c.bf16 %v5041_v63, %v5025_v40  ;;  %v23929_v15 = vld [vmem:[%s19818_s22 + $0x4ac] sm:$0x1]  ;;  %v2348_v48 = vunpack.c.l.bf16 %v23866_v25  ;;  %v2351_v18 = vunpack.c.l.bf16 %v23869_v22  ;;  %v23940_v33 = vld [vmem:[%s19818_s22 + $0x4c4] sm:$0x1]  ;;  %v23943_v62 = vld [vmem:[%s19818_s22 + $0x560] sm:$0x1]  ;;  %v2354_v3 = vunpack.c.l.bf16 %v23874_v2 }
 0x41b   : > { %v2357_v14 = vunpack.c.l.bf16 %v23877_v23  ;;  %v2360_v4 = vunpack.c.l.bf16 %v23880_v6  ;;  %v2363_v25 = vunpack.c.l.bf16 %v23887_v58  ;;  %v23952_v22 = vld [vmem:[%s19818_s22 + $0x56c] sm:$0x1]  ;;  %v23955_v40 = vld [vmem:[%s19818_s22 + $0x578] sm:$0x1]  ;;  %v23958_v63 = vld [vmem:[%s19818_s22 + $0x584] sm:$0x1]  ;;  %v2366_v2 = vunpack.c.l.bf16 %v23890_v37 }
 0x41c   : > { %17188 = vmatmul.mubr.msk.bf16.gmra.mrb[44].mxu0 %vm603_vm2, %v5070_v46  ;;  %v2369_v23 = vunpack.c.l.bf16 %v23893_v27  ;;  %v2372_v6 = vunpack.c.l.bf16 %v23900_v9  ;;  %v2375_v58 = vunpack.c.l.bf16 %v23903_v5  ;;  %v23965_v46 = vld [vmem:[%s19818_s22 + $0x590] sm:$0x1]  ;;  %v23968_v17 = vld [vmem:[%s19818_s22 + $0x62c] sm:$0x1]  ;;  %v2378_v61 = vunpack.c.l.bf16 %v23906_v50  ;;  %v23984_v9 = vld [vmem:[%s19818_s22 + $0x65c] sm:$0x1] }
 0x41d   : > { %17191 = vmatprep.mubr.msk.bf16.mxu0 %vm19561_vm0, %v24572_v38  ;;  %v23971_v38 = vld [vmem:[%s19818_s22 + $0x638] sm:$0x1]  ;;  %v2381_v45 = vunpack.c.l.bf16 %v23911_v34  ;;  %v2384_v31 = vunpack.c.l.bf16 %v23914_v13  ;;  %v2387_v37 = vunpack.c.l.bf16 %v23917_v35  ;;  %v23981_v27 = vld [vmem:[%s19818_s22 + $0x650] sm:$0x1]  ;;  %v2390_v5 = vunpack.c.l.bf16 %v23923_v10 }
 0x41e   : > { %v2393_v28 = vunpack.c.l.bf16 %v23926_v30  ;;  %v2396_v43 = vunpack.c.l.bf16 %v23929_v15  ;;  %v2399_v50 = vunpack.c.l.bf16 %v23937_v57  ;;  %v2402_v34 = vunpack.c.l.bf16 %v23940_v33 }
 0x41f   : > { %v2405_v13 = vunpack.c.l.bf16 %v23943_v62  ;;  %v2408_v35 = vunpack.c.l.bf16 %v23952_v22  ;;  %v2411_v16 = vunpack.c.l.bf16 %v23955_v40  ;;  %v2414_v7 = vunpack.c.l.bf16 %v23958_v63 }
 0x420   : > { %v2417_v41 = vunpack.c.l.bf16 %v23965_v46  ;;  %v24688_v62 = vunpack.c.l.bf16 %v23813_v44  ;;  %v24689_v40 = vunpack.c.l.bf16 %v23816_v12  ;;  %v24690_v46 = vunpack.c.l.bf16 %v23825_v21 }
 0x421   : > { %v24691_v30 = vunpack.c.l.bf16 %v23828_v55  ;;  %v2458_v57 = vsel %vm622_vm12, %v2327_v42, 0.0  ;;  %v2478_v33 = vsel %vm622_vm12, %v2330_v19, 0.0  ;;  %v2479_v44 = vsel %vm622_vm12, %v2333_v53, 0.0 }
 0x422   : > { %v2451_v22 = vsel %vm622_vm12, %v24688_v62, 0.0  ;;  %v2452_v63 = vsel %vm622_vm12, %v24689_v40, 0.0  ;;  %v2454_v10 = vsel %vm622_vm12, %v24690_v46, 0.0  ;;  %v2481_v62 = vsel %vm622_vm12, %v2336_v56, 0.0 }
 0x423   : > { %v2456_v15 = vsel %vm622_vm12, %v24691_v30, 0.0  ;;  %v2453_v26 = vadd.f32 %v2452_v63, %v2451_v22  ;;  %v2480_v12 = vadd.f32 %v2479_v44, %v2478_v33  ;;  %v2483_v40 = vsel %vm622_vm12, %v2339_v24, 0.0 }
 0x424   : > { %v2485_v21 = vsel %vm622_vm12, %v2342_v20, 0.0  ;;  %v2505_v46 = vsel %vm622_vm12, %v2345_v52, 0.0  ;;  %v2506_v55 = vsel %vm622_vm12, %v2348_v48, 0.0  ;;  %v2508_v30 = vsel %vm622_vm12, %v2351_v18, 0.0 }
 0x425   : > { %v2455_v39 = vadd.f32 %v2454_v10, %v2453_v26  ;;  %v2510_v42 = vsel %vm622_vm12, %v2354_v3, 0.0  ;;  %v2482_v22 = vadd.f32 %v2481_v62, %v2480_v12  ;;  %v2507_v19 = vadd.f32 %v2506_v55, %v2505_v46 }
 0x426   : > { %v2512_v53 = vsel %vm622_vm12, %v2357_v14, 0.0  ;;  %v2532_v56 = vsel %vm622_vm12, %v2360_v4, 0.0  ;;  %v2533_v24 = vsel %vm622_vm12, %v2363_v25, 0.0  ;;  %v2535_v20 = vsel %vm622_vm12, %v2366_v2, 0.0 }
 0x427   : > { %v2457_v33 = vadd.f32 %v2456_v15, %v2455_v39  ;;  %v2537_v52 = vsel %vm622_vm12, %v2369_v23, 0.0  ;;  %v2484_v26 = vadd.f32 %v2483_v40, %v2482_v22  ;;  %v2509_v10 = vadd.f32 %v2508_v30, %v2507_v19 }
 0x428   : > { %v2534_v48 = vadd.f32 %v2533_v24, %v2532_v56  ;;  %v2539_v18 = vsel %vm622_vm12, %v2372_v6, 0.0  ;;  %v2559_v3 = vsel %vm622_vm12, %v2375_v58, 0.0  ;;  %v2560_v44 = vsel %vm622_vm12, %v2378_v61, 0.0  ;;  %v24050_v56 = vpop.f32.mrb[24].mxu0 }
 0x429   : > { %v2459_v63 = vadd.f32 %v2458_v57, %v2457_v33  ;;  %v2562_v14 = vsel %vm622_vm12, %v2381_v45, 0.0  ;;  %v2486_v4 = vadd.f32 %v2485_v21, %v2484_v26  ;;  %v2511_v39 = vadd.f32 %v2510_v42, %v2509_v10  ;;  %v17169_v10 = vpop.f32.mrb[25].mxu0 }
 0x42a   : > { %v2536_v15 = vadd.f32 %v2535_v20, %v2534_v48  ;;  %v2561_v25 = vadd.f32 %v2560_v44, %v2559_v3  ;;  %v2564_v2 = vsel %vm622_vm12, %v2384_v31, 0.0  ;;  %v2566_v23 = vsel %vm622_vm12, %v2387_v37, 0.0 }
 0x42b   : > { %v2586_v62 = vsel %vm622_vm12, %v2390_v5, 0.0  ;;  %v2587_v12 = vsel %vm622_vm12, %v2393_v28, 0.0  ;;  %v2513_v6 = vadd.f32 %v2512_v53, %v2511_v39  ;;  %v2589_v61 = vsel %vm622_vm12, %v2396_v43, 0.0 }
 0x42c   : > { %v2538_v57 = vadd.f32 %v2537_v52, %v2536_v15  ;;  %v2563_v40 = vadd.f32 %v2562_v14, %v2561_v25  ;;  %v2588_v58 = vadd.f32 %v2587_v12, %v2586_v62  ;;  %v2591_v45 = vsel %vm622_vm12, %v2399_v50, 0.0  ;;  %v24066_v15 = vpop.f32.mrb[26].mxu0 }
 0x42d   : > { %v2593_v21 = vsel %vm622_vm12, %v2402_v34, 0.0  ;;  %v2613_v46 = vsel %vm622_vm12, %v2405_v13, 0.0  ;;  %v2614_v37 = vsel %vm622_vm12, %v2408_v35, 0.0  ;;  %v2616_v28 = vsel %vm622_vm12, %v2411_v16, 0.0 }
 0x42e   : > { %v2540_v55 = vadd.f32 %v2539_v18, %v2538_v57  ;;  %v2565_v31 = vadd.f32 %v2564_v2, %v2563_v40  ;;  %v2590_v30 = vadd.f32 %v2589_v61, %v2588_v58  ;;  %v2615_v5 = vadd.f32 %v2614_v37, %v2613_v46  ;;  %v17170_v2 = vpop.f32.mrb[27].mxu0 }
 0x42f   : > { %v2618_v42 = vsel %vm622_vm12, %v2414_v7, 0.0  ;;  %v2620_v22 = vsel %vm622_vm12, %v2417_v41, 0.0  ;;  %v24692_v50 = vunpack.c.l.bf16 %v23968_v17  ;;  %v24693_v13 = vunpack.c.l.bf16 %v23971_v38 }
 0x430   : > { %v2567_v19 = vadd.f32 %v2566_v23, %v2565_v31  ;;  %v2592_v43 = vadd.f32 %v2591_v45, %v2590_v30  ;;  %v2617_v35 = vadd.f32 %v2616_v28, %v2615_v5  ;;  %v24694_v16 = vunpack.c.l.bf16 %v23978_v49 }
 0x431   : > { %v2640_v34 = vsel %vm622_vm12, %v24692_v50, 0.0  ;;  %v2641_v53 = vsel %vm622_vm12, %v24693_v13, 0.0  ;;  %v24695_v41 = vunpack.c.l.bf16 %v23981_v27  ;;  %v24696_v17 = vunpack.c.l.bf16 %v23984_v9 }
 0x432   : > { %v2642_v33 = vadd.f32 %v2641_v53, %v2640_v34  ;;  %v2643_v7 = vsel %vm622_vm12, %v24694_v16, 0.0  ;;  %v2594_v20 = vadd.f32 %v2593_v21, %v2592_v43  ;;  %v4564_v38 = vrot.slane %v23652_v29, 4 }
 0x433   : > { %v2645_v24 = vsel %vm622_vm12, %v24695_v41, 0.0  ;;  %v2647_v52 = vsel %vm622_vm12, %v24696_v17, 0.0  ;;  %v4565_v26 = vrot.slane %v2459_v63, 4  ;;  %v2619_v48 = vadd.f32 %v2618_v42, %v2617_v35 }
 0x434   : > { %v2644_v18 = vadd.f32 %v2643_v7, %v2642_v33  ;;  %v4567_v3 = vrot.slane %v23664_v8, 4  ;;  %v4568_v49 = vrot.slane %v2486_v4, 4  ;;  %v4570_v27 = vrot.slane %v23678_v60, 4 }
 0x435   : > { %v4566_v44 = vsel %vm2963_vm1, %v4564_v38, %v4565_v26  ;;  %v4571_v14 = vrot.slane %v2513_v6, 4  ;;  %v4573_v39 = vrot.slane %v23694_v0, 4  ;;  %v2621_v9 = vadd.f32 %v2620_v22, %v2619_v48 }
 0x436   : > { %v2646_v25 = vadd.f32 %v2645_v24, %v2644_v18  ;;  %v4569_v29 = vsel %vm2963_vm1, %v4567_v3, %v4568_v49  ;;  %v4574_v63 = vrot.slane %v2540_v55, 4  ;;  %v4576_v8 = vrot.slane %v23708_v54, 4 }
 0x437   : > { %v4572_v23 = vsel %vm2963_vm1, %v4570_v27, %v4571_v14  ;;  %v4577_v4 = vrot.slane %v2567_v19, 4  ;;  %v4579_v62 = vrot.slane %v23724_v36, 4  ;;  %v4580_v6 = vrot.slane %v2594_v20, 4 }
 0x438   : > { %v2648_v12 = vadd.f32 %v2647_v52, %v2646_v25  ;;  %v4575_v60 = vsel %vm2963_vm1, %v4573_v39, %v4574_v63  ;;  %v4582_v0 = vrot.slane %v23733_v47, 4  ;;  %v4583_v40 = vrot.slane %v2621_v9, 4 }
 0x439   : > { %v4578_v57 = vsel %vm2963_vm1, %v4576_v8, %v4577_v4  ;;  %v4585_v58 = vrot.slane %v23745_v1, 4  ;;  %v4596_v61 = vsel %vm2649_vm3, %v4566_v44, 0.0  ;;  %v4581_v45 = vsel %vm2963_vm1, %v4579_v62, %v4580_v6 }
 0x43a   : > { %v4586_v21 = vrot.slane %v2648_v12, 4  ;;  %v4597_v54 = vrot.slane %v4596_v61, 4  ;;  %v4603_v46 = vsel %vm2649_vm3, %v4569_v29, 0.0  ;;  %v4584_v36 = vsel %vm2963_vm1, %v4582_v0, %v4583_v40 }
 0x43b   : > { %v4604_v55 = vrot.slane %v4603_v46, 4  ;;  %v4610_v31 = vsel %vm2649_vm3, %v4572_v23, 0.0  ;;  %v4617_v47 = vsel %vm2649_vm3, %v4575_v60, 0.0  ;;  %v4624_v42 = vsel %vm2649_vm3, %v4578_v57, 0.0 }
 0x43c   : > { %v4587_v30 = vsel %vm2963_vm1, %v4585_v58, %v4586_v21  ;;  %v4598_v37 = vadd.f32 %v4597_v54, %v4596_v61  ;;  %v4611_v5 = vrot.slane %v4610_v31, 4  ;;  %v4618_v1 = vrot.slane %v4617_v47, 4 }
 0x43d   : > { %v4605_v28 = vadd.f32 %v4604_v55, %v4603_v46  ;;  %v4631_v22 = vsel %vm2649_vm3, %v4581_v45, 0.0  ;;  %v4638_v19 = vsel %vm2649_vm3, %v4584_v36, 0.0  ;;  %v4625_v13 = vrot.slane %v4624_v42, 4 }
 0x43e   : > { %v4599_v43 = vrot.slane %v4598_v37, 2  ;;  %v4612_v50 = vadd.f32 %v4611_v5, %v4610_v31  ;;  %v4619_v34 = vadd.f32 %v4618_v1, %v4617_v47  ;;  %v4632_v35 = vrot.slane %v4631_v22, 4  ;;  %v24697_v5 = vld [vmem:[#allocation22_spill] sm:$0xff] }
 0x43f   : > { %v4606_v53 = vrot.slane %v4605_v28, 2  ;;  %v4639_v33 = vrot.slane %v4638_v19, 4  ;;  %v4645_v16 = vsel %vm2649_vm3, %v4587_v30, 0.0  ;;  %v4626_v20 = vadd.f32 %v4625_v13, %v4624_v42 }
 0x440   : > { %v4600_v7 = vadd.f32 %v4599_v43, %v4598_v37  ;;  %v4613_v41 = vrot.slane %v4612_v50, 2  ;;  %v4620_v24 = vrot.slane %v4619_v34, 2  ;;  %v4633_v52 = vadd.f32 %v4632_v35, %v4631_v22  ;;  %v24698_v22 = vld [vmem:[#allocation24_spill] sm:$0xff] }
 0x441   : > { %v4607_v17 = vadd.f32 %v4606_v53, %v4605_v28  ;;  %v4640_v38 = vadd.f32 %v4639_v33, %v4638_v19  ;;  %v4646_v26 = vrot.slane %v4645_v16, 4  ;;  %v4627_v3 = vrot.slane %v4626_v20, 2  ;;  %v17580_v33 = vld [vmem:[#allocation7 + $0x1200] ss:$24 sps:$4 sm:$0xff]  }
 0x442   : > { %v4601_v10 = vrot.slane %v4600_v7, 1  ;;  %v4614_v48 = vadd.f32 %v4613_v41, %v4612_v50  ;;  %v4621_v18 = vadd.f32 %v4620_v24, %v4619_v34  ;;  %v4634_v44 = vrot.slane %v4633_v52, 2  ;;  %v17525_v24 = vld [vmem:[#allocation7 + $0x334] ss:$24 sps:$4 sm:$0xff]  }
 0x443   : > { %v4608_v49 = vrot.slane %v4607_v17, 1  ;;  %v4641_v27 = vrot.slane %v4640_v38, 2  ;;  %v4647_v14 = vadd.f32 %v4646_v26, %v4645_v16  ;;  %v4628_v29 = vadd.f32 %v4627_v3, %v4626_v20  ;;  %v17517_v16 = vld [vmem:[#allocation7 + $0x300] ss:$24 sps:$4 sm:$0xff]   ;;  %v17588_v20 = vld [vmem:[#allocation7 + $0x1234] ss:$24 sps:$4 sm:$0xff]  }
 0x444   : > { %v4602_v39 = vadd.f32 %v4601_v10, %v4600_v7  ;;  %v4615_v9 = vrot.slane %v4614_v48, 1  ;;  %v4622_v25 = vrot.slane %v4621_v18, 1  ;;  %v4635_v2 = vadd.f32 %v4634_v44, %v4633_v52  ;;  %v17523_v52 = vld [vmem:[#allocation7 + $0x330] ss:$24 sps:$4 sm:$0xff]   ;;  %v17531_v26 = vld [vmem:[#allocation7 + $0x364] ss:$24 sps:$4 sm:$0xff]  }
 0x445   : > { %v4609_v63 = vadd.f32 %v4608_v49, %v4607_v17  ;;  %v4642_v23 = vadd.f32 %v4641_v27, %v4640_v38  ;;  %v4648_v8 = vrot.slane %v4647_v14, 2  ;;  %v4629_v12 = vrot.slane %v4628_v29, 1  ;;  %v17586_v17 = vld [vmem:[#allocation7 + $0x1230] ss:$24 sps:$4 sm:$0xff]   ;;  %v17594_v38 = vld [vmem:[#allocation7 + $0x1264] ss:$24 sps:$4 sm:$0xff]  }
 0x446   : > { %v4616_v4 = vadd.f32 %v4615_v9, %v4614_v48  ;;  %v4623_v62 = vadd.f32 %v4622_v25, %v4621_v18  ;;  %v4636_v60 = vrot.slane %v4635_v2, 1  ;;  %v5259_v40 = vmax.f32 %v23857_v59, 0.0  ;;  %v17592_v10 = vld [vmem:[#allocation7 + $0x1260] ss:$24 sps:$4 sm:$0xff]   ;;  %v17600_v18 = vld [vmem:[#allocation7 + $0x1294] ss:$24 sps:$4 sm:$0xff]  }
 0x447   : > { %v4643_v6 = vrot.slane %v4642_v23, 1  ;;  %v4649_v0 = vadd.f32 %v4648_v8, %v4647_v14  ;;  %v5051_v57 = vsel %vm4660_vm4, %v4609_v63, %v4602_v39  ;;  %v4630_v58 = vadd.f32 %v4629_v12, %v4628_v29  ;;  %v17529_v48 = vld [vmem:[#allocation7 + $0x360] ss:$24 sps:$4 sm:$0xff]   ;;  %v17537_v3 = vld [vmem:[#allocation7 + $0x394] ss:$24 sps:$4 sm:$0xff]  }
 0x448   : > { %v5052_v61 = vsel %vm4662_vm5, %v4616_v4, %v5051_v57  ;;  %v4637_v45 = vadd.f32 %v4636_v60, %v4635_v2  ;;  %v24094_v30 = vpack.c.bf16 %v5259_v40, %v5259_v40  ;;  %v5168_v59 = vadd.f32 %v23839_v32, %v23543_v51  ;;  %v17598_v49 = vld [vmem:[#allocation7 + $0x1290] ss:$24 sps:$4 sm:$0xff]   ;;  %v17606_v27 = vld [vmem:[#allocation7 + $0x12c4] ss:$24 sps:$4 sm:$0xff]   ;;  %v17604_v39 = vld [vmem:[#allocation7 + $0x12c0] ss:$24 sps:$4 sm:$0xff]  }
 0x449   : > { %v4644_v21 = vadd.f32 %v4643_v6, %v4642_v23  ;;  %v4650_v54 = vrot.slane %v4649_v0, 1  ;;  %v5053_v46 = vsel %vm4664_vm6, %v4623_v62, %v5052_v61  ;;  %v5157_v1 = vadd.f32 %v23839_v32, %v24697_v5  ;;  %v17535_v44 = vld [vmem:[#allocation7 + $0x390] ss:$24 sps:$4 sm:$0xff]   ;;  %v17543_v14 = vld [vmem:[#allocation7 + $0x3c4] ss:$24 sps:$4 sm:$0xff]   ;;  %v24124_v40 = vpop.f32.mrb[28].mxu0 }
 0x44a   : > { %v5054_v36 = vsel %vm4666_vm7, %v4630_v58, %v5053_v46  ;;  %v5197_v42 = vadd.f32 %v23839_v32, %v23757_v11  ;;  %v5200_v19 = vadd.f32 %v23839_v32, %v24698_v22  ;;  %v5261_v43 = vmax.f32 %v5168_v59, 0.0  ;;  %v17541_v9 = vld [vmem:[#allocation7 + $0x3c0] ss:$24 sps:$4 sm:$0xff]   ;;  %v17612_v25 = vld [vmem:[#allocation7 + $0x12f4] ss:$24 sps:$4 sm:$0xff]   ;;  %v17173_v61 = vpop.f32.mrb[29].mxu0 }
 0x44b   : > { %v4651_v55 = vadd.f32 %v4650_v54, %v4649_v0  ;;  %v5055_v31 = vsel %vm4668_vm8, %v4637_v45, %v5054_v36  ;;  %v5208_v34 = vadd.f32 %v23839_v32, %v24066_v15  ;;  %v5258_v51 = vmax.f32 %v5157_v1, 0.0  ;;  %v17549_v29 = vld [vmem:[#allocation7 + $0x3f4] ss:$24 sps:$4 sm:$0xff]   ;;  %v17610_v63 = vld [vmem:[#allocation7 + $0x12f0] ss:$24 sps:$4 sm:$0xff]   ;;  %v5215_v46 = vpop.f32.mrb[30].mxu0 }
 0x44c   : > { %v5056_v47 = vsel %vm4670_vm9, %v4644_v21, %v5055_v31  ;;  %v5268_v50 = vmax.f32 %v5197_v42, 0.0  ;;  %v5269_v13 = vmax.f32 %v5200_v19, 0.0  ;;  %v24111_v11 = vpack.c.bf16 %v5261_v43, %v5261_v43  ;;  %v17547_v2 = vld [vmem:[#allocation7 + $0x3f0] ss:$24 sps:$4 sm:$0xff]   ;;  %v17618_v23 = vld [vmem:[#allocation7 + $0x1324] ss:$24 sps:$4 sm:$0xff]  }
 0x44d   : > { %v5057_v37 = vsel %vm4672_vm10, %v4651_v55, %v5056_v47  ;;  %v5271_v53 = vmax.f32 %v5208_v34, 0.0  ;;  %v24115_v41 = vpack.c.bf16 %v5258_v51, %v5258_v51  ;;  %v17555_v8 = vld [vmem:[#allocation7 + $0x424] ss:$24 sps:$4 sm:$0xff]   ;;  %v17616_v4 = vld [vmem:[#allocation7 + $0x1320] ss:$24 sps:$4 sm:$0xff]   ;;  %v17174_v55 = vpop.f32.mrb[31].mxu0 }
 0x44e   : > { %v5071_v28 = vpack.c.bf16 %v5057_v37, %v5057_v37  ;;  %v24109_v35 = vpack.c.bf16 %v5269_v13, %v5269_v13  ;;  %v24113_v7 = vpack.c.bf16 %v5268_v50, %v5268_v50  ;;  %v17553_v62 = vld [vmem:[#allocation7 + $0x420] ss:$24 sps:$4 sm:$0xff]   ;;  %v17624_v12 = vld [vmem:[#allocation7 + $0x1354] ss:$24 sps:$4 sm:$0xff]   ;;  %v17622_v6 = vld [vmem:[#allocation7 + $0x1350] ss:$24 sps:$4 sm:$0xff]  }
 0x44f   : > { %v24119_v15 = vpack.c.bf16 %v5271_v53, %v5271_v53  ;;  %v17561_v60 = vld [vmem:[#allocation7 + $0x454] ss:$24 sps:$4 sm:$0xff]   ;;  %v17559_v0 = vld [vmem:[#allocation7 + $0x450] ss:$24 sps:$4 sm:$0xff]   ;;  %v17630_v57 = vld [vmem:[#allocation7 + $0x1384] ss:$24 sps:$4 sm:$0xff]  }
 0x450   : > { %17192 = vmatmul.mubr.msk.bf16.gmra.mrb[48].mxu0 %vm603_vm2, %v5071_v28  ;;  %12777 = vmatprep.mubr.bf16.mxu1 %v24109_v35  ;;  %v17567_v58 = vld [vmem:[#allocation7 + $0x484] ss:$24 sps:$4 sm:$0xff]   ;;  %v17628_v45 = vld [vmem:[#allocation7 + $0x1380] ss:$24 sps:$4 sm:$0xff]   ;;  %v17636_v54 = vld [vmem:[#allocation7 + $0x13b4] ss:$24 sps:$4 sm:$0xff]  }
 0x451   : > { %12572 = vmatprep.mubr.bf16.mxu0 %v24094_v30  ;;  %12778 = vmatmul.mubr.bf16.vlgmr.msra.gmra.mrb[0].mxu1 %v24113_v7  ;;  %v17565_v21 = vld [vmem:[#allocation7 + $0x480] ss:$24 sps:$4 sm:$0xff]   ;;  %v17573_v36 = vld [vmem:[#allocation7 + $0x4b4] ss:$24 sps:$4 sm:$0xff]   ;;  %v17634_v31 = vld [vmem:[#allocation7 + $0x13b0] ss:$24 sps:$4 sm:$0xff]  }
 0x452   : > { %12787 = vmatpush1.bf16.msra.mxu1 %v17580_v33  ;;  %12818 = vmatprep.mubr.bf16.mxu1 %v24119_v15  ;;  %v17571_v47 = vld [vmem:[#allocation7 + $0x4b0] ss:$24 sps:$4 sm:$0xff]   ;;  %v17642_v37 = vld [vmem:[#allocation7 + $0x13e4] ss:$24 sps:$4 sm:$0xff]   ;;  %v17640_v5 = vld [vmem:[#allocation7 + $0x13e0] ss:$24 sps:$4 sm:$0xff]  }
 0x453   : > { %12788 = vmatprep.subr.bf16.mxu1 %v17588_v20  ;;  %v17579_v59 = vld [vmem:[#allocation7 + $0x4e4] ss:$24 sps:$4 sm:$0xff]   ;;  %v17577_v1 = vld [vmem:[#allocation7 + $0x4e0] ss:$24 sps:$4 sm:$0xff]   ;;  %v17648_v28 = vld [vmem:[#allocation7 + $0x1414] ss:$24 sps:$4 sm:$0xff]  }
 0x454   : > { %v17585_v42 = vld [vmem:[#allocation7 + $0x514] ss:$24 sps:$4 sm:$0xff]   ;;  %v17646_v22 = vld [vmem:[#allocation7 + $0x1410] ss:$24 sps:$4 sm:$0xff]   ;;  %v17654_v43 = vld [vmem:[#allocation7 + $0x1444] ss:$24 sps:$4 sm:$0xff]  }
 0x455   : > { %v17583_v19 = vld [vmem:[#allocation7 + $0x510] ss:$24 sps:$4 sm:$0xff]   ;;  %v17591_v50 = vld [vmem:[#allocation7 + $0x544] ss:$24 sps:$4 sm:$0xff]   ;;  %v17652_v34 = vld [vmem:[#allocation7 + $0x1440] ss:$24 sps:$4 sm:$0xff]  }
 0x456   : > { %12789 = vmatpush1.bf16.msra.mxu1 %v17586_v17  ;;  %v17589_v51 = vld [vmem:[#allocation7 + $0x540] ss:$24 sps:$4 sm:$0xff]   ;;  %v17660_v13 = vld [vmem:[#allocation7 + $0x1474] ss:$24 sps:$4 sm:$0xff]   ;;  %v17658_v33 = vld [vmem:[#allocation7 + $0x1470] ss:$24 sps:$4 sm:$0xff]  }
 0x457   : > { %12790 = vmatprep.subr.bf16.mxu1 %v17594_v38  ;;  %v17597_v53 = vld [vmem:[#allocation7 + $0x574] ss:$24 sps:$4 sm:$0xff]   ;;  %v17603_v20 = vld [vmem:[#allocation7 + $0x5a4] ss:$24 sps:$4 sm:$0xff]   ;;  %v17664_v17 = vld [vmem:[#allocation7 + $0x14a0] ss:$24 sps:$4 sm:$0xff]   ;;  %v5205_v38 = vadd.f32 %v23839_v32, %v24050_v56 }
 0x458   : > { %12573 = vmatmul.mubr.bf16.vlgmr.msra.gmra.mrb[52].mxu0 %v24115_v41  ;;  %v17688_v61 = vld [vmem:[#allocation7 + $0x1560] ss:$24 sps:$4 sm:$0xff]   ;;  %v17702_v55 = vld [vmem:[#allocation7 + $0x15c4] ss:$24 sps:$4 sm:$0xff]  }
 0x459   : > { %12582 = vmatpush1.bf16.msra.mxu0 %v17517_v16  ;;  %12613 = vmatprep.mubr.bf16.mxu0 %v24111_v11  ;;  %v17595_v16 = vld [vmem:[#allocation7 + $0x570] ss:$24 sps:$4 sm:$0xff]  }
 0x45a   : > { %12583 = vmatprep.subr.bf16.mxu0 %v17525_v24  ;;  %12791 = vmatpush1.bf16.msra.mxu1 %v17592_v10  ;;  %v17666_v24 = vld [vmem:[#allocation7 + $0x14a4] ss:$24 sps:$4 sm:$0xff]  }
 0x45b   : > { %12792 = vmatprep.subr.bf16.mxu1 %v17600_v18  ;;  %v24699_v10 = vld [vmem:[#allocation20_spill] sm:$0xff]  ;;  %v17609_v18 = vld [vmem:[#allocation7 + $0x5d4] ss:$24 sps:$4 sm:$0xff]  }
 0x45d   : > { %12584 = vmatpush1.bf16.msra.mxu0 %v17523_v52  ;;  %v17601_v52 = vld [vmem:[#allocation7 + $0x5a0] ss:$24 sps:$4 sm:$0xff]  }
 0x45e   : > { %12585 = vmatprep.subr.bf16.mxu0 %v17531_v26  ;;  %12793 = vmatpush1.bf16.msra.mxu1 %v17598_v49  ;;  %v17672_v26 = vld [vmem:[#allocation7 + $0x14d4] ss:$24 sps:$4 sm:$0xff]  }
 0x45f   : > { %12794 = vmatprep.subr.bf16.mxu1 %v17606_v27  ;;  %v17670_v27 = vld [vmem:[#allocation7 + $0x14d0] ss:$24 sps:$4 sm:$0xff]  }
 0x461   : > { %12586 = vmatpush1.bf16.msra.mxu0 %v17529_v48  ;;  %v5165_v48 = vadd.f32 %v23839_v32, %v24699_v10 }
 0x462   : > { %12587 = vmatprep.subr.bf16.mxu0 %v17537_v3  ;;  %12795 = vmatpush1.bf16.msra.mxu1 %v17604_v39  ;;  %v24700_v3 = vld [vmem:[#allocation30_spill] sm:$0xff]  ;;  %v5270_v39 = vmax.f32 %v5205_v38, 0.0 }
 0x463   : > { %12796 = vmatprep.subr.bf16.mxu1 %v17612_v25  ;;  %v5176_v49 = vadd.f32 %v23839_v32, %v24700_v3  ;;  %v5260_v56 = vmax.f32 %v5165_v48, 0.0  ;;  %v17615_v25 = vld [vmem:[#allocation7 + $0x604] ss:$24 sps:$4 sm:$0xff]   ;;  %v17730_v48 = vld [vmem:[#allocation7 + $0x16b0] ss:$24 sps:$4 sm:$0xff]  }
 0x464   : > { %v17738_v3 = vld [vmem:[#allocation7 + $0x16e4] ss:$24 sps:$4 sm:$0xff]  }
 0x465   : > { %12588 = vmatpush1.bf16.msra.mxu0 %v17535_v44  ;;  %v5216_v44 = vadd.f32 %v23839_v32, %v5215_v46  ;;  %v24135_v32 = vpack.c.bf16 %v5260_v56, %v5260_v56  ;;  %v17694_v46 = vld [vmem:[#allocation7 + $0x1590] ss:$24 sps:$4 sm:$0xff]  }
 0x466   : > { %12589 = vmatprep.subr.bf16.mxu0 %v17543_v14  ;;  %12797 = vmatpush1.bf16.msra.mxu1 %v17610_v63  ;;  %v17607_v14 = vld [vmem:[#allocation7 + $0x5d0] ss:$24 sps:$4 sm:$0xff]  }
 0x467   : > { %12798 = vmatprep.subr.bf16.mxu1 %v17618_v23  ;;  %v5273_v63 = vmax.f32 %v5216_v44, 0.0  ;;  %v17613_v23 = vld [vmem:[#allocation7 + $0x600] ss:$24 sps:$4 sm:$0xff]   ;;  %v17679_v56 = vld [vmem:[#allocation7 + $0x810] ss:$24 sps:$4 sm:$0xff]  }
 0x468   : > { %v17736_v44 = vld [vmem:[#allocation7 + $0x16e0] ss:$24 sps:$4 sm:$0xff]  }
 0x469   : > { %12590 = vmatpush1.bf16.msra.mxu0 %v17541_v9  ;;  %v17678_v9 = vld [vmem:[#allocation7 + $0x1504] ss:$24 sps:$4 sm:$0xff]  }
 0x46a   : > { %12591 = vmatprep.subr.bf16.mxu0 %v17549_v29  ;;  %12799 = vmatpush1.bf16.msra.mxu1 %v17616_v4  ;;  %v5263_v29 = vmax.f32 %v5176_v49, 0.0  ;;  %v17621_v4 = vld [vmem:[#allocation7 + $0x634] ss:$24 sps:$4 sm:$0xff]   ;;  %v17675_v49 = vld [vmem:[#allocation7 + $0x7e4] ss:$24 sps:$4 sm:$0xff]  }
 0x46b   : > { %12800 = vmatprep.subr.bf16.mxu1 %v17624_v12 }
 0x46c   : > { %v24137_v12 = vpack.c.bf16 %v5263_v29, %v5263_v29  ;;  %v17687_v29 = vld [vmem:[#allocation7 + $0x844] ss:$24 sps:$4 sm:$0xff]  }
 0x46d   : > { %12592 = vmatpush1.bf16.msra.mxu0 %v17547_v2  ;;  %v17676_v2 = vld [vmem:[#allocation7 + $0x1500] ss:$24 sps:$4 sm:$0xff]  }
 0x46e   : > { %12593 = vmatprep.subr.bf16.mxu0 %v17555_v8  ;;  %12801 = vmatpush1.bf16.msra.mxu1 %v17622_v6  ;;  %v24133_v8 = vpack.c.bf16 %v5270_v39, %v5270_v39  ;;  %v17682_v6 = vld [vmem:[#allocation7 + $0x1530] ss:$24 sps:$4 sm:$0xff]   ;;  %v17681_v39 = vld [vmem:[#allocation7 + $0x814] ss:$24 sps:$4 sm:$0xff]  }
 0x46f   : > { %12802 = vmatprep.subr.bf16.mxu1 %v17630_v57  ;;  %v17690_v57 = vld [vmem:[#allocation7 + $0x1564] ss:$24 sps:$4 sm:$0xff]  }
 0x471   : > { %12594 = vmatpush1.bf16.msra.mxu0 %v17553_v62  ;;  %v17684_v62 = vld [vmem:[#allocation7 + $0x1534] ss:$24 sps:$4 sm:$0xff]  }
 0x472   : > { %12595 = vmatprep.subr.bf16.mxu0 %v17561_v60  ;;  %12803 = vmatpush1.bf16.msra.mxu1 %v17628_v45  ;;  %v24140_v60 = vpack.c.bf16 %v5273_v63, %v5273_v63  ;;  %v17625_v45 = vld [vmem:[#allocation7 + $0x660] ss:$24 sps:$4 sm:$0xff]  }
 0x473   : > { %12804 = vmatprep.subr.bf16.mxu1 %v17636_v54  ;;  %v17633_v54 = vld [vmem:[#allocation7 + $0x694] ss:$24 sps:$4 sm:$0xff]   ;;  %v17748_v63 = vld [vmem:[#allocation7 + $0x1740] ss:$24 sps:$4 sm:$0xff]  }
 0x475   : > { %12596 = vmatpush1.bf16.msra.mxu0 %v17559_v0  ;;  %v17619_v0 = vld [vmem:[#allocation7 + $0x630] ss:$24 sps:$4 sm:$0xff]  }
 0x476   : > { %12597 = vmatprep.subr.bf16.mxu0 %v17567_v58  ;;  %12805 = vmatpush1.bf16.msra.mxu1 %v17634_v31  ;;  %v17627_v58 = vld [vmem:[#allocation7 + $0x664] ss:$24 sps:$4 sm:$0xff]  }
 0x477   : > { %12806 = vmatprep.subr.bf16.mxu1 %v17642_v37  ;;  %v17639_v31 = vld [vmem:[#allocation7 + $0x6c4] ss:$24 sps:$4 sm:$0xff]   ;;  %v17637_v37 = vld [vmem:[#allocation7 + $0x6c0] ss:$24 sps:$4 sm:$0xff]  }
 0x479   : > { %12598 = vmatpush1.bf16.msra.mxu0 %v17565_v21  ;;  %v17696_v21 = vld [vmem:[#allocation7 + $0x1594] ss:$24 sps:$4 sm:$0xff]  }
 0x47a   : > { %12599 = vmatprep.subr.bf16.mxu0 %v17573_v36  ;;  %12807 = vmatpush1.bf16.msra.mxu1 %v17640_v5  ;;  %v17631_v36 = vld [vmem:[#allocation7 + $0x690] ss:$24 sps:$4 sm:$0xff]   ;;  %v17645_v5 = vld [vmem:[#allocation7 + $0x6f4] ss:$24 sps:$4 sm:$0xff]  }
 0x47b   : > { %12808 = vmatprep.subr.bf16.mxu1 %v17648_v28  ;;  %v17643_v28 = vld [vmem:[#allocation7 + $0x6f0] ss:$24 sps:$4 sm:$0xff]  }
 0x47d   : > { %12600 = vmatpush1.bf16.msra.mxu0 %v17571_v47  ;;  %v17700_v47 = vld [vmem:[#allocation7 + $0x15c0] ss:$24 sps:$4 sm:$0xff]  }
 0x47e   : > { %12601 = vmatprep.subr.bf16.mxu0 %v17579_v59  ;;  %12809 = vmatpush1.bf16.msra.mxu1 %v17646_v22  ;;  %v17708_v59 = vld [vmem:[#allocation7 + $0x15f4] ss:$24 sps:$4 sm:$0xff]   ;;  %v17651_v22 = vld [vmem:[#allocation7 + $0x724] ss:$24 sps:$4 sm:$0xff]  }
 0x47f   : > { %12810 = vmatprep.subr.bf16.mxu1 %v17654_v43  ;;  %v17649_v43 = vld [vmem:[#allocation7 + $0x720] ss:$24 sps:$4 sm:$0xff]  }
 0x481   : > { %12602 = vmatpush1.bf16.msra.mxu0 %v17577_v1  ;;  %v17706_v1 = vld [vmem:[#allocation7 + $0x15f0] ss:$24 sps:$4 sm:$0xff]  }
 0x482   : > { %12603 = vmatprep.subr.bf16.mxu0 %v17585_v42  ;;  %12811 = vmatpush1.bf16.msra.mxu1 %v17652_v34  ;;  %v17714_v42 = vld [vmem:[#allocation7 + $0x1624] ss:$24 sps:$4 sm:$0xff]   ;;  %v17657_v34 = vld [vmem:[#allocation7 + $0x754] ss:$24 sps:$4 sm:$0xff]  }
 0x483   : > { %12812 = vmatprep.subr.bf16.mxu1 %v17660_v13  ;;  %v17655_v13 = vld [vmem:[#allocation7 + $0x750] ss:$24 sps:$4 sm:$0xff]  }
 0x485   : > { %12604 = vmatpush1.bf16.msra.mxu0 %v17583_v19  ;;  %v17712_v19 = vld [vmem:[#allocation7 + $0x1620] ss:$24 sps:$4 sm:$0xff]  }
 0x486   : > { %12605 = vmatprep.subr.bf16.mxu0 %v17591_v50  ;;  %12813 = vmatpush1.bf16.msra.mxu1 %v17658_v33  ;;  %v17720_v50 = vld [vmem:[#allocation7 + $0x1654] ss:$24 sps:$4 sm:$0xff]   ;;  %v24145_v33 = vpop.f32.mrb[32].mxu0 }
 0x487   : > { %12814 = vmatprep.subr.bf16.mxu1 %v17666_v24  ;;  %v17177_v24 = vpop.f32.mrb[33].mxu0 }
 0x488   : > { %v5223_v38 = vpop.f32.mrb[34].mxu0 }
 0x489   : > { %12606 = vmatpush1.bf16.msra.mxu0 %v17589_v51  ;;  %v17718_v51 = vld [vmem:[#allocation7 + $0x1650] ss:$24 sps:$4 sm:$0xff]   ;;  %v17178_v10 = vpop.f32.mrb[35].mxu0 }
 0x48a   : > { %12607 = vmatprep.subr.bf16.mxu0 %v17597_v53  ;;  %12815 = vmatpush1.bf16.msra.mxu1 %v17664_v17  ;;  %v17726_v53 = vld [vmem:[#allocation7 + $0x1684] ss:$24 sps:$4 sm:$0xff]   ;;  %v17661_v17 = vld [vmem:[#allocation7 + $0x780] ss:$24 sps:$4 sm:$0xff]  }
 0x48b   : > { %12816 = vmatprep.subr.bf16.mxu1 %v17672_v26  ;;  %v17669_v26 = vld [vmem:[#allocation7 + $0x7b4] ss:$24 sps:$4 sm:$0xff]   ;;  %v17721_v10 = vld [vmem:[#allocation7 + $0x960] ss:$24 sps:$4 sm:$0xff]  }
 0x48d   : > { %12608 = vmatpush1.bf16.msra.mxu0 %v17595_v16  ;;  %v17663_v16 = vld [vmem:[#allocation7 + $0x784] ss:$24 sps:$4 sm:$0xff]  }
 0x48e   : > { %12609 = vmatprep.subr.bf16.mxu0 %v17603_v20  ;;  %12817 = vmatpush1.bf16.msra.mxu1 %v17670_v27  ;;  %v17724_v20 = vld [vmem:[#allocation7 + $0x1680] ss:$24 sps:$4 sm:$0xff]  }
 0x48f   : > { %12827 = vmatprep.subr.bf16.mxu1 %v17678_v9  ;;  %v17673_v27 = vld [vmem:[#allocation7 + $0x7e0] ss:$24 sps:$4 sm:$0xff]   ;;  %v17742_v9 = vld [vmem:[#allocation7 + $0x1710] ss:$24 sps:$4 sm:$0xff]  }
 0x491   : > { %12610 = vmatpush1.bf16.msra.mxu0 %v17601_v52  ;;  %12819 = vmatmul.mubr.bf16.vlgmr.msra.gmra.mrb[0].mxu1 %v24133_v8  ;;  %v17732_v52 = vld [vmem:[#allocation7 + $0x16b4] ss:$24 sps:$4 sm:$0xff]  }
 0x492   : > { %12611 = vmatprep.subr.bf16.mxu0 %v17609_v18  ;;  %12828 = vmatpush1.bf16.msra.mxu1 %v17676_v2  ;;  %v17667_v18 = vld [vmem:[#allocation7 + $0x7b0] ss:$24 sps:$4 sm:$0xff]   ;;  %v17685_v2 = vld [vmem:[#allocation7 + $0x840] ss:$24 sps:$4 sm:$0xff]  }
 0x493   : > { %12829 = vmatprep.subr.bf16.mxu1 %v17684_v62  ;;  %12859 = vmatprep.mubr.bf16.mxu1 %v24140_v60  ;;  %v17754_v62 = vld [vmem:[#allocation7 + $0x1770] ss:$24 sps:$4 sm:$0xff]  }
 0x495   : > { %12612 = vmatpush1.bf16.msra.mxu0 %v17607_v14  ;;  %v17744_v14 = vld [vmem:[#allocation7 + $0x1714] ss:$24 sps:$4 sm:$0xff]  }
 0x496   : > { %12622 = vmatprep.subr.bf16.mxu0 %v17615_v25  ;;  %12830 = vmatpush1.bf16.msra.mxu1 %v17682_v6  ;;  %v17750_v25 = vld [vmem:[#allocation7 + $0x1744] ss:$24 sps:$4 sm:$0xff]   ;;  %v17691_v6 = vld [vmem:[#allocation7 + $0x870] ss:$24 sps:$4 sm:$0xff]  }
 0x497   : > { %12831 = vmatprep.subr.bf16.mxu1 %v17690_v57  ;;  %v17699_v57 = vld [vmem:[#allocation7 + $0x8a4] ss:$24 sps:$4 sm:$0xff]  }
 0x498   : > { %12614 = vmatmul.mubr.bf16.vlgmr.msra.gmra.mrb[52].mxu0 %v24135_v32 }
 0x499   : > { %12623 = vmatpush1.bf16.msra.mxu0 %v17613_v23  ;;  %12654 = vmatprep.mubr.bf16.mxu0 %v24137_v12  ;;  %v17756_v23 = vld [vmem:[#allocation7 + $0x1774] ss:$24 sps:$4 sm:$0xff]  }
 0x49a   : > { %12624 = vmatprep.subr.bf16.mxu0 %v17621_v4  ;;  %12832 = vmatpush1.bf16.msra.mxu1 %v17688_v61  ;;  %v17693_v4 = vld [vmem:[#allocation7 + $0x874] ss:$24 sps:$4 sm:$0xff]   ;;  %v17697_v61 = vld [vmem:[#allocation7 + $0x8a0] ss:$24 sps:$4 sm:$0xff]  }
 0x49b   : > { %12833 = vmatprep.subr.bf16.mxu1 %v17696_v21 }
 0x49d   : > { %12625 = vmatpush1.bf16.msra.mxu0 %v17619_v0  ;;  %v17762_v0 = vld [vmem:[#allocation7 + $0x17a4] ss:$24 sps:$4 sm:$0xff]  }
 0x49e   : > { %12626 = vmatprep.subr.bf16.mxu0 %v17627_v58  ;;  %12834 = vmatpush1.bf16.msra.mxu1 %v17694_v46  ;;  %v17760_v58 = vld [vmem:[#allocation7 + $0x17a0] ss:$24 sps:$4 sm:$0xff]  }
 0x49f   : > { %12835 = vmatprep.subr.bf16.mxu1 %v17702_v55  ;;  %v24701_v46 = vld [vmem:[#allocation29_spill] sm:$0xff]  ;;  %v17705_v55 = vld [vmem:[#allocation7 + $0x8d4] ss:$24 sps:$4 sm:$0xff]  }
 0x4a1   : > { %12627 = vmatpush1.bf16.msra.mxu0 %v17625_v45  ;;  %v24147_v45 = vld [vmem:[#allocation5] ss:$0 sm:$0xff] }
 0x4a2   : > { %12628 = vmatprep.subr.bf16.mxu0 %v17633_v54  ;;  %12836 = vmatpush1.bf16.msra.mxu1 %v17700_v47  ;;  %v5213_v21 = vadd.f32 %v24147_v45, %v24124_v40  ;;  %v17768_v54 = vld [vmem:[#allocation7 + $0x17d4] ss:$24 sps:$4 sm:$0xff]  }
 0x4a3   : > { %12837 = vmatprep.subr.bf16.mxu1 %v17708_v59  ;;  %v17766_v59 = vld [vmem:[#allocation7 + $0x17d0] ss:$24 sps:$4 sm:$0xff]  }
 0x4a5   : > { %12629 = vmatpush1.bf16.msra.mxu0 %v17631_v36  ;;  %v5173_v36 = vadd.f32 %v24147_v45, %v24701_v46  ;;  %v17820_v46 = vld [vmem:[#allocation7 + $0x1980] ss:$24 sps:$4 sm:$0xff]  }
 0x4a6   : > { %12630 = vmatprep.subr.bf16.mxu0 %v17639_v31  ;;  %12838 = vmatpush1.bf16.msra.mxu1 %v17706_v1  ;;  %v24702_v31 = vld [vmem:[#allocation32_spill] sm:$0xff]  ;;  %v5272_v1 = vmax.f32 %v5213_v21, 0.0 }
 0x4a7   : > { %12839 = vmatprep.subr.bf16.mxu1 %v17714_v42  ;;  %v5184_v47 = vadd.f32 %v24147_v45, %v24702_v31  ;;  %v5262_v40 = vmax.f32 %v5173_v36, 0.0  ;;  %v17711_v42 = vld [vmem:[#allocation7 + $0x904] ss:$24 sps:$4 sm:$0xff]   ;;  %v17757_v36 = vld [vmem:[#allocation7 + $0xa80] ss:$24 sps:$4 sm:$0xff]  }
 0x4a8   : > { %v17759_v21 = vld [vmem:[#allocation7 + $0xa84] ss:$24 sps:$4 sm:$0xff]  }
 0x4a9   : > { %12631 = vmatpush1.bf16.msra.mxu0 %v17637_v37  ;;  %v5224_v37 = vadd.f32 %v24147_v45, %v5223_v38  ;;  %v17723_v38 = vld [vmem:[#allocation7 + $0x964] ss:$24 sps:$4 sm:$0xff]  }
 0x4aa   : > { %12632 = vmatprep.subr.bf16.mxu0 %v17645_v5  ;;  %12840 = vmatpush1.bf16.msra.mxu1 %v17712_v19  ;;  %v17703_v5 = vld [vmem:[#allocation7 + $0x8d0] ss:$24 sps:$4 sm:$0xff]  }
 0x4ab   : > { %12841 = vmatprep.subr.bf16.mxu1 %v17720_v50  ;;  %v5275_v19 = vmax.f32 %v5224_v37, 0.0  ;;  %v17709_v50 = vld [vmem:[#allocation7 + $0x900] ss:$24 sps:$4 sm:$0xff]  }
 0x4ad   : > { %12633 = vmatpush1.bf16.msra.mxu0 %v17643_v28  ;;  %v17774_v28 = vld [vmem:[#allocation7 + $0x1804] ss:$24 sps:$4 sm:$0xff]   ;;  %v24163_v24 = vpack.c.bf16 %v5275_v19, %v5275_v19  ;;  %v17777_v19 = vld [vmem:[#allocation7 + $0xb14] ss:$24 sps:$4 sm:$0xff]  }
 0x4ae   : > { %12634 = vmatprep.subr.bf16.mxu0 %v17651_v22  ;;  %12842 = vmatpush1.bf16.msra.mxu1 %v17718_v51  ;;  %v5265_v22 = vmax.f32 %v5184_v47, 0.0  ;;  %v24158_v51 = vpack.c.bf16 %v5262_v40, %v5262_v40  ;;  %v17765_v47 = vld [vmem:[#allocation7 + $0xab4] ss:$24 sps:$4 sm:$0xff]   ;;  %v17832_v40 = vld [vmem:[#allocation7 + $0x19e0] ss:$24 sps:$4 sm:$0xff]  }
 0x4af   : > { %12843 = vmatprep.subr.bf16.mxu1 %v17726_v53  ;;  %v17780_v53 = vld [vmem:[#allocation7 + $0x1834] ss:$24 sps:$4 sm:$0xff]  }
 0x4b1   : > { %12635 = vmatpush1.bf16.msra.mxu0 %v17649_v43  ;;  %v17772_v43 = vld [vmem:[#allocation7 + $0x1800] ss:$24 sps:$4 sm:$0xff]  }
 0x4b2   : > { %12636 = vmatprep.subr.bf16.mxu0 %v17657_v34  ;;  %12844 = vmatpush1.bf16.msra.mxu1 %v17724_v20  ;;  %v24156_v34 = vpack.c.bf16 %v5272_v1, %v5272_v1  ;;  %v17778_v20 = vld [vmem:[#allocation7 + $0x1830] ss:$24 sps:$4 sm:$0xff]   ;;  %v17834_v1 = vld [vmem:[#allocation7 + $0x19e4] ss:$24 sps:$4 sm:$0xff]  }
 0x4b3   : > { %12845 = vmatprep.subr.bf16.mxu1 %v17732_v52  ;;  %v17786_v52 = vld [vmem:[#allocation7 + $0x1864] ss:$24 sps:$4 sm:$0xff]  }
 0x4b5   : > { %12637 = vmatpush1.bf16.msra.mxu0 %v17655_v13  ;;  %v17717_v13 = vld [vmem:[#allocation7 + $0x934] ss:$24 sps:$4 sm:$0xff]  }
 0x4b6   : > { %12638 = vmatprep.subr.bf16.mxu0 %v17663_v16  ;;  %12846 = vmatpush1.bf16.msra.mxu1 %v17730_v48  ;;  %v24160_v16 = vpack.c.bf16 %v5265_v22, %v5265_v22  ;;  %v17792_v48 = vld [vmem:[#allocation7 + $0x1894] ss:$24 sps:$4 sm:$0xff]  }
 0x4b7   : > { %12847 = vmatprep.subr.bf16.mxu1 %v17738_v3  ;;  %v17790_v3 = vld [vmem:[#allocation7 + $0x1890] ss:$24 sps:$4 sm:$0xff]   ;;  %v17840_v22 = vld [vmem:[#allocation7 + $0x1a14] ss:$24 sps:$4 sm:$0xff]  }
 0x4b9   : > { %12639 = vmatpush1.bf16.msra.mxu0 %v17661_v17  ;;  %v17715_v17 = vld [vmem:[#allocation7 + $0x930] ss:$24 sps:$4 sm:$0xff]  }
 0x4ba   : > { %12640 = vmatprep.subr.bf16.mxu0 %v17669_v26  ;;  %12848 = vmatpush1.bf16.msra.mxu1 %v17736_v44  ;;  %v17784_v26 = vld [vmem:[#allocation7 + $0x1860] ss:$24 sps:$4 sm:$0xff]   ;;  %v17798_v44 = vld [vmem:[#allocation7 + $0x18c4] ss:$24 sps:$4 sm:$0xff]  }
 0x4bb   : > { %12849 = vmatprep.subr.bf16.mxu1 %v17744_v14  ;;  %v17796_v14 = vld [vmem:[#allocation7 + $0x18c0] ss:$24 sps:$4 sm:$0xff]  }
 0x4bd   : > { %12641 = vmatpush1.bf16.msra.mxu0 %v17667_v18  ;;  %v17729_v18 = vld [vmem:[#allocation7 + $0x994] ss:$24 sps:$4 sm:$0xff]  }
 0x4be   : > { %12642 = vmatprep.subr.bf16.mxu0 %v17675_v49  ;;  %12850 = vmatpush1.bf16.msra.mxu1 %v17742_v9  ;;  %v17727_v49 = vld [vmem:[#allocation7 + $0x990] ss:$24 sps:$4 sm:$0xff]   ;;  %v17804_v9 = vld [vmem:[#allocation7 + $0x18f4] ss:$24 sps:$4 sm:$0xff]  }
 0x4bf   : > { %12851 = vmatprep.subr.bf16.mxu1 %v17750_v25  ;;  %v17802_v25 = vld [vmem:[#allocation7 + $0x18f0] ss:$24 sps:$4 sm:$0xff]  }
 0x4c1   : > { %12643 = vmatpush1.bf16.msra.mxu0 %v17673_v27  ;;  %v17735_v27 = vld [vmem:[#allocation7 + $0x9c4] ss:$24 sps:$4 sm:$0xff]  }
 0x4c2   : > { %12644 = vmatprep.subr.bf16.mxu0 %v17681_v39  ;;  %12852 = vmatpush1.bf16.msra.mxu1 %v17748_v63  ;;  %v17733_v39 = vld [vmem:[#allocation7 + $0x9c0] ss:$24 sps:$4 sm:$0xff]   ;;  %v17810_v63 = vld [vmem:[#allocation7 + $0x1924] ss:$24 sps:$4 sm:$0xff]  }
 0x4c3   : > { %12853 = vmatprep.subr.bf16.mxu1 %v17756_v23  ;;  %v17808_v23 = vld [vmem:[#allocation7 + $0x1920] ss:$24 sps:$4 sm:$0xff]  }
 0x4c5   : > { %12645 = vmatpush1.bf16.msra.mxu0 %v17679_v56  ;;  %v17741_v56 = vld [vmem:[#allocation7 + $0x9f4] ss:$24 sps:$4 sm:$0xff]  }
 0x4c6   : > { %12646 = vmatprep.subr.bf16.mxu0 %v17687_v29  ;;  %12854 = vmatpush1.bf16.msra.mxu1 %v17754_v62  ;;  %v17739_v29 = vld [vmem:[#allocation7 + $0x9f0] ss:$24 sps:$4 sm:$0xff]   ;;  %v17816_v62 = vld [vmem:[#allocation7 + $0x1954] ss:$24 sps:$4 sm:$0xff]  }
 0x4c7   : > { %12855 = vmatprep.subr.bf16.mxu1 %v17762_v0  ;;  %v17814_v0 = vld [vmem:[#allocation7 + $0x1950] ss:$24 sps:$4 sm:$0xff]  }
 0x4c9   : > { %12647 = vmatpush1.bf16.msra.mxu0 %v17685_v2  ;;  %v17747_v2 = vld [vmem:[#allocation7 + $0xa24] ss:$24 sps:$4 sm:$0xff]  }
 0x4ca   : > { %12648 = vmatprep.subr.bf16.mxu0 %v17693_v4  ;;  %12856 = vmatpush1.bf16.msra.mxu1 %v17760_v58  ;;  %v17745_v4 = vld [vmem:[#allocation7 + $0xa20] ss:$24 sps:$4 sm:$0xff]   ;;  %v17822_v58 = vld [vmem:[#allocation7 + $0x1984] ss:$24 sps:$4 sm:$0xff]  }
 0x4cb   : > { %12857 = vmatprep.subr.bf16.mxu1 %v17768_v54 }
 0x4cd   : > { %12649 = vmatpush1.bf16.msra.mxu0 %v17691_v6  ;;  %v17753_v6 = vld [vmem:[#allocation7 + $0xa54] ss:$24 sps:$4 sm:$0xff]  }
 0x4ce   : > { %12650 = vmatprep.subr.bf16.mxu0 %v17699_v57  ;;  %12858 = vmatpush1.bf16.msra.mxu1 %v17766_v59  ;;  %v17751_v57 = vld [vmem:[#allocation7 + $0xa50] ss:$24 sps:$4 sm:$0xff]  }
 0x4cf   : > { %12868 = vmatprep.subr.bf16.mxu1 %v17774_v28  ;;  %v17826_v59 = vld [vmem:[#allocation7 + $0x19b0] ss:$24 sps:$4 sm:$0xff]   ;;  %v17771_v28 = vld [vmem:[#allocation7 + $0xae4] ss:$24 sps:$4 sm:$0xff]  }
 0x4d1   : > { %12651 = vmatpush1.bf16.msra.mxu0 %v17697_v61  ;;  %12860 = vmatmul.mubr.bf16.vlgmr.msra.gmra.mrb[0].mxu1 %v24156_v34  ;;  %v24168_v61 = vpop.f32.mrb[36].mxu0 }
 0x4d2   : > { %12652 = vmatprep.subr.bf16.mxu0 %v17705_v55  ;;  %12869 = vmatpush1.bf16.msra.mxu1 %v17772_v43  ;;  %v17181_v54 = vpop.f32.mrb[37].mxu0  ;;  %v17828_v55 = vld [vmem:[#allocation7 + $0x19b4] ss:$24 sps:$4 sm:$0xff]   ;;  %v17838_v43 = vld [vmem:[#allocation7 + $0x1a10] ss:$24 sps:$4 sm:$0xff]  }
 0x4d3   : > { %12870 = vmatprep.subr.bf16.mxu1 %v17780_v53  ;;  %12900 = vmatprep.mubr.bf16.mxu1 %v24163_v24  ;;  %v5231_v31 = vpop.f32.mrb[38].mxu0  ;;  %v17783_v53 = vld [vmem:[#allocation7 + $0xb44] ss:$24 sps:$4 sm:$0xff]  }
 0x4d4   : > { %v17182_v37 = vpop.f32.mrb[39].mxu0 }
 0x4d5   : > { %12653 = vmatpush1.bf16.msra.mxu0 %v17703_v5  ;;  %v17763_v5 = vld [vmem:[#allocation7 + $0xab0] ss:$24 sps:$4 sm:$0xff]  }
 0x4d6   : > { %12663 = vmatprep.subr.bf16.mxu0 %v17711_v42  ;;  %12871 = vmatpush1.bf16.msra.mxu1 %v17778_v20  ;;  %v17769_v42 = vld [vmem:[#allocation7 + $0xae0] ss:$24 sps:$4 sm:$0xff]   ;;  %v17811_v37 = vld [vmem:[#allocation7 + $0xc30] ss:$24 sps:$4 sm:$0xff]  }
 0x4d7   : > { %12872 = vmatprep.subr.bf16.mxu1 %v17786_v52  ;;  %v17844_v20 = vld [vmem:[#allocation7 + $0x1a40] ss:$24 sps:$4 sm:$0xff]   ;;  %v17852_v52 = vld [vmem:[#allocation7 + $0x1a74] ss:$24 sps:$4 sm:$0xff]  }
 0x4d8   : > { %12655 = vmatmul.mubr.bf16.vlgmr.msra.gmra.mrb[52].mxu0 %v24158_v51 }
 0x4d9   : > { %12664 = vmatpush1.bf16.msra.mxu0 %v17709_v50  ;;  %12695 = vmatprep.mubr.bf16.mxu0 %v24160_v16  ;;  %v17775_v50 = vld [vmem:[#allocation7 + $0xb10] ss:$24 sps:$4 sm:$0xff]  }
 0x4da   : > { %12665 = vmatprep.subr.bf16.mxu0 %v17717_v13  ;;  %12873 = vmatpush1.bf16.msra.mxu1 %v17784_v26  ;;  %v17846_v13 = vld [vmem:[#allocation7 + $0x1a44] ss:$24 sps:$4 sm:$0xff]   ;;  %v17850_v26 = vld [vmem:[#allocation7 + $0x1a70] ss:$24 sps:$4 sm:$0xff]  }
 0x4db   : > { %12874 = vmatprep.subr.bf16.mxu1 %v17792_v48  ;;  %v17858_v48 = vld [vmem:[#allocation7 + $0x1aa4] ss:$24 sps:$4 sm:$0xff]  }
 0x4dd   : > { %12666 = vmatpush1.bf16.msra.mxu0 %v17715_v17  ;;  %v17781_v17 = vld [vmem:[#allocation7 + $0xb40] ss:$24 sps:$4 sm:$0xff]  }
 0x4de   : > { %12667 = vmatprep.subr.bf16.mxu0 %v17723_v38  ;;  %12875 = vmatpush1.bf16.msra.mxu1 %v17790_v3  ;;  %v17789_v38 = vld [vmem:[#allocation7 + $0xb74] ss:$24 sps:$4 sm:$0xff]   ;;  %v17856_v3 = vld [vmem:[#allocation7 + $0x1aa0] ss:$24 sps:$4 sm:$0xff]  }
 0x4df   : > { %12876 = vmatprep.subr.bf16.mxu1 %v17798_v44  ;;  %v5221_v44 = vadd.f32 %v24147_v45, %v24145_v33 }
 0x4e1   : > { %12668 = vmatpush1.bf16.msra.mxu0 %v17721_v10  ;;  %v17787_v10 = vld [vmem:[#allocation7 + $0xb70] ss:$24 sps:$4 sm:$0xff]  }
 0x4e2   : > { %12669 = vmatprep.subr.bf16.mxu0 %v17729_v18  ;;  %12877 = vmatpush1.bf16.msra.mxu1 %v17796_v14  ;;  %v17795_v18 = vld [vmem:[#allocation7 + $0xba4] ss:$24 sps:$4 sm:$0xff]   ;;  %v24703_v14 = vld [vmem:[#allocation31_spill] sm:$0xff] }
 0x4e3   : > { %12878 = vmatprep.subr.bf16.mxu1 %v17804_v9  ;;  %v17801_v9 = vld [vmem:[#allocation7 + $0xbd4] ss:$24 sps:$4 sm:$0xff]  }
 0x4e5   : > { %12670 = vmatpush1.bf16.msra.mxu0 %v17727_v49  ;;  %v17793_v49 = vld [vmem:[#allocation7 + $0xba0] ss:$24 sps:$4 sm:$0xff]  }
 0x4e6   : > { %12671 = vmatprep.subr.bf16.mxu0 %v17735_v27  ;;  %12879 = vmatpush1.bf16.msra.mxu1 %v17802_v25  ;;  %v17864_v27 = vld [vmem:[#allocation7 + $0x1ad4] ss:$24 sps:$4 sm:$0xff]  }
 0x4e7   : > { %12880 = vmatprep.subr.bf16.mxu1 %v17810_v63  ;;  %v17862_v63 = vld [vmem:[#allocation7 + $0x1ad0] ss:$24 sps:$4 sm:$0xff]  }
 0x4e9   : > { %12672 = vmatpush1.bf16.msra.mxu0 %v17733_v39  ;;  %v5181_v39 = vadd.f32 %v24147_v45, %v24703_v14  ;;  %v17915_v14 = vld [vmem:[#allocation7 + $0x1c84] ss:$24 sps:$4 sm:$0xff]  }
 0x4ea   : > { %12673 = vmatprep.subr.bf16.mxu0 %v17741_v56  ;;  %12881 = vmatpush1.bf16.msra.mxu1 %v17808_v23  ;;  %v24704_v56 = vld [vmem:[#allocation28_spill] sm:$0xff]  ;;  %v5274_v23 = vmax.f32 %v5221_v44, 0.0  ;;  %v17907_v44 = vld [vmem:[#allocation7 + $0x1c50] ss:$24 sps:$4 sm:$0xff]  }
 0x4eb   : > { %12882 = vmatprep.subr.bf16.mxu1 %v17816_v62  ;;  %v5192_v25 = vadd.f32 %v24147_v45, %v24704_v56  ;;  %v5264_v33 = vmax.f32 %v5181_v39, 0.0  ;;  %v17807_v62 = vld [vmem:[#allocation7 + $0xc04] ss:$24 sps:$4 sm:$0xff]   ;;  %v24189_v39 = vpop.f32.mrb[40].mxu0 }
 0x4ec   : > { %v17185_v56 = vpop.f32.mrb[41].mxu0 }
 0x4ed   : > { %12674 = vmatpush1.bf16.msra.mxu0 %v17739_v29  ;;  %v5232_v29 = vadd.f32 %v24147_v45, %v5231_v31  ;;  %v24179_v54 = vpack.c.bf16 %v5264_v33, %v5264_v33  ;;  %v17919_v33 = vld [vmem:[#allocation7 + $0x1cb0] ss:$24 sps:$4 sm:$0xff]  }
 0x4ee   : > { %12675 = vmatprep.subr.bf16.mxu0 %v17747_v2  ;;  %12883 = vmatpush1.bf16.msra.mxu1 %v17814_v0  ;;  %v17799_v2 = vld [vmem:[#allocation7 + $0xbd0] ss:$24 sps:$4 sm:$0xff]  }
 0x4ef   : > { %12884 = vmatprep.subr.bf16.mxu1 %v17822_v58  ;;  %v5277_v0 = vmax.f32 %v5232_v29, 0.0  ;;  %v17805_v58 = vld [vmem:[#allocation7 + $0xc00] ss:$24 sps:$4 sm:$0xff]   ;;  %v17955_v56 = vld [vmem:[#allocation7 + $0x1dd0] ss:$24 sps:$4 sm:$0xff]  }
 0x4f0   : > { %v17853_v29 = vld [vmem:[#allocation7 + $0xd80] ss:$24 sps:$4 sm:$0xff]  }
 0x4f1   : > { %12676 = vmatpush1.bf16.msra.mxu0 %v17745_v4  ;;  %v17870_v4 = vld [vmem:[#allocation7 + $0x1b04] ss:$24 sps:$4 sm:$0xff]   ;;  %v24184_v31 = vpack.c.bf16 %v5277_v0, %v5277_v0 }
 0x4f2   : > { %12677 = vmatprep.subr.bf16.mxu0 %v17753_v6  ;;  %12885 = vmatpush1.bf16.msra.mxu1 %v17820_v46  ;;  %v5267_v6 = vmax.f32 %v5192_v25, 0.0  ;;  %v17813_v46 = vld [vmem:[#allocation7 + $0xc34] ss:$24 sps:$4 sm:$0xff]   ;;  %v17913_v25 = vld [vmem:[#allocation7 + $0x1c80] ss:$24 sps:$4 sm:$0xff]  }
 0x4f3   : > { %12886 = vmatprep.subr.bf16.mxu1 %v17828_v55  ;;  %v17867_v0 = vld [vmem:[#allocation7 + $0xde4] ss:$24 sps:$4 sm:$0xff]  }
 0x4f4   : > { %v24181_v55 = vpack.c.bf16 %v5267_v6, %v5267_v6  ;;  %v17927_v6 = vld [vmem:[#allocation7 + $0x1ce4] ss:$24 sps:$4 sm:$0xff]  }
 0x4f5   : > { %12678 = vmatpush1.bf16.msra.mxu0 %v17751_v57  ;;  %v17868_v57 = vld [vmem:[#allocation7 + $0x1b00] ss:$24 sps:$4 sm:$0xff]  }
 0x4f6   : > { %12679 = vmatprep.subr.bf16.mxu0 %v17759_v21  ;;  %12887 = vmatpush1.bf16.msra.mxu1 %v17826_v59  ;;  %v24177_v21 = vpack.c.bf16 %v5274_v23, %v5274_v23  ;;  %v17882_v59 = vld [vmem:[#allocation7 + $0x1b64] ss:$24 sps:$4 sm:$0xff]   ;;  %v17861_v23 = vld [vmem:[#allocation7 + $0xdb4] ss:$24 sps:$4 sm:$0xff]  }
 0x4f7   : > { %12888 = vmatprep.subr.bf16.mxu1 %v17834_v1  ;;  %v17880_v1 = vld [vmem:[#allocation7 + $0x1b60] ss:$24 sps:$4 sm:$0xff]  }
 0x4f9   : > { %12680 = vmatpush1.bf16.msra.mxu0 %v17757_v36  ;;  %v17876_v36 = vld [vmem:[#allocation7 + $0x1b34] ss:$24 sps:$4 sm:$0xff]  }
 0x4fa   : > { %12681 = vmatprep.subr.bf16.mxu0 %v17765_v47  ;;  %12889 = vmatpush1.bf16.msra.mxu1 %v17832_v40  ;;  %v17874_v47 = vld [vmem:[#allocation7 + $0x1b30] ss:$24 sps:$4 sm:$0xff]   ;;  %v17888_v40 = vld [vmem:[#allocation7 + $0x1b94] ss:$24 sps:$4 sm:$0xff]  }
 0x4fb   : > { %12890 = vmatprep.subr.bf16.mxu1 %v17840_v22  ;;  %v17886_v22 = vld [vmem:[#allocation7 + $0x1b90] ss:$24 sps:$4 sm:$0xff]  }
 0x4fd   : > { %12682 = vmatpush1.bf16.msra.mxu0 %v17763_v5  ;;  %v17819_v5 = vld [vmem:[#allocation7 + $0xc64] ss:$24 sps:$4 sm:$0xff]  }
 0x4fe   : > { %12683 = vmatprep.subr.bf16.mxu0 %v17771_v28  ;;  %12891 = vmatpush1.bf16.msra.mxu1 %v17838_v43  ;;  %v17817_v28 = vld [vmem:[#allocation7 + $0xc60] ss:$24 sps:$4 sm:$0xff]   ;;  %v17894_v43 = vld [vmem:[#allocation7 + $0x1bc4] ss:$24 sps:$4 sm:$0xff]  }
 0x4ff   : > { %12892 = vmatprep.subr.bf16.mxu1 %v17846_v13  ;;  %v17892_v13 = vld [vmem:[#allocation7 + $0x1bc0] ss:$24 sps:$4 sm:$0xff]  }
 0x501   : > { %12684 = vmatpush1.bf16.msra.mxu0 %v17769_v42  ;;  %v17825_v42 = vld [vmem:[#allocation7 + $0xc94] ss:$24 sps:$4 sm:$0xff]  }
 0x502   : > { %12685 = vmatprep.subr.bf16.mxu0 %v17777_v19  ;;  %12893 = vmatpush1.bf16.msra.mxu1 %v17844_v20  ;;  %v17823_v19 = vld [vmem:[#allocation7 + $0xc90] ss:$24 sps:$4 sm:$0xff]   ;;  %v17900_v20 = vld [vmem:[#allocation7 + $0x1bf4] ss:$24 sps:$4 sm:$0xff]  }
 0x503   : > { %12894 = vmatprep.subr.bf16.mxu1 %v17852_v52  ;;  %v17898_v52 = vld [vmem:[#allocation7 + $0x1bf0] ss:$24 sps:$4 sm:$0xff]  }
 0x505   : > { %12686 = vmatpush1.bf16.msra.mxu0 %v17775_v50  ;;  %v17831_v50 = vld [vmem:[#allocation7 + $0xcc4] ss:$24 sps:$4 sm:$0xff]  }
 0x506   : > { %12687 = vmatprep.subr.bf16.mxu0 %v17783_v53  ;;  %12895 = vmatpush1.bf16.msra.mxu1 %v17850_v26  ;;  %v17829_v53 = vld [vmem:[#allocation7 + $0xcc0] ss:$24 sps:$4 sm:$0xff]   ;;  %v17903_v26 = vld [vmem:[#allocation7 + $0x1c24] ss:$24 sps:$4 sm:$0xff]  }
 0x507   : > { %12896 = vmatprep.subr.bf16.mxu1 %v17858_v48  ;;  %v17901_v48 = vld [vmem:[#allocation7 + $0x1c20] ss:$24 sps:$4 sm:$0xff]  }
 0x509   : > { %12688 = vmatpush1.bf16.msra.mxu0 %v17781_v17  ;;  %v17837_v17 = vld [vmem:[#allocation7 + $0xcf4] ss:$24 sps:$4 sm:$0xff]  }
 0x50a   : > { %12689 = vmatprep.subr.bf16.mxu0 %v17789_v38  ;;  %12897 = vmatpush1.bf16.msra.mxu1 %v17856_v3  ;;  %v17835_v38 = vld [vmem:[#allocation7 + $0xcf0] ss:$24 sps:$4 sm:$0xff]   ;;  %v17909_v3 = vld [vmem:[#allocation7 + $0x1c54] ss:$24 sps:$4 sm:$0xff]  }
 0x50b   : > { %12898 = vmatprep.subr.bf16.mxu1 %v17864_v27  ;;  %v17847_v27 = vld [vmem:[#allocation7 + $0xd50] ss:$24 sps:$4 sm:$0xff]  }
 0x50d   : > { %12690 = vmatpush1.bf16.msra.mxu0 %v17787_v10  ;;  %v17843_v10 = vld [vmem:[#allocation7 + $0xd24] ss:$24 sps:$4 sm:$0xff]  }
 0x50e   : > { %12691 = vmatprep.subr.bf16.mxu0 %v17795_v18  ;;  %12899 = vmatpush1.bf16.msra.mxu1 %v17862_v63  ;;  %v17841_v18 = vld [vmem:[#allocation7 + $0xd20] ss:$24 sps:$4 sm:$0xff]   ;;  %v17921_v63 = vld [vmem:[#allocation7 + $0x1cb4] ss:$24 sps:$4 sm:$0xff]  }
 0x50f   : > { %12909 = vmatprep.subr.bf16.mxu1 %v17870_v4 }
 0x511   : > { %12692 = vmatpush1.bf16.msra.mxu0 %v17793_v49  ;;  %12901 = vmatmul.mubr.bf16.vlgmr.msra.gmra.mrb[0].mxu1 %v24177_v21  ;;  %v17849_v49 = vld [vmem:[#allocation7 + $0xd54] ss:$24 sps:$4 sm:$0xff]  }
 0x512   : > { %12693 = vmatprep.subr.bf16.mxu0 %v17801_v9  ;;  %12910 = vmatpush1.bf16.msra.mxu1 %v17868_v57  ;;  %v17855_v9 = vld [vmem:[#allocation7 + $0xd84] ss:$24 sps:$4 sm:$0xff]   ;;  %v17925_v57 = vld [vmem:[#allocation7 + $0x1ce0] ss:$24 sps:$4 sm:$0xff]  }
 0x513   : > { %12911 = vmatprep.subr.bf16.mxu1 %v17876_v36  ;;  %12941 = vmatprep.mubr.bf16.mxu1 %v24184_v31  ;;  %v17873_v36 = vld [vmem:[#allocation7 + $0xe14] ss:$24 sps:$4 sm:$0xff]  }
 0x515   : > { %12694 = vmatpush1.bf16.msra.mxu0 %v17799_v2  ;;  %v5239_v2 = vpop.f32.mrb[42].mxu0 }
 0x516   : > { %12704 = vmatprep.subr.bf16.mxu0 %v17807_v62  ;;  %12912 = vmatpush1.bf16.msra.mxu1 %v17874_v47  ;;  %v17186_v4 = vpop.f32.mrb[43].mxu0  ;;  %v17859_v62 = vld [vmem:[#allocation7 + $0xdb0] ss:$24 sps:$4 sm:$0xff]  }
 0x517   : > { %12913 = vmatprep.subr.bf16.mxu1 %v17882_v59  ;;  %v17931_v47 = vld [vmem:[#allocation7 + $0x1d10] ss:$24 sps:$4 sm:$0xff]   ;;  %v17939_v59 = vld [vmem:[#allocation7 + $0x1d44] ss:$24 sps:$4 sm:$0xff]  }
 0x518   : > { %12696 = vmatmul.mubr.bf16.vlgmr.msra.gmra.mrb[52].mxu0 %v24179_v54  ;;  %v17906_v4 = vld [vmem:[#allocation7 + $0xc] ss:$24 sps:$4 sm:$0xff]  }
 0x519   : > { %12705 = vmatpush1.bf16.msra.mxu0 %v17805_v58  ;;  %12736 = vmatprep.mubr.bf16.mxu0 %v24181_v55  ;;  %v17865_v58 = vld [vmem:[#allocation7 + $0xde0] ss:$24 sps:$4 sm:$0xff]  }
 0x51a   : > { %12706 = vmatprep.subr.bf16.mxu0 %v17813_v46  ;;  %12914 = vmatpush1.bf16.msra.mxu1 %v17880_v1  ;;  %v17933_v46 = vld [vmem:[#allocation7 + $0x1d14] ss:$24 sps:$4 sm:$0xff]   ;;  %v17879_v1 = vld [vmem:[#allocation7 + $0xe44] ss:$24 sps:$4 sm:$0xff]  }
 0x51b   : > { %12915 = vmatprep.subr.bf16.mxu1 %v17888_v40 }
 0x51d   : > { %12707 = vmatpush1.bf16.msra.mxu0 %v17811_v37  ;;  %v17871_v37 = vld [vmem:[#allocation7 + $0xe10] ss:$24 sps:$4 sm:$0xff]  }
 0x51e   : > { %12708 = vmatprep.subr.bf16.mxu0 %v17819_v5  ;;  %12916 = vmatpush1.bf16.msra.mxu1 %v17886_v22  ;;  %v24191_v5 = vpop.f32.mrb[44].mxu0 }
 0x51f   : > { %12917 = vmatprep.subr.bf16.mxu1 %v17894_v43  ;;  %v17945_v43 = vld [vmem:[#allocation7 + $0x1d74] ss:$24 sps:$4 sm:$0xff]  }
 0x521   : > { %12709 = vmatpush1.bf16.msra.mxu0 %v17817_v28  ;;  %v17189_v28 = vpop.f32.mrb[45].mxu0 }
 0x522   : > { %12710 = vmatprep.subr.bf16.mxu0 %v17825_v42  ;;  %12918 = vmatpush1.bf16.msra.mxu1 %v17892_v13  ;;  %v24193_v40 = vpop.f32.mrb[46].mxu0  ;;  %v17937_v42 = vld [vmem:[#allocation7 + $0x1d40] ss:$24 sps:$4 sm:$0xff]   ;;  %v17943_v13 = vld [vmem:[#allocation7 + $0x1d70] ss:$24 sps:$4 sm:$0xff]  }
 0x523   : > { %12919 = vmatprep.subr.bf16.mxu1 %v17900_v20  ;;  %v17190_v22 = vpop.f32.mrb[47].mxu0  ;;  %v17951_v20 = vld [vmem:[#allocation7 + $0x1da4] ss:$24 sps:$4 sm:$0xff]   ;;  %v17981_v28 = vld [vmem:[#allocation7 + $0x1e94] ss:$24 sps:$4 sm:$0xff]  }
 0x524   : > { %v17979_v22 = vld [vmem:[#allocation7 + $0x1e90] ss:$24 sps:$4 sm:$0xff]  }
 0x525   : > { %12711 = vmatpush1.bf16.msra.mxu0 %v17823_v19  ;;  %v17877_v19 = vld [vmem:[#allocation7 + $0xe40] ss:$24 sps:$4 sm:$0xff]  }
 0x526   : > { %12712 = vmatprep.subr.bf16.mxu0 %v17831_v50  ;;  %12920 = vmatpush1.bf16.msra.mxu1 %v17898_v52  ;;  %v17885_v50 = vld [vmem:[#allocation7 + $0xe74] ss:$24 sps:$4 sm:$0xff]   ;;  %v17891_v52 = vld [vmem:[#allocation7 + $0xea4] ss:$24 sps:$4 sm:$0xff]  }
 0x527   : > { %12921 = vmatprep.subr.bf16.mxu1 %v17903_v26 }
 0x529   : > { %12713 = vmatpush1.bf16.msra.mxu0 %v17829_v53  ;;  %v17883_v53 = vld [vmem:[#allocation7 + $0xe70] ss:$24 sps:$4 sm:$0xff]  }
 0x52a   : > { %12714 = vmatprep.subr.bf16.mxu0 %v17837_v17  ;;  %12922 = vmatpush1.bf16.msra.mxu1 %v17901_v48  ;;  %v24195_v17 = vpop.f32.mrb[48].mxu0 }
 0x52b   : > { %12923 = vmatprep.subr.bf16.mxu1 %v17909_v3  ;;  %v5229_v3 = vadd.f32 %v24147_v45, %v24168_v61 }
 0x52d   : > { %12715 = vmatpush1.bf16.msra.mxu0 %v17835_v38  ;;  %v17193_v38 = vpop.f32.mrb[49].mxu0 }
 0x52e   : > { %12716 = vmatprep.subr.bf16.mxu0 %v17843_v10  ;;  %12924 = vmatpush1.bf16.msra.mxu1 %v17907_v44  ;;  %v5255_v26 = vpop.f32.mrb[50].mxu0  ;;  %v17949_v10 = vld [vmem:[#allocation7 + $0x1da0] ss:$24 sps:$4 sm:$0xff]   ;;  %v17991_v38 = vld [vmem:[#allocation7 + $0x1ef0] ss:$24 sps:$4 sm:$0xff]  }
 0x52f   : > { %12925 = vmatprep.subr.bf16.mxu1 %v17915_v14  ;;  %v17194_v48 = vpop.f32.mrb[51].mxu0  ;;  %v24705_v44 = vld [vmem:[#allocation33_spill] sm:$0xff]  ;;  %v17897_v14 = vld [vmem:[#allocation7 + $0xed4] ss:$24 sps:$4 sm:$0xff]   ;;  %v17934_v26 = vld [vmem:[#allocation7 + $0xf8] ss:$24 sps:$4 sm:$0xff]  }
 0x530   : > { %v17942_v48 = vld [vmem:[#allocation7 + $0x12c] ss:$24 sps:$4 sm:$0xff]  }
 0x531   : > { %12717 = vmatpush1.bf16.msra.mxu0 %v17841_v18  ;;  %v17889_v18 = vld [vmem:[#allocation7 + $0xea0] ss:$24 sps:$4 sm:$0xff]  }
 0x532   : > { %12718 = vmatprep.subr.bf16.mxu0 %v17849_v49  ;;  %12926 = vmatpush1.bf16.msra.mxu1 %v17913_v25  ;;  %v17957_v49 = vld [vmem:[#allocation7 + $0x1dd4] ss:$24 sps:$4 sm:$0xff]   ;;  %v17895_v25 = vld [vmem:[#allocation7 + $0xed0] ss:$24 sps:$4 sm:$0xff]  }
 0x533   : > { %12927 = vmatprep.subr.bf16.mxu1 %v17921_v63  ;;  %v17963_v63 = vld [vmem:[#allocation7 + $0x1e04] ss:$24 sps:$4 sm:$0xff]  }
 0x535   : > { %12719 = vmatpush1.bf16.msra.mxu0 %v17847_v27  ;;  %v5189_v27 = vadd.f32 %v24147_v45, %v24705_v44  ;;  %v17948_v44 = vld [vmem:[#allocation7 + $0x15c] ss:$24 sps:$4 sm:$0xff]  }
 0x536   : > { %12720 = vmatprep.subr.bf16.mxu0 %v17855_v9  ;;  %12928 = vmatpush1.bf16.msra.mxu1 %v17919_v33  ;;  %v5240_v9 = vadd.f32 %v24147_v45, %v5239_v2  ;;  %v17961_v33 = vld [vmem:[#allocation7 + $0x1e00] ss:$24 sps:$4 sm:$0xff]   ;;  %v17912_v2 = vld [vmem:[#allocation7 + $0x3c] ss:$24 sps:$4 sm:$0xff]  }
 0x537   : > { %12929 = vmatprep.subr.bf16.mxu1 %v17927_v6 }
 0x538   : > { %v5279_v61 = vmax.f32 %v5240_v9, 0.0  ;;  %v18011_v9 = vld [vmem:[#allocation7 + $0x1f84] ss:$24 sps:$4 sm:$0xff]  }
 0x539   : > { %12721 = vmatpush1.bf16.msra.mxu0 %v17853_v29  ;;  %v5276_v29 = vmax.f32 %v5229_v3, 0.0  ;;  %v17940_v3 = vld [vmem:[#allocation7 + $0x128] ss:$24 sps:$4 sm:$0xff]  }
 0x53a   : > { %12722 = vmatprep.subr.bf16.mxu0 %v17861_v23  ;;  %12930 = vmatpush1.bf16.msra.mxu1 %v17925_v57  ;;  %v5266_v23 = vmax.f32 %v5189_v27, 0.0  ;;  %v17969_v57 = vld [vmem:[#allocation7 + $0x1e34] ss:$24 sps:$4 sm:$0xff]   ;;  %v18003_v27 = vld [vmem:[#allocation7 + $0x1f50] ss:$24 sps:$4 sm:$0xff]  }
 0x53b   : > { %12931 = vmatprep.subr.bf16.mxu1 %v17933_v46  ;;  %v24202_v6 = vpack.c.bf16 %v5276_v29, %v5276_v29  ;;  %v17967_v46 = vld [vmem:[#allocation7 + $0x1e30] ss:$24 sps:$4 sm:$0xff]  }
 0x53c   : > { %v17952_v29 = vld [vmem:[#allocation7 + $0x188] ss:$24 sps:$4 sm:$0xff]  }
 0x53d   : > { %12723 = vmatpush1.bf16.msra.mxu0 %v17859_v62  ;;  %v17904_v62 = vld [vmem:[#allocation7 + $0x8] ss:$24 sps:$4 sm:$0xff]  }
 0x53e   : > { %12724 = vmatprep.subr.bf16.mxu0 %v17867_v0  ;;  %12932 = vmatpush1.bf16.msra.mxu1 %v17931_v47  ;;  %v24204_v0 = vpack.c.bf16 %v5266_v23, %v5266_v23  ;;  %v17975_v47 = vld [vmem:[#allocation7 + $0x1e64] ss:$24 sps:$4 sm:$0xff]  }
 0x53f   : > { %12933 = vmatprep.subr.bf16.mxu1 %v17939_v59  ;;  %v17973_v59 = vld [vmem:[#allocation7 + $0x1e60] ss:$24 sps:$4 sm:$0xff]   ;;  %v17960_v23 = vld [vmem:[#allocation7 + $0x1bc] ss:$24 sps:$4 sm:$0xff]  }
 0x541   : > { %12725 = vmatpush1.bf16.msra.mxu0 %v17865_v58  ;;  %v24207_v58 = vpack.c.bf16 %v5279_v61, %v5279_v61  ;;  %v17958_v61 = vld [vmem:[#allocation7 + $0x1b8] ss:$24 sps:$4 sm:$0xff]  }
 0x542   : > { %12726 = vmatprep.subr.bf16.mxu0 %v17873_v36  ;;  %12934 = vmatpush1.bf16.msra.mxu1 %v17937_v42  ;;  %v17910_v36 = vld [vmem:[#allocation7 + $0x38] ss:$24 sps:$4 sm:$0xff]   ;;  %v17924_v42 = vld [vmem:[#allocation7 + $0x9c] ss:$24 sps:$4 sm:$0xff]  }
 0x543   : > { %12935 = vmatprep.subr.bf16.mxu1 %v17945_v43  ;;  %v17987_v43 = vld [vmem:[#allocation7 + $0x1ec4] ss:$24 sps:$4 sm:$0xff]  }
 0x545   : > { %12727 = vmatpush1.bf16.msra.mxu0 %v17871_v37  ;;  %v17918_v37 = vld [vmem:[#allocation7 + $0x6c] ss:$24 sps:$4 sm:$0xff]  }
 0x546   : > { %12728 = vmatprep.subr.bf16.mxu0 %v17879_v1  ;;  %12936 = vmatpush1.bf16.msra.mxu1 %v17943_v13  ;;  %v17916_v1 = vld [vmem:[#allocation7 + $0x68] ss:$24 sps:$4 sm:$0xff]  }
 0x547   : > { %12937 = vmatprep.subr.bf16.mxu1 %v17951_v20  ;;  %v17985_v13 = vld [vmem:[#allocation7 + $0x1ec0] ss:$24 sps:$4 sm:$0xff]   ;;  %v17993_v20 = vld [vmem:[#allocation7 + $0x1ef4] ss:$24 sps:$4 sm:$0xff]  }
 0x549   : > { %12729 = vmatpush1.bf16.msra.mxu0 %v17877_v19  ;;  %v17922_v19 = vld [vmem:[#allocation7 + $0x98] ss:$24 sps:$4 sm:$0xff]  }
 0x54a   : > { %12730 = vmatprep.subr.bf16.mxu0 %v17885_v50  ;;  %12938 = vmatpush1.bf16.msra.mxu1 %v17949_v10  ;;  %v17930_v50 = vld [vmem:[#allocation7 + $0xcc] ss:$24 sps:$4 sm:$0xff]  }
 0x54b   : > { %12939 = vmatprep.subr.bf16.mxu1 %v17957_v49  ;;  %v17999_v10 = vld [vmem:[#allocation7 + $0x1f24] ss:$24 sps:$4 sm:$0xff]   ;;  %v18005_v49 = vld [vmem:[#allocation7 + $0x1f54] ss:$24 sps:$4 sm:$0xff]  }
 0x54d   : > { %12731 = vmatpush1.bf16.msra.mxu0 %v17883_v53  ;;  %v17928_v53 = vld [vmem:[#allocation7 + $0xc8] ss:$24 sps:$4 sm:$0xff]  }
 0x54e   : > { %12732 = vmatprep.subr.bf16.mxu0 %v17891_v52  ;;  %12940 = vmatpush1.bf16.msra.mxu1 %v17955_v56  ;;  %v17936_v52 = vld [vmem:[#allocation7 + $0xfc] ss:$24 sps:$4 sm:$0xff]   ;;  %v17954_v56 = vld [vmem:[#allocation7 + $0x18c] ss:$24 sps:$4 sm:$0xff]  }
 0x54f   : > { %12950 = vmatprep.subr.bf16.mxu1 %v17963_v63  ;;  %v18017_v63 = vld [vmem:[#allocation7 + $0x1fb4] ss:$24 sps:$4 sm:$0xff]  }
 0x551   : > { %12733 = vmatpush1.bf16.msra.mxu0 %v17889_v18  ;;  %12942 = vmatmul.mubr.bf16.vlgmr.msra.gmra.mrb[0].mxu1 %v24202_v6  ;;  %v17997_v18 = vld [vmem:[#allocation7 + $0x1f20] ss:$24 sps:$4 sm:$0xff]  }
 0x552   : > { %12734 = vmatprep.subr.bf16.mxu0 %v17897_v14  ;;  %12951 = vmatpush1.bf16.msra.mxu1 %v17961_v33  ;;  %v17946_v14 = vld [vmem:[#allocation7 + $0x158] ss:$24 sps:$4 sm:$0xff]   ;;  %v18023_v33 = vld [vmem:[#allocation7 + $0x1fe4] ss:$24 sps:$4 sm:$0xff]  }
 0x553   : > { %12952 = vmatprep.subr.bf16.mxu1 %v17969_v57  ;;  %12982 = vmatprep.mubr.bf16.mxu1 %v24207_v58  ;;  %v17964_v57 = vld [vmem:[#allocation7 + $0x1e8] ss:$24 sps:$4 sm:$0xff]  }
 0x555   : > { %12735 = vmatpush1.bf16.msra.mxu0 %v17895_v25  ;;  %v18009_v25 = vld [vmem:[#allocation7 + $0x1f80] ss:$24 sps:$4 sm:$0xff]  }
 0x556   : > { %13073 = vmatprep.subr.bf16.mxu0 %v17906_v4  ;;  %12953 = vmatpush1.bf16.msra.mxu1 %v17967_v46  ;;  %v18015_v4 = vld [vmem:[#allocation7 + $0x1fb0] ss:$24 sps:$4 sm:$0xff]   ;;  %v18029_v46 = vld [vmem:[#allocation7 + $0x2014] ss:$24 sps:$4 sm:$0xff]  }
 0x557   : > { %12954 = vmatprep.subr.bf16.mxu1 %v17975_v47  ;;  %v18027_v47 = vld [vmem:[#allocation7 + $0x2010] ss:$24 sps:$4 sm:$0xff]  }
 0x558   : > { %12737 = vmatmul.mubr.bf16.vlgmr.msra.gmra.mrb[52].mxu0 %v24204_v0 }
 0x559   : > { %13074 = vmatpush1.bf16.msra.mxu0 %v17904_v62  ;;  %13105 = vmatprep.mubr.bf16.mxu0 %v24094_v30  ;;  %v17966_v62 = vld [vmem:[#allocation7 + $0x1ec] ss:$24 sps:$4 sm:$0xff]  }
 0x55a   : > { %13075 = vmatprep.subr.bf16.mxu0 %v17912_v2  ;;  %12955 = vmatpush1.bf16.msra.mxu1 %v17973_v59  ;;  %v18021_v2 = vld [vmem:[#allocation7 + $0x1fe0] ss:$24 sps:$4 sm:$0xff]   ;;  %v18035_v59 = vld [vmem:[#allocation7 + $0x2044] ss:$24 sps:$4 sm:$0xff]  }
 0x55b   : > { %12956 = vmatprep.subr.bf16.mxu1 %v17981_v28  ;;  %v18033_v28 = vld [vmem:[#allocation7 + $0x2040] ss:$24 sps:$4 sm:$0xff]  }
 0x55d   : > { %13076 = vmatpush1.bf16.msra.mxu0 %v17910_v36  ;;  %v17972_v36 = vld [vmem:[#allocation7 + $0x21c] ss:$24 sps:$4 sm:$0xff]  }
 0x55e   : > { %13077 = vmatprep.subr.bf16.mxu0 %v17918_v37  ;;  %12957 = vmatpush1.bf16.msra.mxu1 %v17979_v22  ;;  %v17970_v37 = vld [vmem:[#allocation7 + $0x218] ss:$24 sps:$4 sm:$0xff]   ;;  %v18041_v22 = vld [vmem:[#allocation7 + $0x2074] ss:$24 sps:$4 sm:$0xff]  }
 0x55f   : > { %12958 = vmatprep.subr.bf16.mxu1 %v17987_v43  ;;  %v18039_v43 = vld [vmem:[#allocation7 + $0x2070] ss:$24 sps:$4 sm:$0xff]  }
 0x561   : > { %13078 = vmatpush1.bf16.msra.mxu0 %v17916_v1  ;;  %v17978_v1 = vld [vmem:[#allocation7 + $0x24c] ss:$24 sps:$4 sm:$0xff]  }
 0x562   : > { %13079 = vmatprep.subr.bf16.mxu0 %v17924_v42  ;;  %12959 = vmatpush1.bf16.msra.mxu1 %v17985_v13  ;;  %v17976_v42 = vld [vmem:[#allocation7 + $0x248] ss:$24 sps:$4 sm:$0xff]   ;;  %v18047_v13 = vld [vmem:[#allocation7 + $0x20a4] ss:$24 sps:$4 sm:$0xff]  }
 0x563   : > { %12960 = vmatprep.subr.bf16.mxu1 %v17993_v20  ;;  %v18045_v20 = vld [vmem:[#allocation7 + $0x20a0] ss:$24 sps:$4 sm:$0xff]  }
 0x565   : > { %13080 = vmatpush1.bf16.msra.mxu0 %v17922_v19  ;;  %v17984_v19 = vld [vmem:[#allocation7 + $0x27c] ss:$24 sps:$4 sm:$0xff]  }
 0x566   : > { %13081 = vmatprep.subr.bf16.mxu0 %v17930_v50  ;;  %12961 = vmatpush1.bf16.msra.mxu1 %v17991_v38  ;;  %v17982_v50 = vld [vmem:[#allocation7 + $0x278] ss:$24 sps:$4 sm:$0xff]   ;;  %v5237_v38 = vadd.f32 %v24147_v45, %v24189_v39  ;;  %v18000_v39 = vld [vmem:[#allocation7 + $0x308] ss:$24 sps:$4 sm:$0xff]  }
 0x567   : > { %12962 = vmatprep.subr.bf16.mxu1 %v17999_v10  ;;  %v17996_v10 = vld [vmem:[#allocation7 + $0x2dc] ss:$24 sps:$4 sm:$0xff]  }
 0x569   : > { %13082 = vmatpush1.bf16.msra.mxu0 %v17928_v53  ;;  %v17990_v53 = vld [vmem:[#allocation7 + $0x2ac] ss:$24 sps:$4 sm:$0xff]  }
 0x56a   : > { %13083 = vmatprep.subr.bf16.mxu0 %v17936_v52  ;;  %12963 = vmatpush1.bf16.msra.mxu1 %v17997_v18  ;;  %v17988_v52 = vld [vmem:[#allocation7 + $0x2a8] ss:$24 sps:$4 sm:$0xff]  }
 0x56b   : > { %12964 = vmatprep.subr.bf16.mxu1 %v18005_v49  ;;  %v18051_v18 = vld [vmem:[#allocation7 + $0x20d0] ss:$24 sps:$4 sm:$0xff]   ;;  %v5278_v49 = vmax.f32 %v5237_v38, 0.0 }
 0x56c   : > { %v18042_v38 = vld [vmem:[#allocation7 + $0x458] ss:$24 sps:$4 sm:$0xff]  }
 0x56d   : > { %13084 = vmatpush1.bf16.msra.mxu0 %v17934_v26  ;;  %v18053_v26 = vld [vmem:[#allocation7 + $0x20d4] ss:$24 sps:$4 sm:$0xff]  }
 0x56e   : > { %13085 = vmatprep.subr.bf16.mxu0 %v17942_v48  ;;  %12965 = vmatpush1.bf16.msra.mxu1 %v18003_v27  ;;  %v5248_v48 = vadd.f32 %v24147_v45, %v24193_v40  ;;  %v18002_v27 = vld [vmem:[#allocation7 + $0x30c] ss:$24 sps:$4 sm:$0xff]  }
 0x56f   : > { %12966 = vmatprep.subr.bf16.mxu1 %v18011_v9  ;;  %v18057_v9 = vld [vmem:[#allocation7 + $0x2100] ss:$24 sps:$4 sm:$0xff]   ;;  %v18065_v45 = vld [vmem:[#allocation7 + $0x2134] ss:$24 sps:$4 sm:$0xff]  }
 0x571   : > { %13086 = vmatpush1.bf16.msra.mxu0 %v17940_v3  ;;  %v17994_v3 = vld [vmem:[#allocation7 + $0x2d8] ss:$24 sps:$4 sm:$0xff]  }
 0x572   : > { %13087 = vmatprep.subr.bf16.mxu0 %v17948_v44  ;;  %12967 = vmatpush1.bf16.msra.mxu1 %v18009_v25  ;;  %v18059_v44 = vld [vmem:[#allocation7 + $0x2104] ss:$24 sps:$4 sm:$0xff]  }
 0x573   : > { %12968 = vmatprep.subr.bf16.mxu1 %v18017_v63  ;;  %v18008_v25 = vld [vmem:[#allocation7 + $0x33c] ss:$24 sps:$4 sm:$0xff]   ;;  %v18006_v63 = vld [vmem:[#allocation7 + $0x338] ss:$24 sps:$4 sm:$0xff]  }
 0x575   : > { %13088 = vmatpush1.bf16.msra.mxu0 %v17946_v14  ;;  %v5281_v14 = vmax.f32 %v5248_v48, 0.0  ;;  %v18105_v48 = vld [vmem:[#allocation7 + $0x2280] ss:$24 sps:$4 sm:$0xff]  }
 0x576   : > { %13089 = vmatprep.subr.bf16.mxu0 %v17954_v56  ;;  %12969 = vmatpush1.bf16.msra.mxu1 %v18015_v4  ;;  %v24216_v56 = vpack.c.bf16 %v5278_v49, %v5278_v49  ;;  %v18014_v4 = vld [vmem:[#allocation7 + $0x36c] ss:$24 sps:$4 sm:$0xff]   ;;  %v18056_v49 = vld [vmem:[#allocation7 + $0x4bc] ss:$24 sps:$4 sm:$0xff]  }
 0x577   : > { %12970 = vmatprep.subr.bf16.mxu1 %v18023_v33  ;;  %v24219_v40 = vpack.c.bf16 %v5281_v14, %v5281_v14  ;;  %v18012_v33 = vld [vmem:[#allocation7 + $0x368] ss:$24 sps:$4 sm:$0xff]   ;;  %v18119_v14 = vld [vmem:[#allocation7 + $0x22e4] ss:$24 sps:$4 sm:$0xff]  }
 0x579   : > { %13090 = vmatpush1.bf16.msra.mxu0 %v17952_v29  ;;  %v18063_v29 = vld [vmem:[#allocation7 + $0x2130] ss:$24 sps:$4 sm:$0xff]  }
 0x57a   : > { %13091 = vmatprep.subr.bf16.mxu0 %v17960_v23  ;;  %12971 = vmatpush1.bf16.msra.mxu1 %v18021_v2  ;;  %v18071_v23 = vld [vmem:[#allocation7 + $0x2164] ss:$24 sps:$4 sm:$0xff]  }
 0x57b   : > { %12972 = vmatprep.subr.bf16.mxu1 %v18029_v46  ;;  %v18020_v2 = vld [vmem:[#allocation7 + $0x39c] ss:$24 sps:$4 sm:$0xff]   ;;  %v18018_v46 = vld [vmem:[#allocation7 + $0x398] ss:$24 sps:$4 sm:$0xff]  }
 0x57d   : > { %13092 = vmatpush1.bf16.msra.mxu0 %v17958_v61  ;;  %v18069_v61 = vld [vmem:[#allocation7 + $0x2160] ss:$24 sps:$4 sm:$0xff]  }
 0x57e   : > { %13093 = vmatprep.subr.bf16.mxu0 %v17966_v62  ;;  %12973 = vmatpush1.bf16.msra.mxu1 %v18027_v47  ;;  %v18077_v62 = vld [vmem:[#allocation7 + $0x2194] ss:$24 sps:$4 sm:$0xff]  }
 0x57f   : > { %12974 = vmatprep.subr.bf16.mxu1 %v18035_v59  ;;  %v18026_v47 = vld [vmem:[#allocation7 + $0x3cc] ss:$24 sps:$4 sm:$0xff]   ;;  %v18024_v59 = vld [vmem:[#allocation7 + $0x3c8] ss:$24 sps:$4 sm:$0xff]  }
 0x581   : > { %13094 = vmatpush1.bf16.msra.mxu0 %v17964_v57  ;;  %v18075_v57 = vld [vmem:[#allocation7 + $0x2190] ss:$24 sps:$4 sm:$0xff]  }
 0x582   : > { %13095 = vmatprep.subr.bf16.mxu0 %v17972_v36  ;;  %12975 = vmatpush1.bf16.msra.mxu1 %v18033_v28  ;;  %v18083_v36 = vld [vmem:[#allocation7 + $0x21c4] ss:$24 sps:$4 sm:$0xff]  }
 0x583   : > { %12976 = vmatprep.subr.bf16.mxu1 %v18041_v22  ;;  %v18032_v28 = vld [vmem:[#allocation7 + $0x3fc] ss:$24 sps:$4 sm:$0xff]   ;;  %v18030_v22 = vld [vmem:[#allocation7 + $0x3f8] ss:$24 sps:$4 sm:$0xff]  }
 0x585   : > { %13096 = vmatpush1.bf16.msra.mxu0 %v17970_v37  ;;  %v18081_v37 = vld [vmem:[#allocation7 + $0x21c0] ss:$24 sps:$4 sm:$0xff]  }
 0x586   : > { %13097 = vmatprep.subr.bf16.mxu0 %v17978_v1  ;;  %12977 = vmatpush1.bf16.msra.mxu1 %v18039_v43  ;;  %v18089_v1 = vld [vmem:[#allocation7 + $0x21f4] ss:$24 sps:$4 sm:$0xff]  }
 0x587   : > { %12978 = vmatprep.subr.bf16.mxu1 %v18047_v13  ;;  %v18038_v43 = vld [vmem:[#allocation7 + $0x42c] ss:$24 sps:$4 sm:$0xff]   ;;  %v18036_v13 = vld [vmem:[#allocation7 + $0x428] ss:$24 sps:$4 sm:$0xff]  }
 0x589   : > { %13098 = vmatpush1.bf16.msra.mxu0 %v17976_v42  ;;  %v18087_v42 = vld [vmem:[#allocation7 + $0x21f0] ss:$24 sps:$4 sm:$0xff]  }
 0x58a   : > { %13099 = vmatprep.subr.bf16.mxu0 %v17984_v19  ;;  %12979 = vmatpush1.bf16.msra.mxu1 %v18045_v20  ;;  %v18095_v19 = vld [vmem:[#allocation7 + $0x2224] ss:$24 sps:$4 sm:$0xff]  }
 0x58b   : > { %12980 = vmatprep.subr.bf16.mxu1 %v18053_v26  ;;  %v18044_v20 = vld [vmem:[#allocation7 + $0x45c] ss:$24 sps:$4 sm:$0xff]  }
 0x58c   : > { %v18107_v26 = vld [vmem:[#allocation7 + $0x2284] ss:$24 sps:$4 sm:$0xff]  }
 0x58d   : > { %13100 = vmatpush1.bf16.msra.mxu0 %v17982_v50  ;;  %v18093_v50 = vld [vmem:[#allocation7 + $0x2220] ss:$24 sps:$4 sm:$0xff]  }
 0x58e   : > { %13101 = vmatprep.subr.bf16.mxu0 %v17990_v53  ;;  %12981 = vmatpush1.bf16.msra.mxu1 %v18051_v18  ;;  %v18101_v53 = vld [vmem:[#allocation7 + $0x2254] ss:$24 sps:$4 sm:$0xff]   ;;  %v18048_v18 = vld [vmem:[#allocation7 + $0x488] ss:$24 sps:$4 sm:$0xff]  }
 0x58f   : > { %12991 = vmatprep.subr.bf16.mxu1 %v18059_v44  ;;  %v18111_v44 = vld [vmem:[#allocation7 + $0x22b0] ss:$24 sps:$4 sm:$0xff]  }
 0x591   : > { %13102 = vmatpush1.bf16.msra.mxu0 %v17988_v52  ;;  %12983 = vmatmul.mubr.bf16.vlgmr.msra.gmra.mrb[0].mxu1 %v24216_v56  ;;  %v18099_v52 = vld [vmem:[#allocation7 + $0x2250] ss:$24 sps:$4 sm:$0xff]  }
 0x592   : > { %13103 = vmatprep.subr.bf16.mxu0 %v17996_v10  ;;  %12992 = vmatpush1.bf16.msra.mxu1 %v18057_v9  ;;  %v18050_v10 = vld [vmem:[#allocation7 + $0x48c] ss:$24 sps:$4 sm:$0xff]  }
 0x593   : > { %12993 = vmatprep.subr.bf16.mxu1 %v18065_v45  ;;  %13023 = vmatprep.mubr.bf16.mxu1 %v24219_v40  ;;  %v18062_v9 = vld [vmem:[#allocation7 + $0x4ec] ss:$24 sps:$4 sm:$0xff]  }
 0x594   : > { %v18125_v45 = vld [vmem:[#allocation7 + $0x2314] ss:$24 sps:$4 sm:$0xff]  }
 0x595   : > { %13104 = vmatpush1.bf16.msra.mxu0 %v17994_v3  ;;  %v18113_v3 = vld [vmem:[#allocation7 + $0x22b4] ss:$24 sps:$4 sm:$0xff]  }
 0x596   : > { %13114 = vmatprep.subr.bf16.mxu0 %v18002_v27  ;;  %12994 = vmatpush1.bf16.msra.mxu1 %v18063_v29  ;;  %v18054_v27 = vld [vmem:[#allocation7 + $0x4b8] ss:$24 sps:$4 sm:$0xff]   ;;  %v18068_v29 = vld [vmem:[#allocation7 + $0x51c] ss:$24 sps:$4 sm:$0xff]  }
 0x597   : > { %12995 = vmatprep.subr.bf16.mxu1 %v18071_v23  ;;  %v18066_v23 = vld [vmem:[#allocation7 + $0x518] ss:$24 sps:$4 sm:$0xff]  }
 0x598   : > { %13106 = vmatmul.mubr.bf16.vlgmr.msra.gmra.mrb[56].mxu0 %v24115_v41 }
 0x599   : > { %13115 = vmatpush1.bf16.msra.mxu0 %v18000_v39  ;;  %13146 = vmatprep.mubr.bf16.mxu0 %v24111_v11  ;;  %v18117_v39 = vld [vmem:[#allocation7 + $0x22e0] ss:$24 sps:$4 sm:$0xff]  }
 0x59a   : > { %13116 = vmatprep.subr.bf16.mxu0 %v18008_v25  ;;  %12996 = vmatpush1.bf16.msra.mxu1 %v18069_v61  ;;  %v18060_v25 = vld [vmem:[#allocation7 + $0x4e8] ss:$24 sps:$4 sm:$0xff]   ;;  %v18074_v61 = vld [vmem:[#allocation7 + $0x54c] ss:$24 sps:$4 sm:$0xff]  }
 0x59b   : > { %12997 = vmatprep.subr.bf16.mxu1 %v18077_v62  ;;  %v18072_v62 = vld [vmem:[#allocation7 + $0x548] ss:$24 sps:$4 sm:$0xff]  }
 0x59d   : > { %13117 = vmatpush1.bf16.msra.mxu0 %v18006_v63  ;;  %v18123_v63 = vld [vmem:[#allocation7 + $0x2310] ss:$24 sps:$4 sm:$0xff]  }
 0x59e   : > { %13118 = vmatprep.subr.bf16.mxu0 %v18014_v4  ;;  %12998 = vmatpush1.bf16.msra.mxu1 %v18075_v57  ;;  %v18131_v4 = vld [vmem:[#allocation7 + $0x2344] ss:$24 sps:$4 sm:$0xff]  }
 0x59f   : > { %12999 = vmatprep.subr.bf16.mxu1 %v18083_v36  ;;  %v18080_v57 = vld [vmem:[#allocation7 + $0x57c] ss:$24 sps:$4 sm:$0xff]   ;;  %v18078_v36 = vld [vmem:[#allocation7 + $0x578] ss:$24 sps:$4 sm:$0xff]  }
 0x5a1   : > { %13119 = vmatpush1.bf16.msra.mxu0 %v18012_v33  ;;  %v18129_v33 = vld [vmem:[#allocation7 + $0x2340] ss:$24 sps:$4 sm:$0xff]  }
 0x5a2   : > { %13120 = vmatprep.subr.bf16.mxu0 %v18020_v2  ;;  %13000 = vmatpush1.bf16.msra.mxu1 %v18081_v37  ;;  %v18137_v2 = vld [vmem:[#allocation7 + $0x2374] ss:$24 sps:$4 sm:$0xff]  }
 0x5a3   : > { %13001 = vmatprep.subr.bf16.mxu1 %v18089_v1  ;;  %v18086_v37 = vld [vmem:[#allocation7 + $0x5ac] ss:$24 sps:$4 sm:$0xff]   ;;  %v24224_v1 = vld [vmem:[#allocation5] ss:$0 sm:$0xff] }
 0x5a5   : > { %13121 = vmatpush1.bf16.msra.mxu0 %v18018_v46  ;;  %v18135_v46 = vld [vmem:[#allocation7 + $0x2370] ss:$24 sps:$4 sm:$0xff]  }
 0x5a6   : > { %13122 = vmatprep.subr.bf16.mxu0 %v18026_v47  ;;  %13002 = vmatpush1.bf16.msra.mxu1 %v18087_v42  ;;  %v18143_v47 = vld [vmem:[#allocation7 + $0x23a4] ss:$24 sps:$4 sm:$0xff]   ;;  %v18084_v42 = vld [vmem:[#allocation7 + $0x5a8] ss:$24 sps:$4 sm:$0xff]  }
 0x5a7   : > { %13003 = vmatprep.subr.bf16.mxu1 %v18095_v19  ;;  %v18092_v19 = vld [vmem:[#allocation7 + $0x5dc] ss:$24 sps:$4 sm:$0xff]  }
 0x5a9   : > { %13123 = vmatpush1.bf16.msra.mxu0 %v18024_v59  ;;  %v18141_v59 = vld [vmem:[#allocation7 + $0x23a0] ss:$24 sps:$4 sm:$0xff]  }
 0x5aa   : > { %13124 = vmatprep.subr.bf16.mxu0 %v18032_v28  ;;  %13004 = vmatpush1.bf16.msra.mxu1 %v18093_v50  ;;  %v5245_v28 = vadd.f32 %v24224_v1, %v24191_v5  ;;  %v18096_v5 = vld [vmem:[#allocation7 + $0x608] ss:$24 sps:$4 sm:$0xff]  }
 0x5ab   : > { %13005 = vmatprep.subr.bf16.mxu1 %v18101_v53  ;;  %v18155_v53 = vld [vmem:[#allocation7 + $0x2404] ss:$24 sps:$4 sm:$0xff]  }
 0x5ac   : > { %v5280_v50 = vmax.f32 %v5245_v28, 0.0  ;;  %v18140_v28 = vld [vmem:[#allocation7 + $0x75c] ss:$24 sps:$4 sm:$0xff]  }
 0x5ad   : > { %13125 = vmatpush1.bf16.msra.mxu0 %v18030_v22  ;;  %v18149_v22 = vld [vmem:[#allocation7 + $0x23d4] ss:$24 sps:$4 sm:$0xff]  }
 0x5ae   : > { %13126 = vmatprep.subr.bf16.mxu0 %v18038_v43  ;;  %13006 = vmatpush1.bf16.msra.mxu1 %v18099_v52  ;;  %v18147_v43 = vld [vmem:[#allocation7 + $0x23d0] ss:$24 sps:$4 sm:$0xff]   ;;  %v18153_v52 = vld [vmem:[#allocation7 + $0x2400] ss:$24 sps:$4 sm:$0xff]  }
 0x5af   : > { %13007 = vmatprep.subr.bf16.mxu1 %v18107_v26  ;;  %v18104_v26 = vld [vmem:[#allocation7 + $0x63c] ss:$24 sps:$4 sm:$0xff]  }
 0x5b1   : > { %13127 = vmatpush1.bf16.msra.mxu0 %v18036_v13  ;;  %v18090_v13 = vld [vmem:[#allocation7 + $0x5d8] ss:$24 sps:$4 sm:$0xff]  }
 0x5b2   : > { %13128 = vmatprep.subr.bf16.mxu0 %v18044_v20  ;;  %13008 = vmatpush1.bf16.msra.mxu1 %v18105_v48  ;;  %v18098_v20 = vld [vmem:[#allocation7 + $0x60c] ss:$24 sps:$4 sm:$0xff]   ;;  %v18159_v48 = vld [vmem:[#allocation7 + $0x2430] ss:$24 sps:$4 sm:$0xff]  }
 0x5b3   : > { %13009 = vmatprep.subr.bf16.mxu1 %v18113_v3  ;;  %v18167_v3 = vld [vmem:[#allocation7 + $0x2464] ss:$24 sps:$4 sm:$0xff]  }
 0x5b5   : > { %13129 = vmatpush1.bf16.msra.mxu0 %v18042_v38  ;;  %v24228_v38 = vpack.c.bf16 %v5280_v50, %v5280_v50  ;;  %v18146_v50 = vld [vmem:[#allocation7 + $0x78c] ss:$24 sps:$4 sm:$0xff]  }
 0x5b6   : > { %13130 = vmatprep.subr.bf16.mxu0 %v18050_v10  ;;  %13010 = vmatpush1.bf16.msra.mxu1 %v18111_v44  ;;  %v18161_v10 = vld [vmem:[#allocation7 + $0x2434] ss:$24 sps:$4 sm:$0xff]   ;;  %v19562_v44 = vmov 0  }
 0x5b7   : > { %13011 = vmatprep.subr.bf16.mxu1 %v18119_v14  ;;  %v18108_v14 = vld [vmem:[#allocation7 + $0x668] ss:$24 sps:$4 sm:$0xff]  }
 0x5b9   : > { %13131 = vmatpush1.bf16.msra.mxu0 %v18048_v18  ;;  %v18102_v18 = vld [vmem:[#allocation7 + $0x638] ss:$24 sps:$4 sm:$0xff]  }
 0x5ba   : > { %13132 = vmatprep.subr.bf16.mxu0 %v18056_v49  ;;  %13012 = vmatpush1.bf16.msra.mxu1 %v18117_v39  ;;  %v18110_v49 = vld [vmem:[#allocation7 + $0x66c] ss:$24 sps:$4 sm:$0xff]   ;;  %v18116_v39 = vld [vmem:[#allocation7 + $0x69c] ss:$24 sps:$4 sm:$0xff]  }
 0x5bb   : > { %13013 = vmatprep.subr.bf16.mxu1 %v18125_v45  ;;  %v18114_v45 = vld [vmem:[#allocation7 + $0x698] ss:$24 sps:$4 sm:$0xff]  }
 0x5bd   : > { %13133 = vmatpush1.bf16.msra.mxu0 %v18054_v27  ;;  %v18165_v27 = vld [vmem:[#allocation7 + $0x2460] ss:$24 sps:$4 sm:$0xff]  }
 0x5be   : > { %13134 = vmatprep.subr.bf16.mxu0 %v18062_v9  ;;  %13014 = vmatpush1.bf16.msra.mxu1 %v18123_v63  ;;  %v18173_v9 = vld [vmem:[#allocation7 + $0x2494] ss:$24 sps:$4 sm:$0xff]  }
 0x5bf   : > { %13015 = vmatprep.subr.bf16.mxu1 %v18131_v4  ;;  %v18122_v63 = vld [vmem:[#allocation7 + $0x6cc] ss:$24 sps:$4 sm:$0xff]   ;;  %v18120_v4 = vld [vmem:[#allocation7 + $0x6c8] ss:$24 sps:$4 sm:$0xff]  }
 0x5c1   : > { %13135 = vmatpush1.bf16.msra.mxu0 %v18060_v25  ;;  %v18171_v25 = vld [vmem:[#allocation7 + $0x2490] ss:$24 sps:$4 sm:$0xff]  }
 0x5c2   : > { %13136 = vmatprep.subr.bf16.mxu0 %v18068_v29  ;;  %13016 = vmatpush1.bf16.msra.mxu1 %v18129_v33  ;;  %v18179_v29 = vld [vmem:[#allocation7 + $0x24c4] ss:$24 sps:$4 sm:$0xff]  }
 0x5c3   : > { %13017 = vmatprep.subr.bf16.mxu1 %v18137_v2  ;;  %v18128_v33 = vld [vmem:[#allocation7 + $0x6fc] ss:$24 sps:$4 sm:$0xff]   ;;  %v18126_v2 = vld [vmem:[#allocation7 + $0x6f8] ss:$24 sps:$4 sm:$0xff]  }
 0x5c5   : > { %13137 = vmatpush1.bf16.msra.mxu0 %v18066_v23  ;;  %v18177_v23 = vld [vmem:[#allocation7 + $0x24c0] ss:$24 sps:$4 sm:$0xff]  }
 0x5c6   : > { %13138 = vmatprep.subr.bf16.mxu0 %v18074_v61  ;;  %13018 = vmatpush1.bf16.msra.mxu1 %v18135_v46  ;;  %v18185_v61 = vld [vmem:[#allocation7 + $0x24f4] ss:$24 sps:$4 sm:$0xff]  }
 0x5c7   : > { %13019 = vmatprep.subr.bf16.mxu1 %v18143_v47  ;;  %v18134_v46 = vld [vmem:[#allocation7 + $0x72c] ss:$24 sps:$4 sm:$0xff]   ;;  %v5253_v47 = vadd.f32 %v24224_v1, %v24195_v17  ;;  %v18144_v17 = vld [vmem:[#allocation7 + $0x788] ss:$24 sps:$4 sm:$0xff]  }
 0x5c8   : > { %v18212_v1 = vld [vmem:[#allocation7 + $0x44] ss:$24 sps:$4 sm:$0xff]  }
 0x5c9   : > { %13139 = vmatpush1.bf16.msra.mxu0 %v18072_v62  ;;  %v18183_v62 = vld [vmem:[#allocation7 + $0x24f0] ss:$24 sps:$4 sm:$0xff]  }
 0x5ca   : > { %13140 = vmatprep.subr.bf16.mxu0 %v18080_v57  ;;  %13020 = vmatpush1.bf16.msra.mxu1 %v18141_v59  ;;  %v18191_v57 = vld [vmem:[#allocation7 + $0x2524] ss:$24 sps:$4 sm:$0xff]   ;;  %v18197_v59 = vld [vmem:[#allocation7 + $0x2554] ss:$24 sps:$4 sm:$0xff]  }
 0x5cb   : > { %13021 = vmatprep.subr.bf16.mxu1 %v18149_v22  ;;  %v5282_v22 = vmax.f32 %v5253_v47, 0.0  ;;  %v18254_v47 = vld [vmem:[#allocation7 + $0x194] ss:$24 sps:$4 sm:$0xff]  }
 0x5cd   : > { %13141 = vmatpush1.bf16.msra.mxu0 %v18078_v36  ;;  %v18189_v36 = vld [vmem:[#allocation7 + $0x2520] ss:$24 sps:$4 sm:$0xff]  }
 0x5ce   : > { %13142 = vmatprep.subr.bf16.mxu0 %v18086_v37  ;;  %13022 = vmatpush1.bf16.msra.mxu1 %v18147_v43  ;;  %v18132_v37 = vld [vmem:[#allocation7 + $0x728] ss:$24 sps:$4 sm:$0xff]   ;;  %v18206_v43 = vld [vmem:[#allocation7 + $0x14] ss:$24 sps:$4 sm:$0xff]  }
 0x5cf   : > { %13032 = vmatprep.subr.bf16.mxu1 %v18155_v53  ;;  %v24236_v53 = vpack.c.bf16 %v5282_v22, %v5282_v22  ;;  %v18260_v22 = vld [vmem:[#allocation7 + $0x1c4] ss:$24 sps:$4 sm:$0xff]  }
 0x5d1   : > { %13143 = vmatpush1.bf16.msra.mxu0 %v18084_v42  ;;  %13024 = vmatmul.mubr.bf16.vlgmr.msra.gmra.mrb[0].mxu1 %v24228_v38  ;;  %v18195_v42 = vld [vmem:[#allocation7 + $0x2550] ss:$24 sps:$4 sm:$0xff]  }
 0x5d2   : > { %13144 = vmatprep.subr.bf16.mxu0 %v18092_v19  ;;  %13033 = vmatpush1.bf16.msra.mxu1 %v18153_v52  ;;  %v18138_v19 = vld [vmem:[#allocation7 + $0x758] ss:$24 sps:$4 sm:$0xff]  }
 0x5d3   : > { %13034 = vmatprep.subr.bf16.mxu1 %v18161_v10  ;;  %13064 = vmatprep.mubr.bf16.mxu1 %v19562_v44  ;;  %v18210_v52 = vld [vmem:[#allocation7 + $0x40] ss:$24 sps:$4 sm:$0xff]   ;;  %v18158_v10 = vld [vmem:[#allocation7 + $0x7ec] ss:$24 sps:$4 sm:$0xff]  }
 0x5d5   : > { %13145 = vmatpush1.bf16.msra.mxu0 %v18090_v13  ;;  %v18204_v13 = vld [vmem:[#allocation7 + $0x10] ss:$24 sps:$4 sm:$0xff]  }
 0x5d6   : > { %13155 = vmatprep.subr.bf16.mxu0 %v18098_v20  ;;  %13035 = vmatpush1.bf16.msra.mxu1 %v18159_v48  ;;  %v18152_v20 = vld [vmem:[#allocation7 + $0x7bc] ss:$24 sps:$4 sm:$0xff]   ;;  %v18216_v48 = vld [vmem:[#allocation7 + $0x70] ss:$24 sps:$4 sm:$0xff]  }
 0x5d7   : > { %13036 = vmatprep.subr.bf16.mxu1 %v18167_v3  ;;  %v18224_v3 = vld [vmem:[#allocation7 + $0xa4] ss:$24 sps:$4 sm:$0xff]  }
 0x5d8   : > { %13147 = vmatmul.mubr.bf16.vlgmr.msra.gmra.mrb[56].mxu0 %v24135_v32 }
 0x5d9   : > { %13156 = vmatpush1.bf16.msra.mxu0 %v18096_v5  ;;  %13187 = vmatprep.mubr.bf16.mxu0 %v24137_v12  ;;  %v18150_v5 = vld [vmem:[#allocation7 + $0x7b8] ss:$24 sps:$4 sm:$0xff]  }
 0x5da   : > { %13157 = vmatprep.subr.bf16.mxu0 %v18104_v26  ;;  %13037 = vmatpush1.bf16.msra.mxu1 %v18165_v27  ;;  %v18218_v26 = vld [vmem:[#allocation7 + $0x74] ss:$24 sps:$4 sm:$0xff]   ;;  %v18222_v27 = vld [vmem:[#allocation7 + $0xa0] ss:$24 sps:$4 sm:$0xff]  }
 0x5db   : > { %13038 = vmatprep.subr.bf16.mxu1 %v18173_v9  ;;  %v18170_v9 = vld [vmem:[#allocation7 + $0x84c] ss:$24 sps:$4 sm:$0xff]  }
 0x5dd   : > { %13158 = vmatpush1.bf16.msra.mxu0 %v18102_v18  ;;  %v18156_v18 = vld [vmem:[#allocation7 + $0x7e8] ss:$24 sps:$4 sm:$0xff]  }
 0x5de   : > { %13159 = vmatprep.subr.bf16.mxu0 %v18110_v49  ;;  %13039 = vmatpush1.bf16.msra.mxu1 %v18171_v25  ;;  %v18164_v49 = vld [vmem:[#allocation7 + $0x81c] ss:$24 sps:$4 sm:$0xff]   ;;  %v18168_v25 = vld [vmem:[#allocation7 + $0x848] ss:$24 sps:$4 sm:$0xff]  }
 0x5df   : > { %13040 = vmatprep.subr.bf16.mxu1 %v18179_v29  ;;  %v18176_v29 = vld [vmem:[#allocation7 + $0x87c] ss:$24 sps:$4 sm:$0xff]  }
 0x5e1   : > { %13160 = vmatpush1.bf16.msra.mxu0 %v18108_v14  ;;  %v18162_v14 = vld [vmem:[#allocation7 + $0x818] ss:$24 sps:$4 sm:$0xff]  }
 0x5e2   : > { %13161 = vmatprep.subr.bf16.mxu0 %v18116_v39  ;;  %13041 = vmatpush1.bf16.msra.mxu1 %v18177_v23  ;;  %v18228_v39 = vld [vmem:[#allocation7 + $0xd0] ss:$24 sps:$4 sm:$0xff]  }
 0x5e3   : > { %13042 = vmatprep.subr.bf16.mxu1 %v18185_v61  ;;  %v18174_v23 = vld [vmem:[#allocation7 + $0x878] ss:$24 sps:$4 sm:$0xff]   ;;  %v18182_v61 = vld [vmem:[#allocation7 + $0x8ac] ss:$24 sps:$4 sm:$0xff]  }
 0x5e5   : > { %13162 = vmatpush1.bf16.msra.mxu0 %v18114_v45  ;;  %v18236_v45 = vld [vmem:[#allocation7 + $0x104] ss:$24 sps:$4 sm:$0xff]  }
 0x5e6   : > { %13163 = vmatprep.subr.bf16.mxu0 %v18122_v63  ;;  %13043 = vmatpush1.bf16.msra.mxu1 %v18183_v62  ;;  %v18234_v63 = vld [vmem:[#allocation7 + $0x100] ss:$24 sps:$4 sm:$0xff]  }
 0x5e7   : > { %13044 = vmatprep.subr.bf16.mxu1 %v18191_v57  ;;  %v18180_v62 = vld [vmem:[#allocation7 + $0x8a8] ss:$24 sps:$4 sm:$0xff]   ;;  %v18188_v57 = vld [vmem:[#allocation7 + $0x8dc] ss:$24 sps:$4 sm:$0xff]  }
 0x5e9   : > { %13164 = vmatpush1.bf16.msra.mxu0 %v18120_v4  ;;  %v18242_v4 = vld [vmem:[#allocation7 + $0x134] ss:$24 sps:$4 sm:$0xff]  }
 0x5ea   : > { %13165 = vmatprep.subr.bf16.mxu0 %v18128_v33  ;;  %13045 = vmatpush1.bf16.msra.mxu1 %v18189_v36  ;;  %v18240_v33 = vld [vmem:[#allocation7 + $0x130] ss:$24 sps:$4 sm:$0xff]  }
 0x5eb   : > { %13046 = vmatprep.subr.bf16.mxu1 %v18197_v59  ;;  %v18186_v36 = vld [vmem:[#allocation7 + $0x8d8] ss:$24 sps:$4 sm:$0xff]  }
 0x5ec   : > { %v18252_v59 = vld [vmem:[#allocation7 + $0x190] ss:$24 sps:$4 sm:$0xff]  }
 0x5ed   : > { %13166 = vmatpush1.bf16.msra.mxu0 %v18126_v2  ;;  %v18248_v2 = vld [vmem:[#allocation7 + $0x164] ss:$24 sps:$4 sm:$0xff]  }
 0x5ee   : > { %13167 = vmatprep.subr.bf16.mxu0 %v18134_v46  ;;  %13047 = vmatpush1.bf16.msra.mxu1 %v18195_v42  ;;  %v18246_v46 = vld [vmem:[#allocation7 + $0x160] ss:$24 sps:$4 sm:$0xff]   ;;  %v18200_v42 = vld [vmem:[#allocation7 + $0x93c] ss:$24 sps:$4 sm:$0xff]  }
 0x5ef   : > { %13606 = vmatprep.subr.bf16.mxu1 %v18206_v43  ;;  %v18198_v43 = vld [vmem:[#allocation7 + $0x938] ss:$24 sps:$4 sm:$0xff]  }
 0x5f1   : > { %13168 = vmatpush1.bf16.msra.mxu0 %v18132_v37  ;;  %13065 = vmatmul.mubr.bf16.vlgmr.msra.gmra.mrb[0].mxu1 %v24236_v53  ;;  %v18194_v37 = vld [vmem:[#allocation7 + $0x90c] ss:$24 sps:$4 sm:$0xff]  }
 0x5f2   : > { %13169 = vmatprep.subr.bf16.mxu0 %v18140_v28  ;;  %13607 = vmatpush1.bf16.msra.mxu1 %v18204_v13  ;;  %v18192_v28 = vld [vmem:[#allocation7 + $0x908] ss:$24 sps:$4 sm:$0xff]   ;;  %v18203_v13 = vld [vmem:[#allocation7 + $0x96c] ss:$24 sps:$4 sm:$0xff]  }
 0x5f3   : > { %13638 = vmatprep.mubr.bf16.mxu1 %v24094_v30  ;;  %13608 = vmatprep.subr.bf16.mxu1 %v18212_v1  ;;  %v18230_v30 = vld [vmem:[#allocation7 + $0xd4] ss:$24 sps:$4 sm:$0xff]   ;;  %v18201_v1 = vld [vmem:[#allocation7 + $0x968] ss:$24 sps:$4 sm:$0xff]  }
 0x5f5   : > { %13170 = vmatpush1.bf16.msra.mxu0 %v18138_v19  ;;  %v18258_v19 = vld [vmem:[#allocation7 + $0x1c0] ss:$24 sps:$4 sm:$0xff]  }
 0x5f6   : > { %13171 = vmatprep.subr.bf16.mxu0 %v18146_v50  ;;  %13609 = vmatpush1.bf16.msra.mxu1 %v18210_v52  ;;  %v18266_v50 = vld [vmem:[#allocation7 + $0x1f4] ss:$24 sps:$4 sm:$0xff]  }
 0x5f7   : > { %13610 = vmatprep.subr.bf16.mxu1 %v18218_v26  ;;  %v18209_v52 = vld [vmem:[#allocation7 + $0x99c] ss:$24 sps:$4 sm:$0xff]   ;;  %v18207_v26 = vld [vmem:[#allocation7 + $0x998] ss:$24 sps:$4 sm:$0xff]  }
 0x5f9   : > { %13172 = vmatpush1.bf16.msra.mxu0 %v18144_v17  ;;  %v18264_v17 = vld [vmem:[#allocation7 + $0x1f0] ss:$24 sps:$4 sm:$0xff]  }
 0x5fa   : > { %13173 = vmatprep.subr.bf16.mxu0 %v18152_v20  ;;  %13611 = vmatpush1.bf16.msra.mxu1 %v18216_v48  ;;  %v18272_v20 = vld [vmem:[#allocation7 + $0x224] ss:$24 sps:$4 sm:$0xff]  }
 0x5fb   : > { %13612 = vmatprep.subr.bf16.mxu1 %v18224_v3  ;;  %v18215_v48 = vld [vmem:[#allocation7 + $0x9cc] ss:$24 sps:$4 sm:$0xff]   ;;  %v18213_v3 = vld [vmem:[#allocation7 + $0x9c8] ss:$24 sps:$4 sm:$0xff]  }
 0x5fd   : > { %13174 = vmatpush1.bf16.msra.mxu0 %v18150_v5  ;;  %v18270_v5 = vld [vmem:[#allocation7 + $0x220] ss:$24 sps:$4 sm:$0xff]  }
 0x5fe   : > { %13175 = vmatprep.subr.bf16.mxu0 %v18158_v10  ;;  %13613 = vmatpush1.bf16.msra.mxu1 %v18222_v27  ;;  %v18278_v10 = vld [vmem:[#allocation7 + $0x254] ss:$24 sps:$4 sm:$0xff]  }
 0x5ff   : > { %13614 = vmatprep.subr.bf16.mxu1 %v18230_v30  ;;  %v18221_v27 = vld [vmem:[#allocation7 + $0x9fc] ss:$24 sps:$4 sm:$0xff]   ;;  %v18219_v30 = vld [vmem:[#allocation7 + $0x9f8] ss:$24 sps:$4 sm:$0xff]  }
 0x601   : > { %13176 = vmatpush1.bf16.msra.mxu0 %v18156_v18  ;;  %v18276_v18 = vld [vmem:[#allocation7 + $0x250] ss:$24 sps:$4 sm:$0xff]  }
 0x602   : > { %13177 = vmatprep.subr.bf16.mxu0 %v18164_v49  ;;  %13615 = vmatpush1.bf16.msra.mxu1 %v18228_v39  ;;  %v18284_v49 = vld [vmem:[#allocation7 + $0x284] ss:$24 sps:$4 sm:$0xff]  }
 0x603   : > { %13616 = vmatprep.subr.bf16.mxu1 %v18236_v45  ;;  %v18227_v39 = vld [vmem:[#allocation7 + $0xa2c] ss:$24 sps:$4 sm:$0xff]  }
 0x605   : > { %13178 = vmatpush1.bf16.msra.mxu0 %v18162_v14  ;;  %v18282_v14 = vld [vmem:[#allocation7 + $0x280] ss:$24 sps:$4 sm:$0xff]  }
 0x606   : > { %13179 = vmatprep.subr.bf16.mxu0 %v18170_v9  ;;  %13617 = vmatpush1.bf16.msra.mxu1 %v18234_v63  ;;  %v18290_v9 = vld [vmem:[#allocation7 + $0x2b4] ss:$24 sps:$4 sm:$0xff]  }
 0x607   : > { %13618 = vmatprep.subr.bf16.mxu1 %v18242_v4  ;;  %v18296_v4 = vld [vmem:[#allocation7 + $0x2e4] ss:$24 sps:$4 sm:$0xff]  }
 0x609   : > { %13180 = vmatpush1.bf16.msra.mxu0 %v18168_v25 }
 0x60a   : > { %13181 = vmatprep.subr.bf16.mxu0 %v18176_v29  ;;  %13619 = vmatpush1.bf16.msra.mxu1 %v18240_v33  ;;  %v18288_v29 = vld [vmem:[#allocation7 + $0x2b0] ss:$24 sps:$4 sm:$0xff]   ;;  %v18233_v33 = vld [vmem:[#allocation7 + $0xa5c] ss:$24 sps:$4 sm:$0xff]  }
 0x60b   : > { %13620 = vmatprep.subr.bf16.mxu1 %v18248_v2  ;;  %v18231_v2 = vld [vmem:[#allocation7 + $0xa58] ss:$24 sps:$4 sm:$0xff]  }
 0x60d   : > { %13182 = vmatpush1.bf16.msra.mxu0 %v18174_v23  ;;  %v18225_v23 = vld [vmem:[#allocation7 + $0xa28] ss:$24 sps:$4 sm:$0xff]  }
 0x60e   : > { %13183 = vmatprep.subr.bf16.mxu0 %v18182_v61  ;;  %13621 = vmatpush1.bf16.msra.mxu1 %v18246_v46  ;;  %v18239_v46 = vld [vmem:[#allocation7 + $0xa8c] ss:$24 sps:$4 sm:$0xff]  }
 0x60f   : > { %13622 = vmatprep.subr.bf16.mxu1 %v18254_v47  ;;  %v18237_v47 = vld [vmem:[#allocation7 + $0xa88] ss:$24 sps:$4 sm:$0xff]  }
 0x611   : > { %13184 = vmatpush1.bf16.msra.mxu0 %v18180_v62  ;;  %v18294_v62 = vld [vmem:[#allocation7 + $0x2e0] ss:$24 sps:$4 sm:$0xff]  }
 0x612   : > { %13185 = vmatprep.subr.bf16.mxu0 %v18188_v57  ;;  %13623 = vmatpush1.bf16.msra.mxu1 %v18252_v59  ;;  %v18302_v57 = vld [vmem:[#allocation7 + $0x314] ss:$24 sps:$4 sm:$0xff]  }
 0x613   : > { %13624 = vmatprep.subr.bf16.mxu1 %v18260_v22  ;;  %v18245_v59 = vld [vmem:[#allocation7 + $0xabc] ss:$24 sps:$4 sm:$0xff]  }
 0x614   : > { %v18314_v22 = vld [vmem:[#allocation7 + $0x374] ss:$24 sps:$4 sm:$0xff]  }
 0x615   : > { %13186 = vmatpush1.bf16.msra.mxu0 %v18186_v36  ;;  %v18300_v36 = vld [vmem:[#allocation7 + $0x310] ss:$24 sps:$4 sm:$0xff]  }
 0x616   : > { %13196 = vmatprep.subr.bf16.mxu0 %v18194_v37  ;;  %13625 = vmatpush1.bf16.msra.mxu1 %v18258_v19  ;;  %v18308_v37 = vld [vmem:[#allocation7 + $0x344] ss:$24 sps:$4 sm:$0xff]  }
 0x617   : > { %13626 = vmatprep.subr.bf16.mxu1 %v18266_v50  ;;  %v18251_v19 = vld [vmem:[#allocation7 + $0xaec] ss:$24 sps:$4 sm:$0xff]   ;;  %v18249_v50 = vld [vmem:[#allocation7 + $0xae8] ss:$24 sps:$4 sm:$0xff]  }
 0x618   : > { %13188 = vmatmul.mubr.bf16.vlgmr.msra.gmra.mrb[56].mxu0 %v24158_v51 }
 0x619   : > { %13197 = vmatpush1.bf16.msra.mxu0 %v18192_v28  ;;  %13228 = vmatprep.mubr.bf16.mxu0 %v24160_v16  ;;  %v18306_v28 = vld [vmem:[#allocation7 + $0x340] ss:$24 sps:$4 sm:$0xff]  }
 0x61a   : > { %13198 = vmatprep.subr.bf16.mxu0 %v18200_v42  ;;  %13627 = vmatpush1.bf16.msra.mxu1 %v18264_v17  ;;  %v18243_v42 = vld [vmem:[#allocation7 + $0xab8] ss:$24 sps:$4 sm:$0xff]   ;;  %v18257_v17 = vld [vmem:[#allocation7 + $0xb1c] ss:$24 sps:$4 sm:$0xff]  }
 0x61b   : > { %13628 = vmatprep.subr.bf16.mxu1 %v18272_v20  ;;  %v18263_v20 = vld [vmem:[#allocation7 + $0xb4c] ss:$24 sps:$4 sm:$0xff]  }
 0x61d   : > { %13199 = vmatpush1.bf16.msra.mxu0 %v18198_v43  ;;  %v18312_v43 = vld [vmem:[#allocation7 + $0x370] ss:$24 sps:$4 sm:$0xff]  }
 0x61e   : > { %13200 = vmatprep.subr.bf16.mxu0 %v18203_v13  ;;  %13629 = vmatpush1.bf16.msra.mxu1 %v18270_v5  ;;  %v18320_v13 = vld [vmem:[#allocation7 + $0x3a4] ss:$24 sps:$4 sm:$0xff]   ;;  %v18261_v5 = vld [vmem:[#allocation7 + $0xb48] ss:$24 sps:$4 sm:$0xff]  }
 0x61f   : > { %13630 = vmatprep.subr.bf16.mxu1 %v18278_v10  ;;  %v18269_v10 = vld [vmem:[#allocation7 + $0xb7c] ss:$24 sps:$4 sm:$0xff]  }
 0x621   : > { %13201 = vmatpush1.bf16.msra.mxu0 %v18201_v1  ;;  %v18255_v1 = vld [vmem:[#allocation7 + $0xb18] ss:$24 sps:$4 sm:$0xff]  }
 0x622   : > { %13202 = vmatprep.subr.bf16.mxu0 %v18209_v52  ;;  %13631 = vmatpush1.bf16.msra.mxu1 %v18276_v18  ;;  %v18324_v52 = vld [vmem:[#allocation7 + $0x3d0] ss:$24 sps:$4 sm:$0xff]  }
 0x623   : > { %13632 = vmatprep.subr.bf16.mxu1 %v18284_v49  ;;  %v18267_v18 = vld [vmem:[#allocation7 + $0xb78] ss:$24 sps:$4 sm:$0xff]   ;;  %v18275_v49 = vld [vmem:[#allocation7 + $0xbac] ss:$24 sps:$4 sm:$0xff]  }
 0x625   : > { %13203 = vmatpush1.bf16.msra.mxu0 %v18207_v26  ;;  %v18332_v26 = vld [vmem:[#allocation7 + $0x404] ss:$24 sps:$4 sm:$0xff]  }
 0x626   : > { %13204 = vmatprep.subr.bf16.mxu0 %v18215_v48  ;;  %13633 = vmatpush1.bf16.msra.mxu1 %v18282_v14  ;;  %v18330_v48 = vld [vmem:[#allocation7 + $0x400] ss:$24 sps:$4 sm:$0xff]  }
 0x627   : > { %13634 = vmatprep.subr.bf16.mxu1 %v18290_v9  ;;  %v18273_v14 = vld [vmem:[#allocation7 + $0xba8] ss:$24 sps:$4 sm:$0xff]   ;;  %v18281_v9 = vld [vmem:[#allocation7 + $0xbdc] ss:$24 sps:$4 sm:$0xff]  }
 0x629   : > { %13205 = vmatpush1.bf16.msra.mxu0 %v18213_v3  ;;  %v18338_v3 = vld [vmem:[#allocation7 + $0x434] ss:$24 sps:$4 sm:$0xff]  }
 0x62a   : > { %13206 = vmatprep.subr.bf16.mxu0 %v18221_v27  ;;  %13635 = vmatpush1.bf16.msra.mxu1 %v18288_v29  ;;  %v18336_v27 = vld [vmem:[#allocation7 + $0x430] ss:$24 sps:$4 sm:$0xff]  }
 0x62b   : > { %v24242_v25 = vpop.f32.mrb[52].mxu0  ;;  %13636 = vmatprep.subr.bf16.mxu1 %v18296_v4  ;;  %v18279_v29 = vld [vmem:[#allocation7 + $0xbd8] ss:$24 sps:$4 sm:$0xff]  }
 0x62c   : > { %v24244_v45 = vpop.f32.mrb[53].mxu0  ;;  %v18348_v4 = vld [vmem:[#allocation7 + $0x490] ss:$24 sps:$4 sm:$0xff]  }
 0x62d   : > { %v12742_v63 = vpop.f32.mrb[54].mxu0  ;;  %13207 = vmatpush1.bf16.msra.mxu0 %v18219_v30  ;;  %v18344_v30 = vld [vmem:[#allocation7 + $0x464] ss:$24 sps:$4 sm:$0xff]  }
 0x62e   : > { %v12743_v61 = vpop.f32.mrb[55].mxu0  ;;  %13208 = vmatprep.subr.bf16.mxu0 %v18227_v39  ;;  %13637 = vmatpush1.bf16.msra.mxu1 %v18294_v62  ;;  %v18342_v39 = vld [vmem:[#allocation7 + $0x460] ss:$24 sps:$4 sm:$0xff]   ;;  %v18350_v63 = vld [vmem:[#allocation7 + $0x494] ss:$24 sps:$4 sm:$0xff]  }
 0x62f   : > { %13647 = vmatprep.subr.bf16.mxu1 %v18302_v57  ;;  %v18285_v61 = vld [vmem:[#allocation7 + $0xc08] ss:$24 sps:$4 sm:$0xff]   ;;  %v18356_v62 = vld [vmem:[#allocation7 + $0x4c4] ss:$24 sps:$4 sm:$0xff]   ;;  %v18291_v57 = vld [vmem:[#allocation7 + $0xc38] ss:$24 sps:$4 sm:$0xff]  }
 0x631   : > { %13209 = vmatpush1.bf16.msra.mxu0 %v18225_v23  ;;  %13639 = vmatmul.mubr.bf16.vlgmr.msra.gmra.mrb[4].mxu1 %v24115_v41  ;;  %v18318_v41 = vld [vmem:[#allocation7 + $0x3a0] ss:$24 sps:$4 sm:$0xff]   ;;  %v18287_v23 = vld [vmem:[#allocation7 + $0xc0c] ss:$24 sps:$4 sm:$0xff]  }
 0x632   : > { %13210 = vmatprep.subr.bf16.mxu0 %v18233_v33  ;;  %13648 = vmatpush1.bf16.msra.mxu1 %v18300_v36  ;;  %v18293_v33 = vld [vmem:[#allocation7 + $0xc3c] ss:$24 sps:$4 sm:$0xff]   ;;  %v18299_v36 = vld [vmem:[#allocation7 + $0xc6c] ss:$24 sps:$4 sm:$0xff]  }
 0x633   : > { %13679 = vmatprep.mubr.bf16.mxu1 %v24111_v11  ;;  %13649 = vmatprep.subr.bf16.mxu1 %v18308_v37  ;;  %v18326_v11 = vld [vmem:[#allocation7 + $0x3d4] ss:$24 sps:$4 sm:$0xff]   ;;  %v18297_v37 = vld [vmem:[#allocation7 + $0xc68] ss:$24 sps:$4 sm:$0xff]  }
 0x635   : > { %13211 = vmatpush1.bf16.msra.mxu0 %v18231_v2  ;;  %v18354_v2 = vld [vmem:[#allocation7 + $0x4c0] ss:$24 sps:$4 sm:$0xff]  }
 0x636   : > { %13212 = vmatprep.subr.bf16.mxu0 %v18239_v46  ;;  %13650 = vmatpush1.bf16.msra.mxu1 %v18306_v28  ;;  %v18362_v46 = vld [vmem:[#allocation7 + $0x4f4] ss:$24 sps:$4 sm:$0xff]  }
 0x637   : > { %13651 = vmatprep.subr.bf16.mxu1 %v18314_v22  ;;  %v18305_v28 = vld [vmem:[#allocation7 + $0xc9c] ss:$24 sps:$4 sm:$0xff]   ;;  %v18303_v22 = vld [vmem:[#allocation7 + $0xc98] ss:$24 sps:$4 sm:$0xff]  }
 0x639   : > { %13213 = vmatpush1.bf16.msra.mxu0 %v18237_v47  ;;  %v18360_v47 = vld [vmem:[#allocation7 + $0x4f0] ss:$24 sps:$4 sm:$0xff]  }
 0x63a   : > { %13214 = vmatprep.subr.bf16.mxu0 %v18245_v59  ;;  %13652 = vmatpush1.bf16.msra.mxu1 %v18312_v43  ;;  %v18368_v59 = vld [vmem:[#allocation7 + $0x524] ss:$24 sps:$4 sm:$0xff]  }
 0x63b   : > { %13653 = vmatprep.subr.bf16.mxu1 %v18320_v13  ;;  %v18311_v43 = vld [vmem:[#allocation7 + $0xccc] ss:$24 sps:$4 sm:$0xff]   ;;  %v18309_v13 = vld [vmem:[#allocation7 + $0xcc8] ss:$24 sps:$4 sm:$0xff]  }
 0x63d   : > { %13215 = vmatpush1.bf16.msra.mxu0 %v18243_v42  ;;  %v18366_v42 = vld [vmem:[#allocation7 + $0x520] ss:$24 sps:$4 sm:$0xff]  }
 0x63e   : > { %13216 = vmatprep.subr.bf16.mxu0 %v18251_v19  ;;  %13654 = vmatpush1.bf16.msra.mxu1 %v18318_v41  ;;  %v18374_v19 = vld [vmem:[#allocation7 + $0x554] ss:$24 sps:$4 sm:$0xff]  }
 0x63f   : > { %13655 = vmatprep.subr.bf16.mxu1 %v18326_v11  ;;  %v18317_v41 = vld [vmem:[#allocation7 + $0xcfc] ss:$24 sps:$4 sm:$0xff]   ;;  %v18315_v11 = vld [vmem:[#allocation7 + $0xcf8] ss:$24 sps:$4 sm:$0xff]  }
 0x641   : > { %13217 = vmatpush1.bf16.msra.mxu0 %v18249_v50  ;;  %v18372_v50 = vld [vmem:[#allocation7 + $0x550] ss:$24 sps:$4 sm:$0xff]  }
 0x642   : > { %13218 = vmatprep.subr.bf16.mxu0 %v18257_v17  ;;  %13656 = vmatpush1.bf16.msra.mxu1 %v18324_v52  ;;  %v18380_v17 = vld [vmem:[#allocation7 + $0x584] ss:$24 sps:$4 sm:$0xff]  }
 0x643   : > { %13657 = vmatprep.subr.bf16.mxu1 %v18332_v26  ;;  %v18323_v52 = vld [vmem:[#allocation7 + $0xd2c] ss:$24 sps:$4 sm:$0xff]   ;;  %v18321_v26 = vld [vmem:[#allocation7 + $0xd28] ss:$24 sps:$4 sm:$0xff]  }
 0x645   : > { %13219 = vmatpush1.bf16.msra.mxu0 %v18255_v1  ;;  %v18378_v1 = vld [vmem:[#allocation7 + $0x580] ss:$24 sps:$4 sm:$0xff]  }
 0x646   : > { %13220 = vmatprep.subr.bf16.mxu0 %v18263_v20  ;;  %13658 = vmatpush1.bf16.msra.mxu1 %v18330_v48  ;;  %v18386_v20 = vld [vmem:[#allocation7 + $0x5b4] ss:$24 sps:$4 sm:$0xff]  }
 0x647   : > { %13659 = vmatprep.subr.bf16.mxu1 %v18338_v3  ;;  %v18329_v48 = vld [vmem:[#allocation7 + $0xd5c] ss:$24 sps:$4 sm:$0xff]   ;;  %v18327_v3 = vld [vmem:[#allocation7 + $0xd58] ss:$24 sps:$4 sm:$0xff]  }
 0x649   : > { %13221 = vmatpush1.bf16.msra.mxu0 %v18261_v5  ;;  %v18384_v5 = vld [vmem:[#allocation7 + $0x5b0] ss:$24 sps:$4 sm:$0xff]  }
 0x64a   : > { %13222 = vmatprep.subr.bf16.mxu0 %v18269_v10  ;;  %13660 = vmatpush1.bf16.msra.mxu1 %v18336_v27  ;;  %v18392_v10 = vld [vmem:[#allocation7 + $0x5e4] ss:$24 sps:$4 sm:$0xff]  }
 0x64b   : > { %13661 = vmatprep.subr.bf16.mxu1 %v18344_v30  ;;  %v18335_v27 = vld [vmem:[#allocation7 + $0xd8c] ss:$24 sps:$4 sm:$0xff]   ;;  %v18333_v30 = vld [vmem:[#allocation7 + $0xd88] ss:$24 sps:$4 sm:$0xff]  }
 0x64d   : > { %13223 = vmatpush1.bf16.msra.mxu0 %v18267_v18  ;;  %v18390_v18 = vld [vmem:[#allocation7 + $0x5e0] ss:$24 sps:$4 sm:$0xff]  }
 0x64e   : > { %13224 = vmatprep.subr.bf16.mxu0 %v18275_v49  ;;  %13662 = vmatpush1.bf16.msra.mxu1 %v18342_v39  ;;  %v18398_v49 = vld [vmem:[#allocation7 + $0x614] ss:$24 sps:$4 sm:$0xff]  }
 0x64f   : > { %13663 = vmatprep.subr.bf16.mxu1 %v18350_v63  ;;  %v18341_v39 = vld [vmem:[#allocation7 + $0xdbc] ss:$24 sps:$4 sm:$0xff]   ;;  %v18339_v63 = vld [vmem:[#allocation7 + $0xdb8] ss:$24 sps:$4 sm:$0xff]  }
 0x651   : > { %13225 = vmatpush1.bf16.msra.mxu0 %v18273_v14  ;;  %v18396_v14 = vld [vmem:[#allocation7 + $0x610] ss:$24 sps:$4 sm:$0xff]  }
 0x652   : > { %13226 = vmatprep.subr.bf16.mxu0 %v18281_v9  ;;  %13664 = vmatpush1.bf16.msra.mxu1 %v18348_v4  ;;  %v18404_v9 = vld [vmem:[#allocation7 + $0x644] ss:$24 sps:$4 sm:$0xff]  }
 0x653   : > { %13665 = vmatprep.subr.bf16.mxu1 %v18356_v62  ;;  %v18347_v4 = vld [vmem:[#allocation7 + $0xdec] ss:$24 sps:$4 sm:$0xff]  }
 0x654   : > { %v18416_v62 = vld [vmem:[#allocation7 + $0x6a4] ss:$24 sps:$4 sm:$0xff]  }
 0x655   : > { %13227 = vmatpush1.bf16.msra.mxu0 %v18279_v29  ;;  %v18402_v29 = vld [vmem:[#allocation7 + $0x640] ss:$24 sps:$4 sm:$0xff]  }
 0x656   : > { %13237 = vmatprep.subr.bf16.mxu0 %v18287_v23  ;;  %13666 = vmatpush1.bf16.msra.mxu1 %v18354_v2  ;;  %v18410_v23 = vld [vmem:[#allocation7 + $0x674] ss:$24 sps:$4 sm:$0xff]  }
 0x657   : > { %13667 = vmatprep.subr.bf16.mxu1 %v18362_v46  ;;  %v18353_v2 = vld [vmem:[#allocation7 + $0xe1c] ss:$24 sps:$4 sm:$0xff]   ;;  %v18359_v46 = vld [vmem:[#allocation7 + $0xe4c] ss:$24 sps:$4 sm:$0xff]  }
 0x658   : > { %13229 = vmatmul.mubr.bf16.vlgmr.msra.gmra.mrb[56].mxu0 %v24179_v54 }
 0x659   : > { %13238 = vmatpush1.bf16.msra.mxu0 %v18285_v61  ;;  %13269 = vmatprep.mubr.bf16.mxu0 %v24181_v55  ;;  %v18408_v61 = vld [vmem:[#allocation7 + $0x670] ss:$24 sps:$4 sm:$0xff]  }
 0x65a   : > { %13239 = vmatprep.subr.bf16.mxu0 %v18293_v33  ;;  %13668 = vmatpush1.bf16.msra.mxu1 %v18360_v47  ;;  %v18345_v33 = vld [vmem:[#allocation7 + $0xde8] ss:$24 sps:$4 sm:$0xff]  }
 0x65b   : > { %13669 = vmatprep.subr.bf16.mxu1 %v18368_v59  ;;  %v18357_v47 = vld [vmem:[#allocation7 + $0xe48] ss:$24 sps:$4 sm:$0xff]   ;;  %v18365_v59 = vld [vmem:[#allocation7 + $0xe7c] ss:$24 sps:$4 sm:$0xff]  }
 0x65d   : > { %13240 = vmatpush1.bf16.msra.mxu0 %v18291_v57  ;;  %v18351_v57 = vld [vmem:[#allocation7 + $0xe18] ss:$24 sps:$4 sm:$0xff]  }
 0x65e   : > { %13241 = vmatprep.subr.bf16.mxu0 %v18299_v36  ;;  %13670 = vmatpush1.bf16.msra.mxu1 %v18366_v42  ;;  %v18420_v36 = vld [vmem:[#allocation7 + $0x6d0] ss:$24 sps:$4 sm:$0xff]  }
 0x65f   : > { %13671 = vmatprep.subr.bf16.mxu1 %v18374_v19  ;;  %v18363_v42 = vld [vmem:[#allocation7 + $0xe78] ss:$24 sps:$4 sm:$0xff]   ;;  %v18371_v19 = vld [vmem:[#allocation7 + $0xeac] ss:$24 sps:$4 sm:$0xff]  }
 0x661   : > { %13242 = vmatpush1.bf16.msra.mxu0 %v18297_v37  ;;  %v18428_v37 = vld [vmem:[#allocation7 + $0x704] ss:$24 sps:$4 sm:$0xff]  }
 0x662   : > { %13243 = vmatprep.subr.bf16.mxu0 %v18305_v28  ;;  %13672 = vmatpush1.bf16.msra.mxu1 %v18372_v50  ;;  %v18426_v28 = vld [vmem:[#allocation7 + $0x700] ss:$24 sps:$4 sm:$0xff]  }
 0x663   : > { %13673 = vmatprep.subr.bf16.mxu1 %v18380_v17  ;;  %v18369_v50 = vld [vmem:[#allocation7 + $0xea8] ss:$24 sps:$4 sm:$0xff]   ;;  %v18377_v17 = vld [vmem:[#allocation7 + $0xedc] ss:$24 sps:$4 sm:$0xff]  }
 0x665   : > { %13244 = vmatpush1.bf16.msra.mxu0 %v18303_v22  ;;  %v18434_v22 = vld [vmem:[#allocation7 + $0x734] ss:$24 sps:$4 sm:$0xff]  }
 0x666   : > { %13245 = vmatprep.subr.bf16.mxu0 %v18311_v43  ;;  %13674 = vmatpush1.bf16.msra.mxu1 %v18378_v1  ;;  %v18432_v43 = vld [vmem:[#allocation7 + $0x730] ss:$24 sps:$4 sm:$0xff]  }
 0x667   : > { %13675 = vmatprep.subr.bf16.mxu1 %v18386_v20  ;;  %v18375_v1 = vld [vmem:[#allocation7 + $0xed8] ss:$24 sps:$4 sm:$0xff]   ;;  %v18383_v20 = vld [vmem:[#allocation7 + $0xf0c] ss:$24 sps:$4 sm:$0xff]  }
 0x669   : > { %13246 = vmatpush1.bf16.msra.mxu0 %v18309_v13  ;;  %v18440_v13 = vld [vmem:[#allocation7 + $0x764] ss:$24 sps:$4 sm:$0xff]  }
 0x66a   : > { %13247 = vmatprep.subr.bf16.mxu0 %v18317_v41  ;;  %13676 = vmatpush1.bf16.msra.mxu1 %v18384_v5  ;;  %v18438_v41 = vld [vmem:[#allocation7 + $0x760] ss:$24 sps:$4 sm:$0xff]  }
 0x66b   : > { %13677 = vmatprep.subr.bf16.mxu1 %v18392_v10  ;;  %v18381_v5 = vld [vmem:[#allocation7 + $0xf08] ss:$24 sps:$4 sm:$0xff]   ;;  %v18452_v10 = vld [vmem:[#allocation7 + $0x7c4] ss:$24 sps:$4 sm:$0xff]  }
 0x66d   : > { %13248 = vmatpush1.bf16.msra.mxu0 %v18315_v11  ;;  %v18446_v11 = vld [vmem:[#allocation7 + $0x794] ss:$24 sps:$4 sm:$0xff]  }
 0x66e   : > { %13249 = vmatprep.subr.bf16.mxu0 %v18323_v52  ;;  %13678 = vmatpush1.bf16.msra.mxu1 %v18390_v18  ;;  %v18444_v52 = vld [vmem:[#allocation7 + $0x790] ss:$24 sps:$4 sm:$0xff]  }
 0x66f   : > { %13688 = vmatprep.subr.bf16.mxu1 %v18398_v49  ;;  %v18387_v18 = vld [vmem:[#allocation7 + $0xf38] ss:$24 sps:$4 sm:$0xff]   ;;  %v18395_v49 = vld [vmem:[#allocation7 + $0xf6c] ss:$24 sps:$4 sm:$0xff]  }
 0x671   : > { %13250 = vmatpush1.bf16.msra.mxu0 %v18321_v26  ;;  %13680 = vmatmul.mubr.bf16.vlgmr.msra.gmra.mrb[4].mxu1 %v24135_v32  ;;  %v18414_v32 = vld [vmem:[#allocation7 + $0x6a0] ss:$24 sps:$4 sm:$0xff]   ;;  %v18389_v26 = vld [vmem:[#allocation7 + $0xf3c] ss:$24 sps:$4 sm:$0xff]  }
 0x672   : > { %13251 = vmatprep.subr.bf16.mxu0 %v18329_v48  ;;  %13689 = vmatpush1.bf16.msra.mxu1 %v18396_v14  ;;  %v18450_v48 = vld [vmem:[#allocation7 + $0x7c0] ss:$24 sps:$4 sm:$0xff]  }
 0x673   : > { %13720 = vmatprep.mubr.bf16.mxu1 %v24137_v12  ;;  %13690 = vmatprep.subr.bf16.mxu1 %v18404_v9  ;;  %v18422_v12 = vld [vmem:[#allocation7 + $0x6d4] ss:$24 sps:$4 sm:$0xff]   ;;  %v18393_v14 = vld [vmem:[#allocation7 + $0xf68] ss:$24 sps:$4 sm:$0xff]  }
 0x674   : > { %v18401_v9 = vld [vmem:[#allocation7 + $0xf9c] ss:$24 sps:$4 sm:$0xff]  }
 0x675   : > { %13252 = vmatpush1.bf16.msra.mxu0 %v18327_v3  ;;  %v18458_v3 = vld [vmem:[#allocation7 + $0x7f4] ss:$24 sps:$4 sm:$0xff]  }
 0x676   : > { %13253 = vmatprep.subr.bf16.mxu0 %v18335_v27  ;;  %13691 = vmatpush1.bf16.msra.mxu1 %v18402_v29  ;;  %v18456_v27 = vld [vmem:[#allocation7 + $0x7f0] ss:$24 sps:$4 sm:$0xff]  }
 0x677   : > { %13692 = vmatprep.subr.bf16.mxu1 %v18410_v23  ;;  %v18399_v29 = vld [vmem:[#allocation7 + $0xf98] ss:$24 sps:$4 sm:$0xff]   ;;  %v18407_v23 = vld [vmem:[#allocation7 + $0xfcc] ss:$24 sps:$4 sm:$0xff]  }
 0x679   : > { %13254 = vmatpush1.bf16.msra.mxu0 %v18333_v30  ;;  %v18464_v30 = vld [vmem:[#allocation7 + $0x824] ss:$24 sps:$4 sm:$0xff]  }
 0x67a   : > { %13255 = vmatprep.subr.bf16.mxu0 %v18341_v39  ;;  %13693 = vmatpush1.bf16.msra.mxu1 %v18408_v61  ;;  %v18462_v39 = vld [vmem:[#allocation7 + $0x820] ss:$24 sps:$4 sm:$0xff]  }
 0x67b   : > { %13694 = vmatprep.subr.bf16.mxu1 %v18416_v62  ;;  %v18405_v61 = vld [vmem:[#allocation7 + $0xfc8] ss:$24 sps:$4 sm:$0xff]   ;;  %v18413_v62 = vld [vmem:[#allocation7 + $0xffc] ss:$24 sps:$4 sm:$0xff]  }
 0x67d   : > { %13256 = vmatpush1.bf16.msra.mxu0 %v18339_v63  ;;  %v18470_v63 = vld [vmem:[#allocation7 + $0x854] ss:$24 sps:$4 sm:$0xff]  }
 0x67e   : > { %13257 = vmatprep.subr.bf16.mxu0 %v18347_v4  ;;  %13695 = vmatpush1.bf16.msra.mxu1 %v18414_v32  ;;  %v18468_v4 = vld [vmem:[#allocation7 + $0x850] ss:$24 sps:$4 sm:$0xff]  }
 0x67f   : > { %13696 = vmatprep.subr.bf16.mxu1 %v18422_v12  ;;  %v18411_v32 = vld [vmem:[#allocation7 + $0xff8] ss:$24 sps:$4 sm:$0xff]   ;;  %v18419_v12 = vld [vmem:[#allocation7 + $0x102c] ss:$24 sps:$4 sm:$0xff]  }
 0x681   : > { %13258 = vmatpush1.bf16.msra.mxu0 %v18345_v33  ;;  %v18476_v33 = vld [vmem:[#allocation7 + $0x884] ss:$24 sps:$4 sm:$0xff]  }
 0x682   : > { %13259 = vmatprep.subr.bf16.mxu0 %v18353_v2  ;;  %13697 = vmatpush1.bf16.msra.mxu1 %v18420_v36  ;;  %v18474_v2 = vld [vmem:[#allocation7 + $0x880] ss:$24 sps:$4 sm:$0xff]  }
 0x683   : > { %13698 = vmatprep.subr.bf16.mxu1 %v18428_v37  ;;  %v18417_v36 = vld [vmem:[#allocation7 + $0x1028] ss:$24 sps:$4 sm:$0xff]   ;;  %v18425_v37 = vld [vmem:[#allocation7 + $0x105c] ss:$24 sps:$4 sm:$0xff]  }
 0x685   : > { %13260 = vmatpush1.bf16.msra.mxu0 %v18351_v57  ;;  %v18482_v57 = vld [vmem:[#allocation7 + $0x8b4] ss:$24 sps:$4 sm:$0xff]  }
 0x686   : > { %13261 = vmatprep.subr.bf16.mxu0 %v18359_v46  ;;  %13699 = vmatpush1.bf16.msra.mxu1 %v18426_v28  ;;  %v18480_v46 = vld [vmem:[#allocation7 + $0x8b0] ss:$24 sps:$4 sm:$0xff]  }
 0x687   : > { %13700 = vmatprep.subr.bf16.mxu1 %v18434_v22  ;;  %v18423_v28 = vld [vmem:[#allocation7 + $0x1058] ss:$24 sps:$4 sm:$0xff]   ;;  %v18431_v22 = vld [vmem:[#allocation7 + $0x108c] ss:$24 sps:$4 sm:$0xff]  }
 0x689   : > { %13262 = vmatpush1.bf16.msra.mxu0 %v18357_v47  ;;  %v18488_v47 = vld [vmem:[#allocation7 + $0x8e4] ss:$24 sps:$4 sm:$0xff]  }
 0x68a   : > { %13263 = vmatprep.subr.bf16.mxu0 %v18365_v59  ;;  %13701 = vmatpush1.bf16.msra.mxu1 %v18432_v43  ;;  %v18486_v59 = vld [vmem:[#allocation7 + $0x8e0] ss:$24 sps:$4 sm:$0xff]  }
 0x68b   : > { %13702 = vmatprep.subr.bf16.mxu1 %v18440_v13  ;;  %v18429_v43 = vld [vmem:[#allocation7 + $0x1088] ss:$24 sps:$4 sm:$0xff]   ;;  %v18437_v13 = vld [vmem:[#allocation7 + $0x10bc] ss:$24 sps:$4 sm:$0xff]  }
 0x68d   : > { %13264 = vmatpush1.bf16.msra.mxu0 %v18363_v42  ;;  %v18494_v42 = vld [vmem:[#allocation7 + $0x914] ss:$24 sps:$4 sm:$0xff]  }
 0x68e   : > { %13265 = vmatprep.subr.bf16.mxu0 %v18371_v19  ;;  %13703 = vmatpush1.bf16.msra.mxu1 %v18438_v41  ;;  %v18492_v19 = vld [vmem:[#allocation7 + $0x910] ss:$24 sps:$4 sm:$0xff]   ;;  %v6510_v41 = vlaneseq }
 0x68f   : > { %13704 = vmatprep.subr.bf16.mxu1 %v18446_v11  ;;  %v18506_v11 = vld [vmem:[#allocation7 + $0x974] ss:$24 sps:$4 sm:$0xff]  }
 0x691   : > { %13266 = vmatpush1.bf16.msra.mxu0 %v18369_v50  ;;  %v18500_v50 = vld [vmem:[#allocation7 + $0x944] ss:$24 sps:$4 sm:$0xff]  }
 0x692   : > { %13267 = vmatprep.subr.bf16.mxu0 %v18377_v17  ;;  %13705 = vmatpush1.bf16.msra.mxu1 %v18444_v52  ;;  %v18498_v17 = vld [vmem:[#allocation7 + $0x940] ss:$24 sps:$4 sm:$0xff]   ;;  %v18504_v52 = vld [vmem:[#allocation7 + $0x970] ss:$24 sps:$4 sm:$0xff]  }
 0x693   : > { %13706 = vmatprep.subr.bf16.mxu1 %v18452_v10  ;;  %v18512_v10 = vld [vmem:[#allocation7 + $0x9a4] ss:$24 sps:$4 sm:$0xff]  }
 0x695   : > { %13268 = vmatpush1.bf16.msra.mxu0 %v18375_v1  ;;  %v18435_v1 = vld [vmem:[#allocation7 + $0x10b8] ss:$24 sps:$4 sm:$0xff]  }
 0x696   : > { %13278 = vmatprep.subr.bf16.mxu0 %v18383_v20  ;;  %13707 = vmatpush1.bf16.msra.mxu1 %v18450_v48  ;;  %v18443_v20 = vld [vmem:[#allocation7 + $0x10ec] ss:$24 sps:$4 sm:$0xff]  }
 0x697   : > { %13708 = vmatprep.subr.bf16.mxu1 %v18458_v3  ;;  %v18518_v3 = vld [vmem:[#allocation7 + $0x9d4] ss:$24 sps:$4 sm:$0xff]  }
 0x698   : > { %13270 = vmatmul.mubr.bf16.vlgmr.msra.gmra.mrb[56].mxu0 %v24204_v0 }
 0x699   : > { %13279 = vmatpush1.bf16.msra.mxu0 %v18381_v5  ;;  %13310 = vmatprep.mubr.bf16.mxu0 %v24109_v35  ;;  %v24256_v5 = vshrl.u32 %v6510_v41, 7  ;;  %v18548_v41 = vld [vmem:[#allocation7 + $0xac4] ss:$24 sps:$4 sm:$0xff]  }
 0x69a   : > { %13280 = vmatprep.subr.bf16.mxu0 %v18389_v26  ;;  %13709 = vmatpush1.bf16.msra.mxu1 %v18456_v27  ;;  %v18441_v26 = vld [vmem:[#allocation7 + $0x10e8] ss:$24 sps:$4 sm:$0xff]  }
 0x69b   : > { %13710 = vmatprep.subr.bf16.mxu1 %v18464_v30  ;;  %v6512_v48 = vsub.s32 0, %v24256_v5  ;;  %v6516_v27 = vsub.s32 1, %v24256_v5  ;;  %v18516_v30 = vld [vmem:[#allocation7 + $0x9d0] ss:$24 sps:$4 sm:$0xff]  }
 0x69d   : > { %13281 = vmatpush1.bf16.msra.mxu0 %v18387_v18  ;;  %v18447_v18 = vld [vmem:[#allocation7 + $0x1118] ss:$24 sps:$4 sm:$0xff]  }
 0x69e   : > { %13282 = vmatprep.subr.bf16.mxu0 %v18395_v49  ;;  %13711 = vmatpush1.bf16.msra.mxu1 %v18462_v39  ;;  %v6508_v49 = vld [vmem:[#allocation8] sm:$0x3f] }
 0x69f   : > { %13712 = vmatprep.subr.bf16.mxu1 %v18470_v63  ;;  %v18453_v39 = vld [vmem:[#allocation7 + $0x1148] ss:$24 sps:$4 sm:$0xff]   ;;  %v6517_v63 = vrot.slane %v6508_v49, %v6516_v27 }
 0x6a0   : > { %v18564_v27 = vld [vmem:[#allocation7 + $0xb50] ss:$24 sps:$4 sm:$0xff]  }
 0x6a1   : > { %13283 = vmatpush1.bf16.msra.mxu0 %v18393_v14  ;;  %v18455_v14 = vld [vmem:[#allocation7 + $0x114c] ss:$24 sps:$4 sm:$0xff]  }
 0x6a2   : > { %13284 = vmatprep.subr.bf16.mxu0 %v18401_v9  ;;  %13713 = vmatpush1.bf16.msra.mxu1 %v18468_v4  ;;  %v6513_v9 = vrot.slane %v6508_v49, %v6512_v48  ;;  %v18522_v4 = vld [vmem:[#allocation7 + $0xa00] ss:$24 sps:$4 sm:$0xff]   ;;  %v18503_v49 = vld [vmem:[#allocation7 + $0x12cc] ss:$24 sps:$4 sm:$0xff]  }
 0x6a3   : > { %13714 = vmatprep.subr.bf16.mxu1 %v18476_v33  ;;  %v18459_v33 = vld [vmem:[#allocation7 + $0x1178] ss:$24 sps:$4 sm:$0xff]  }
 0x6a4   : > { %v18558_v48 = vld [vmem:[#allocation7 + $0xb20] ss:$24 sps:$4 sm:$0xff]  }
 0x6a5   : > { %13285 = vmatpush1.bf16.msra.mxu0 %v18399_v29  ;;  %v18524_v29 = vld [vmem:[#allocation7 + $0xa04] ss:$24 sps:$4 sm:$0xff]  }
 0x6a6   : > { %13286 = vmatprep.subr.bf16.mxu0 %v18407_v23  ;;  %13715 = vmatpush1.bf16.msra.mxu1 %v18474_v2  ;;  %v18461_v23 = vld [vmem:[#allocation7 + $0x117c] ss:$24 sps:$4 sm:$0xff]   ;;  %v17197_v2 = vadd.f32 %v24244_v45, %v6517_v63  ;;  %v18534_v45 = vld [vmem:[#allocation7 + $0xa60] ss:$24 sps:$4 sm:$0xff]  }
 0x6a7   : > { %13716 = vmatprep.subr.bf16.mxu1 %v18482_v57  ;;  %v18578_v63 = vld [vmem:[#allocation7 + $0xbb4] ss:$24 sps:$4 sm:$0xff]  }
 0x6a9   : > { %13287 = vmatpush1.bf16.msra.mxu0 %v18405_v61  ;;  %v17195_v61 = vadd.f32 %v24242_v25, %v6513_v9  ;;  %v18509_v9 = vld [vmem:[#allocation7 + $0x12fc] ss:$24 sps:$4 sm:$0xff]  }
 0x6aa   : > { %13288 = vmatprep.subr.bf16.mxu0 %v18413_v62  ;;  %13717 = vmatpush1.bf16.msra.mxu1 %v18480_v46  ;;  %v18530_v62 = vld [vmem:[#allocation7 + $0xa34] ss:$24 sps:$4 sm:$0xff]  }
 0x6ab   : > { %13718 = vmatprep.subr.bf16.mxu1 %v18488_v47 }
 0x6ad   : > { %13289 = vmatpush1.bf16.msra.mxu0 %v18411_v32  ;;  %v18467_v32 = vld [vmem:[#allocation7 + $0x11ac] ss:$24 sps:$4 sm:$0xff]  }
 0x6ae   : > { %13290 = vmatprep.subr.bf16.mxu0 %v18419_v12  ;;  %13719 = vmatpush1.bf16.msra.mxu1 %v18486_v59  ;;  %v18465_v59 = vld [vmem:[#allocation7 + $0x11a8] ss:$24 sps:$4 sm:$0xff]  }
 0x6af   : > { %13729 = vmatprep.subr.bf16.mxu1 %v18494_v42  ;;  %v18473_v42 = vld [vmem:[#allocation7 + $0x11dc] ss:$24 sps:$4 sm:$0xff]  }
 0x6b1   : > { %13291 = vmatpush1.bf16.msra.mxu0 %v18417_v36  ;;  %13721 = vmatmul.mubr.bf16.vlgmr.msra.gmra.mrb[4].mxu1 %v24158_v51  ;;  %v18449_v51 = vld [vmem:[#allocation7 + $0x111c] ss:$24 sps:$4 sm:$0xff]  }
 0x6b2   : > { %13292 = vmatprep.subr.bf16.mxu0 %v18425_v37  ;;  %13730 = vmatpush1.bf16.msra.mxu1 %v18492_v19  ;;  %v18528_v37 = vld [vmem:[#allocation7 + $0xa30] ss:$24 sps:$4 sm:$0xff]   ;;  %v18542_v19 = vld [vmem:[#allocation7 + $0xa94] ss:$24 sps:$4 sm:$0xff]  }
 0x6b3   : > { %13761 = vmatprep.mubr.bf16.mxu1 %v24160_v16  ;;  %13731 = vmatprep.subr.bf16.mxu1 %v18500_v50  ;;  %v18510_v16 = vld [vmem:[#allocation7 + $0x9a0] ss:$24 sps:$4 sm:$0xff]   ;;  %v18540_v50 = vld [vmem:[#allocation7 + $0xa90] ss:$24 sps:$4 sm:$0xff]  }
 0x6b5   : > { %13293 = vmatpush1.bf16.msra.mxu0 %v18423_v28  ;;  %v18536_v28 = vld [vmem:[#allocation7 + $0xa64] ss:$24 sps:$4 sm:$0xff]  }
 0x6b6   : > { %13294 = vmatprep.subr.bf16.mxu0 %v18431_v22  ;;  %13732 = vmatpush1.bf16.msra.mxu1 %v18498_v17  ;;  %v18471_v22 = vld [vmem:[#allocation7 + $0x11d8] ss:$24 sps:$4 sm:$0xff]   ;;  %v18485_v17 = vld [vmem:[#allocation7 + $0x123c] ss:$24 sps:$4 sm:$0xff]  }
 0x6b7   : > { %13733 = vmatprep.subr.bf16.mxu1 %v18506_v11  ;;  %v18483_v11 = vld [vmem:[#allocation7 + $0x1238] ss:$24 sps:$4 sm:$0xff]  }
 0x6b9   : > { %13295 = vmatpush1.bf16.msra.mxu0 %v18429_v43  ;;  %v18479_v43 = vld [vmem:[#allocation7 + $0x120c] ss:$24 sps:$4 sm:$0xff]  }
 0x6ba   : > { %13296 = vmatprep.subr.bf16.mxu0 %v18437_v13  ;;  %13734 = vmatpush1.bf16.msra.mxu1 %v18504_v52  ;;  %v18477_v13 = vld [vmem:[#allocation7 + $0x1208] ss:$24 sps:$4 sm:$0xff]   ;;  %v18491_v52 = vld [vmem:[#allocation7 + $0x126c] ss:$24 sps:$4 sm:$0xff]  }
 0x6bb   : > { %13735 = vmatprep.subr.bf16.mxu1 %v18512_v10  ;;  %v18489_v10 = vld [vmem:[#allocation7 + $0x1268] ss:$24 sps:$4 sm:$0xff]  }
 0x6bd   : > { %13297 = vmatpush1.bf16.msra.mxu0 %v18435_v1  ;;  %v18546_v1 = vld [vmem:[#allocation7 + $0xac0] ss:$24 sps:$4 sm:$0xff]  }
 0x6be   : > { %13298 = vmatprep.subr.bf16.mxu0 %v18443_v20  ;;  %13736 = vmatpush1.bf16.msra.mxu1 %v18510_v16  ;;  %v18554_v20 = vld [vmem:[#allocation7 + $0xaf4] ss:$24 sps:$4 sm:$0xff]  }
 0x6bf   : > { %13737 = vmatprep.subr.bf16.mxu1 %v18518_v3  ;;  %v18497_v16 = vld [vmem:[#allocation7 + $0x129c] ss:$24 sps:$4 sm:$0xff]  }
 0x6c0   : > { %v18566_v3 = vld [vmem:[#allocation7 + $0xb54] ss:$24 sps:$4 sm:$0xff]  }
 0x6c1   : > { %13299 = vmatpush1.bf16.msra.mxu0 %v18441_v26  ;;  %v18552_v26 = vld [vmem:[#allocation7 + $0xaf0] ss:$24 sps:$4 sm:$0xff]  }
 0x6c2   : > { %13300 = vmatprep.subr.bf16.mxu0 %v18449_v51  ;;  %13738 = vmatpush1.bf16.msra.mxu1 %v18516_v30  ;;  %v18560_v51 = vld [vmem:[#allocation7 + $0xb24] ss:$24 sps:$4 sm:$0xff]  }
 0x6c3   : > { %13739 = vmatprep.subr.bf16.mxu1 %v18524_v29  ;;  %v18572_v30 = vld [vmem:[#allocation7 + $0xb84] ss:$24 sps:$4 sm:$0xff]   ;;  %v18507_v29 = vld [vmem:[#allocation7 + $0x12f8] ss:$24 sps:$4 sm:$0xff]  }
 0x6c4   : > { %v13066_v57 = vpop.f32.mrb[0].mxu1 }
 0x6c5   : > { %13301 = vmatpush1.bf16.msra.mxu0 %v18447_v18  ;;  %v24262_v12 = vadd.f32 %v17195_v61, %v13066_v57  ;;  %v13068_v46 = vpop.f32.mrb[1].mxu1  ;;  %v18495_v18 = vld [vmem:[#allocation7 + $0x1298] ss:$24 sps:$4 sm:$0xff]   ;;  %v18513_v61 = vld [vmem:[#allocation7 + $0x1328] ss:$24 sps:$4 sm:$0xff]  }
 0x6c6   : > { %13302 = vmatprep.subr.bf16.mxu0 %v18455_v14  ;;  %v24264_v36 = vadd.f32 %v17197_v2, %v13068_v46  ;;  %v13070_v47 = vpop.f32.mrb[2].mxu1  ;;  %13740 = vmatpush1.bf16.msra.mxu1 %v18522_v4  ;;  %v18501_v14 = vld [vmem:[#allocation7 + $0x12c8] ss:$24 sps:$4 sm:$0xff]   ;;  %v18590_v57 = vld [vmem:[#allocation7 + $0xc14] ss:$24 sps:$4 sm:$0xff]  }
 0x6c7   : > { %v13071_v25 = vpop.f32.mrb[3].mxu1  ;;  %13741 = vmatprep.subr.bf16.mxu1 %v18530_v62  ;;  %v18576_v4 = vld [vmem:[#allocation7 + $0xbb0] ss:$24 sps:$4 sm:$0xff]   ;;  %v18521_v62 = vld [vmem:[#allocation7 + $0x135c] ss:$24 sps:$4 sm:$0xff]  }
 0x6c8   : > { %v18582_v2 = vld [vmem:[#allocation7 + $0xbe0] ss:$24 sps:$4 sm:$0xff]   ;;  %v18527_v46 = vld [vmem:[#allocation7 + $0x138c] ss:$24 sps:$4 sm:$0xff]   ;;  %v18588_v47 = vld [vmem:[#allocation7 + $0xc10] ss:$24 sps:$4 sm:$0xff]  }
 0x6c9   : > { %13303 = vmatpush1.bf16.msra.mxu0 %v18453_v39  ;;  %v18570_v39 = vld [vmem:[#allocation7 + $0xb80] ss:$24 sps:$4 sm:$0xff]   ;;  %v18533_v25 = vld [vmem:[#allocation7 + $0x13bc] ss:$24 sps:$4 sm:$0xff]  }
 0x6ca   : > { %13304 = vmatprep.subr.bf16.mxu0 %v18461_v23  ;;  %13742 = vmatpush1.bf16.msra.mxu1 %v18528_v37  ;;  %v18515_v23 = vld [vmem:[#allocation7 + $0x132c] ss:$24 sps:$4 sm:$0xff]   ;;  %v18525_v37 = vld [vmem:[#allocation7 + $0x1388] ss:$24 sps:$4 sm:$0xff]  }
 0x6cb   : > { %13743 = vmatprep.subr.bf16.mxu1 %v18536_v28  ;;  %v18594_v28 = vld [vmem:[#allocation7 + $0xc40] ss:$24 sps:$4 sm:$0xff]  }
 0x6cd   : > { %13305 = vmatpush1.bf16.msra.mxu0 %v18459_v33  ;;  %v18584_v33 = vld [vmem:[#allocation7 + $0xbe4] ss:$24 sps:$4 sm:$0xff]  }
 0x6ce   : > { %13306 = vmatprep.subr.bf16.mxu0 %v18467_v32  ;;  %13744 = vmatpush1.bf16.msra.mxu1 %v18534_v45  ;;  %v18519_v32 = vld [vmem:[#allocation7 + $0x1358] ss:$24 sps:$4 sm:$0xff]   ;;  %v18602_v45 = vld [vmem:[#allocation7 + $0xc74] ss:$24 sps:$4 sm:$0xff]  }
 0x6cf   : > { %13745 = vmatprep.subr.bf16.mxu1 %v18542_v19  ;;  %v18600_v19 = vld [vmem:[#allocation7 + $0xc70] ss:$24 sps:$4 sm:$0xff]  }
 0x6d1   : > { %13307 = vmatpush1.bf16.msra.mxu0 %v18465_v59  ;;  %v18596_v59 = vld [vmem:[#allocation7 + $0xc44] ss:$24 sps:$4 sm:$0xff]  }
 0x6d2   : > { %13308 = vmatprep.subr.bf16.mxu0 %v18473_v42  ;;  %13746 = vmatpush1.bf16.msra.mxu1 %v18540_v50  ;;  %v18531_v42 = vld [vmem:[#allocation7 + $0x13b8] ss:$24 sps:$4 sm:$0xff]   ;;  %v18608_v50 = vld [vmem:[#allocation7 + $0xca4] ss:$24 sps:$4 sm:$0xff]  }
 0x6d3   : > { %13747 = vmatprep.subr.bf16.mxu1 %v18548_v41  ;;  %v18551_v41 = vld [vmem:[#allocation7 + $0x144c] ss:$24 sps:$4 sm:$0xff]  }
 0x6d5   : > { %13309 = vmatpush1.bf16.msra.mxu0 %v18471_v22  ;;  %v18539_v22 = vld [vmem:[#allocation7 + $0x13ec] ss:$24 sps:$4 sm:$0xff]  }
 0x6d6   : > { %13319 = vmatprep.subr.bf16.mxu0 %v18479_v43  ;;  %13748 = vmatpush1.bf16.msra.mxu1 %v18546_v1  ;;  %v18537_v43 = vld [vmem:[#allocation7 + $0x13e8] ss:$24 sps:$4 sm:$0xff]  }
 0x6d7   : > { %13749 = vmatprep.subr.bf16.mxu1 %v18554_v20  ;;  %v18612_v1 = vld [vmem:[#allocation7 + $0xcd0] ss:$24 sps:$4 sm:$0xff]   ;;  %v18620_v20 = vld [vmem:[#allocation7 + $0xd04] ss:$24 sps:$4 sm:$0xff]  }
 0x6d8   : > { %13311 = vmatmul.mubr.bf16.vlgmr.msra.gmra.mrb[56].mxu0 %v24113_v7 }
 0x6d9   : > { %13320 = vmatpush1.bf16.msra.mxu0 %v18477_v13  ;;  %13351 = vmatprep.mubr.bf16.mxu0 %v24119_v15  ;;  %v18545_v13 = vld [vmem:[#allocation7 + $0x141c] ss:$24 sps:$4 sm:$0xff]  }
 0x6da   : > { %13321 = vmatprep.subr.bf16.mxu0 %v18485_v17  ;;  %13750 = vmatpush1.bf16.msra.mxu1 %v18552_v26  ;;  %v18543_v17 = vld [vmem:[#allocation7 + $0x1418] ss:$24 sps:$4 sm:$0xff]  }
 0x6db   : > { %13751 = vmatprep.subr.bf16.mxu1 %v18560_v51  ;;  %v18618_v26 = vld [vmem:[#allocation7 + $0xd00] ss:$24 sps:$4 sm:$0xff]   ;;  %v18626_v51 = vld [vmem:[#allocation7 + $0xd34] ss:$24 sps:$4 sm:$0xff]  }
 0x6dd   : > { %13322 = vmatpush1.bf16.msra.mxu0 %v18483_v11  ;;  %v18549_v11 = vld [vmem:[#allocation7 + $0x1448] ss:$24 sps:$4 sm:$0xff]  }
 0x6de   : > { %13323 = vmatprep.subr.bf16.mxu0 %v18491_v52  ;;  %13752 = vmatpush1.bf16.msra.mxu1 %v18558_v48  ;;  %v18557_v52 = vld [vmem:[#allocation7 + $0x147c] ss:$24 sps:$4 sm:$0xff]   ;;  %v18624_v48 = vld [vmem:[#allocation7 + $0xd30] ss:$24 sps:$4 sm:$0xff]  }
 0x6df   : > { %13753 = vmatprep.subr.bf16.mxu1 %v18566_v3  ;;  %v18632_v3 = vld [vmem:[#allocation7 + $0xd64] ss:$24 sps:$4 sm:$0xff]  }
 0x6e1   : > { %13324 = vmatpush1.bf16.msra.mxu0 %v18489_v10  ;;  %v18555_v10 = vld [vmem:[#allocation7 + $0x1478] ss:$24 sps:$4 sm:$0xff]  }
 0x6e2   : > { %13325 = vmatprep.subr.bf16.mxu0 %v18497_v16  ;;  %13754 = vmatpush1.bf16.msra.mxu1 %v18564_v27  ;;  %v18563_v16 = vld [vmem:[#allocation7 + $0x14ac] ss:$24 sps:$4 sm:$0xff]   ;;  %v18630_v27 = vld [vmem:[#allocation7 + $0xd60] ss:$24 sps:$4 sm:$0xff]  }
 0x6e3   : > { %13755 = vmatprep.subr.bf16.mxu1 %v18572_v30  ;;  %v18638_v30 = vld [vmem:[#allocation7 + $0xd94] ss:$24 sps:$4 sm:$0xff]  }
 0x6e5   : > { %13326 = vmatpush1.bf16.msra.mxu0 %v18495_v18  ;;  %v18561_v18 = vld [vmem:[#allocation7 + $0x14a8] ss:$24 sps:$4 sm:$0xff]  }
 0x6e6   : > { %13327 = vmatprep.subr.bf16.mxu0 %v18503_v49  ;;  %13756 = vmatpush1.bf16.msra.mxu1 %v18570_v39  ;;  %v18569_v49 = vld [vmem:[#allocation7 + $0x14dc] ss:$24 sps:$4 sm:$0xff]   ;;  %v18636_v39 = vld [vmem:[#allocation7 + $0xd90] ss:$24 sps:$4 sm:$0xff]  }
 0x6e7   : > { %13757 = vmatprep.subr.bf16.mxu1 %v18578_v63  ;;  %v18581_v63 = vld [vmem:[#allocation7 + $0x153c] ss:$24 sps:$4 sm:$0xff]  }
 0x6e9   : > { %13328 = vmatpush1.bf16.msra.mxu0 %v18501_v14  ;;  %v18567_v14 = vld [vmem:[#allocation7 + $0x14d8] ss:$24 sps:$4 sm:$0xff]  }
 0x6ea   : > { %13329 = vmatprep.subr.bf16.mxu0 %v18509_v9  ;;  %13758 = vmatpush1.bf16.msra.mxu1 %v18576_v4  ;;  %v18575_v9 = vld [vmem:[#allocation7 + $0x150c] ss:$24 sps:$4 sm:$0xff]   ;;  %v18642_v4 = vld [vmem:[#allocation7 + $0xdc0] ss:$24 sps:$4 sm:$0xff]  }
 0x6eb   : > { %13759 = vmatprep.subr.bf16.mxu1 %v18584_v33  ;;  %v18650_v33 = vld [vmem:[#allocation7 + $0xdf4] ss:$24 sps:$4 sm:$0xff]  }
 0x6ed   : > { %13330 = vmatpush1.bf16.msra.mxu0 %v18507_v29  ;;  %v18573_v29 = vld [vmem:[#allocation7 + $0x1508] ss:$24 sps:$4 sm:$0xff]  }
 0x6ee   : > { %13331 = vmatprep.subr.bf16.mxu0 %v18515_v23  ;;  %13760 = vmatpush1.bf16.msra.mxu1 %v18582_v2  ;;  %v18644_v23 = vld [vmem:[#allocation7 + $0xdc4] ss:$24 sps:$4 sm:$0xff]   ;;  %v18648_v2 = vld [vmem:[#allocation7 + $0xdf0] ss:$24 sps:$4 sm:$0xff]  }
 0x6ef   : > { %13770 = vmatprep.subr.bf16.mxu1 %v18590_v57  ;;  %v18656_v57 = vld [vmem:[#allocation7 + $0xe24] ss:$24 sps:$4 sm:$0xff]  }
 0x6f1   : > { %13332 = vmatpush1.bf16.msra.mxu0 %v18513_v61  ;;  %13762 = vmatmul.mubr.bf16.vlgmr.msra.gmra.mrb[4].mxu1 %v24179_v54  ;;  %v18606_v54 = vld [vmem:[#allocation7 + $0xca0] ss:$24 sps:$4 sm:$0xff]  }
 0x6f2   : > { %13333 = vmatprep.subr.bf16.mxu0 %v18521_v62  ;;  %13771 = vmatpush1.bf16.msra.mxu1 %v18588_v47  ;;  %v18579_v61 = vld [vmem:[#allocation7 + $0x1538] ss:$24 sps:$4 sm:$0xff]   ;;  %v18587_v62 = vld [vmem:[#allocation7 + $0x156c] ss:$24 sps:$4 sm:$0xff]  }
 0x6f3   : > { %13802 = vmatprep.mubr.bf16.mxu1 %v24181_v55  ;;  %13772 = vmatprep.subr.bf16.mxu1 %v18596_v59  ;;  %v18614_v55 = vld [vmem:[#allocation7 + $0xcd4] ss:$24 sps:$4 sm:$0xff]   ;;  %v18654_v47 = vld [vmem:[#allocation7 + $0xe20] ss:$24 sps:$4 sm:$0xff]  }
 0x6f4   : > { %v18662_v59 = vld [vmem:[#allocation7 + $0xe54] ss:$24 sps:$4 sm:$0xff]  }
 0x6f5   : > { %13334 = vmatpush1.bf16.msra.mxu0 %v18519_v32  ;;  %v18585_v32 = vld [vmem:[#allocation7 + $0x1568] ss:$24 sps:$4 sm:$0xff]  }
 0x6f6   : > { %13335 = vmatprep.subr.bf16.mxu0 %v18527_v46  ;;  %13773 = vmatpush1.bf16.msra.mxu1 %v18594_v28  ;;  %v18593_v46 = vld [vmem:[#allocation7 + $0x159c] ss:$24 sps:$4 sm:$0xff]   ;;  %v18660_v28 = vld [vmem:[#allocation7 + $0xe50] ss:$24 sps:$4 sm:$0xff]  }
 0x6f7   : > { %13774 = vmatprep.subr.bf16.mxu1 %v18602_v45  ;;  %v18668_v45 = vld [vmem:[#allocation7 + $0xe84] ss:$24 sps:$4 sm:$0xff]  }
 0x6f9   : > { %13336 = vmatpush1.bf16.msra.mxu0 %v18525_v37  ;;  %v18591_v37 = vld [vmem:[#allocation7 + $0x1598] ss:$24 sps:$4 sm:$0xff]  }
 0x6fa   : > { %13337 = vmatprep.subr.bf16.mxu0 %v18533_v25  ;;  %13775 = vmatpush1.bf16.msra.mxu1 %v18600_v19  ;;  %v18599_v25 = vld [vmem:[#allocation7 + $0x15cc] ss:$24 sps:$4 sm:$0xff]   ;;  %v18666_v19 = vld [vmem:[#allocation7 + $0xe80] ss:$24 sps:$4 sm:$0xff]  }
 0x6fb   : > { %13776 = vmatprep.subr.bf16.mxu1 %v18608_v50  ;;  %v18674_v50 = vld [vmem:[#allocation7 + $0xeb4] ss:$24 sps:$4 sm:$0xff]  }
 0x6fd   : > { %13338 = vmatpush1.bf16.msra.mxu0 %v18531_v42  ;;  %v18597_v42 = vld [vmem:[#allocation7 + $0x15c8] ss:$24 sps:$4 sm:$0xff]  }
 0x6fe   : > { %13339 = vmatprep.subr.bf16.mxu0 %v18539_v22  ;;  %13777 = vmatpush1.bf16.msra.mxu1 %v18606_v54  ;;  %v18605_v22 = vld [vmem:[#allocation7 + $0x15fc] ss:$24 sps:$4 sm:$0xff]   ;;  %v18672_v54 = vld [vmem:[#allocation7 + $0xeb0] ss:$24 sps:$4 sm:$0xff]  }
 0x6ff   : > { %13778 = vmatprep.subr.bf16.mxu1 %v18614_v55  ;;  %v18680_v55 = vld [vmem:[#allocation7 + $0xee4] ss:$24 sps:$4 sm:$0xff]  }
 0x701   : > { %13340 = vmatpush1.bf16.msra.mxu0 %v18537_v43  ;;  %v18603_v43 = vld [vmem:[#allocation7 + $0x15f8] ss:$24 sps:$4 sm:$0xff]  }
 0x702   : > { %13341 = vmatprep.subr.bf16.mxu0 %v18545_v13  ;;  %13779 = vmatpush1.bf16.msra.mxu1 %v18612_v1  ;;  %v18611_v13 = vld [vmem:[#allocation7 + $0x162c] ss:$24 sps:$4 sm:$0xff]   ;;  %v18678_v1 = vld [vmem:[#allocation7 + $0xee0] ss:$24 sps:$4 sm:$0xff]  }
 0x703   : > { %13780 = vmatprep.subr.bf16.mxu1 %v18620_v20  ;;  %v18686_v20 = vld [vmem:[#allocation7 + $0xf14] ss:$24 sps:$4 sm:$0xff]  }
 0x705   : > { %13342 = vmatpush1.bf16.msra.mxu0 %v18543_v17  ;;  %v18609_v17 = vld [vmem:[#allocation7 + $0x1628] ss:$24 sps:$4 sm:$0xff]  }
 0x706   : > { %13343 = vmatprep.subr.bf16.mxu0 %v18551_v41  ;;  %13781 = vmatpush1.bf16.msra.mxu1 %v18618_v26  ;;  %v18617_v41 = vld [vmem:[#allocation7 + $0x165c] ss:$24 sps:$4 sm:$0xff]   ;;  %v18684_v26 = vld [vmem:[#allocation7 + $0xf10] ss:$24 sps:$4 sm:$0xff]  }
 0x707   : > { %13782 = vmatprep.subr.bf16.mxu1 %v18626_v51  ;;  %v18692_v51 = vld [vmem:[#allocation7 + $0xf44] ss:$24 sps:$4 sm:$0xff]  }
 0x709   : > { %13344 = vmatpush1.bf16.msra.mxu0 %v18549_v11  ;;  %v18615_v11 = vld [vmem:[#allocation7 + $0x1658] ss:$24 sps:$4 sm:$0xff]  }
 0x70a   : > { %13345 = vmatprep.subr.bf16.mxu0 %v18557_v52  ;;  %13783 = vmatpush1.bf16.msra.mxu1 %v18624_v48  ;;  %v18623_v52 = vld [vmem:[#allocation7 + $0x168c] ss:$24 sps:$4 sm:$0xff]   ;;  %v18690_v48 = vld [vmem:[#allocation7 + $0xf40] ss:$24 sps:$4 sm:$0xff]  }
 0x70b   : > { %13784 = vmatprep.subr.bf16.mxu1 %v18632_v3  ;;  %v18698_v3 = vld [vmem:[#allocation7 + $0xf74] ss:$24 sps:$4 sm:$0xff]  }
 0x70d   : > { %13346 = vmatpush1.bf16.msra.mxu0 %v18555_v10  ;;  %v18621_v10 = vld [vmem:[#allocation7 + $0x1688] ss:$24 sps:$4 sm:$0xff]  }
 0x70e   : > { %13347 = vmatprep.subr.bf16.mxu0 %v18563_v16  ;;  %13785 = vmatpush1.bf16.msra.mxu1 %v18630_v27  ;;  %v18629_v16 = vld [vmem:[#allocation7 + $0x16bc] ss:$24 sps:$4 sm:$0xff]   ;;  %v18696_v27 = vld [vmem:[#allocation7 + $0xf70] ss:$24 sps:$4 sm:$0xff]  }
 0x70f   : > { %13786 = vmatprep.subr.bf16.mxu1 %v18638_v30  ;;  %v18704_v30 = vld [vmem:[#allocation7 + $0xfa4] ss:$24 sps:$4 sm:$0xff]  }
 0x711   : > { %13348 = vmatpush1.bf16.msra.mxu0 %v18561_v18  ;;  %v18627_v18 = vld [vmem:[#allocation7 + $0x16b8] ss:$24 sps:$4 sm:$0xff]  }
 0x712   : > { %13349 = vmatprep.subr.bf16.mxu0 %v18569_v49  ;;  %13787 = vmatpush1.bf16.msra.mxu1 %v18636_v39  ;;  %v18635_v49 = vld [vmem:[#allocation7 + $0x16ec] ss:$24 sps:$4 sm:$0xff]   ;;  %v18639_v39 = vld [vmem:[#allocation7 + $0x1718] ss:$24 sps:$4 sm:$0xff]  }
 0x713   : > { %13788 = vmatprep.subr.bf16.mxu1 %v18644_v23  ;;  %v18645_v23 = vld [vmem:[#allocation7 + $0x1748] ss:$24 sps:$4 sm:$0xff]  }
 0x715   : > { %13350 = vmatpush1.bf16.msra.mxu0 %v18567_v14  ;;  %v18633_v14 = vld [vmem:[#allocation7 + $0x16e8] ss:$24 sps:$4 sm:$0xff]  }
 0x716   : > { %13360 = vmatprep.subr.bf16.mxu0 %v18575_v9  ;;  %13789 = vmatpush1.bf16.msra.mxu1 %v18642_v4  ;;  %v18641_v9 = vld [vmem:[#allocation7 + $0x171c] ss:$24 sps:$4 sm:$0xff]  }
 0x717   : > { %13790 = vmatprep.subr.bf16.mxu1 %v18650_v33  ;;  %v18716_v4 = vld [vmem:[#allocation7 + $0x1004] ss:$24 sps:$4 sm:$0xff]   ;;  %v18714_v33 = vld [vmem:[#allocation7 + $0x1000] ss:$24 sps:$4 sm:$0xff]  }
 0x718   : > { %13352 = vmatmul.mubr.bf16.vlgmr.msra.gmra.mrb[56].mxu0 %v24133_v8 }
 0x719   : > { %13361 = vmatpush1.bf16.msra.mxu0 %v18573_v29  ;;  %13392 = vmatprep.mubr.bf16.mxu0 %v24140_v60  ;;  %v18647_v29 = vld [vmem:[#allocation7 + $0x174c] ss:$24 sps:$4 sm:$0xff]  }
 0x71a   : > { %13362 = vmatprep.subr.bf16.mxu0 %v18581_v63  ;;  %13791 = vmatpush1.bf16.msra.mxu1 %v18648_v2  ;;  %v18708_v63 = vld [vmem:[#allocation7 + $0xfd0] ss:$24 sps:$4 sm:$0xff]   ;;  %v18722_v2 = vld [vmem:[#allocation7 + $0x1034] ss:$24 sps:$4 sm:$0xff]  }
 0x71b   : > { %13792 = vmatprep.subr.bf16.mxu1 %v18656_v57  ;;  %v18720_v57 = vld [vmem:[#allocation7 + $0x1030] ss:$24 sps:$4 sm:$0xff]  }
 0x71d   : > { %13363 = vmatpush1.bf16.msra.mxu0 %v18579_v61  ;;  %v18653_v61 = vld [vmem:[#allocation7 + $0x177c] ss:$24 sps:$4 sm:$0xff]  }
 0x71e   : > { %13364 = vmatprep.subr.bf16.mxu0 %v18587_v62  ;;  %13793 = vmatpush1.bf16.msra.mxu1 %v18654_v47  ;;  %v18651_v62 = vld [vmem:[#allocation7 + $0x1778] ss:$24 sps:$4 sm:$0xff]   ;;  %v18728_v47 = vld [vmem:[#allocation7 + $0x1064] ss:$24 sps:$4 sm:$0xff]  }
 0x71f   : > { %13794 = vmatprep.subr.bf16.mxu1 %v18662_v59  ;;  %v18726_v59 = vld [vmem:[#allocation7 + $0x1060] ss:$24 sps:$4 sm:$0xff]  }
 0x721   : > { %13365 = vmatpush1.bf16.msra.mxu0 %v18585_v32  ;;  %v18659_v32 = vld [vmem:[#allocation7 + $0x17ac] ss:$24 sps:$4 sm:$0xff]  }
 0x722   : > { %13366 = vmatprep.subr.bf16.mxu0 %v18593_v46  ;;  %13795 = vmatpush1.bf16.msra.mxu1 %v18660_v28  ;;  %v18657_v46 = vld [vmem:[#allocation7 + $0x17a8] ss:$24 sps:$4 sm:$0xff]   ;;  %v18734_v28 = vld [vmem:[#allocation7 + $0x1094] ss:$24 sps:$4 sm:$0xff]  }
 0x723   : > { %13796 = vmatprep.subr.bf16.mxu1 %v18668_v45  ;;  %v18732_v45 = vld [vmem:[#allocation7 + $0x1090] ss:$24 sps:$4 sm:$0xff]  }
 0x725   : > { %13367 = vmatpush1.bf16.msra.mxu0 %v18591_v37  ;;  %v18665_v37 = vld [vmem:[#allocation7 + $0x17dc] ss:$24 sps:$4 sm:$0xff]  }
 0x726   : > { %13368 = vmatprep.subr.bf16.mxu0 %v18599_v25  ;;  %13797 = vmatpush1.bf16.msra.mxu1 %v18666_v19  ;;  %v18663_v25 = vld [vmem:[#allocation7 + $0x17d8] ss:$24 sps:$4 sm:$0xff]   ;;  %v18677_v19 = vld [vmem:[#allocation7 + $0x183c] ss:$24 sps:$4 sm:$0xff]  }
 0x727   : > { %13798 = vmatprep.subr.bf16.mxu1 %v18674_v50  ;;  %v18738_v50 = vld [vmem:[#allocation7 + $0x10c0] ss:$24 sps:$4 sm:$0xff]  }
 0x729   : > { %13369 = vmatpush1.bf16.msra.mxu0 %v18597_v42  ;;  %v18671_v42 = vld [vmem:[#allocation7 + $0x180c] ss:$24 sps:$4 sm:$0xff]  }
 0x72a   : > { %13370 = vmatprep.subr.bf16.mxu0 %v18605_v22  ;;  %13799 = vmatpush1.bf16.msra.mxu1 %v18672_v54  ;;  %v18669_v22 = vld [vmem:[#allocation7 + $0x1808] ss:$24 sps:$4 sm:$0xff]   ;;  %v18746_v54 = vld [vmem:[#allocation7 + $0x10f4] ss:$24 sps:$4 sm:$0xff]  }
 0x72b   : > { %13800 = vmatprep.subr.bf16.mxu1 %v18680_v55  ;;  %v18744_v55 = vld [vmem:[#allocation7 + $0x10f0] ss:$24 sps:$4 sm:$0xff]  }
 0x72d   : > { %13371 = vmatpush1.bf16.msra.mxu0 %v18603_v43  ;;  %v18740_v43 = vld [vmem:[#allocation7 + $0x10c4] ss:$24 sps:$4 sm:$0xff]  }
 0x72e   : > { %13372 = vmatprep.subr.bf16.mxu0 %v18611_v13  ;;  %13801 = vmatpush1.bf16.msra.mxu1 %v18678_v1  ;;  %v18675_v13 = vld [vmem:[#allocation7 + $0x1838] ss:$24 sps:$4 sm:$0xff]   ;;  %v18752_v1 = vld [vmem:[#allocation7 + $0x1124] ss:$24 sps:$4 sm:$0xff]  }
 0x72f   : > { %13811 = vmatprep.subr.bf16.mxu1 %v18686_v20  ;;  %v18750_v20 = vld [vmem:[#allocation7 + $0x1120] ss:$24 sps:$4 sm:$0xff]  }
 0x731   : > { %13373 = vmatpush1.bf16.msra.mxu0 %v18609_v17  ;;  %13803 = vmatmul.mubr.bf16.vlgmr.msra.gmra.mrb[4].mxu1 %v24204_v0  ;;  %v18702_v0 = vld [vmem:[#allocation7 + $0xfa0] ss:$24 sps:$4 sm:$0xff]   ;;  %v18683_v17 = vld [vmem:[#allocation7 + $0x186c] ss:$24 sps:$4 sm:$0xff]  }
 0x732   : > { %13374 = vmatprep.subr.bf16.mxu0 %v18617_v41  ;;  %13812 = vmatpush1.bf16.msra.mxu1 %v18684_v26  ;;  %v18681_v41 = vld [vmem:[#allocation7 + $0x1868] ss:$24 sps:$4 sm:$0xff]   ;;  %v18758_v26 = vld [vmem:[#allocation7 + $0x1154] ss:$24 sps:$4 sm:$0xff]  }
 0x733   : > { %13843 = vmatprep.mubr.bf16.mxu1 %v24109_v35  ;;  %13813 = vmatprep.subr.bf16.mxu1 %v18692_v51  ;;  %v18710_v35 = vld [vmem:[#allocation7 + $0xfd4] ss:$24 sps:$4 sm:$0xff]   ;;  %v18756_v51 = vld [vmem:[#allocation7 + $0x1150] ss:$24 sps:$4 sm:$0xff]  }
 0x735   : > { %13375 = vmatpush1.bf16.msra.mxu0 %v18615_v11  ;;  %v18689_v11 = vld [vmem:[#allocation7 + $0x189c] ss:$24 sps:$4 sm:$0xff]  }
 0x736   : > { %13376 = vmatprep.subr.bf16.mxu0 %v18623_v52  ;;  %13814 = vmatpush1.bf16.msra.mxu1 %v18690_v48  ;;  %v18687_v52 = vld [vmem:[#allocation7 + $0x1898] ss:$24 sps:$4 sm:$0xff]   ;;  %v18764_v48 = vld [vmem:[#allocation7 + $0x1184] ss:$24 sps:$4 sm:$0xff]  }
 0x737   : > { %13815 = vmatprep.subr.bf16.mxu1 %v18698_v3  ;;  %v18762_v3 = vld [vmem:[#allocation7 + $0x1180] ss:$24 sps:$4 sm:$0xff]  }
 0x739   : > { %13377 = vmatpush1.bf16.msra.mxu0 %v18621_v10  ;;  %v18695_v10 = vld [vmem:[#allocation7 + $0x18cc] ss:$24 sps:$4 sm:$0xff]  }
 0x73a   : > { %13378 = vmatprep.subr.bf16.mxu0 %v18629_v16  ;;  %13816 = vmatpush1.bf16.msra.mxu1 %v18696_v27  ;;  %v18693_v16 = vld [vmem:[#allocation7 + $0x18c8] ss:$24 sps:$4 sm:$0xff]   ;;  %v18770_v27 = vld [vmem:[#allocation7 + $0x11b4] ss:$24 sps:$4 sm:$0xff]  }
 0x73b   : > { %13817 = vmatprep.subr.bf16.mxu1 %v18704_v30  ;;  %v18768_v30 = vld [vmem:[#allocation7 + $0x11b0] ss:$24 sps:$4 sm:$0xff]  }
 0x73d   : > { %13379 = vmatpush1.bf16.msra.mxu0 %v18627_v18  ;;  %v18701_v18 = vld [vmem:[#allocation7 + $0x18fc] ss:$24 sps:$4 sm:$0xff]  }
 0x73e   : > { %13380 = vmatprep.subr.bf16.mxu0 %v18635_v49  ;;  %13818 = vmatpush1.bf16.msra.mxu1 %v18702_v0  ;;  %v18699_v49 = vld [vmem:[#allocation7 + $0x18f8] ss:$24 sps:$4 sm:$0xff]   ;;  %v18776_v0 = vld [vmem:[#allocation7 + $0x11e4] ss:$24 sps:$4 sm:$0xff]  }
 0x73f   : > { %13819 = vmatprep.subr.bf16.mxu1 %v18710_v35  ;;  %v18774_v35 = vld [vmem:[#allocation7 + $0x11e0] ss:$24 sps:$4 sm:$0xff]  }
 0x741   : > { %13381 = vmatpush1.bf16.msra.mxu0 %v18633_v14  ;;  %v18707_v14 = vld [vmem:[#allocation7 + $0x192c] ss:$24 sps:$4 sm:$0xff]  }
 0x742   : > { %13382 = vmatprep.subr.bf16.mxu0 %v18641_v9  ;;  %13820 = vmatpush1.bf16.msra.mxu1 %v18708_v63  ;;  %v18705_v9 = vld [vmem:[#allocation7 + $0x1928] ss:$24 sps:$4 sm:$0xff]   ;;  %v18782_v63 = vld [vmem:[#allocation7 + $0x1214] ss:$24 sps:$4 sm:$0xff]  }
 0x743   : > { %13821 = vmatprep.subr.bf16.mxu1 %v18716_v4  ;;  %v18780_v4 = vld [vmem:[#allocation7 + $0x1210] ss:$24 sps:$4 sm:$0xff]  }
 0x745   : > { %13383 = vmatpush1.bf16.msra.mxu0 %v18639_v39  ;;  %v18713_v39 = vld [vmem:[#allocation7 + $0x195c] ss:$24 sps:$4 sm:$0xff]  }
 0x746   : > { %13384 = vmatprep.subr.bf16.mxu0 %v18647_v29  ;;  %13822 = vmatpush1.bf16.msra.mxu1 %v18714_v33  ;;  %v18711_v29 = vld [vmem:[#allocation7 + $0x1958] ss:$24 sps:$4 sm:$0xff]   ;;  %v18788_v33 = vld [vmem:[#allocation7 + $0x1244] ss:$24 sps:$4 sm:$0xff]  }
 0x747   : > { %13823 = vmatprep.subr.bf16.mxu1 %v18722_v2  ;;  %v18786_v2 = vld [vmem:[#allocation7 + $0x1240] ss:$24 sps:$4 sm:$0xff]  }
 0x749   : > { %13385 = vmatpush1.bf16.msra.mxu0 %v18645_v23  ;;  %v18719_v23 = vld [vmem:[#allocation7 + $0x198c] ss:$24 sps:$4 sm:$0xff]  }
 0x74a   : > { %13386 = vmatprep.subr.bf16.mxu0 %v18653_v61  ;;  %13824 = vmatpush1.bf16.msra.mxu1 %v18720_v57  ;;  %v18717_v61 = vld [vmem:[#allocation7 + $0x1988] ss:$24 sps:$4 sm:$0xff]   ;;  %v18794_v57 = vld [vmem:[#allocation7 + $0x1274] ss:$24 sps:$4 sm:$0xff]  }
 0x74b   : > { %13825 = vmatprep.subr.bf16.mxu1 %v18728_v47  ;;  %v18792_v47 = vld [vmem:[#allocation7 + $0x1270] ss:$24 sps:$4 sm:$0xff]  }
 0x74d   : > { %13387 = vmatpush1.bf16.msra.mxu0 %v18651_v62  ;;  %v18725_v62 = vld [vmem:[#allocation7 + $0x19bc] ss:$24 sps:$4 sm:$0xff]  }
 0x74e   : > { %13388 = vmatprep.subr.bf16.mxu0 %v18659_v32  ;;  %13826 = vmatpush1.bf16.msra.mxu1 %v18726_v59  ;;  %v18723_v32 = vld [vmem:[#allocation7 + $0x19b8] ss:$24 sps:$4 sm:$0xff]   ;;  %v18800_v59 = vld [vmem:[#allocation7 + $0x12a4] ss:$24 sps:$4 sm:$0xff]  }
 0x74f   : > { %13827 = vmatprep.subr.bf16.mxu1 %v18734_v28  ;;  %v18735_v28 = vld [vmem:[#allocation7 + $0x1a18] ss:$24 sps:$4 sm:$0xff]  }
 0x751   : > { %13389 = vmatpush1.bf16.msra.mxu0 %v18657_v46  ;;  %v18731_v46 = vld [vmem:[#allocation7 + $0x19ec] ss:$24 sps:$4 sm:$0xff]  }
 0x752   : > { %13390 = vmatprep.subr.bf16.mxu0 %v18665_v37  ;;  %13828 = vmatpush1.bf16.msra.mxu1 %v18732_v45  ;;  %v18729_v37 = vld [vmem:[#allocation7 + $0x19e8] ss:$24 sps:$4 sm:$0xff]  }
 0x753   : > { %13829 = vmatprep.subr.bf16.mxu1 %v18740_v43  ;;  %v18804_v45 = vld [vmem:[#allocation7 + $0x12d0] ss:$24 sps:$4 sm:$0xff]   ;;  %v18749_v43 = vld [vmem:[#allocation7 + $0x1a7c] ss:$24 sps:$4 sm:$0xff]  }
 0x755   : > { %13391 = vmatpush1.bf16.msra.mxu0 %v18663_v25  ;;  %v18737_v25 = vld [vmem:[#allocation7 + $0x1a1c] ss:$24 sps:$4 sm:$0xff]  }
 0x756   : > { %13401 = vmatprep.subr.bf16.mxu0 %v18671_v42  ;;  %13830 = vmatpush1.bf16.msra.mxu1 %v18738_v50  ;;  %v18743_v42 = vld [vmem:[#allocation7 + $0x1a4c] ss:$24 sps:$4 sm:$0xff]   ;;  %v18810_v50 = vld [vmem:[#allocation7 + $0x1300] ss:$24 sps:$4 sm:$0xff]  }
 0x757   : > { %13831 = vmatprep.subr.bf16.mxu1 %v18746_v54  ;;  %v18818_v54 = vld [vmem:[#allocation7 + $0x1334] ss:$24 sps:$4 sm:$0xff]  }
 0x758   : > { %13393 = vmatmul.mubr.bf16.vlgmr.msra.gmra.mrb[56].mxu0 %v24156_v34 }
 0x759   : > { %13402 = vmatpush1.bf16.msra.mxu0 %v18669_v22  ;;  %13433 = vmatprep.mubr.bf16.mxu0 %v24163_v24  ;;  %v18741_v22 = vld [vmem:[#allocation7 + $0x1a48] ss:$24 sps:$4 sm:$0xff]  }
 0x75a   : > { %13403 = vmatprep.subr.bf16.mxu0 %v18677_v19  ;;  %13832 = vmatpush1.bf16.msra.mxu1 %v18744_v55  ;;  %v18812_v19 = vld [vmem:[#allocation7 + $0x1304] ss:$24 sps:$4 sm:$0xff]   ;;  %v18816_v55 = vld [vmem:[#allocation7 + $0x1330] ss:$24 sps:$4 sm:$0xff]  }
 0x75b   : > { %13833 = vmatprep.subr.bf16.mxu1 %v18752_v1  ;;  %v18824_v1 = vld [vmem:[#allocation7 + $0x1364] ss:$24 sps:$4 sm:$0xff]  }
 0x75d   : > { %13404 = vmatpush1.bf16.msra.mxu0 %v18675_v13  ;;  %v18747_v13 = vld [vmem:[#allocation7 + $0x1a78] ss:$24 sps:$4 sm:$0xff]  }
 0x75e   : > { %13405 = vmatprep.subr.bf16.mxu0 %v18683_v17  ;;  %13834 = vmatpush1.bf16.msra.mxu1 %v18750_v20  ;;  %v18755_v17 = vld [vmem:[#allocation7 + $0x1aac] ss:$24 sps:$4 sm:$0xff]   ;;  %v18822_v20 = vld [vmem:[#allocation7 + $0x1360] ss:$24 sps:$4 sm:$0xff]  }
 0x75f   : > { %13835 = vmatprep.subr.bf16.mxu1 %v18758_v26  ;;  %v18830_v26 = vld [vmem:[#allocation7 + $0x1394] ss:$24 sps:$4 sm:$0xff]  }
 0x761   : > { %13406 = vmatpush1.bf16.msra.mxu0 %v18681_v41  ;;  %v18753_v41 = vld [vmem:[#allocation7 + $0x1aa8] ss:$24 sps:$4 sm:$0xff]  }
 0x762   : > { %13407 = vmatprep.subr.bf16.mxu0 %v18689_v11  ;;  %13836 = vmatpush1.bf16.msra.mxu1 %v18756_v51  ;;  %v18761_v11 = vld [vmem:[#allocation7 + $0x1adc] ss:$24 sps:$4 sm:$0xff]   ;;  %v18828_v51 = vld [vmem:[#allocation7 + $0x1390] ss:$24 sps:$4 sm:$0xff]  }
 0x763   : > { %13837 = vmatprep.subr.bf16.mxu1 %v18764_v48  ;;  %v18773_v48 = vld [vmem:[#allocation7 + $0x1b3c] ss:$24 sps:$4 sm:$0xff]  }
 0x765   : > { %13408 = vmatpush1.bf16.msra.mxu0 %v18687_v52  ;;  %v18759_v52 = vld [vmem:[#allocation7 + $0x1ad8] ss:$24 sps:$4 sm:$0xff]  }
 0x766   : > { %13409 = vmatprep.subr.bf16.mxu0 %v18695_v10  ;;  %13838 = vmatpush1.bf16.msra.mxu1 %v18762_v3  ;;  %v18767_v10 = vld [vmem:[#allocation7 + $0x1b0c] ss:$24 sps:$4 sm:$0xff]   ;;  %v18834_v3 = vld [vmem:[#allocation7 + $0x13c0] ss:$24 sps:$4 sm:$0xff]  }
 0x767   : > { %13839 = vmatprep.subr.bf16.mxu1 %v18770_v27  ;;  %v18842_v27 = vld [vmem:[#allocation7 + $0x13f4] ss:$24 sps:$4 sm:$0xff]  }
 0x769   : > { %13410 = vmatpush1.bf16.msra.mxu0 %v18693_v16  ;;  %v18765_v16 = vld [vmem:[#allocation7 + $0x1b08] ss:$24 sps:$4 sm:$0xff]  }
 0x76a   : > { %13411 = vmatprep.subr.bf16.mxu0 %v18701_v18  ;;  %13840 = vmatpush1.bf16.msra.mxu1 %v18768_v30  ;;  %v18836_v18 = vld [vmem:[#allocation7 + $0x13c4] ss:$24 sps:$4 sm:$0xff]   ;;  %v18840_v30 = vld [vmem:[#allocation7 + $0x13f0] ss:$24 sps:$4 sm:$0xff]  }
 0x76b   : > { %13841 = vmatprep.subr.bf16.mxu1 %v18776_v0  ;;  %v18848_v0 = vld [vmem:[#allocation7 + $0x1424] ss:$24 sps:$4 sm:$0xff]  }
 0x76d   : > { %13412 = vmatpush1.bf16.msra.mxu0 %v18699_v49  ;;  %v18771_v49 = vld [vmem:[#allocation7 + $0x1b38] ss:$24 sps:$4 sm:$0xff]  }
 0x76e   : > { %13413 = vmatprep.subr.bf16.mxu0 %v18707_v14  ;;  %13842 = vmatpush1.bf16.msra.mxu1 %v18774_v35  ;;  %v18779_v14 = vld [vmem:[#allocation7 + $0x1b6c] ss:$24 sps:$4 sm:$0xff]   ;;  %v18846_v35 = vld [vmem:[#allocation7 + $0x1420] ss:$24 sps:$4 sm:$0xff]  }
 0x76f   : > { %13852 = vmatprep.subr.bf16.mxu1 %v18782_v63  ;;  %v18854_v63 = vld [vmem:[#allocation7 + $0x1454] ss:$24 sps:$4 sm:$0xff]  }
 0x771   : > { %13414 = vmatpush1.bf16.msra.mxu0 %v18705_v9  ;;  %13844 = vmatmul.mubr.bf16.vlgmr.msra.gmra.mrb[4].mxu1 %v24113_v7  ;;  %v18798_v7 = vld [vmem:[#allocation7 + $0x12a0] ss:$24 sps:$4 sm:$0xff]  }
 0x772   : > { %13415 = vmatprep.subr.bf16.mxu0 %v18713_v39  ;;  %13853 = vmatpush1.bf16.msra.mxu1 %v18780_v4  ;;  %v18777_v9 = vld [vmem:[#allocation7 + $0x1b68] ss:$24 sps:$4 sm:$0xff]   ;;  %v18785_v39 = vld [vmem:[#allocation7 + $0x1b9c] ss:$24 sps:$4 sm:$0xff]  }
 0x773   : > { %13884 = vmatprep.mubr.bf16.mxu1 %v24119_v15  ;;  %13854 = vmatprep.subr.bf16.mxu1 %v18788_v33  ;;  %v18806_v15 = vld [vmem:[#allocation7 + $0x12d4] ss:$24 sps:$4 sm:$0xff]   ;;  %v18852_v4 = vld [vmem:[#allocation7 + $0x1450] ss:$24 sps:$4 sm:$0xff]   ;;  %v18860_v33 = vld [vmem:[#allocation7 + $0x1484] ss:$24 sps:$4 sm:$0xff]  }
 0x775   : > { %13416 = vmatpush1.bf16.msra.mxu0 %v18711_v29  ;;  %v18783_v29 = vld [vmem:[#allocation7 + $0x1b98] ss:$24 sps:$4 sm:$0xff]  }
 0x776   : > { %13417 = vmatprep.subr.bf16.mxu0 %v18719_v23  ;;  %13855 = vmatpush1.bf16.msra.mxu1 %v18786_v2  ;;  %v18791_v23 = vld [vmem:[#allocation7 + $0x1bcc] ss:$24 sps:$4 sm:$0xff]   ;;  %v18858_v2 = vld [vmem:[#allocation7 + $0x1480] ss:$24 sps:$4 sm:$0xff]  }
 0x777   : > { %13856 = vmatprep.subr.bf16.mxu1 %v18794_v57  ;;  %v18866_v57 = vld [vmem:[#allocation7 + $0x14b4] ss:$24 sps:$4 sm:$0xff]  }
 0x779   : > { %13418 = vmatpush1.bf16.msra.mxu0 %v18717_v61  ;;  %v18789_v61 = vld [vmem:[#allocation7 + $0x1bc8] ss:$24 sps:$4 sm:$0xff]  }
 0x77a   : > { %13419 = vmatprep.subr.bf16.mxu0 %v18725_v62  ;;  %13857 = vmatpush1.bf16.msra.mxu1 %v18792_v47  ;;  %v18797_v62 = vld [vmem:[#allocation7 + $0x1bfc] ss:$24 sps:$4 sm:$0xff]   ;;  %v18864_v47 = vld [vmem:[#allocation7 + $0x14b0] ss:$24 sps:$4 sm:$0xff]  }
 0x77b   : > { %13858 = vmatprep.subr.bf16.mxu1 %v18800_v59  ;;  %v18872_v59 = vld [vmem:[#allocation7 + $0x14e4] ss:$24 sps:$4 sm:$0xff]  }
 0x77d   : > { %13420 = vmatpush1.bf16.msra.mxu0 %v18723_v32  ;;  %v18795_v32 = vld [vmem:[#allocation7 + $0x1bf8] ss:$24 sps:$4 sm:$0xff]  }
 0x77e   : > { %13421 = vmatprep.subr.bf16.mxu0 %v18731_v46  ;;  %13859 = vmatpush1.bf16.msra.mxu1 %v18798_v7  ;;  %v18803_v46 = vld [vmem:[#allocation7 + $0x1c2c] ss:$24 sps:$4 sm:$0xff]   ;;  %v18870_v7 = vld [vmem:[#allocation7 + $0x14e0] ss:$24 sps:$4 sm:$0xff]  }
 0x77f   : > { %13860 = vmatprep.subr.bf16.mxu1 %v18806_v15  ;;  %v18878_v15 = vld [vmem:[#allocation7 + $0x1514] ss:$24 sps:$4 sm:$0xff]  }
 0x781   : > { %13422 = vmatpush1.bf16.msra.mxu0 %v18729_v37  ;;  %v18801_v37 = vld [vmem:[#allocation7 + $0x1c28] ss:$24 sps:$4 sm:$0xff]  }
 0x782   : > { %13423 = vmatprep.subr.bf16.mxu0 %v18737_v25  ;;  %13861 = vmatpush1.bf16.msra.mxu1 %v18804_v45  ;;  %v18809_v25 = vld [vmem:[#allocation7 + $0x1c5c] ss:$24 sps:$4 sm:$0xff]   ;;  %v18876_v45 = vld [vmem:[#allocation7 + $0x1510] ss:$24 sps:$4 sm:$0xff]  }
 0x783   : > { %13862 = vmatprep.subr.bf16.mxu1 %v18812_v19  ;;  %v18884_v19 = vld [vmem:[#allocation7 + $0x1544] ss:$24 sps:$4 sm:$0xff]  }
 0x785   : > { %13424 = vmatpush1.bf16.msra.mxu0 %v18735_v28  ;;  %v18807_v28 = vld [vmem:[#allocation7 + $0x1c58] ss:$24 sps:$4 sm:$0xff]  }
 0x786   : > { %13425 = vmatprep.subr.bf16.mxu0 %v18743_v42  ;;  %13863 = vmatpush1.bf16.msra.mxu1 %v18810_v50  ;;  %v18815_v42 = vld [vmem:[#allocation7 + $0x1c8c] ss:$24 sps:$4 sm:$0xff]   ;;  %v18882_v50 = vld [vmem:[#allocation7 + $0x1540] ss:$24 sps:$4 sm:$0xff]  }
 0x787   : > { %13864 = vmatprep.subr.bf16.mxu1 %v18818_v54  ;;  %v18890_v54 = vld [vmem:[#allocation7 + $0x1574] ss:$24 sps:$4 sm:$0xff]  }
 0x789   : > { %13426 = vmatpush1.bf16.msra.mxu0 %v18741_v22  ;;  %v18813_v22 = vld [vmem:[#allocation7 + $0x1c88] ss:$24 sps:$4 sm:$0xff]  }
 0x78a   : > { %13427 = vmatprep.subr.bf16.mxu0 %v18749_v43  ;;  %13865 = vmatpush1.bf16.msra.mxu1 %v18816_v55  ;;  %v18821_v43 = vld [vmem:[#allocation7 + $0x1cbc] ss:$24 sps:$4 sm:$0xff]   ;;  %v18888_v55 = vld [vmem:[#allocation7 + $0x1570] ss:$24 sps:$4 sm:$0xff]  }
 0x78b   : > { %13866 = vmatprep.subr.bf16.mxu1 %v18824_v1  ;;  %v18896_v1 = vld [vmem:[#allocation7 + $0x15a4] ss:$24 sps:$4 sm:$0xff]  }
 0x78d   : > { %13428 = vmatpush1.bf16.msra.mxu0 %v18747_v13  ;;  %v18819_v13 = vld [vmem:[#allocation7 + $0x1cb8] ss:$24 sps:$4 sm:$0xff]  }
 0x78e   : > { %13429 = vmatprep.subr.bf16.mxu0 %v18755_v17  ;;  %13867 = vmatpush1.bf16.msra.mxu1 %v18822_v20  ;;  %v18827_v17 = vld [vmem:[#allocation7 + $0x1cec] ss:$24 sps:$4 sm:$0xff]   ;;  %v18831_v20 = vld [vmem:[#allocation7 + $0x1d18] ss:$24 sps:$4 sm:$0xff]  }
 0x78f   : > { %13868 = vmatprep.subr.bf16.mxu1 %v18830_v26  ;;  %v18900_v26 = vld [vmem:[#allocation7 + $0x15d0] ss:$24 sps:$4 sm:$0xff]  }
 0x791   : > { %13430 = vmatpush1.bf16.msra.mxu0 %v18753_v41  ;;  %v18825_v41 = vld [vmem:[#allocation7 + $0x1ce8] ss:$24 sps:$4 sm:$0xff]  }
 0x792   : > { %13431 = vmatprep.subr.bf16.mxu0 %v18761_v11  ;;  %13869 = vmatpush1.bf16.msra.mxu1 %v18828_v51  ;;  %v18833_v11 = vld [vmem:[#allocation7 + $0x1d1c] ss:$24 sps:$4 sm:$0xff]  }
 0x793   : > { %13870 = vmatprep.subr.bf16.mxu1 %v18836_v18  ;;  %v18908_v51 = vld [vmem:[#allocation7 + $0x1604] ss:$24 sps:$4 sm:$0xff]   ;;  %v18843_v18 = vld [vmem:[#allocation7 + $0x1d78] ss:$24 sps:$4 sm:$0xff]  }
 0x795   : > { %13432 = vmatpush1.bf16.msra.mxu0 %v18759_v52  ;;  %v18839_v52 = vld [vmem:[#allocation7 + $0x1d4c] ss:$24 sps:$4 sm:$0xff]  }
 0x796   : > { %13442 = vmatprep.subr.bf16.mxu0 %v18767_v10  ;;  %13871 = vmatpush1.bf16.msra.mxu1 %v18834_v3  ;;  %v18837_v10 = vld [vmem:[#allocation7 + $0x1d48] ss:$24 sps:$4 sm:$0xff]   ;;  %v18914_v3 = vld [vmem:[#allocation7 + $0x1634] ss:$24 sps:$4 sm:$0xff]  }
 0x797   : > { %13872 = vmatprep.subr.bf16.mxu1 %v18842_v27  ;;  %v18912_v27 = vld [vmem:[#allocation7 + $0x1630] ss:$24 sps:$4 sm:$0xff]  }
 0x798   : > { %13434 = vmatmul.mubr.bf16.vlgmr.msra.gmra.mrb[56].mxu0 %v24177_v21 }
 0x799   : > { %13443 = vmatpush1.bf16.msra.mxu0 %v18765_v16  ;;  %13474 = vmatprep.mubr.bf16.mxu0 %v24184_v31  ;;  %v18845_v16 = vld [vmem:[#allocation7 + $0x1d7c] ss:$24 sps:$4 sm:$0xff]  }
 0x79a   : > { %13444 = vmatprep.subr.bf16.mxu0 %v18773_v48  ;;  %13873 = vmatpush1.bf16.msra.mxu1 %v18840_v30  ;;  %v18906_v48 = vld [vmem:[#allocation7 + $0x1600] ss:$24 sps:$4 sm:$0xff]   ;;  %v18920_v30 = vld [vmem:[#allocation7 + $0x1664] ss:$24 sps:$4 sm:$0xff]  }
 0x79b   : > { %13874 = vmatprep.subr.bf16.mxu1 %v18848_v0  ;;  %v18918_v0 = vld [vmem:[#allocation7 + $0x1660] ss:$24 sps:$4 sm:$0xff]  }
 0x79d   : > { %13445 = vmatpush1.bf16.msra.mxu0 %v18771_v49  ;;  %v18851_v49 = vld [vmem:[#allocation7 + $0x1dac] ss:$24 sps:$4 sm:$0xff]  }
 0x79e   : > { %13446 = vmatprep.subr.bf16.mxu0 %v18779_v14  ;;  %13875 = vmatpush1.bf16.msra.mxu1 %v18846_v35  ;;  %v18849_v14 = vld [vmem:[#allocation7 + $0x1da8] ss:$24 sps:$4 sm:$0xff]   ;;  %v18926_v35 = vld [vmem:[#allocation7 + $0x1694] ss:$24 sps:$4 sm:$0xff]  }
 0x79f   : > { %13876 = vmatprep.subr.bf16.mxu1 %v18854_v63  ;;  %v18924_v63 = vld [vmem:[#allocation7 + $0x1690] ss:$24 sps:$4 sm:$0xff]  }
 0x7a1   : > { %13447 = vmatpush1.bf16.msra.mxu0 %v18777_v9  ;;  %v18857_v9 = vld [vmem:[#allocation7 + $0x1ddc] ss:$24 sps:$4 sm:$0xff]  }
 0x7a2   : > { %13448 = vmatprep.subr.bf16.mxu0 %v18785_v39  ;;  %13877 = vmatpush1.bf16.msra.mxu1 %v18852_v4  ;;  %v18855_v39 = vld [vmem:[#allocation7 + $0x1dd8] ss:$24 sps:$4 sm:$0xff]   ;;  %v18869_v4 = vld [vmem:[#allocation7 + $0x1e3c] ss:$24 sps:$4 sm:$0xff]  }
 0x7a3   : > { %13878 = vmatprep.subr.bf16.mxu1 %v18860_v33  ;;  %v18930_v33 = vld [vmem:[#allocation7 + $0x16c0] ss:$24 sps:$4 sm:$0xff]  }
 0x7a5   : > { %13449 = vmatpush1.bf16.msra.mxu0 %v18783_v29  ;;  %v18863_v29 = vld [vmem:[#allocation7 + $0x1e0c] ss:$24 sps:$4 sm:$0xff]  }
 0x7a6   : > { %13450 = vmatprep.subr.bf16.mxu0 %v18791_v23  ;;  %13879 = vmatpush1.bf16.msra.mxu1 %v18858_v2  ;;  %v18861_v23 = vld [vmem:[#allocation7 + $0x1e08] ss:$24 sps:$4 sm:$0xff]   ;;  %v18938_v2 = vld [vmem:[#allocation7 + $0x16f4] ss:$24 sps:$4 sm:$0xff]  }
 0x7a7   : > { %13880 = vmatprep.subr.bf16.mxu1 %v18866_v57  ;;  %v18936_v57 = vld [vmem:[#allocation7 + $0x16f0] ss:$24 sps:$4 sm:$0xff]  }
 0x7a9   : > { %13451 = vmatpush1.bf16.msra.mxu0 %v18789_v61  ;;  %v18932_v61 = vld [vmem:[#allocation7 + $0x16c4] ss:$24 sps:$4 sm:$0xff]  }
 0x7aa   : > { %13452 = vmatprep.subr.bf16.mxu0 %v18797_v62  ;;  %13881 = vmatpush1.bf16.msra.mxu1 %v18864_v47  ;;  %v18867_v62 = vld [vmem:[#allocation7 + $0x1e38] ss:$24 sps:$4 sm:$0xff]   ;;  %v18944_v47 = vld [vmem:[#allocation7 + $0x1724] ss:$24 sps:$4 sm:$0xff]  }
 0x7ab   : > { %13882 = vmatprep.subr.bf16.mxu1 %v18872_v59  ;;  %v18942_v59 = vld [vmem:[#allocation7 + $0x1720] ss:$24 sps:$4 sm:$0xff]  }
 0x7ad   : > { %13453 = vmatpush1.bf16.msra.mxu0 %v18795_v32  ;;  %v18875_v32 = vld [vmem:[#allocation7 + $0x1e6c] ss:$24 sps:$4 sm:$0xff]  }
 0x7ae   : > { %13454 = vmatprep.subr.bf16.mxu0 %v18803_v46  ;;  %13883 = vmatpush1.bf16.msra.mxu1 %v18870_v7  ;;  %v18873_v46 = vld [vmem:[#allocation7 + $0x1e68] ss:$24 sps:$4 sm:$0xff]   ;;  %v18950_v7 = vld [vmem:[#allocation7 + $0x1754] ss:$24 sps:$4 sm:$0xff]  }
 0x7af   : > { %13893 = vmatprep.subr.bf16.mxu1 %v18878_v15  ;;  %v18948_v15 = vld [vmem:[#allocation7 + $0x1750] ss:$24 sps:$4 sm:$0xff]  }
 0x7b1   : > { %13455 = vmatpush1.bf16.msra.mxu0 %v18801_v37  ;;  %13885 = vmatmul.mubr.bf16.vlgmr.msra.gmra.mrb[4].mxu1 %v24133_v8  ;;  %v18894_v8 = vld [vmem:[#allocation7 + $0x15a0] ss:$24 sps:$4 sm:$0xff]   ;;  %v18881_v37 = vld [vmem:[#allocation7 + $0x1e9c] ss:$24 sps:$4 sm:$0xff]  }
 0x7b2   : > { %13456 = vmatprep.subr.bf16.mxu0 %v18809_v25  ;;  %13894 = vmatpush1.bf16.msra.mxu1 %v18876_v45  ;;  %v18879_v25 = vld [vmem:[#allocation7 + $0x1e98] ss:$24 sps:$4 sm:$0xff]   ;;  %v18956_v45 = vld [vmem:[#allocation7 + $0x1784] ss:$24 sps:$4 sm:$0xff]  }
 0x7b3   : > { %13925 = vmatprep.mubr.bf16.mxu1 %v24140_v60  ;;  %13895 = vmatprep.subr.bf16.mxu1 %v18884_v19  ;;  %v18902_v60 = vld [vmem:[#allocation7 + $0x15d4] ss:$24 sps:$4 sm:$0xff]   ;;  %v18954_v19 = vld [vmem:[#allocation7 + $0x1780] ss:$24 sps:$4 sm:$0xff]  }
 0x7b5   : > { %13457 = vmatpush1.bf16.msra.mxu0 %v18807_v28  ;;  %v18887_v28 = vld [vmem:[#allocation7 + $0x1ecc] ss:$24 sps:$4 sm:$0xff]  }
 0x7b6   : > { %13458 = vmatprep.subr.bf16.mxu0 %v18815_v42  ;;  %13896 = vmatpush1.bf16.msra.mxu1 %v18882_v50  ;;  %v18885_v42 = vld [vmem:[#allocation7 + $0x1ec8] ss:$24 sps:$4 sm:$0xff]   ;;  %v18962_v50 = vld [vmem:[#allocation7 + $0x17b4] ss:$24 sps:$4 sm:$0xff]  }
 0x7b7   : > { %13897 = vmatprep.subr.bf16.mxu1 %v18890_v54  ;;  %v18960_v54 = vld [vmem:[#allocation7 + $0x17b0] ss:$24 sps:$4 sm:$0xff]  }
 0x7b9   : > { %13459 = vmatpush1.bf16.msra.mxu0 %v18813_v22  ;;  %v18893_v22 = vld [vmem:[#allocation7 + $0x1efc] ss:$24 sps:$4 sm:$0xff]  }
 0x7ba   : > { %13460 = vmatprep.subr.bf16.mxu0 %v18821_v43  ;;  %13898 = vmatpush1.bf16.msra.mxu1 %v18888_v55  ;;  %v18891_v43 = vld [vmem:[#allocation7 + $0x1ef8] ss:$24 sps:$4 sm:$0xff]   ;;  %v18968_v55 = vld [vmem:[#allocation7 + $0x17e4] ss:$24 sps:$4 sm:$0xff]  }
 0x7bb   : > { %13899 = vmatprep.subr.bf16.mxu1 %v18896_v1  ;;  %v18966_v1 = vld [vmem:[#allocation7 + $0x17e0] ss:$24 sps:$4 sm:$0xff]  }
 0x7bd   : > { %13461 = vmatpush1.bf16.msra.mxu0 %v18819_v13  ;;  %v18899_v13 = vld [vmem:[#allocation7 + $0x1f2c] ss:$24 sps:$4 sm:$0xff]  }
 0x7be   : > { %13462 = vmatprep.subr.bf16.mxu0 %v18827_v17  ;;  %13900 = vmatpush1.bf16.msra.mxu1 %v18894_v8  ;;  %v18897_v17 = vld [vmem:[#allocation7 + $0x1f28] ss:$24 sps:$4 sm:$0xff]   ;;  %v18974_v8 = vld [vmem:[#allocation7 + $0x1814] ss:$24 sps:$4 sm:$0xff]  }
 0x7bf   : > { %13901 = vmatprep.subr.bf16.mxu1 %v18902_v60  ;;  %v18972_v60 = vld [vmem:[#allocation7 + $0x1810] ss:$24 sps:$4 sm:$0xff]  }
 0x7c1   : > { %13463 = vmatpush1.bf16.msra.mxu0 %v18825_v41  ;;  %v18905_v41 = vld [vmem:[#allocation7 + $0x1f5c] ss:$24 sps:$4 sm:$0xff]  }
 0x7c2   : > { %13464 = vmatprep.subr.bf16.mxu0 %v18833_v11  ;;  %13902 = vmatpush1.bf16.msra.mxu1 %v18900_v26  ;;  %v18903_v11 = vld [vmem:[#allocation7 + $0x1f58] ss:$24 sps:$4 sm:$0xff]   ;;  %v18980_v26 = vld [vmem:[#allocation7 + $0x1844] ss:$24 sps:$4 sm:$0xff]  }
 0x7c3   : > { %13903 = vmatprep.subr.bf16.mxu1 %v18908_v51  ;;  %v18978_v51 = vld [vmem:[#allocation7 + $0x1840] ss:$24 sps:$4 sm:$0xff]  }
 0x7c5   : > { %13465 = vmatpush1.bf16.msra.mxu0 %v18831_v20  ;;  %v18911_v20 = vld [vmem:[#allocation7 + $0x1f8c] ss:$24 sps:$4 sm:$0xff]  }
 0x7c6   : > { %13466 = vmatprep.subr.bf16.mxu0 %v18839_v52  ;;  %13904 = vmatpush1.bf16.msra.mxu1 %v18906_v48  ;;  %v18909_v52 = vld [vmem:[#allocation7 + $0x1f88] ss:$24 sps:$4 sm:$0xff]   ;;  %v18986_v48 = vld [vmem:[#allocation7 + $0x1874] ss:$24 sps:$4 sm:$0xff]  }
 0x7c7   : > { %13905 = vmatprep.subr.bf16.mxu1 %v18914_v3  ;;  %v18984_v3 = vld [vmem:[#allocation7 + $0x1870] ss:$24 sps:$4 sm:$0xff]  }
 0x7c9   : > { %13467 = vmatpush1.bf16.msra.mxu0 %v18837_v10  ;;  %v18917_v10 = vld [vmem:[#allocation7 + $0x1fbc] ss:$24 sps:$4 sm:$0xff]  }
 0x7ca   : > { %13468 = vmatprep.subr.bf16.mxu0 %v18845_v16  ;;  %13906 = vmatpush1.bf16.msra.mxu1 %v18912_v27  ;;  %v18915_v16 = vld [vmem:[#allocation7 + $0x1fb8] ss:$24 sps:$4 sm:$0xff]   ;;  %v18992_v27 = vld [vmem:[#allocation7 + $0x18a4] ss:$24 sps:$4 sm:$0xff]  }
 0x7cb   : > { %13907 = vmatprep.subr.bf16.mxu1 %v18920_v30  ;;  %v18927_v30 = vld [vmem:[#allocation7 + $0x2018] ss:$24 sps:$4 sm:$0xff]  }
 0x7cd   : > { %13469 = vmatpush1.bf16.msra.mxu0 %v18843_v18  ;;  %v18923_v18 = vld [vmem:[#allocation7 + $0x1fec] ss:$24 sps:$4 sm:$0xff]  }
 0x7ce   : > { %13470 = vmatprep.subr.bf16.mxu0 %v18851_v49  ;;  %13908 = vmatpush1.bf16.msra.mxu1 %v18918_v0  ;;  %v18921_v49 = vld [vmem:[#allocation7 + $0x1fe8] ss:$24 sps:$4 sm:$0xff]  }
 0x7cf   : > { %13909 = vmatprep.subr.bf16.mxu1 %v18926_v35  ;;  %v18996_v0 = vld [vmem:[#allocation7 + $0x18d0] ss:$24 sps:$4 sm:$0xff]   ;;  %v19004_v35 = vld [vmem:[#allocation7 + $0x1904] ss:$24 sps:$4 sm:$0xff]  }
 0x7d1   : > { %13471 = vmatpush1.bf16.msra.mxu0 %v18849_v14  ;;  %v18929_v14 = vld [vmem:[#allocation7 + $0x201c] ss:$24 sps:$4 sm:$0xff]  }
 0x7d2   : > { %13472 = vmatprep.subr.bf16.mxu0 %v18857_v9  ;;  %13910 = vmatpush1.bf16.msra.mxu1 %v18924_v63  ;;  %v18935_v9 = vld [vmem:[#allocation7 + $0x204c] ss:$24 sps:$4 sm:$0xff]   ;;  %v19002_v63 = vld [vmem:[#allocation7 + $0x1900] ss:$24 sps:$4 sm:$0xff]  }
 0x7d3   : > { %13911 = vmatprep.subr.bf16.mxu1 %v18932_v61  ;;  %v18947_v61 = vld [vmem:[#allocation7 + $0x20ac] ss:$24 sps:$4 sm:$0xff]  }
 0x7d5   : > { %13473 = vmatpush1.bf16.msra.mxu0 %v18855_v39  ;;  %v18933_v39 = vld [vmem:[#allocation7 + $0x2048] ss:$24 sps:$4 sm:$0xff]  }
 0x7d6   : > { %13483 = vmatprep.subr.bf16.mxu0 %v18863_v29  ;;  %13912 = vmatpush1.bf16.msra.mxu1 %v18930_v33  ;;  %v18941_v29 = vld [vmem:[#allocation7 + $0x207c] ss:$24 sps:$4 sm:$0xff]   ;;  %v19008_v33 = vld [vmem:[#allocation7 + $0x1930] ss:$24 sps:$4 sm:$0xff]  }
 0x7d7   : > { %13913 = vmatprep.subr.bf16.mxu1 %v18938_v2  ;;  %v19016_v2 = vld [vmem:[#allocation7 + $0x1964] ss:$24 sps:$4 sm:$0xff]  }
 0x7d8   : > { %13475 = vmatmul.mubr.bf16.vlgmr.msra.gmra.mrb[56].mxu0 %v24202_v6 }
 0x7d9   : > { %13484 = vmatpush1.bf16.msra.mxu0 %v18861_v23  ;;  %13515 = vmatprep.mubr.bf16.mxu0 %v24207_v58  ;;  %v18939_v23 = vld [vmem:[#allocation7 + $0x2078] ss:$24 sps:$4 sm:$0xff]  }
 0x7da   : > { %13485 = vmatprep.subr.bf16.mxu0 %v18869_v4  ;;  %13914 = vmatpush1.bf16.msra.mxu1 %v18936_v57  ;;  %v19010_v4 = vld [vmem:[#allocation7 + $0x1934] ss:$24 sps:$4 sm:$0xff]   ;;  %v19014_v57 = vld [vmem:[#allocation7 + $0x1960] ss:$24 sps:$4 sm:$0xff]  }
 0x7db   : > { %13915 = vmatprep.subr.bf16.mxu1 %v18944_v47  ;;  %v19022_v47 = vld [vmem:[#allocation7 + $0x1994] ss:$24 sps:$4 sm:$0xff]  }
 0x7dd   : > { %13486 = vmatpush1.bf16.msra.mxu0 %v18867_v62  ;;  %v18945_v62 = vld [vmem:[#allocation7 + $0x20a8] ss:$24 sps:$4 sm:$0xff]  }
 0x7de   : > { %13487 = vmatprep.subr.bf16.mxu0 %v18875_v32  ;;  %13916 = vmatpush1.bf16.msra.mxu1 %v18942_v59  ;;  %v18953_v32 = vld [vmem:[#allocation7 + $0x20dc] ss:$24 sps:$4 sm:$0xff]   ;;  %v19020_v59 = vld [vmem:[#allocation7 + $0x1990] ss:$24 sps:$4 sm:$0xff]  }
 0x7df   : > { %13917 = vmatprep.subr.bf16.mxu1 %v18950_v7  ;;  %v18965_v7 = vld [vmem:[#allocation7 + $0x213c] ss:$24 sps:$4 sm:$0xff]  }
 0x7e1   : > { %13488 = vmatpush1.bf16.msra.mxu0 %v18873_v46  ;;  %v18951_v46 = vld [vmem:[#allocation7 + $0x20d8] ss:$24 sps:$4 sm:$0xff]  }
 0x7e2   : > { %13489 = vmatprep.subr.bf16.mxu0 %v18881_v37  ;;  %13918 = vmatpush1.bf16.msra.mxu1 %v18948_v15  ;;  %v18959_v37 = vld [vmem:[#allocation7 + $0x210c] ss:$24 sps:$4 sm:$0xff]   ;;  %v19026_v15 = vld [vmem:[#allocation7 + $0x19c0] ss:$24 sps:$4 sm:$0xff]  }
 0x7e3   : > { %13919 = vmatprep.subr.bf16.mxu1 %v18956_v45  ;;  %v19034_v45 = vld [vmem:[#allocation7 + $0x19f4] ss:$24 sps:$4 sm:$0xff]  }
 0x7e5   : > { %13490 = vmatpush1.bf16.msra.mxu0 %v18879_v25  ;;  %v18957_v25 = vld [vmem:[#allocation7 + $0x2108] ss:$24 sps:$4 sm:$0xff]  }
 0x7e6   : > { %13491 = vmatprep.subr.bf16.mxu0 %v18887_v28  ;;  %13920 = vmatpush1.bf16.msra.mxu1 %v18954_v19  ;;  %v19028_v28 = vld [vmem:[#allocation7 + $0x19c4] ss:$24 sps:$4 sm:$0xff]   ;;  %v19032_v19 = vld [vmem:[#allocation7 + $0x19f0] ss:$24 sps:$4 sm:$0xff]  }
 0x7e7   : > { %13921 = vmatprep.subr.bf16.mxu1 %v18962_v50  ;;  %v19040_v50 = vld [vmem:[#allocation7 + $0x1a24] ss:$24 sps:$4 sm:$0xff]  }
 0x7e9   : > { %13492 = vmatpush1.bf16.msra.mxu0 %v18885_v42  ;;  %v18963_v42 = vld [vmem:[#allocation7 + $0x2138] ss:$24 sps:$4 sm:$0xff]  }
 0x7ea   : > { %13493 = vmatprep.subr.bf16.mxu0 %v18893_v22  ;;  %13922 = vmatpush1.bf16.msra.mxu1 %v18960_v54  ;;  %v18971_v22 = vld [vmem:[#allocation7 + $0x216c] ss:$24 sps:$4 sm:$0xff]   ;;  %v19038_v54 = vld [vmem:[#allocation7 + $0x1a20] ss:$24 sps:$4 sm:$0xff]  }
 0x7eb   : > { %13923 = vmatprep.subr.bf16.mxu1 %v18968_v55  ;;  %v19046_v55 = vld [vmem:[#allocation7 + $0x1a54] ss:$24 sps:$4 sm:$0xff]  }
 0x7ed   : > { %13494 = vmatpush1.bf16.msra.mxu0 %v18891_v43  ;;  %v18969_v43 = vld [vmem:[#allocation7 + $0x2168] ss:$24 sps:$4 sm:$0xff]  }
 0x7ee   : > { %13495 = vmatprep.subr.bf16.mxu0 %v18899_v13  ;;  %13924 = vmatpush1.bf16.msra.mxu1 %v18966_v1  ;;  %v18977_v13 = vld [vmem:[#allocation7 + $0x219c] ss:$24 sps:$4 sm:$0xff]   ;;  %v19044_v1 = vld [vmem:[#allocation7 + $0x1a50] ss:$24 sps:$4 sm:$0xff]  }
 0x7ef   : > { %13934 = vmatprep.subr.bf16.mxu1 %v18974_v8  ;;  %v19052_v8 = vld [vmem:[#allocation7 + $0x1a84] ss:$24 sps:$4 sm:$0xff]  }
 0x7f1   : > { %13496 = vmatpush1.bf16.msra.mxu0 %v18897_v17  ;;  %13926 = vmatmul.mubr.bf16.vlgmr.msra.gmra.mrb[4].mxu1 %v24156_v34  ;;  %v18990_v34 = vld [vmem:[#allocation7 + $0x18a0] ss:$24 sps:$4 sm:$0xff]  }
 0x7f2   : > { %13497 = vmatprep.subr.bf16.mxu0 %v18905_v41  ;;  %13935 = vmatpush1.bf16.msra.mxu1 %v18972_v60  ;;  %v18975_v17 = vld [vmem:[#allocation7 + $0x2198] ss:$24 sps:$4 sm:$0xff]   ;;  %v18983_v41 = vld [vmem:[#allocation7 + $0x21cc] ss:$24 sps:$4 sm:$0xff]  }
 0x7f3   : > { %13966 = vmatprep.mubr.bf16.mxu1 %v24163_v24  ;;  %13936 = vmatprep.subr.bf16.mxu1 %v18980_v26  ;;  %v18998_v24 = vld [vmem:[#allocation7 + $0x18d4] ss:$24 sps:$4 sm:$0xff]   ;;  %v19050_v60 = vld [vmem:[#allocation7 + $0x1a80] ss:$24 sps:$4 sm:$0xff]  }
 0x7f4   : > { %v19058_v26 = vld [vmem:[#allocation7 + $0x1ab4] ss:$24 sps:$4 sm:$0xff]  }
 0x7f5   : > { %13498 = vmatpush1.bf16.msra.mxu0 %v18903_v11  ;;  %v18981_v11 = vld [vmem:[#allocation7 + $0x21c8] ss:$24 sps:$4 sm:$0xff]  }
 0x7f6   : > { %13499 = vmatprep.subr.bf16.mxu0 %v18911_v20  ;;  %13937 = vmatpush1.bf16.msra.mxu1 %v18978_v51  ;;  %v18989_v20 = vld [vmem:[#allocation7 + $0x21fc] ss:$24 sps:$4 sm:$0xff]   ;;  %v19056_v51 = vld [vmem:[#allocation7 + $0x1ab0] ss:$24 sps:$4 sm:$0xff]  }
 0x7f7   : > { %13938 = vmatprep.subr.bf16.mxu1 %v18986_v48  ;;  %v19064_v48 = vld [vmem:[#allocation7 + $0x1ae4] ss:$24 sps:$4 sm:$0xff]  }
 0x7f9   : > { %13500 = vmatpush1.bf16.msra.mxu0 %v18909_v52  ;;  %v18987_v52 = vld [vmem:[#allocation7 + $0x21f8] ss:$24 sps:$4 sm:$0xff]  }
 0x7fa   : > { %13501 = vmatprep.subr.bf16.mxu0 %v18917_v10  ;;  %13939 = vmatpush1.bf16.msra.mxu1 %v18984_v3  ;;  %v18995_v10 = vld [vmem:[#allocation7 + $0x222c] ss:$24 sps:$4 sm:$0xff]   ;;  %v19062_v3 = vld [vmem:[#allocation7 + $0x1ae0] ss:$24 sps:$4 sm:$0xff]  }
 0x7fb   : > { %13940 = vmatprep.subr.bf16.mxu1 %v18992_v27  ;;  %v19070_v27 = vld [vmem:[#allocation7 + $0x1b14] ss:$24 sps:$4 sm:$0xff]  }
 0x7fd   : > { %13502 = vmatpush1.bf16.msra.mxu0 %v18915_v16  ;;  %v18993_v16 = vld [vmem:[#allocation7 + $0x2228] ss:$24 sps:$4 sm:$0xff]  }
 0x7fe   : > { %13503 = vmatprep.subr.bf16.mxu0 %v18923_v18  ;;  %13941 = vmatpush1.bf16.msra.mxu1 %v18990_v34  ;;  %v19001_v18 = vld [vmem:[#allocation7 + $0x225c] ss:$24 sps:$4 sm:$0xff]   ;;  %v19068_v34 = vld [vmem:[#allocation7 + $0x1b10] ss:$24 sps:$4 sm:$0xff]  }
 0x7ff   : > { %13942 = vmatprep.subr.bf16.mxu1 %v18998_v24  ;;  %v19076_v24 = vld [vmem:[#allocation7 + $0x1b44] ss:$24 sps:$4 sm:$0xff]  }
 0x801   : > { %13504 = vmatpush1.bf16.msra.mxu0 %v18921_v49  ;;  %v18999_v49 = vld [vmem:[#allocation7 + $0x2258] ss:$24 sps:$4 sm:$0xff]  }
 0x802   : > { %13505 = vmatprep.subr.bf16.mxu0 %v18929_v14  ;;  %13943 = vmatpush1.bf16.msra.mxu1 %v18996_v0  ;;  %v19007_v14 = vld [vmem:[#allocation7 + $0x228c] ss:$24 sps:$4 sm:$0xff]   ;;  %v19074_v0 = vld [vmem:[#allocation7 + $0x1b40] ss:$24 sps:$4 sm:$0xff]  }
 0x803   : > { %13944 = vmatprep.subr.bf16.mxu1 %v19004_v35  ;;  %v19082_v35 = vld [vmem:[#allocation7 + $0x1b74] ss:$24 sps:$4 sm:$0xff]  }
 0x805   : > { %13506 = vmatpush1.bf16.msra.mxu0 %v18927_v30  ;;  %v19005_v30 = vld [vmem:[#allocation7 + $0x2288] ss:$24 sps:$4 sm:$0xff]  }
 0x806   : > { %13507 = vmatprep.subr.bf16.mxu0 %v18935_v9  ;;  %13945 = vmatpush1.bf16.msra.mxu1 %v19002_v63  ;;  %v19013_v9 = vld [vmem:[#allocation7 + $0x22bc] ss:$24 sps:$4 sm:$0xff]   ;;  %v19080_v63 = vld [vmem:[#allocation7 + $0x1b70] ss:$24 sps:$4 sm:$0xff]  }
 0x807   : > { %13946 = vmatprep.subr.bf16.mxu1 %v19010_v4  ;;  %v19088_v4 = vld [vmem:[#allocation7 + $0x1ba4] ss:$24 sps:$4 sm:$0xff]  }
 0x809   : > { %13508 = vmatpush1.bf16.msra.mxu0 %v18933_v39  ;;  %v19011_v39 = vld [vmem:[#allocation7 + $0x22b8] ss:$24 sps:$4 sm:$0xff]  }
 0x80a   : > { %13509 = vmatprep.subr.bf16.mxu0 %v18941_v29  ;;  %13947 = vmatpush1.bf16.msra.mxu1 %v19008_v33  ;;  %v19019_v29 = vld [vmem:[#allocation7 + $0x22ec] ss:$24 sps:$4 sm:$0xff]   ;;  %v19023_v33 = vld [vmem:[#allocation7 + $0x2318] ss:$24 sps:$4 sm:$0xff]  }
 0x80b   : > { %13948 = vmatprep.subr.bf16.mxu1 %v19016_v2  ;;  %v19092_v2 = vld [vmem:[#allocation7 + $0x1bd0] ss:$24 sps:$4 sm:$0xff]  }
 0x80d   : > { %13510 = vmatpush1.bf16.msra.mxu0 %v18939_v23  ;;  %v19017_v23 = vld [vmem:[#allocation7 + $0x22e8] ss:$24 sps:$4 sm:$0xff]  }
 0x80e   : > { %13511 = vmatprep.subr.bf16.mxu0 %v18947_v61  ;;  %13949 = vmatpush1.bf16.msra.mxu1 %v19014_v57  ;;  %v19025_v61 = vld [vmem:[#allocation7 + $0x231c] ss:$24 sps:$4 sm:$0xff]  }
 0x80f   : > { %13950 = vmatprep.subr.bf16.mxu1 %v19022_v47  ;;  %v19100_v57 = vld [vmem:[#allocation7 + $0x1c04] ss:$24 sps:$4 sm:$0xff]   ;;  %v19098_v47 = vld [vmem:[#allocation7 + $0x1c00] ss:$24 sps:$4 sm:$0xff]  }
 0x811   : > { %13512 = vmatpush1.bf16.msra.mxu0 %v18945_v62  ;;  %v19031_v62 = vld [vmem:[#allocation7 + $0x234c] ss:$24 sps:$4 sm:$0xff]  }
 0x812   : > { %13513 = vmatprep.subr.bf16.mxu0 %v18953_v32  ;;  %13951 = vmatpush1.bf16.msra.mxu1 %v19020_v59  ;;  %v19029_v32 = vld [vmem:[#allocation7 + $0x2348] ss:$24 sps:$4 sm:$0xff]   ;;  %v19103_v59 = vld [vmem:[#allocation7 + $0x1c34] ss:$24 sps:$4 sm:$0xff]  }
 0x813   : > { %13952 = vmatprep.subr.bf16.mxu1 %v19028_v28  ;;  %v19041_v28 = vld [vmem:[#allocation7 + $0x23a8] ss:$24 sps:$4 sm:$0xff]  }
 0x815   : > { %13514 = vmatpush1.bf16.msra.mxu0 %v18951_v46  ;;  %v19037_v46 = vld [vmem:[#allocation7 + $0x237c] ss:$24 sps:$4 sm:$0xff]  }
 0x816   : > { %13524 = vmatprep.subr.bf16.mxu0 %v18959_v37  ;;  %13953 = vmatpush1.bf16.msra.mxu1 %v19026_v15  ;;  %v19035_v37 = vld [vmem:[#allocation7 + $0x2378] ss:$24 sps:$4 sm:$0xff]   ;;  %v19108_v15 = vld [vmem:[#allocation7 + $0x1c64] ss:$24 sps:$4 sm:$0xff]  }
 0x817   : > { %13954 = vmatprep.subr.bf16.mxu1 %v19034_v45  ;;  %v19106_v45 = vld [vmem:[#allocation7 + $0x1c60] ss:$24 sps:$4 sm:$0xff]  }
 0x818   : > { %13516 = vmatmul.mubr.bf16.vlgmr.msra.gmra.mrb[56].mxu0 %v24216_v56 }
 0x819   : > { %13525 = vmatpush1.bf16.msra.mxu0 %v18957_v25  ;;  %13556 = vmatprep.mubr.bf16.mxu0 %v24219_v40  ;;  %v19043_v25 = vld [vmem:[#allocation7 + $0x23ac] ss:$24 sps:$4 sm:$0xff]  }
 0x81a   : > { %13526 = vmatprep.subr.bf16.mxu0 %v18965_v7  ;;  %13955 = vmatpush1.bf16.msra.mxu1 %v19032_v19  ;;  %v19101_v7 = vld [vmem:[#allocation7 + $0x1c30] ss:$24 sps:$4 sm:$0xff]   ;;  %v19113_v19 = vld [vmem:[#allocation7 + $0x1c94] ss:$24 sps:$4 sm:$0xff]  }
 0x81b   : > { %13956 = vmatprep.subr.bf16.mxu1 %v19040_v50  ;;  %v19111_v50 = vld [vmem:[#allocation7 + $0x1c90] ss:$24 sps:$4 sm:$0xff]  }
 0x81d   : > { %13527 = vmatpush1.bf16.msra.mxu0 %v18963_v42  ;;  %v19049_v42 = vld [vmem:[#allocation7 + $0x23dc] ss:$24 sps:$4 sm:$0xff]  }
 0x81e   : > { %13528 = vmatprep.subr.bf16.mxu0 %v18971_v22  ;;  %13957 = vmatpush1.bf16.msra.mxu1 %v19038_v54  ;;  %v19047_v22 = vld [vmem:[#allocation7 + $0x23d8] ss:$24 sps:$4 sm:$0xff]   ;;  %v19061_v54 = vld [vmem:[#allocation7 + $0x243c] ss:$24 sps:$4 sm:$0xff]  }
 0x81f   : > { %13958 = vmatprep.subr.bf16.mxu1 %v19046_v55  ;;  %v19116_v55 = vld [vmem:[#allocation7 + $0x1cc0] ss:$24 sps:$4 sm:$0xff]  }
 0x821   : > { %13529 = vmatpush1.bf16.msra.mxu0 %v18969_v43  ;;  %v19055_v43 = vld [vmem:[#allocation7 + $0x240c] ss:$24 sps:$4 sm:$0xff]  }
 0x822   : > { %13530 = vmatprep.subr.bf16.mxu0 %v18977_v13  ;;  %13959 = vmatpush1.bf16.msra.mxu1 %v19044_v1  ;;  %v19053_v13 = vld [vmem:[#allocation7 + $0x2408] ss:$24 sps:$4 sm:$0xff]   ;;  %v19123_v1 = vld [vmem:[#allocation7 + $0x1cf4] ss:$24 sps:$4 sm:$0xff]  }
 0x823   : > { %13960 = vmatprep.subr.bf16.mxu1 %v19052_v8  ;;  %v19121_v8 = vld [vmem:[#allocation7 + $0x1cf0] ss:$24 sps:$4 sm:$0xff]  }
 0x825   : > { %13531 = vmatpush1.bf16.msra.mxu0 %v18975_v17  ;;  %v19118_v17 = vld [vmem:[#allocation7 + $0x1cc4] ss:$24 sps:$4 sm:$0xff]  }
 0x826   : > { %13532 = vmatprep.subr.bf16.mxu0 %v18983_v41  ;;  %13961 = vmatpush1.bf16.msra.mxu1 %v19050_v60  ;;  %v19059_v41 = vld [vmem:[#allocation7 + $0x2438] ss:$24 sps:$4 sm:$0xff]   ;;  %v19128_v60 = vld [vmem:[#allocation7 + $0x1d24] ss:$24 sps:$4 sm:$0xff]  }
 0x827   : > { %13962 = vmatprep.subr.bf16.mxu1 %v19058_v26  ;;  %v19126_v26 = vld [vmem:[#allocation7 + $0x1d20] ss:$24 sps:$4 sm:$0xff]  }
 0x829   : > { %13533 = vmatpush1.bf16.msra.mxu0 %v18981_v11  ;;  %v19067_v11 = vld [vmem:[#allocation7 + $0x246c] ss:$24 sps:$4 sm:$0xff]  }
 0x82a   : > { %13534 = vmatprep.subr.bf16.mxu0 %v18989_v20  ;;  %13963 = vmatpush1.bf16.msra.mxu1 %v19056_v51  ;;  %v19065_v20 = vld [vmem:[#allocation7 + $0x2468] ss:$24 sps:$4 sm:$0xff]   ;;  %v19133_v51 = vld [vmem:[#allocation7 + $0x1d54] ss:$24 sps:$4 sm:$0xff]  }
 0x82b   : > { %13964 = vmatprep.subr.bf16.mxu1 %v19064_v48  ;;  %v19131_v48 = vld [vmem:[#allocation7 + $0x1d50] ss:$24 sps:$4 sm:$0xff]  }
 0x82d   : > { %13535 = vmatpush1.bf16.msra.mxu0 %v18987_v52  ;;  %v19073_v52 = vld [vmem:[#allocation7 + $0x249c] ss:$24 sps:$4 sm:$0xff]  }
 0x82e   : > { %13536 = vmatprep.subr.bf16.mxu0 %v18995_v10  ;;  %13965 = vmatpush1.bf16.msra.mxu1 %v19062_v3  ;;  %v19071_v10 = vld [vmem:[#allocation7 + $0x2498] ss:$24 sps:$4 sm:$0xff]   ;;  %v19138_v3 = vld [vmem:[#allocation7 + $0x1d84] ss:$24 sps:$4 sm:$0xff]  }
 0x82f   : > { %13975 = vmatprep.subr.bf16.mxu1 %v19070_v27  ;;  %v19136_v27 = vld [vmem:[#allocation7 + $0x1d80] ss:$24 sps:$4 sm:$0xff]  }
 0x831   : > { %13537 = vmatpush1.bf16.msra.mxu0 %v18993_v16  ;;  %13967 = vmatmul.mubr.bf16.vlgmr.msra.gmra.mrb[4].mxu1 %v24177_v21  ;;  %v19086_v21 = vld [vmem:[#allocation7 + $0x1ba0] ss:$24 sps:$4 sm:$0xff]   ;;  %v19079_v16 = vld [vmem:[#allocation7 + $0x24cc] ss:$24 sps:$4 sm:$0xff]  }
 0x832   : > { %13538 = vmatprep.subr.bf16.mxu0 %v19001_v18  ;;  %13976 = vmatpush1.bf16.msra.mxu1 %v19068_v34  ;;  %v19077_v18 = vld [vmem:[#allocation7 + $0x24c8] ss:$24 sps:$4 sm:$0xff]   ;;  %v19143_v34 = vld [vmem:[#allocation7 + $0x1db4] ss:$24 sps:$4 sm:$0xff]  }
 0x833   : > { %14007 = vmatprep.mubr.bf16.mxu1 %v24184_v31  ;;  %13977 = vmatprep.subr.bf16.mxu1 %v19076_v24  ;;  %v19094_v31 = vld [vmem:[#allocation7 + $0x1bd4] ss:$24 sps:$4 sm:$0xff]   ;;  %v19141_v24 = vld [vmem:[#allocation7 + $0x1db0] ss:$24 sps:$4 sm:$0xff]  }
 0x835   : > { %13539 = vmatpush1.bf16.msra.mxu0 %v18999_v49  ;;  %v19085_v49 = vld [vmem:[#allocation7 + $0x24fc] ss:$24 sps:$4 sm:$0xff]  }
 0x836   : > { %13540 = vmatprep.subr.bf16.mxu0 %v19007_v14  ;;  %13978 = vmatpush1.bf16.msra.mxu1 %v19074_v0  ;;  %v19083_v14 = vld [vmem:[#allocation7 + $0x24f8] ss:$24 sps:$4 sm:$0xff]   ;;  %v19146_v0 = vld [vmem:[#allocation7 + $0x1de4] ss:$24 sps:$4 sm:$0xff]  }
 0x837   : > { %13979 = vmatprep.subr.bf16.mxu1 %v19082_v35  ;;  %v19144_v35 = vld [vmem:[#allocation7 + $0x1de0] ss:$24 sps:$4 sm:$0xff]  }
 0x839   : > { %13541 = vmatpush1.bf16.msra.mxu0 %v19005_v30  ;;  %v19091_v30 = vld [vmem:[#allocation7 + $0x252c] ss:$24 sps:$4 sm:$0xff]  }
 0x83a   : > { %13542 = vmatprep.subr.bf16.mxu0 %v19013_v9  ;;  %13980 = vmatpush1.bf16.msra.mxu1 %v19080_v63  ;;  %v19089_v9 = vld [vmem:[#allocation7 + $0x2528] ss:$24 sps:$4 sm:$0xff]   ;;  %v19149_v63 = vld [vmem:[#allocation7 + $0x1e14] ss:$24 sps:$4 sm:$0xff]  }
 0x83b   : > { %13981 = vmatprep.subr.bf16.mxu1 %v19088_v4  ;;  %v14140_v4 = vmax.f32 %v24264_v36, 0.0  ;;  %v19114_v36 = vld [vmem:[#allocation10 + $0x50] sm:$0xff]  }
 0x83d   : > { %13543 = vmatpush1.bf16.msra.mxu0 %v19011_v39  ;;  %v19097_v39 = vld [vmem:[#allocation7 + $0x255c] ss:$24 sps:$4 sm:$0xff]  }
 0x83e   : > { %13544 = vmatprep.subr.bf16.mxu0 %v19019_v29  ;;  %13982 = vmatpush1.bf16.msra.mxu1 %v19086_v21  ;;  %v19095_v29 = vld [vmem:[#allocation7 + $0x2558] ss:$24 sps:$4 sm:$0xff]   ;;  %v19105_v21 = vld [vmem:[#allocation10] sm:$0xff]  }
 0x83f   : > { %13983 = vmatprep.subr.bf16.mxu1 %v19094_v31  ;;  %v14146_v31 = vpack.c.bf16 %v14140_v4, %v14140_v4  ;;  %v19278_v4 = vld [vmem:[#allocation10 + $0xa8] sm:$0xff]  }
 0x841   : > { %13545 = vmatpush1.bf16.msra.mxu0 %v19017_v23  ;;  %v19104_v23 = vld [vmem:[#allocation10 + $0x40] sm:$0xff]  }
 0x842   : > { %13546 = vmatprep.subr.bf16.mxu0 %v19025_v61  ;;  %13984 = vmatpush1.bf16.msra.mxu1 %v19092_v2  ;;  %v19147_v61 = vld [vmem:[#allocation7 + $0x1e10] ss:$24 sps:$4 sm:$0xff]   ;;  %v19150_v2 = vld [vmem:[#allocation7 + $0x1e40] ss:$24 sps:$4 sm:$0xff]  }
 0x843   : > { %13985 = vmatprep.subr.bf16.mxu1 %v19100_v57  ;;  %v19155_v57 = vld [vmem:[#allocation7 + $0x1e74] ss:$24 sps:$4 sm:$0xff]  }
 0x845   : > { %13547 = vmatpush1.bf16.msra.mxu0 %v19023_v33  ;;  %v19109_v33 = vld [vmem:[#allocation10 + $0x48] sm:$0xff]  }
 0x846   : > { %13548 = vmatprep.subr.bf16.mxu0 %v19031_v62  ;;  %13986 = vmatpush1.bf16.msra.mxu1 %v19098_v47  ;;  %v19152_v62 = vld [vmem:[#allocation7 + $0x1e44] ss:$24 sps:$4 sm:$0xff]  }
 0x847   : > { %13987 = vmatprep.subr.bf16.mxu1 %v19103_v59  ;;  %v19115_v47 = vld [vmem:[#allocation10 + $0x10] sm:$0xff]  }
 0x848   : > { %v19156_v59 = vld [vmem:[#allocation7 + $0x1ea0] ss:$24 sps:$4 sm:$0xff]  }
 0x849   : > { %13549 = vmatpush1.bf16.msra.mxu0 %v19029_v32  ;;  %v19110_v32 = vld [vmem:[#allocation10 + $0x8] sm:$0xff]  }
 0x84a   : > { %13550 = vmatprep.subr.bf16.mxu0 %v19037_v46  ;;  %13988 = vmatpush1.bf16.msra.mxu1 %v19101_v7  ;;  %v19153_v46 = vld [vmem:[#allocation7 + $0x1e70] ss:$24 sps:$4 sm:$0xff]   ;;  %v19161_v7 = vld [vmem:[#allocation7 + $0x1ed4] ss:$24 sps:$4 sm:$0xff]  }
 0x84b   : > { %13989 = vmatprep.subr.bf16.mxu1 %v19108_v15  ;;  %v19159_v15 = vld [vmem:[#allocation7 + $0x1ed0] ss:$24 sps:$4 sm:$0xff]  }
 0x84d   : > { %13551 = vmatpush1.bf16.msra.mxu0 %v19035_v37  ;;  %v19119_v37 = vld [vmem:[#allocation10 + $0x58] sm:$0xff]  }
 0x84e   : > { %13552 = vmatprep.subr.bf16.mxu0 %v19043_v25  ;;  %13990 = vmatpush1.bf16.msra.mxu1 %v19106_v45  ;;  %v19120_v25 = vld [vmem:[#allocation10 + $0x18] sm:$0xff]   ;;  %v19129_v45 = vld [vmem:[#allocation10 + $0x68] sm:$0xff]  }
 0x84f   : > { %13991 = vmatprep.subr.bf16.mxu1 %v19113_v19  ;;  %v19130_v19 = vld [vmem:[#allocation10 + $0x28] sm:$0xff]  }
 0x851   : > { %13553 = vmatpush1.bf16.msra.mxu0 %v19041_v28  ;;  %v19124_v28 = vld [vmem:[#allocation10 + $0x60] sm:$0xff]  }
 0x852   : > { %13554 = vmatprep.subr.bf16.mxu0 %v19049_v42  ;;  %13992 = vmatpush1.bf16.msra.mxu1 %v19111_v50  ;;  %v19164_v42 = vld [vmem:[#allocation7 + $0x1f04] ss:$24 sps:$4 sm:$0xff]  }
 0x853   : > { %13993 = vmatprep.subr.bf16.mxu1 %v19118_v17  ;;  %v19134_v50 = vld [vmem:[#allocation10 + $0x70] sm:$0xff]  }
 0x854   : > { %v19170_v17 = vld [vmem:[#allocation7 + $0x1f64] ss:$24 sps:$4 sm:$0xff]  }
 0x855   : > { %13555 = vmatpush1.bf16.msra.mxu0 %v19047_v22  ;;  %v19162_v22 = vld [vmem:[#allocation7 + $0x1f00] ss:$24 sps:$4 sm:$0xff]  }
 0x856   : > { %13565 = vmatprep.subr.bf16.mxu0 %v19055_v43  ;;  %13994 = vmatpush1.bf16.msra.mxu1 %v19116_v55  ;;  %v19167_v43 = vld [vmem:[#allocation7 + $0x1f34] ss:$24 sps:$4 sm:$0xff]   ;;  %v19139_v55 = vld [vmem:[#allocation10 + $0x78] sm:$0xff]  }
 0x857   : > { %13995 = vmatprep.subr.bf16.mxu1 %v19123_v1  ;;  %v19140_v1 = vld [vmem:[#allocation10 + $0x38] sm:$0xff]  }
 0x858   : > { %13557 = vmatmul.mubr.bf16.vlgmr.msra.gmra.mrb[56].mxu0 %v24228_v38 }
 0x859   : > { %13566 = vmatpush1.bf16.msra.mxu0 %v19053_v13  ;;  %13597 = vmatprep.mubr.bf16.mxu0 %v19562_v44  ;;  %v19165_v13 = vld [vmem:[#allocation7 + $0x1f30] ss:$24 sps:$4 sm:$0xff]  }
 0x85a   : > { %13567 = vmatprep.subr.bf16.mxu0 %v19061_v54  ;;  %13996 = vmatpush1.bf16.msra.mxu1 %v19121_v8  ;;  %v19135_v54 = vld [vmem:[#allocation10 + $0x30] sm:$0xff]   ;;  %v14139_v8 = vmax.f32 %v24262_v12, 0.0 }
 0x85b   : > { %13997 = vmatprep.subr.bf16.mxu1 %v19128_v60  ;;  %v19171_v60 = vld [vmem:[#allocation7 + $0x1f90] ss:$24 sps:$4 sm:$0xff]   ;;  %v19271_v12 = vld [vmem:[#allocation10 + $0xd0] sm:$0xff]  }
 0x85d   : > { %13568 = vmatpush1.bf16.msra.mxu0 %v19059_v41  ;;  %v19168_v41 = vld [vmem:[#allocation7 + $0x1f60] ss:$24 sps:$4 sm:$0xff]  }
 0x85e   : > { %13569 = vmatprep.subr.bf16.mxu0 %v19067_v11  ;;  %13998 = vmatpush1.bf16.msra.mxu1 %v19126_v26  ;;  %v19173_v11 = vld [vmem:[#allocation7 + $0x1f94] ss:$24 sps:$4 sm:$0xff]  }
 0x85f   : > { %13999 = vmatprep.subr.bf16.mxu1 %v19133_v51  ;;  %v19262_v26 = vld [vmem:[#allocation10 + $0x80] sm:$0xff]   ;;  %v19266_v51 = vld [vmem:[#allocation10 + $0xc8] sm:$0xff]  }
 0x861   : > { %13570 = vmatpush1.bf16.msra.mxu0 %v19065_v20  ;;  %v19261_v20 = vld [vmem:[#allocation10 + $0xc0] sm:$0xff]  }
 0x862   : > { %13571 = vmatprep.subr.bf16.mxu0 %v19073_v52  ;;  %14000 = vmatpush1.bf16.msra.mxu1 %v19131_v48  ;;  %v19176_v52 = vld [vmem:[#allocation7 + $0x1fc4] ss:$24 sps:$4 sm:$0xff]   ;;  %v19179_v48 = vld [vmem:[#allocation7 + $0x1ff4] ss:$24 sps:$4 sm:$0xff]  }
 0x863   : > { %14001 = vmatprep.subr.bf16.mxu1 %v19138_v3  ;;  %v19177_v3 = vld [vmem:[#allocation7 + $0x1ff0] ss:$24 sps:$4 sm:$0xff]  }
 0x865   : > { %13572 = vmatpush1.bf16.msra.mxu0 %v19071_v10  ;;  %v14145_v10 = vpack.c.bf16 %v14139_v8, %v14139_v8  ;;  %v19234_v8 = vld [vmem:[#allocation7 + $0x2380] ss:$24 sps:$4 sm:$0xff]  }
 0x866   : > { %13573 = vmatprep.subr.bf16.mxu0 %v19079_v16  ;;  %14002 = vmatpush1.bf16.msra.mxu1 %v19136_v27  ;;  %v19174_v16 = vld [vmem:[#allocation7 + $0x1fc0] ss:$24 sps:$4 sm:$0xff]  }
 0x867   : > { %14003 = vmatprep.subr.bf16.mxu1 %v19143_v34  ;;  %v19272_v27 = vld [vmem:[#allocation10 + $0x90] sm:$0xff]  }
 0x868   : > { %v19180_v34 = vld [vmem:[#allocation7 + $0x2020] ss:$24 sps:$4 sm:$0xff]  }
 0x869   : > { %13574 = vmatpush1.bf16.msra.mxu0 %v19077_v18  ;;  %v19267_v18 = vld [vmem:[#allocation10 + $0x88] sm:$0xff]  }
 0x86a   : > { %13575 = vmatprep.subr.bf16.mxu0 %v19085_v49  ;;  %14004 = vmatpush1.bf16.msra.mxu1 %v19141_v24  ;;  %v19182_v49 = vld [vmem:[#allocation7 + $0x2024] ss:$24 sps:$4 sm:$0xff]  }
 0x86b   : > { %14005 = vmatprep.subr.bf16.mxu1 %v19146_v0  ;;  %v19274_v24 = vld [vmem:[#allocation10 + $0x98] sm:$0xff]   ;;  %v19183_v0 = vld [vmem:[#allocation7 + $0x2050] ss:$24 sps:$4 sm:$0xff]  }
 0x86d   : > { %13576 = vmatpush1.bf16.msra.mxu0 %v19083_v14  ;;  %v19273_v14 = vld [vmem:[#allocation10 + $0xd8] sm:$0xff]  }
 0x86e   : > { %13577 = vmatprep.subr.bf16.mxu0 %v19091_v30  ;;  %14006 = vmatpush1.bf16.msra.mxu1 %v19144_v35  ;;  %v19185_v30 = vld [vmem:[#allocation7 + $0x2054] ss:$24 sps:$4 sm:$0xff]  }
 0x86f   : > { %14016 = vmatprep.subr.bf16.mxu1 %v19149_v63  ;;  %v19276_v35 = vld [vmem:[#allocation10 + $0xa0] sm:$0xff]   ;;  %v19186_v63 = vld [vmem:[#allocation7 + $0x2080] ss:$24 sps:$4 sm:$0xff]  }
 0x871   : > { %13578 = vmatpush1.bf16.msra.mxu0 %v19089_v9  ;;  %14008 = vmatmul.mubr.bf16.vlgmr.msra.gmra.mrb[4].mxu1 %v24202_v6  ;;  %v19158_v6 = vld [vmem:[#allocation7 + $0x1ea4] ss:$24 sps:$4 sm:$0xff]  }
 0x872   : > { %13579 = vmatprep.subr.bf16.mxu0 %v19097_v39  ;;  %14017 = vmatpush1.bf16.msra.mxu1 %v19147_v61  ;;  %v19275_v9 = vld [vmem:[#allocation10 + $0xe0] sm:$0xff]  }
 0x873   : > { %14048 = vmatprep.mubr.bf16.mxu1 %v24207_v58  ;;  %14018 = vmatprep.subr.bf16.mxu1 %v19152_v62  ;;  %v19125_v58 = vld [vmem:[#allocation10 + $0x20] sm:$0xff]  }
 0x874   : > { %v19188_v39 = vld [vmem:[#allocation7 + $0x2084] ss:$24 sps:$4 sm:$0xff]   ;;  %v19189_v61 = vld [vmem:[#allocation7 + $0x20b0] ss:$24 sps:$4 sm:$0xff]  }
 0x875   : > { %13580 = vmatpush1.bf16.msra.mxu0 %v19095_v29  ;;  %v19277_v29 = vld [vmem:[#allocation10 + $0xe8] sm:$0xff]  }
 0x876   : > { %17075 = vmatprep.subr.bf16.mxu0 %v19104_v23  ;;  %14019 = vmatpush1.bf16.msra.mxu1 %v19150_v2  ;;  %v19191_v23 = vld [vmem:[#allocation7 + $0x20b4] ss:$24 sps:$4 sm:$0xff]   ;;  %v19195_v62 = vld [vmem:[#allocation7 + $0x2110] ss:$24 sps:$4 sm:$0xff]   ;;  %v19200_v2 = vld [vmem:[#allocation7 + $0x2144] ss:$24 sps:$4 sm:$0xff]  }
 0x877   : > { %14020 = vmatprep.subr.bf16.mxu1 %v19155_v57  ;;  %v19203_v57 = vld [vmem:[#allocation7 + $0x2174] ss:$24 sps:$4 sm:$0xff]  }
 0x878   : > { %13598 = vmatmul.mubr.bf16.vlgmr.msra.gmra.mrb[56].mxu0 %v24236_v53 }
 0x879   : > { %17076 = vmatpush3.bf16.msra.mxu0 %v19105_v21  ;;  %14574 = vmatprep.mubr.bf16.mxu0 %v14146_v31  ;;  %v19194_v21 = vld [vmem:[#allocation7 + $0x20e4] ss:$24 sps:$4 sm:$0xff]   ;;  %v19197_v31 = vld [vmem:[#allocation7 + $0x2114] ss:$24 sps:$4 sm:$0xff]  }
 0x87a   : > { %17077 = vmatprep.subr.bf16.mxu0 %v19109_v33  ;;  %14021 = vmatpush1.bf16.msra.mxu1 %v19153_v46  ;;  %v19192_v33 = vld [vmem:[#allocation7 + $0x20e0] ss:$24 sps:$4 sm:$0xff]   ;;  %v19206_v46 = vld [vmem:[#allocation7 + $0x21a4] ss:$24 sps:$4 sm:$0xff]  }
 0x87b   : > { %14022 = vmatprep.subr.bf16.mxu1 %v19158_v6  ;;  %v19209_v6 = vld [vmem:[#allocation7 + $0x21d4] ss:$24 sps:$4 sm:$0xff]  }
 0x87d   : > { %17078 = vmatpush3.bf16.msra.mxu0 %v19110_v32  ;;  %v19198_v32 = vld [vmem:[#allocation7 + $0x2140] ss:$24 sps:$4 sm:$0xff]  }
 0x87e   : > { %17079 = vmatprep.subr.bf16.mxu0 %v19114_v36  ;;  %14023 = vmatpush1.bf16.msra.mxu1 %v19156_v59  ;;  %v19201_v36 = vld [vmem:[#allocation7 + $0x2170] ss:$24 sps:$4 sm:$0xff]   ;;  %v19212_v59 = vld [vmem:[#allocation7 + $0x2204] ss:$24 sps:$4 sm:$0xff]  }
 0x87f   : > { %14024 = vmatprep.subr.bf16.mxu1 %v19161_v7  ;;  %v19280_v7 = vld [vmem:[#allocation10 + $0xb0] sm:$0xff]  }
 0x881   : > { %17080 = vmatpush3.bf16.msra.mxu0 %v19115_v47  ;;  %v19204_v47 = vld [vmem:[#allocation7 + $0x21a0] ss:$24 sps:$4 sm:$0xff]  }
 0x882   : > { %17081 = vmatprep.subr.bf16.mxu0 %v19119_v37  ;;  %14025 = vmatpush1.bf16.msra.mxu1 %v19159_v15  ;;  %v19207_v37 = vld [vmem:[#allocation7 + $0x21d0] ss:$24 sps:$4 sm:$0xff]   ;;  %v19218_v15 = vld [vmem:[#allocation7 + $0x2264] ss:$24 sps:$4 sm:$0xff]  }
 0x883   : > { %14026 = vmatprep.subr.bf16.mxu1 %v19164_v42  ;;  %v19282_v42 = vld [vmem:[#allocation10 + $0xb8] sm:$0xff]  }
 0x885   : > { %17082 = vmatpush3.bf16.msra.mxu0 %v19120_v25  ;;  %v19215_v25 = vld [vmem:[#allocation7 + $0x2234] ss:$24 sps:$4 sm:$0xff]  }
 0x886   : > { %17083 = vmatprep.subr.bf16.mxu0 %v19124_v28  ;;  %14027 = vmatpush1.bf16.msra.mxu1 %v19162_v22  ;;  %v19213_v28 = vld [vmem:[#allocation7 + $0x2230] ss:$24 sps:$4 sm:$0xff]   ;;  %v19221_v22 = vld [vmem:[#allocation7 + $0x2294] ss:$24 sps:$4 sm:$0xff]  }
 0x887   : > { %14028 = vmatprep.subr.bf16.mxu1 %v19167_v43  ;;  %v19224_v43 = vld [vmem:[#allocation7 + $0x22c4] ss:$24 sps:$4 sm:$0xff]  }
 0x889   : > { %17084 = vmatpush3.bf16.msra.mxu0 %v19125_v58  ;;  %v19281_v58 = vld [vmem:[#allocation10 + $0xf8] sm:$0xff]  }
 0x88a   : > { %17085 = vmatprep.subr.bf16.mxu0 %v19129_v45  ;;  %14029 = vmatpush1.bf16.msra.mxu1 %v19165_v13  ;;  %v19216_v45 = vld [vmem:[#allocation7 + $0x2260] ss:$24 sps:$4 sm:$0xff]   ;;  %v19227_v13 = vld [vmem:[#allocation7 + $0x22f4] ss:$24 sps:$4 sm:$0xff]  }
 0x88b   : > { %14030 = vmatprep.subr.bf16.mxu1 %v19170_v17  ;;  %v19230_v17 = vld [vmem:[#allocation7 + $0x2324] ss:$24 sps:$4 sm:$0xff]  }
 0x88d   : > { %17086 = vmatpush3.bf16.msra.mxu0 %v19130_v19  ;;  %v19219_v19 = vld [vmem:[#allocation7 + $0x2290] ss:$24 sps:$4 sm:$0xff]  }
 0x88e   : > { %17087 = vmatprep.subr.bf16.mxu0 %v19134_v50  ;;  %14031 = vmatpush1.bf16.msra.mxu1 %v19168_v41  ;;  %v19222_v50 = vld [vmem:[#allocation7 + $0x22c0] ss:$24 sps:$4 sm:$0xff]   ;;  %v19233_v41 = vld [vmem:[#allocation7 + $0x2354] ss:$24 sps:$4 sm:$0xff]  }
 0x88f   : > { %14032 = vmatprep.subr.bf16.mxu1 %v19173_v11  ;;  %v19236_v11 = vld [vmem:[#allocation7 + $0x2384] ss:$24 sps:$4 sm:$0xff]  }
 0x891   : > { %17088 = vmatpush3.bf16.msra.mxu0 %v19135_v54  ;;  %v19225_v54 = vld [vmem:[#allocation7 + $0x22f0] ss:$24 sps:$4 sm:$0xff]  }
 0x892   : > { %17089 = vmatprep.subr.bf16.mxu0 %v19139_v55  ;;  %14033 = vmatpush1.bf16.msra.mxu1 %v19171_v60  ;;  %v19228_v55 = vld [vmem:[#allocation7 + $0x2320] ss:$24 sps:$4 sm:$0xff]   ;;  %v19237_v60 = vld [vmem:[#allocation7 + $0x23b0] ss:$24 sps:$4 sm:$0xff]  }
 0x893   : > { %14034 = vmatprep.subr.bf16.mxu1 %v19176_v52  ;;  %v19242_v52 = vld [vmem:[#allocation7 + $0x23e4] ss:$24 sps:$4 sm:$0xff]  }
 0x895   : > { %17090 = vmatpush3.bf16.msra.mxu0 %v19140_v1  ;;  %v19231_v1 = vld [vmem:[#allocation7 + $0x2350] ss:$24 sps:$4 sm:$0xff]  }
 0x896   : > { %17097 = vmatprep.subr.bf16.mxu0 %v19261_v20  ;;  %14035 = vmatpush1.bf16.msra.mxu1 %v19174_v16  ;;  %v19239_v20 = vld [vmem:[#allocation7 + $0x23b4] ss:$24 sps:$4 sm:$0xff]   ;;  %v19243_v16 = vld [vmem:[#allocation7 + $0x2410] ss:$24 sps:$4 sm:$0xff]  }
 0x897   : > { %14036 = vmatprep.subr.bf16.mxu1 %v19179_v48  ;;  %v19248_v48 = vld [vmem:[#allocation7 + $0x2444] ss:$24 sps:$4 sm:$0xff]  }
 0x898   : > { %14575 = vmatmul.mubr.bf16.vlgmr.msra.gmra.mrb[60].mxu0 %v14145_v10  ;;  %v19240_v10 = vld [vmem:[#allocation7 + $0x23e0] ss:$24 sps:$4 sm:$0xff]  }
 0x899   : > { %17098 = vmatpush3.bf16.msra.mxu0 %v19262_v26  ;;  %v19283_v26 = vld [vmem:[#allocation10 + $0x140] sm:$0xff]  }
 0x89a   : > { %17099 = vmatprep.subr.bf16.mxu0 %v19266_v51  ;;  %14037 = vmatpush1.bf16.msra.mxu1 %v19177_v3  ;;  %v19245_v51 = vld [vmem:[#allocation7 + $0x2414] ss:$24 sps:$4 sm:$0xff]   ;;  %v19249_v3 = vld [vmem:[#allocation7 + $0x2470] ss:$24 sps:$4 sm:$0xff]  }
 0x89b   : > { %14038 = vmatprep.subr.bf16.mxu1 %v19182_v49  ;;  %v19254_v49 = vld [vmem:[#allocation7 + $0x24a4] ss:$24 sps:$4 sm:$0xff]  }
 0x89d   : > { %17100 = vmatpush3.bf16.msra.mxu0 %v19267_v18  ;;  %v19246_v18 = vld [vmem:[#allocation7 + $0x2440] ss:$24 sps:$4 sm:$0xff]  }
 0x89e   : > { %17101 = vmatprep.subr.bf16.mxu0 %v19271_v12  ;;  %14039 = vmatpush1.bf16.msra.mxu1 %v19180_v34  ;;  %v19251_v12 = vld [vmem:[#allocation7 + $0x2474] ss:$24 sps:$4 sm:$0xff]   ;;  %v19255_v34 = vld [vmem:[#allocation7 + $0x24d0] ss:$24 sps:$4 sm:$0xff]  }
 0x89f   : > { %14040 = vmatprep.subr.bf16.mxu1 %v19185_v30  ;;  %v19260_v30 = vld [vmem:[#allocation7 + $0x2504] ss:$24 sps:$4 sm:$0xff]  }
 0x8a1   : > { %17102 = vmatpush3.bf16.msra.mxu0 %v19272_v27  ;;  %v19252_v27 = vld [vmem:[#allocation7 + $0x24a0] ss:$24 sps:$4 sm:$0xff]  }
 0x8a2   : > { %17103 = vmatprep.subr.bf16.mxu0 %v19273_v14  ;;  %14041 = vmatpush1.bf16.msra.mxu1 %v19183_v0  ;;  %v19257_v14 = vld [vmem:[#allocation7 + $0x24d4] ss:$24 sps:$4 sm:$0xff]   ;;  %v19268_v0 = vld [vmem:[#allocation7 + $0x2560] ss:$24 sps:$4 sm:$0xff]  }
 0x8a3   : > { %14042 = vmatprep.subr.bf16.mxu1 %v19188_v39  ;;  %v6520_v39 = vsub.s32 2, %v24256_v5 }
 0x8a5   : > { %17104 = vmatpush3.bf16.msra.mxu0 %v19274_v24  ;;  %v19265_v24 = vld [vmem:[#allocation7 + $0x2534] ss:$24 sps:$4 sm:$0xff]  }
 0x8a6   : > { %17105 = vmatprep.subr.bf16.mxu0 %v19275_v9  ;;  %14043 = vmatpush1.bf16.msra.mxu1 %v19186_v63  ;;  %v19270_v9 = vld [vmem:[#allocation7 + $0x2564] ss:$24 sps:$4 sm:$0xff]  }
 0x8a7   : > { %14044 = vmatprep.subr.bf16.mxu1 %v19191_v23 }
 0x8a9   : > { %17106 = vmatpush3.bf16.msra.mxu0 %v19276_v35  ;;  %v6524_v35 = vsub.s32 3, %v24256_v5 }
 0x8aa   : > { %17107 = vmatprep.subr.bf16.mxu0 %v19277_v29  ;;  %14045 = vmatpush1.bf16.msra.mxu1 %v19189_v61  ;;  %v19301_v29 = vld [vmem:[#allocation8] sm:$0x3f] }
 0x8ab   : > { %14046 = vmatprep.subr.bf16.mxu1 %v19194_v21  ;;  %v6521_v63 = vrot.slane %v19301_v29, %v6520_v39  ;;  %v6525_v23 = vrot.slane %v19301_v29, %v6524_v35 }
 0x8ad   : > { %17108 = vmatpush3.bf16.msra.mxu0 %v19278_v4 }
 0x8ae   : > { %14047 = vmatpush1.bf16.msra.mxu1 %v19192_v33 }
 0x8af   : > { %14057 = vmatprep.subr.bf16.mxu1 %v19197_v31 }
 0x8b1   : > { %14049 = vmatmul.mubr.bf16.vlgmr.msra.gmra.mrb[4].mxu1 %v24216_v56  ;;  %v19210_v56 = vld [vmem:[#allocation7 + $0x2200] ss:$24 sps:$4 sm:$0xff]  }
 0x8b2   : > { %14058 = vmatpush1.bf16.msra.mxu1 %v19195_v62  ;;  %14089 = vmatprep.mubr.bf16.mxu1 %v24219_v40  ;;  %v19279_v40 = vld [vmem:[#allocation10 + $0xf0] sm:$0xff]  }
 0x8b3   : > { %14059 = vmatprep.subr.bf16.mxu1 %v19200_v2  ;;  %17109 = vmatprep.subr.bf16.mxu0 %v19279_v40  ;;  %v19292_v40 = vld [vmem:[#allocation10 + $0x120] sm:$0xff]  }
 0x8b4   : > { %17110 = vmatpush3.bf16.msra.mxu0 %v19280_v7  ;;  %v19293_v7 = vld [vmem:[#allocation10 + $0x168] sm:$0xff]  }
 0x8b5   : > { %17111 = vmatprep.subr.bf16.mxu0 %v19281_v58 }
 0x8b6   : > { %14060 = vmatpush1.bf16.msra.mxu1 %v19198_v32 }
 0x8b7   : > { %14061 = vmatprep.subr.bf16.mxu1 %v19203_v57 }
 0x8b8   : > { %17112 = vmatpush3.bf16.msra.mxu0 %v19282_v42 }
 0x8b9   : > { %17119 = vmatprep.subr.bf16.mxu0 %v19283_v26 }
 0x8ba   : > { %14062 = vmatpush1.bf16.msra.mxu1 %v19201_v36  ;;  %v19284_v36 = vld [vmem:[#allocation10 + $0x100] sm:$0xff]  }
 0x8bb   : > { %14063 = vmatprep.subr.bf16.mxu1 %v19206_v46 }
 0x8be   : > { %14064 = vmatpush1.bf16.msra.mxu1 %v19204_v47  ;;  %v19285_v47 = vld [vmem:[#allocation10 + $0x148] sm:$0xff]  }
 0x8bf   : > { %14065 = vmatprep.subr.bf16.mxu1 %v19209_v6  ;;  %v19287_v6 = vld [vmem:[#allocation10 + $0x150] sm:$0xff]  }
 0x8c2   : > { %14066 = vmatpush1.bf16.msra.mxu1 %v19207_v37  ;;  %v19288_v37 = vld [vmem:[#allocation10 + $0x110] sm:$0xff]  }
 0x8c3   : > { %14067 = vmatprep.subr.bf16.mxu1 %v19212_v59  ;;  %v19289_v59 = vld [vmem:[#allocation10 + $0x158] sm:$0xff]  }
 0x8c6   : > { %14068 = vmatpush1.bf16.msra.mxu1 %v19210_v56  ;;  %v19290_v56 = vld [vmem:[#allocation10 + $0x118] sm:$0xff]  }
 0x8c7   : > { %14069 = vmatprep.subr.bf16.mxu1 %v19215_v25  ;;  %v19291_v25 = vld [vmem:[#allocation10 + $0x160] sm:$0xff]  }
 0x8ca   : > { %14070 = vmatpush1.bf16.msra.mxu1 %v19213_v28  ;;  %v19294_v28 = vld [vmem:[#allocation10 + $0x128] sm:$0xff]  }
 0x8cb   : > { %14071 = vmatprep.subr.bf16.mxu1 %v19218_v15 }
 0x8ce   : > { %14072 = vmatpush1.bf16.msra.mxu1 %v19216_v45 }
 0x8cf   : > { %14073 = vmatprep.subr.bf16.mxu1 %v19221_v22 }
 0x8d2   : > { %14074 = vmatpush1.bf16.msra.mxu1 %v19219_v19  ;;  %v19295_v19 = vld [vmem:[#allocation10 + $0x170] sm:$0xff]  }
 0x8d3   : > { %14075 = vmatprep.subr.bf16.mxu1 %v19224_v43  ;;  %v19296_v43 = vld [vmem:[#allocation10 + $0x130] sm:$0xff]  }
 0x8d6   : > { %14076 = vmatpush1.bf16.msra.mxu1 %v19222_v50  ;;  %v19297_v50 = vld [vmem:[#allocation10 + $0x178] sm:$0xff]  }
 0x8d7   : > { %14077 = vmatprep.subr.bf16.mxu1 %v19227_v13  ;;  %v19298_v13 = vld [vmem:[#allocation10 + $0x138] sm:$0xff]  }
 0x8da   : > { %14078 = vmatpush1.bf16.msra.mxu1 %v19225_v54  ;;  %v6528_v54 = vsub.s32 4, %v24256_v5 }
 0x8db   : > { %14079 = vmatprep.subr.bf16.mxu1 %v19230_v17  ;;  %v6532_v17 = vsub.s32 5, %v24256_v5 }
 0x8de   : > { %14080 = vmatpush1.bf16.msra.mxu1 %v19228_v55  ;;  %v6529_v55 = vrot.slane %v19301_v29, %v6528_v54 }
 0x8df   : > { %14081 = vmatprep.subr.bf16.mxu1 %v19233_v41  ;;  %v6533_v41 = vrot.slane %v19301_v29, %v6532_v17 }
 0x8e2   : > { %14082 = vmatpush1.bf16.msra.mxu1 %v19231_v1 }
 0x8e3   : > { %14083 = vmatprep.subr.bf16.mxu1 %v19236_v11 }
 0x8e6   : > { %14084 = vmatpush1.bf16.msra.mxu1 %v19234_v8 }
 0x8e7   : > { %14085 = vmatprep.subr.bf16.mxu1 %v19239_v20 }
 0x8ea   : > { %14086 = vmatpush1.bf16.msra.mxu1 %v19237_v60 }
 0x8eb   : > { %14087 = vmatprep.subr.bf16.mxu1 %v19242_v52 }
 0x8ee   : > { %14088 = vmatpush1.bf16.msra.mxu1 %v19240_v10 }
 0x8ef   : > { %14098 = vmatprep.subr.bf16.mxu1 %v19245_v51 }
 0x8f1   : > { %14090 = vmatmul.mubr.bf16.vlgmr.msra.gmra.mrb[4].mxu1 %v24228_v38  ;;  %v19258_v38 = vld [vmem:[#allocation7 + $0x2500] ss:$24 sps:$4 sm:$0xff]  }
 0x8f2   : > { %14099 = vmatpush1.bf16.msra.mxu1 %v19243_v16  ;;  %14130 = vmatprep.mubr.bf16.mxu1 %v19562_v44  ;;  %v19263_v44 = vld [vmem:[#allocation7 + $0x2530] ss:$24 sps:$4 sm:$0xff]  }
 0x8f3   : > { %14100 = vmatprep.subr.bf16.mxu1 %v19248_v48  ;;  %v16509_v48 = vld [vmem:[#allocation11] ss:$0 sm:$0xff] }
 0x8f6   : > { %14101 = vmatpush1.bf16.msra.mxu1 %v19246_v18 }
 0x8f7   : > { %14102 = vmatprep.subr.bf16.mxu1 %v19251_v12 }
 0x8fa   : > { %14103 = vmatpush1.bf16.msra.mxu1 %v19249_v3 }
 0x8fb   : > { %14104 = vmatprep.subr.bf16.mxu1 %v19254_v49 }
 0x8fe   : > { %14105 = vmatpush1.bf16.msra.mxu1 %v19252_v27 }
 0x8ff   : > { %14106 = vmatprep.subr.bf16.mxu1 %v19257_v14 }
 0x902   : > { %14107 = vmatpush1.bf16.msra.mxu1 %v19255_v34 }
 0x903   : > { %14108 = vmatprep.subr.bf16.mxu1 %v19260_v30 }
 0x906   : > { %14109 = vmatpush1.bf16.msra.mxu1 %v19258_v38 }
 0x907   : > { %14110 = vmatprep.subr.bf16.mxu1 %v19265_v24 }
 0x90a   : > { %14111 = vmatpush1.bf16.msra.mxu1 %v19263_v44 }
 0x90b   : > { %14112 = vmatprep.subr.bf16.mxu1 %v19270_v9 }
 0x90e   : > { %14113 = vmatpush1.bf16.msra.mxu1 %v19268_v0 }
 0x911   : > { %14131 = vmatmul.mubr.bf16.vlgmr.msra.gmra.mrb[4].mxu1 %v24236_v53  ;;  %v19286_v53 = vld [vmem:[#allocation10 + $0x108] sm:$0xff]  }
 0x94b   : > { %v13599_v4 = vpop.f32.mrb[56].mxu0 }
 0x94c   : > { %v17199_v61 = vadd.f32 %v13599_v4, %v6521_v63  ;;  %v13601_v21 = vpop.f32.mrb[57].mxu0 }
 0x94d   : > { %v17200_v33 = vadd.f32 %v13601_v21, %v6525_v23  ;;  %v13603_v31 = vpop.f32.mrb[58].mxu0 }
 0x94e   : > { %v14141_v62 = vmax.f32 %v17199_v61, 0.0  ;;  %v13604_v2 = vpop.f32.mrb[59].mxu0 }
 0x94f   : > { %v14142_v32 = vmax.f32 %v17200_v33, 0.0 }
 0x950   : > { %v14147_v46 = vpack.c.bf16 %v14141_v62, %v14141_v62 }
 0x951   : > { %v14148_v57 = vpack.c.bf16 %v14142_v32, %v14142_v32 }
 0x953   : > { %14614 = vmatprep.mubr.bf16.mxu0 %v14148_v57 }
 0x954   : > { %14615 = vmatmul.mubr.bf16.vlgmr.msra.gmra.mrb[64].mxu0 %v14147_v46 }
 0x955   : > { %17120 = vmatpush3.bf16.msra.mxu0 %v19284_v36 }
 0x956   : > { %17121 = vmatprep.subr.bf16.mxu0 %v19285_v47 }
 0x959   : > { %17122 = vmatpush3.bf16.msra.mxu0 %v19286_v53 }
 0x95a   : > { %17123 = vmatprep.subr.bf16.mxu0 %v19287_v6 }
 0x95d   : > { %17124 = vmatpush3.bf16.msra.mxu0 %v19288_v37 }
 0x95e   : > { %17125 = vmatprep.subr.bf16.mxu0 %v19289_v59 }
 0x961   : > { %17126 = vmatpush3.bf16.msra.mxu0 %v19290_v56 }
 0x962   : > { %17127 = vmatprep.subr.bf16.mxu0 %v19291_v25 }
 0x965   : > { %17128 = vmatpush3.bf16.msra.mxu0 %v19292_v40 }
 0x966   : > { %17129 = vmatprep.subr.bf16.mxu0 %v19293_v7 }
 0x969   : > { %17130 = vmatpush3.bf16.msra.mxu0 %v19294_v28 }
 0x96a   : > { %17131 = vmatprep.subr.bf16.mxu0 %v19295_v19 }
 0x96b   : > { %v17091_v15 = vpop.f32.mrb[60].mxu0 }
 0x96c   : > { %v17092_v58 = vpop.f32.mrb[61].mxu0 }
 0x96d   : > { %v17093_v42 = vadd.f32 %v17092_v58, %v17091_v15  ;;  %v17094_v45 = vpop.f32.mrb[62].mxu0  ;;  %17132 = vmatpush3.bf16.msra.mxu0 %v19296_v43 }
 0x96e   : > { %v17095_v22 = vpop.f32.mrb[63].mxu0  ;;  %17133 = vmatprep.subr.bf16.mxu0 %v19297_v50 }
 0x96f   : > { %v14577_v5 = vadd.f32 %v17093_v42, %v16509_v48 }
 0x971   : > { %17134 = vmatpush3.bf16.msra.mxu0 %v19298_v13 }
 0x9e4   : > { %v14132_v1 = vpop.f32.mrb[4].mxu1 }
 0x9e5   : > { %v17201_v11 = vadd.f32 %v14132_v1, %v6529_v55  ;;  %v14134_v8 = vpop.f32.mrb[5].mxu1 }
 0x9e6   : > { %v17202_v20 = vadd.f32 %v14134_v8, %v6533_v41  ;;  %v14136_v60 = vpop.f32.mrb[6].mxu1 }
 0x9e7   : > { %v14143_v52 = vmax.f32 %v17201_v11, 0.0  ;;  %v14137_v26 = vpop.f32.mrb[7].mxu1 }
 0x9e8   : > { %v14144_v10 = vmax.f32 %v17202_v20, 0.0 }
 0x9e9   : > { %v14149_v16 = vpack.c.bf16 %v14143_v52, %v14143_v52 }
 0x9ea   : > { %v14150_v51 = vpack.c.bf16 %v14144_v10, %v14144_v10 }
 0x9ec   : > { %14654 = vmatprep.mubr.bf16.mxu0 %v14150_v51 }
 0x9ed   : > { %14655 = vmatmul.mubr.bf16.vlgmr.msra.gmra.mrb[68].mxu0 %v14149_v16 }
 0xa27   : > { %v17113_v18 = vpop.f32.mrb[64].mxu0 }
 0xa28   : > { %v17114_v12 = vpop.f32.mrb[65].mxu0 }
 0xa29   : > { %v17115_v3 = vadd.f32 %v17114_v12, %v17113_v18  ;;  %v17116_v49 = vpop.f32.mrb[66].mxu0 }
 0xa2a   : > { %v17117_v27 = vpop.f32.mrb[67].mxu0 }
 0xa2b   : > { %v14617_v14 = vadd.f32 %v17115_v3, %v14577_v5 }
 0xac0   : > { %v17135_v34 = vpop.f32.mrb[68].mxu0 }
 0xac1   : > { %v17136_v30 = vpop.f32.mrb[69].mxu0 }
 0xac2   : > { %v17137_v38 = vadd.f32 %v17136_v30, %v17135_v34  ;;  %v17138_v24 = vpop.f32.mrb[70].mxu0 }
 0xac3   : > { %v17139_v44 = vpop.f32.mrb[71].mxu0 }
 0xac4   : > { %v14657_v9 = vadd.f32 %v17137_v38, %v14617_v14 }
 0xac6   : > { %14662 = vst [vmem:[%s354_s19] sm:$0xff] %v14657_v9 }
 0xac7   : > { %19483 = shalt.err (!%p19480_p6)
}
 0xac8   : > { %s19484_s13 = scalar_lea.hbm %s24311_s29, 128  ;;  %s19488_s2 = scalar_lea.hbm %s24360_s7, 256 }
 0xac9   : > { %p19485_p5 = scmp.ne.s32.totalorder %s24311_s29, %s19484_s13  ;;  %p19489_p10 = scmp.lt.u32.totalorder %s24311_s29, %s24360_s7 }
 0xaca   : > { %p19490_p2 = scmp.lt.u32.totalorder %s19488_s2, %s19484_s13  ;;  %p19492_p4 = scmp.lt.u32.totalorder %s19484_s13, %s24311_s29 }
 0xacb   : > { %p19486_p9 = pnand %p19485_p5, %p24706_p7 }
 0xacc   : > { %p19491_p3 = por %p19490_p2, %p19489_p10 }
 0xacd   : > { %p19487_p12 = pneg %p19486_p9 }
 0xace   : > { %p19493_p8 = por %p19492_p4, %p19491_p3 }
 0xad0   : > { %p19494_p11 = pnand %p19493_p8, %p19487_p12 }
 0xad2   : > { %19497 = shalt.err (!%p19494_p11)
}
 0xad3   : > { %17368 = dma.vmem_to_hbm [thread:$0]  (%p24706_p7), %s24313_s21, 128, %s24311_s29, %s14664_s14  }
 0xad4 PF: > { %p17405_p13 = scmp.ge.s32.totalorder %s19548_s27, 2  ;;  %s14689_s8 = sand.u32 1, %s19536_s24  }
 0xad5   : > { %p24707_p1 = scmp.ne.s32.totalorder %s24399_s12, 0  ;;  %s14690_s16 = scalar_lea.sflag [#allocation4], %s14689_s8 }
 0xad7   : > { %p17390_p0 = pnand %p17405_p13, %p24707_p1 }
 0xad9   : > { %19531 = dma.done.wait (!%p17390_p0), %s14690_s16, 128  }
 0xada   : > { %19533 = vsyncadd (!%p17390_p0), %s14690_s16, 4294967168  ;;  %s24708_s19 = sld [smem:[#allocation19_spill]]  ;;  %p21_p6 = scmp.ge.s32.totalorder %s19629_s30, 4  }
 0xadb   : > { %s24709_s24 = smov %s19540_s25  ;;  %s24710_s25 = smov %s19544_s26 }
 0xadc   : > { %s24712_s27 = smov %s19629_s30  ;;  %23 = sbr.rel (!%p21_p6) target bundleno = 10 (0xa), region = 112 }
 0xae0   : > { %s24711_s26 = smov %s24708_s19 }
 0xae3   :  { %14695 = vsyncpa [#allocation3], 1 }
 0xae4   :  { %14697 = vsyncpa [#allocation3 + $0x1], 1 }
 0xae5   :  { %14698 = vsyncpa [#allocation6], 1 }
 0xae6   :  { %14699 = vsyncpa [#allocation9], 1 }
 0xae7   :  { %14700 = vsyncpa [#allocation12], 1 }
 0xae8   :  { %14701 = vsyncpa [#allocation4], 1 }
 0xae9   :  { %14703 = vsyncpa [#allocation4 + $0x1], 1 }

</bundles_post_ra>
